<compile_context>
chip_gen: v7x
topology: tpu7x:2x2x1
jax: 0.10.0
libtpu: 0.0.40
codegen_flags: <defaults>
</compile_context>

<pallas_src>
import functools

import jax
import jax.numpy as jnp
from jax.experimental import pallas as pl
from jax.experimental.pallas import tpu as pltpu


# ----------------------------------------------------------------------------
# Helpers
# ----------------------------------------------------------------------------
def _round_up(x, m):
    return (x + m - 1) // m * m


def _pick_tile_m(dim, cap=512):
    # Largest tile <= cap that divides dim (dim is a multiple of 16).
    for t in (512, 256, 128, 64, 32, 16):
        if t <= cap and dim % t == 0:
            return t
    return dim


def _gemm_tiles(Mp, Kp, OCp):
    tm = _pick_tile_m(Mp, 512)
    tn = 256 if OCp % 256 == 0 else 128
    tk = 128
    for t in range(min(Kp, 1024), 127, -128):
        if Kp % t == 0:
            tk = t
            break
    # Guarantee >=2 blocks across the parallel axes (keeps both v7x TCs busy).
    while (Mp // tm) * (OCp // tn) < 2:
        if tn > 128:
            tn //= 2
        elif tm > 16:
            tm //= 2
        else:
            break
    return tm, tn, tk


# ----------------------------------------------------------------------------
# Pallas kernels
# ----------------------------------------------------------------------------
def _gemm_bn_kernel(a_ref, w_ref, s_ref, b_ref, o_ref, acc_ref, *, relu):
    # bf16 (tm,tk)@(tk,tn) on the MXU, f32 accumulate in VMEM scratch,
    # fused BN affine + optional ReLU epilogue (VPU), bf16 store.
    k = pl.program_id(2)

    @pl.when(k == 0)
    def _():
        acc_ref[...] = jnp.zeros_like(acc_ref)

    acc_ref[...] += jnp.dot(a_ref[...], w_ref[...],
                            preferred_element_type=jnp.float32)

    @pl.when(k == pl.num_programs(2) - 1)
    def _():
        y = acc_ref[...] * s_ref[...] + b_ref[...]
        if relu:
            y = jnp.maximum(y, 0.0)
        o_ref[...] = y.astype(o_ref.dtype)


def _gemm_bn_res_kernel(a_ref, w_ref, s_ref, b_ref, r_ref, o_ref, acc_ref, *, relu):
    # Same as above, plus fused residual add (f32) before the ReLU.
    k = pl.program_id(2)

    @pl.when(k == 0)
    def _():
        acc_ref[...] = jnp.zeros_like(acc_ref)

    acc_ref[...] += jnp.dot(a_ref[...], w_ref[...],
                            preferred_element_type=jnp.float32)

    @pl.when(k == pl.num_programs(2) - 1)
    def _():
        y = acc_ref[...] * s_ref[...] + b_ref[...] + r_ref[...].astype(jnp.float32)
        if relu:
            y = jnp.maximum(y, 0.0)
        o_ref[...] = y.astype(o_ref.dtype)


def _max_reduce_kernel(x_ref, o_ref):
    # x: (9, tm, C) stacked bf16 pooling taps -> max over taps (VPU), lane-dense C.
    o_ref[...] = jnp.max(x_ref[...], axis=0)


def _avgpool_kernel(x_ref, o_ref):
    # x: (1, HW, C) bf16 -> f32 mean over spatial (lane-dense C output).
    o_ref[...] = jnp.mean(x_ref[...].astype(jnp.float32), axis=1, keepdims=True)


# ----------------------------------------------------------------------------
# GEMM + BN (+residual) (+ReLU) wrapper
# ----------------------------------------------------------------------------
def _gemm_bn(a, w, scale_p, bias_p, relu, residual=None):
    """a:(M,K) bf16, w:(Kp,OCp) bf16 (pre-packed), scale/bias:(1,OCp) f32,
    residual:(M,OCp) bf16 | None. Returns (M, OCp) bf16."""
    M, K = a.shape
    Kp, OCp = w.shape
    Mp = _round_up(M, 16)  # bf16 packs 16 rows per sublane group

    a_p = a
    if Mp != M or Kp != K:
        a_p = jnp.pad(a, ((0, Mp - M), (0, Kp - K)))

    tm, tn, tk = _gemm_tiles(Mp, Kp, OCp)

    in_specs = [
        pl.BlockSpec((tm, tk), lambda i, j, k: (i, k)),
        pl.BlockSpec((tk, tn), lambda i, j, k: (k, j)),
        pl.BlockSpec((1, tn), lambda i, j, k: (0, j)),
        pl.BlockSpec((1, tn), lambda i, j, k: (0, j)),
    ]
    operands = [a_p, w, scale_p, bias_p]
    bytes_accessed = (Mp * Kp + Kp * OCp) * 2 + OCp * 8 + Mp * OCp * 2

    if residual is not None:
        r_p = residual
        if Mp != M:
            r_p = jnp.pad(r_p, ((0, Mp - M), (0, 0)))
        in_specs.append(pl.BlockSpec((tm, tn), lambda i, j, k: (i, j)))
        operands.append(r_p)
        bytes_accessed += Mp * OCp * 2
        kern = functools.partial(_gemm_bn_res_kernel, relu=relu)
    else:
        kern = functools.partial(_gemm_bn_kernel, relu=relu)

    grid = (Mp // tm, OCp // tn, Kp // tk)

    out = pl.pallas_call(
        kern,
        out_shape=jax.ShapeDtypeStruct((Mp, OCp), jnp.bfloat16),
        grid=grid,
        in_specs=in_specs,
        out_specs=pl.BlockSpec((tm, tn), lambda i, j, k: (i, j)),
        scratch_shapes=[pltpu.VMEM((tm, tn), jnp.float32)],
        compiler_params=pltpu.CompilerParams(
            dimension_semantics=("parallel", "parallel", "arbitrary")),
        cost_estimate=pl.CostEstimate(
            flops=2 * Mp * Kp * OCp,
            transcendentals=0,
            bytes_accessed=int(bytes_accessed)),
    )(*operands)

    if Mp != M:
        out = out[:M]
    return out


# ----------------------------------------------------------------------------
# Glue: im2col patch extraction (data movement only), layer wrappers (NHWC bf16)
# ----------------------------------------------------------------------------
def _im2col_nhwc(x, kh, kw, stride, pad):
    # x: (N, H, W, C) bf16 -> patches (N*OH*OW, KH*KW*C), K ordered (kh, kw, c).
    N, H, W, C = x.shape
    xp = jnp.pad(x, ((0, 0), (pad, pad), (pad, pad), (0, 0))) if pad else x
    OH = (H + 2 * pad - kh) // stride + 1
    OW = (W + 2 * pad - kw) // stride + 1
    taps = []
    for i in range(kh):
        for j in range(kw):
            taps.append(xp[:, i:i + stride * OH:stride, j:j + stride * OW:stride, :])
    p = jnp.stack(taps, axis=3)  # (N, OH, OW, KH*KW, C)
    return p.reshape(N * OH * OW, kh * kw * C), OH, OW


def conv_bn(x, params, prefix, kh, kw, stride, pad, relu, residual=None):
    """Conv2d(bias=False) + BatchNorm(inference) [+ residual] [+ ReLU], NHWC bf16.

    Weights are pre-packed (Kp, OCp) bf16; activations carry channel-padded OCp.
    """
    N, H, W, C = x.shape
    w = params[prefix + "_w"]
    s = params[prefix + "_s"]
    b = params[prefix + "_b"]
    OCp = w.shape[1]
    patches, OH, OW = _im2col_nhwc(x, kh, kw, stride, pad)
    res = None
    if residual is not None:
        res = residual.reshape(N * OH * OW, OCp)
    y = _gemm_bn(patches, w, s, b, relu, res)
    return y.reshape(N, OH, OW, OCp)


def maxpool_3x3_s2(x):
    # x: (N, H, W, C) bf16 (C is a multiple of 128 -> lane-dense) -> (N, OH, OW, C).
    N, H, W, C = x.shape
    neg = jnp.array(-jnp.inf, dtype=x.dtype)
    xp = jnp.pad(x, ((0, 0), (1, 1), (1, 1), (0, 0)), constant_values=neg)
    OH = (H + 2 - 3) // 2 + 1
    OW = (W + 2 - 3) // 2 + 1
    taps = [xp[:, i:i + 2 * OH:2, j:j + 2 * OW:2, :]
            for i in range(3) for j in range(3)]
    stacked = jnp.stack(taps, axis=0).reshape(9, N * OH * OW, C)

    M = N * OH * OW
    Mp = _round_up(M, 16)
    if Mp != M:
        stacked = jnp.pad(stacked, ((0, 0), (0, Mp - M), (0, 0)),
                          constant_values=neg)
    tm = _pick_tile_m(Mp, 512)

    out = pl.pallas_call(
        _max_reduce_kernel,
        out_shape=jax.ShapeDtypeStruct((Mp, C), x.dtype),
        grid=(Mp // tm,),
        in_specs=[pl.BlockSpec((9, tm, C), lambda i: (0, i, 0))],
        out_specs=pl.BlockSpec((tm, C), lambda i: (i, 0)),
        compiler_params=pltpu.CompilerParams(dimension_semantics=("parallel",)),
    )(stacked)
    if Mp != M:
        out = out[:M]
    return out.reshape(N, OH, OW, C)


def global_avgpool(x):
    # x: (N, H, W, C) NHWC bf16 -> (N, C, 1, 1) NCHW f32 (final output layout).
    N, H, W, C = x.shape
    xf = x.reshape(N, H * W, C)
    out = pl.pallas_call(
        _avgpool_kernel,
        out_shape=jax.ShapeDtypeStruct((N, 1, C), jnp.float32),
        grid=(N,),
        in_specs=[pl.BlockSpec((1, H * W, C), lambda i: (i, 0, 0))],
        out_specs=pl.BlockSpec((1, 1, C), lambda i: (i, 0, 0)),
        compiler_params=pltpu.CompilerParams(dimension_semantics=("parallel",)),
    )(xf)
    return out.reshape(N, C, 1, 1)


# ----------------------------------------------------------------------------
# ResNet-34 feature extractor (Model(model_choose='34'))
# ----------------------------------------------------------------------------
_BASE_KEY = jax.random.PRNGKey(0)
_KEY_CTR = [0]


def _next_key():
    _KEY_CTR[0] += 1
    return jax.random.fold_in(_BASE_KEY, _KEY_CTR[0])


def _conv_init(oc, ic, kh, kw):
    fan_in = ic * kh * kw
    return jax.random.normal(_next_key(), (oc, ic, kh, kw), jnp.float32) * (2.0 / fan_in) ** 0.5


def _bn_init(c, eps=1e-5):
    gamma = 1.0 + 0.1 * jax.random.normal(_next_key(), (c,), jnp.float32)
    beta = 0.1 * jax.random.normal(_next_key(), (c,), jnp.float32)
    mean = 0.1 * jax.random.normal(_next_key(), (c,), jnp.float32)
    var = jnp.abs(1.0 + 0.1 * jax.random.normal(_next_key(), (c,), jnp.float32))
    scale = gamma / jnp.sqrt(var + eps)
    bias = beta - mean * scale
    return scale, bias


def _pack(prefix, w, scale, bias, ic_pad):
    # Pack weights into GEMM layout (Kp, OCp) bf16 once at build time; pad BN affine.
    OC, IC, KH, KW = w.shape
    if ic_pad > IC:
        w = jnp.pad(w, ((0, 0), (0, ic_pad - IC), (0, 0), (0, 0)))
    K = KH * KW * ic_pad
    Kp = _round_up(K, 128)
    OCp = _round_up(OC, 128)
    wm = w.transpose(2, 3, 1, 0).reshape(K, OC)
    wm = jnp.pad(wm, ((0, Kp - K), (0, OCp - OC))).astype(jnp.bfloat16)
    s = jnp.pad(scale.reshape(1, OC).astype(jnp.float32), ((0, 0), (0, OCp - OC)))
    b = jnp.pad(bias.reshape(1, OC).astype(jnp.float32), ((0, 0), (0, OCp - OC)))
    return {prefix + "_w": wm, prefix + "_s": s, prefix + "_b": b}


def build_resnet34_params():
    # TODO(synk): pretrained ImageNet weights are not available in-script; random init.
    params = {}
    w = _conv_init(64, 3, 7, 7)
    s, b = _bn_init(64)
    params.update(_pack("stem", w, s, b, ic_pad=3))

    cfg = []
    in_c = 64
    for li, (out_c, nblocks) in enumerate([(64, 3), (128, 4), (256, 6), (512, 3)]):
        for bi in range(nblocks):
            stride = 2 if (bi == 0 and li > 0) else 1
            has_ds = (stride != 1) or (in_c != out_c)
            name = f"l{li}b{bi}"
            icp = _round_up(in_c, 128)       # activations carried channel-padded
            ocp = _round_up(out_c, 128)
            w1 = _conv_init(out_c, in_c, 3, 3)
            s1, b1 = _bn_init(out_c)
            params.update(_pack(name + "_c1", w1, s1, b1, ic_pad=icp))
            w2 = _conv_init(out_c, out_c, 3, 3)
            s2, b2 = _bn_init(out_c)
            params.update(_pack(name + "_c2", w2, s2, b2, ic_pad=ocp))
            if has_ds:
                wd = _conv_init(out_c, in_c, 1, 1)
                sd, bd = _bn_init(out_c)
                params.update(_pack(name + "_ds", wd, sd, bd, ic_pad=icp))
            cfg.append((name, stride, has_ds))
            in_c = out_c
    return params, tuple(cfg)


def resnet34_features(x, params, cfg):
    # Single layout/dtype change at the boundary: NCHW f32 -> NHWC bf16 internal.
    x = x.transpose(0, 2, 3, 1).astype(jnp.bfloat16)
    # stem
    x = conv_bn(x, params, "stem", kh=7, kw=7, stride=2, pad=3, relu=True)
    x = maxpool_3x3_s2(x)
    # basic blocks
    for (name, stride, has_ds) in cfg:
        identity = x
        out = conv_bn(x, params, name + "_c1", kh=3, kw=3, stride=stride, pad=1,
                      relu=True)
        if has_ds:
            identity = conv_bn(x, params, name + "_ds", kh=1, kw=1, stride=stride,
                               pad=0, relu=False)
        x = conv_bn(out, params, name + "_c2", kh=3, kw=3, stride=1, pad=1,
                    relu=True, residual=identity)
    # global average pool -> (N, 512, 1, 1) f32
    return global_avgpool(x)


if __name__ == "__main__":
    params, cfg = build_resnet34_params()
    data = jax.random.normal(jax.random.PRNGKey(0), (2, 3, 32, 32), jnp.float32)

    fwd = jax.jit(functools.partial(resnet34_features, cfg=cfg))
    out = fwd(data, params)
    out = jax.block_until_ready(out)

    assert out.shape == (2, 512, 1, 1), out.shape
    assert out.dtype == jnp.float32
    assert bool(jnp.all(jnp.isfinite(out)))
    print("KERNEL_OK")
</pallas_src>

<mosaic_0001>
module attributes {stable_mosaic.version = 11 : i64} {
  func.func @_gemm_bn_kernel(%arg0: i32, %arg1: i32, %arg2: i32, %arg3: memref<256x256xbf16, #tpu.memory_space<vmem>>, %arg4: memref<256x128xbf16, #tpu.memory_space<vmem>>, %arg5: memref<1x128xf32, #tpu.memory_space<vmem>>, %arg6: memref<1x128xf32, #tpu.memory_space<vmem>>, %arg7: memref<256x128xbf16, #tpu.memory_space<vmem>>, %arg8: memref<256x128xf32, #tpu.memory_space<vmem>>) attributes {dimension_semantics = [#tpu.dimension_semantics<parallel>, #tpu.dimension_semantics<parallel>, #tpu.dimension_semantics<arbitrary>], iteration_bounds = array<i64: 2, 1, 1>, scalar_prefetch = 0 : i64, scratch_operands = 1 : i64, tpu.core_type = #tpu.core_type<tc>, window_params = [{transform_indices = @transform_0, window_bounds = array<i64: 256, 256>}, {transform_indices = @transform_1, window_bounds = array<i64: 256, 128>}, {transform_indices = @transform_2, window_bounds = array<i64: 1, 128>}, {transform_indices = @transform_3, window_bounds = array<i64: 1, 128>}, {transform_indices = @transform_4, window_bounds = array<i64: 256, 128>}]} {
    %c0_i32 = arith.constant 0 : i32
    %0 = arith.cmpi eq, %arg2, %c0_i32 : i32
    %1 = arith.extui %0 : i1 to i32
    %c0_i32_0 = arith.constant 0 : i32
    %2 = arith.cmpi ne, %1, %c0_i32_0 : i32
    scf.if %2 {
      %cst_10 = arith.constant 0.000000e+00 : f32
      %12 = vector.broadcast %cst_10 : f32 to vector<256x128xf32>
      %c0_11 = arith.constant 0 : index
      %c0_12 = arith.constant 0 : index
      %13 = vector.load %arg8[%c0_11, %c0_12] : memref<256x128xf32, #tpu.memory_space<vmem>>, vector<256x128xf32>
      tpu.vector_store %arg8[%c0_11, %c0_12], %12 {strides = array<i32>} : memref<256x128xf32, #tpu.memory_space<vmem>>, vector<256x128xf32>,
    } else {
    }
    %c0 = arith.constant 0 : index
    %c0_1 = arith.constant 0 : index
    %3 = vector.load %arg8[%c0, %c0_1] : memref<256x128xf32, #tpu.memory_space<vmem>>, vector<256x128xf32>
    %c0_2 = arith.constant 0 : index
    %c0_3 = arith.constant 0 : index
    %4 = vector.load %arg3[%c0_2, %c0_3] : memref<256x256xbf16, #tpu.memory_space<vmem>>, vector<256x256xbf16>
    %c0_4 = arith.constant 0 : index
    %c0_5 = arith.constant 0 : index
    %5 = vector.load %arg4[%c0_4, %c0_5] : memref<256x128xbf16, #tpu.memory_space<vmem>>, vector<256x128xbf16>
    %cst = arith.constant dense<0.000000e+00> : vector<256x128xf32>
    %6 = tpu.matmul %4, %5, %cst {dimension_numbers = #tpu.dot_dimension_numbers<[1], [0], [0], [1], [0, 0, 1, 1], [], []>} : vector<256x256xbf16>, vector<256x128xbf16>, vector<256x128xf32> -> vector<256x128xf32>
    %7 = arith.addf %3, %6 : vector<256x128xf32>
    %c0_6 = arith.constant 0 : index
    %c0_7 = arith.constant 0 : index
    %8 = vector.load %arg8[%c0_6, %c0_7] : memref<256x128xf32, #tpu.memory_space<vmem>>, vector<256x128xf32>
    tpu.vector_store %arg8[%c0_6, %c0_7], %7 {strides = array<i32>} : memref<256x128xf32, #tpu.memory_space<vmem>>, vector<256x128xf32>,
    %c0_i32_8 = arith.constant 0 : i32
    %9 = arith.cmpi eq, %arg2, %c0_i32_8 : i32
    %10 = arith.extui %9 : i1 to i32
    %c0_i32_9 = arith.constant 0 : i32
    %11 = arith.cmpi ne, %10, %c0_i32_9 : i32
    scf.if %11 {
      %c0_10 = arith.constant 0 : index
      %c0_11 = arith.constant 0 : index
      %12 = vector.load %arg8[%c0_10, %c0_11] : memref<256x128xf32, #tpu.memory_space<vmem>>, vector<256x128xf32>
      %c0_12 = arith.constant 0 : index
      %c0_13 = arith.constant 0 : index
      %13 = vector.load %arg5[%c0_12, %c0_13] : memref<1x128xf32, #tpu.memory_space<vmem>>, vector<1x128xf32>
      %14 = vector.broadcast %13 : vector<1x128xf32> to vector<256x128xf32>
      %15 = arith.mulf %12, %14 : vector<256x128xf32>
      %c0_14 = arith.constant 0 : index
      %c0_15 = arith.constant 0 : index
      %16 = vector.load %arg6[%c0_14, %c0_15] : memref<1x128xf32, #tpu.memory_space<vmem>>, vector<1x128xf32>
      %17 = vector.broadcast %16 : vector<1x128xf32> to vector<256x128xf32>
      %18 = arith.addf %15, %17 : vector<256x128xf32>
      %cst_16 = arith.constant 0.000000e+00 : f32
      %19 = vector.broadcast %cst_16 : f32 to vector<256x128xf32>
      %20 = arith.maximumf %18, %19 : vector<256x128xf32>
      %21 = arith.truncf %20 : vector<256x128xf32> to vector<256x128xbf16>
      %c0_17 = arith.constant 0 : index
      %c0_18 = arith.constant 0 : index
      %22 = vector.load %arg7[%c0_17, %c0_18] : memref<256x128xbf16, #tpu.memory_space<vmem>>, vector<256x128xbf16>
      tpu.vector_store %arg7[%c0_17, %c0_18], %21 {strides = array<i32>} : memref<256x128xbf16, #tpu.memory_space<vmem>>, vector<256x128xbf16>,
    } else {
    }
    return
  }
  func.func @transform_0(%arg0: i32, %arg1: i32, %arg2: i32) -> (i32, i32) {
    %c0_i32 = arith.constant 0 : i32
    return %arg0, %arg2 : i32, i32
  }
  func.func @transform_1(%arg0: i32, %arg1: i32, %arg2: i32) -> (i32, i32) {
    %c0_i32 = arith.constant 0 : i32
    return %arg2, %arg1 : i32, i32
  }
  func.func @transform_2(%arg0: i32, %arg1: i32, %arg2: i32) -> (i32, i32) {
    %c0_i32 = arith.constant 0 : i32
    %c0_i32_0 = arith.constant 0 : i32
    return %c0_i32, %arg1 : i32, i32
  }
  func.func @transform_3(%arg0: i32, %arg1: i32, %arg2: i32) -> (i32, i32) {
    %c0_i32 = arith.constant 0 : i32
    %c0_i32_0 = arith.constant 0 : i32
    return %c0_i32, %arg1 : i32, i32
  }
  func.func @transform_4(%arg0: i32, %arg1: i32, %arg2: i32) -> (i32, i32) {
    %c0_i32 = arith.constant 0 : i32
    return %arg0, %arg1 : i32, i32
  }
}

module attributes {stable_mosaic.version = 11 : i64} {
  func.func @_max_reduce_kernel(%arg0: i32, %arg1: memref<9x128x128xbf16, #tpu.memory_space<vmem>>, %arg2: memref<128x128xbf16, #tpu.memory_space<vmem>>) attributes {dimension_semantics = [#tpu.dimension_semantics<parallel>], iteration_bounds = array<i64: 1>, scalar_prefetch = 0 : i64, scratch_operands = 0 : i64, tpu.core_type = #tpu.core_type<tc>, window_params = [{transform_indices = @transform_0, window_bounds = array<i64: 9, 128, 128>}, {transform_indices = @transform_1, window_bounds = array<i64: 128, 128>}]} {
    %c0 = arith.constant 0 : index
    %c0_0 = arith.constant 0 : index
    %c0_1 = arith.constant 0 : index
    %0 = vector.load %arg1[%c0, %c0_0, %c0_1] : memref<9x128x128xbf16, #tpu.memory_space<vmem>>, vector<9x128x128xbf16>
    %cst = arith.constant dense<0xFF80> : vector<128x128xbf16>
    %1 = vector.multi_reduction <maximumf>, %0, %cst [0] : vector<9x128x128xbf16> to vector<128x128xbf16>
    %c0_2 = arith.constant 0 : index
    %c0_3 = arith.constant 0 : index
    %2 = vector.load %arg2[%c0_2, %c0_3] : memref<128x128xbf16, #tpu.memory_space<vmem>>, vector<128x128xbf16>
    tpu.vector_store %arg2[%c0_2, %c0_3], %1 {strides = array<i32>} : memref<128x128xbf16, #tpu.memory_space<vmem>>, vector<128x128xbf16>,
    return
  }
  func.func @transform_0(%arg0: i32) -> (i32, i32, i32) {
    %c0_i32 = arith.constant 0 : i32
    %c0_i32_0 = arith.constant 0 : i32
    %c0_i32_1 = arith.constant 0 : i32
    return %c0_i32, %arg0, %c0_i32_0 : i32, i32, i32
  }
  func.func @transform_1(%arg0: i32) -> (i32, i32) {
    %c0_i32 = arith.constant 0 : i32
    %c0_i32_0 = arith.constant 0 : i32
    return %arg0, %c0_i32 : i32, i32
  }
}

module attributes {stable_mosaic.version = 11 : i64} {
  func.func @_gemm_bn_res_kernel(%arg0: i32, %arg1: i32, %arg2: i32, %arg3: memref<64x384xbf16, #tpu.memory_space<vmem>>, %arg4: memref<384x128xbf16, #tpu.memory_space<vmem>>, %arg5: memref<1x128xf32, #tpu.memory_space<vmem>>, %arg6: memref<1x128xf32, #tpu.memory_space<vmem>>, %arg7: memref<64x128xbf16, #tpu.memory_space<vmem>>, %arg8: memref<64x128xbf16, #tpu.memory_space<vmem>>, %arg9: memref<64x128xf32, #tpu.memory_space<vmem>>) attributes {dimension_semantics = [#tpu.dimension_semantics<parallel>, #tpu.dimension_semantics<parallel>, #tpu.dimension_semantics<arbitrary>], iteration_bounds = array<i64: 2, 1, 3>, scalar_prefetch = 0 : i64, scratch_operands = 1 : i64, tpu.core_type = #tpu.core_type<tc>, window_params = [{transform_indices = @transform_0, window_bounds = array<i64: 64, 384>}, {transform_indices = @transform_1, window_bounds = array<i64: 384, 128>}, {transform_indices = @transform_2, window_bounds = array<i64: 1, 128>}, {transform_indices = @transform_3, window_bounds = array<i64: 1, 128>}, {transform_indices = @transform_4, window_bounds = array<i64: 64, 128>}, {transform_indices = @transform_5, window_bounds = array<i64: 64, 128>}]} {
    %c0_i32 = arith.constant 0 : i32
    %0 = arith.cmpi eq, %arg2, %c0_i32 : i32
    %1 = arith.extui %0 : i1 to i32
    %c0_i32_0 = arith.constant 0 : i32
    %2 = arith.cmpi ne, %1, %c0_i32_0 : i32
    scf.if %2 {
      %cst_9 = arith.constant 0.000000e+00 : f32
      %12 = vector.broadcast %cst_9 : f32 to vector<64x128xf32>
      %c0_10 = arith.constant 0 : index
      %c0_11 = arith.constant 0 : index
      %13 = vector.load %arg9[%c0_10, %c0_11] : memref<64x128xf32, #tpu.memory_space<vmem>>, vector<64x128xf32>
      tpu.vector_store %arg9[%c0_10, %c0_11], %12 {strides = array<i32>} : memref<64x128xf32, #tpu.memory_space<vmem>>, vector<64x128xf32>,
    } else {
    }
    %c0 = arith.constant 0 : index
    %c0_1 = arith.constant 0 : index
    %3 = vector.load %arg9[%c0, %c0_1] : memref<64x128xf32, #tpu.memory_space<vmem>>, vector<64x128xf32>
    %c0_2 = arith.constant 0 : index
    %c0_3 = arith.constant 0 : index
    %4 = vector.load %arg3[%c0_2, %c0_3] : memref<64x384xbf16, #tpu.memory_space<vmem>>, vector<64x384xbf16>
    %c0_4 = arith.constant 0 : index
    %c0_5 = arith.constant 0 : index
    %5 = vector.load %arg4[%c0_4, %c0_5] : memref<384x128xbf16, #tpu.memory_space<vmem>>, vector<384x128xbf16>
    %cst = arith.constant dense<0.000000e+00> : vector<64x128xf32>
    %6 = tpu.matmul %4, %5, %cst {dimension_numbers = #tpu.dot_dimension_numbers<[1], [0], [0], [1], [0, 0, 1, 1], [], []>} : vector<64x384xbf16>, vector<384x128xbf16>, vector<64x128xf32> -> vector<64x128xf32>
    %7 = arith.addf %3, %6 : vector<64x128xf32>
    %c0_6 = arith.constant 0 : index
    %c0_7 = arith.constant 0 : index
    %8 = vector.load %arg9[%c0_6, %c0_7] : memref<64x128xf32, #tpu.memory_space<vmem>>, vector<64x128xf32>
    tpu.vector_store %arg9[%c0_6, %c0_7], %7 {strides = array<i32>} : memref<64x128xf32, #tpu.memory_space<vmem>>, vector<64x128xf32>,
    %c2_i32 = arith.constant 2 : i32
    %9 = arith.cmpi eq, %arg2, %c2_i32 : i32
    %10 = arith.extui %9 : i1 to i32
    %c0_i32_8 = arith.constant 0 : i32
    %11 = arith.cmpi ne, %10, %c0_i32_8 : i32
    scf.if %11 {
      %c0_9 = arith.constant 0 : index
      %c0_10 = arith.constant 0 : index
      %12 = vector.load %arg9[%c0_9, %c0_10] : memref<64x128xf32, #tpu.memory_space<vmem>>, vector<64x128xf32>
      %c0_11 = arith.constant 0 : index
      %c0_12 = arith.constant 0 : index
      %13 = vector.load %arg5[%c0_11, %c0_12] : memref<1x128xf32, #tpu.memory_space<vmem>>, vector<1x128xf32>
      %14 = vector.broadcast %13 : vector<1x128xf32> to vector<64x128xf32>
      %15 = arith.mulf %12, %14 : vector<64x128xf32>
      %c0_13 = arith.constant 0 : index
      %c0_14 = arith.constant 0 : index
      %16 = vector.load %arg6[%c0_13, %c0_14] : memref<1x128xf32, #tpu.memory_space<vmem>>, vector<1x128xf32>
      %17 = vector.broadcast %16 : vector<1x128xf32> to vector<64x128xf32>
      %18 = arith.addf %15, %17 : vector<64x128xf32>
      %c0_15 = arith.constant 0 : index
      %c0_16 = arith.constant 0 : index
      %19 = vector.load %arg7[%c0_15, %c0_16] : memref<64x128xbf16, #tpu.memory_space<vmem>>, vector<64x128xbf16>
      %20 = arith.extf %19 : vector<64x128xbf16> to vector<64x128xf32>
      %21 = arith.addf %18, %20 : vector<64x128xf32>
      %cst_17 = arith.constant 0.000000e+00 : f32
      %22 = vector.broadcast %cst_17 : f32 to vector<64x128xf32>
      %23 = arith.maximumf %21, %22 : vector<64x128xf32>
      %24 = arith.truncf %23 : vector<64x128xf32> to vector<64x128xbf16>
      %c0_18 = arith.constant 0 : index
      %c0_19 = arith.constant 0 : index
      %25 = vector.load %arg8[%c0_18, %c0_19] : memref<64x128xbf16, #tpu.memory_space<vmem>>, vector<64x128xbf16>
      tpu.vector_store %arg8[%c0_18, %c0_19], %24 {strides = array<i32>} : memref<64x128xbf16, #tpu.memory_space<vmem>>, vector<64x128xbf16>,
    } else {
    }
    return
  }
  func.func @transform_0(%arg0: i32, %arg1: i32, %arg2: i32) -> (i32, i32) {
    %c0_i32 = arith.constant 0 : i32
    return %arg0, %arg2 : i32, i32
  }
  func.func @transform_1(%arg0: i32, %arg1: i32, %arg2: i32) -> (i32, i32) {
    %c0_i32 = arith.constant 0 : i32
    return %arg2, %arg1 : i32, i32
  }
  func.func @transform_2(%arg0: i32, %arg1: i32, %arg2: i32) -> (i32, i32) {
    %c0_i32 = arith.constant 0 : i32
    %c0_i32_0 = arith.constant 0 : i32
    return %c0_i32, %arg1 : i32, i32
  }
  func.func @transform_3(%arg0: i32, %arg1: i32, %arg2: i32) -> (i32, i32) {
    %c0_i32 = arith.constant 0 : i32
    %c0_i32_0 = arith.constant 0 : i32
    return %c0_i32, %arg1 : i32, i32
  }
  func.func @transform_4(%arg0: i32, %arg1: i32, %arg2: i32) -> (i32, i32) {
    %c0_i32 = arith.constant 0 : i32
    return %arg0, %arg1 : i32, i32
  }
  func.func @transform_5(%arg0: i32, %arg1: i32, %arg2: i32) -> (i32, i32) {
    %c0_i32 = arith.constant 0 : i32
    return %arg0, %arg1 : i32, i32
  }
}

module attributes {stable_mosaic.version = 11 : i64} {
  func.func @_gemm_bn_kernel(%arg0: i32, %arg1: i32, %arg2: i32, %arg3: memref<64x384xbf16, #tpu.memory_space<vmem>>, %arg4: memref<384x128xbf16, #tpu.memory_space<vmem>>, %arg5: memref<1x128xf32, #tpu.memory_space<vmem>>, %arg6: memref<1x128xf32, #tpu.memory_space<vmem>>, %arg7: memref<64x128xbf16, #tpu.memory_space<vmem>>, %arg8: memref<64x128xf32, #tpu.memory_space<vmem>>) attributes {dimension_semantics = [#tpu.dimension_semantics<parallel>, #tpu.dimension_semantics<parallel>, #tpu.dimension_semantics<arbitrary>], iteration_bounds = array<i64: 2, 1, 3>, scalar_prefetch = 0 : i64, scratch_operands = 1 : i64, tpu.core_type = #tpu.core_type<tc>, window_params = [{transform_indices = @transform_0, window_bounds = array<i64: 64, 384>}, {transform_indices = @transform_1, window_bounds = array<i64: 384, 128>}, {transform_indices = @transform_2, window_bounds = array<i64: 1, 128>}, {transform_indices = @transform_3, window_bounds = array<i64: 1, 128>}, {transform_indices = @transform_4, window_bounds = array<i64: 64, 128>}]} {
    %c0_i32 = arith.constant 0 : i32
    %0 = arith.cmpi eq, %arg2, %c0_i32 : i32
    %1 = arith.extui %0 : i1 to i32
    %c0_i32_0 = arith.constant 0 : i32
    %2 = arith.cmpi ne, %1, %c0_i32_0 : i32
    scf.if %2 {
      %cst_9 = arith.constant 0.000000e+00 : f32
      %12 = vector.broadcast %cst_9 : f32 to vector<64x128xf32>
      %c0_10 = arith.constant 0 : index
      %c0_11 = arith.constant 0 : index
      %13 = vector.load %arg8[%c0_10, %c0_11] : memref<64x128xf32, #tpu.memory_space<vmem>>, vector<64x128xf32>
      tpu.vector_store %arg8[%c0_10, %c0_11], %12 {strides = array<i32>} : memref<64x128xf32, #tpu.memory_space<vmem>>, vector<64x128xf32>,
    } else {
    }
    %c0 = arith.constant 0 : index
    %c0_1 = arith.constant 0 : index
    %3 = vector.load %arg8[%c0, %c0_1] : memref<64x128xf32, #tpu.memory_space<vmem>>, vector<64x128xf32>
    %c0_2 = arith.constant 0 : index
    %c0_3 = arith.constant 0 : index
    %4 = vector.load %arg3[%c0_2, %c0_3] : memref<64x384xbf16, #tpu.memory_space<vmem>>, vector<64x384xbf16>
    %c0_4 = arith.constant 0 : index
    %c0_5 = arith.constant 0 : index
    %5 = vector.load %arg4[%c0_4, %c0_5] : memref<384x128xbf16, #tpu.memory_space<vmem>>, vector<384x128xbf16>
    %cst = arith.constant dense<0.000000e+00> : vector<64x128xf32>
    %6 = tpu.matmul %4, %5, %cst {dimension_numbers = #tpu.dot_dimension_numbers<[1], [0], [0], [1], [0, 0, 1, 1], [], []>} : vector<64x384xbf16>, vector<384x128xbf16>, vector<64x128xf32> -> vector<64x128xf32>
    %7 = arith.addf %3, %6 : vector<64x128xf32>
    %c0_6 = arith.constant 0 : index
    %c0_7 = arith.constant 0 : index
    %8 = vector.load %arg8[%c0_6, %c0_7] : memref<64x128xf32, #tpu.memory_space<vmem>>, vector<64x128xf32>
    tpu.vector_store %arg8[%c0_6, %c0_7], %7 {strides = array<i32>} : memref<64x128xf32, #tpu.memory_space<vmem>>, vector<64x128xf32>,
    %c2_i32 = arith.constant 2 : i32
    %9 = arith.cmpi eq, %arg2, %c2_i32 : i32
    %10 = arith.extui %9 : i1 to i32
    %c0_i32_8 = arith.constant 0 : i32
    %11 = arith.cmpi ne, %10, %c0_i32_8 : i32
    scf.if %11 {
      %c0_9 = arith.constant 0 : index
      %c0_10 = arith.constant 0 : index
      %12 = vector.load %arg8[%c0_9, %c0_10] : memref<64x128xf32, #tpu.memory_space<vmem>>, vector<64x128xf32>
      %c0_11 = arith.constant 0 : index
      %c0_12 = arith.constant 0 : index
      %13 = vector.load %arg5[%c0_11, %c0_12] : memref<1x128xf32, #tpu.memory_space<vmem>>, vector<1x128xf32>
      %14 = vector.broadcast %13 : vector<1x128xf32> to vector<64x128xf32>
      %15 = arith.mulf %12, %14 : vector<64x128xf32>
      %c0_13 = arith.constant 0 : index
      %c0_14 = arith.constant 0 : index
      %16 = vector.load %arg6[%c0_13, %c0_14] : memref<1x128xf32, #tpu.memory_space<vmem>>, vector<1x128xf32>
      %17 = vector.broadcast %16 : vector<1x128xf32> to vector<64x128xf32>
      %18 = arith.addf %15, %17 : vector<64x128xf32>
      %cst_15 = arith.constant 0.000000e+00 : f32
      %19 = vector.broadcast %cst_15 : f32 to vector<64x128xf32>
      %20 = arith.maximumf %18, %19 : vector<64x128xf32>
      %21 = arith.truncf %20 : vector<64x128xf32> to vector<64x128xbf16>
      %c0_16 = arith.constant 0 : index
      %c0_17 = arith.constant 0 : index
      %22 = vector.load %arg7[%c0_16, %c0_17] : memref<64x128xbf16, #tpu.memory_space<vmem>>, vector<64x128xbf16>
      tpu.vector_store %arg7[%c0_16, %c0_17], %21 {strides = array<i32>} : memref<64x128xbf16, #tpu.memory_space<vmem>>, vector<64x128xbf16>,
    } else {
    }
    return
  }
  func.func @transform_0(%arg0: i32, %arg1: i32, %arg2: i32) -> (i32, i32) {
    %c0_i32 = arith.constant 0 : i32
    return %arg0, %arg2 : i32, i32
  }
  func.func @transform_1(%arg0: i32, %arg1: i32, %arg2: i32) -> (i32, i32) {
    %c0_i32 = arith.constant 0 : i32
    return %arg2, %arg1 : i32, i32
  }
  func.func @transform_2(%arg0: i32, %arg1: i32, %arg2: i32) -> (i32, i32) {
    %c0_i32 = arith.constant 0 : i32
    %c0_i32_0 = arith.constant 0 : i32
    return %c0_i32, %arg1 : i32, i32
  }
  func.func @transform_3(%arg0: i32, %arg1: i32, %arg2: i32) -> (i32, i32) {
    %c0_i32 = arith.constant 0 : i32
    %c0_i32_0 = arith.constant 0 : i32
    return %c0_i32, %arg1 : i32, i32
  }
  func.func @transform_4(%arg0: i32, %arg1: i32, %arg2: i32) -> (i32, i32) {
    %c0_i32 = arith.constant 0 : i32
    return %arg0, %arg1 : i32, i32
  }
}

module attributes {stable_mosaic.version = 11 : i64} {
  func.func @_gemm_bn_kernel(%arg0: i32, %arg1: i32, %arg2: i32, %arg3: memref<16x384xbf16, #tpu.memory_space<vmem>>, %arg4: memref<384x128xbf16, #tpu.memory_space<vmem>>, %arg5: memref<1x128xf32, #tpu.memory_space<vmem>>, %arg6: memref<1x128xf32, #tpu.memory_space<vmem>>, %arg7: memref<16x128xbf16, #tpu.memory_space<vmem>>, %arg8: memref<16x128xf32, #tpu.memory_space<vmem>>) attributes {dimension_semantics = [#tpu.dimension_semantics<parallel>, #tpu.dimension_semantics<parallel>, #tpu.dimension_semantics<arbitrary>], iteration_bounds = array<i64: 2, 1, 3>, scalar_prefetch = 0 : i64, scratch_operands = 1 : i64, tpu.core_type = #tpu.core_type<tc>, window_params = [{transform_indices = @transform_0, window_bounds = array<i64: 16, 384>}, {transform_indices = @transform_1, window_bounds = array<i64: 384, 128>}, {transform_indices = @transform_2, window_bounds = array<i64: 1, 128>}, {transform_indices = @transform_3, window_bounds = array<i64: 1, 128>}, {transform_indices = @transform_4, window_bounds = array<i64: 16, 128>}]} {
    %c0_i32 = arith.constant 0 : i32
    %0 = arith.cmpi eq, %arg2, %c0_i32 : i32
    %1 = arith.extui %0 : i1 to i32
    %c0_i32_0 = arith.constant 0 : i32
    %2 = arith.cmpi ne, %1, %c0_i32_0 : i32
    scf.if %2 {
      %cst_9 = arith.constant 0.000000e+00 : f32
      %12 = vector.broadcast %cst_9 : f32 to vector<16x128xf32>
      %c0_10 = arith.constant 0 : index
      %c0_11 = arith.constant 0 : index
      %13 = vector.load %arg8[%c0_10, %c0_11] : memref<16x128xf32, #tpu.memory_space<vmem>>, vector<16x128xf32>
      tpu.vector_store %arg8[%c0_10, %c0_11], %12 {strides = array<i32>} : memref<16x128xf32, #tpu.memory_space<vmem>>, vector<16x128xf32>,
    } else {
    }
    %c0 = arith.constant 0 : index
    %c0_1 = arith.constant 0 : index
    %3 = vector.load %arg8[%c0, %c0_1] : memref<16x128xf32, #tpu.memory_space<vmem>>, vector<16x128xf32>
    %c0_2 = arith.constant 0 : index
    %c0_3 = arith.constant 0 : index
    %4 = vector.load %arg3[%c0_2, %c0_3] : memref<16x384xbf16, #tpu.memory_space<vmem>>, vector<16x384xbf16>
    %c0_4 = arith.constant 0 : index
    %c0_5 = arith.constant 0 : index
    %5 = vector.load %arg4[%c0_4, %c0_5] : memref<384x128xbf16, #tpu.memory_space<vmem>>, vector<384x128xbf16>
    %cst = arith.constant dense<0.000000e+00> : vector<16x128xf32>
    %6 = tpu.matmul %4, %5, %cst {dimension_numbers = #tpu.dot_dimension_numbers<[1], [0], [0], [1], [0, 0, 1, 1], [], []>} : vector<16x384xbf16>, vector<384x128xbf16>, vector<16x128xf32> -> vector<16x128xf32>
    %7 = arith.addf %3, %6 : vector<16x128xf32>
    %c0_6 = arith.constant 0 : index
    %c0_7 = arith.constant 0 : index
    %8 = vector.load %arg8[%c0_6, %c0_7] : memref<16x128xf32, #tpu.memory_space<vmem>>, vector<16x128xf32>
    tpu.vector_store %arg8[%c0_6, %c0_7], %7 {strides = array<i32>} : memref<16x128xf32, #tpu.memory_space<vmem>>, vector<16x128xf32>,
    %c2_i32 = arith.constant 2 : i32
    %9 = arith.cmpi eq, %arg2, %c2_i32 : i32
    %10 = arith.extui %9 : i1 to i32
    %c0_i32_8 = arith.constant 0 : i32
    %11 = arith.cmpi ne, %10, %c0_i32_8 : i32
    scf.if %11 {
      %c0_9 = arith.constant 0 : index
      %c0_10 = arith.constant 0 : index
      %12 = vector.load %arg8[%c0_9, %c0_10] : memref<16x128xf32, #tpu.memory_space<vmem>>, vector<16x128xf32>
      %c0_11 = arith.constant 0 : index
      %c0_12 = arith.constant 0 : index
      %13 = vector.load %arg5[%c0_11, %c0_12] : memref<1x128xf32, #tpu.memory_space<vmem>>, vector<1x128xf32>
      %14 = vector.broadcast %13 : vector<1x128xf32> to vector<16x128xf32>
      %15 = arith.mulf %12, %14 : vector<16x128xf32>
      %c0_13 = arith.constant 0 : index
      %c0_14 = arith.constant 0 : index
      %16 = vector.load %arg6[%c0_13, %c0_14] : memref<1x128xf32, #tpu.memory_space<vmem>>, vector<1x128xf32>
      %17 = vector.broadcast %16 : vector<1x128xf32> to vector<16x128xf32>
      %18 = arith.addf %15, %17 : vector<16x128xf32>
      %cst_15 = arith.constant 0.000000e+00 : f32
      %19 = vector.broadcast %cst_15 : f32 to vector<16x128xf32>
      %20 = arith.maximumf %18, %19 : vector<16x128xf32>
      %21 = arith.truncf %20 : vector<16x128xf32> to vector<16x128xbf16>
      %c0_16 = arith.constant 0 : index
      %c0_17 = arith.constant 0 : index
      %22 = vector.load %arg7[%c0_16, %c0_17] : memref<16x128xbf16, #tpu.memory_space<vmem>>, vector<16x128xbf16>
      tpu.vector_store %arg7[%c0_16, %c0_17], %21 {strides = array<i32>} : memref<16x128xbf16, #tpu.memory_space<vmem>>, vector<16x128xbf16>,
    } else {
    }
    return
  }
  func.func @transform_0(%arg0: i32, %arg1: i32, %arg2: i32) -> (i32, i32) {
    %c0_i32 = arith.constant 0 : i32
    return %arg0, %arg2 : i32, i32
  }
  func.func @transform_1(%arg0: i32, %arg1: i32, %arg2: i32) -> (i32, i32) {
    %c0_i32 = arith.constant 0 : i32
    return %arg2, %arg1 : i32, i32
  }
  func.func @transform_2(%arg0: i32, %arg1: i32, %arg2: i32) -> (i32, i32) {
    %c0_i32 = arith.constant 0 : i32
    %c0_i32_0 = arith.constant 0 : i32
    return %c0_i32, %arg1 : i32, i32
  }
  func.func @transform_3(%arg0: i32, %arg1: i32, %arg2: i32) -> (i32, i32) {
    %c0_i32 = arith.constant 0 : i32
    %c0_i32_0 = arith.constant 0 : i32
    return %c0_i32, %arg1 : i32, i32
  }
  func.func @transform_4(%arg0: i32, %arg1: i32, %arg2: i32) -> (i32, i32) {
    %c0_i32 = arith.constant 0 : i32
    return %arg0, %arg1 : i32, i32
  }
}

module attributes {stable_mosaic.version = 11 : i64} {
  func.func @_gemm_bn_res_kernel(%arg0: i32, %arg1: i32, %arg2: i32, %arg3: memref<16x384xbf16, #tpu.memory_space<vmem>>, %arg4: memref<384x128xbf16, #tpu.memory_space<vmem>>, %arg5: memref<1x128xf32, #tpu.memory_space<vmem>>, %arg6: memref<1x128xf32, #tpu.memory_space<vmem>>, %arg7: memref<16x128xbf16, #tpu.memory_space<vmem>>, %arg8: memref<16x128xbf16, #tpu.memory_space<vmem>>, %arg9: memref<16x128xf32, #tpu.memory_space<vmem>>) attributes {dimension_semantics = [#tpu.dimension_semantics<parallel>, #tpu.dimension_semantics<parallel>, #tpu.dimension_semantics<arbitrary>], iteration_bounds = array<i64: 2, 1, 3>, scalar_prefetch = 0 : i64, scratch_operands = 1 : i64, tpu.core_type = #tpu.core_type<tc>, window_params = [{transform_indices = @transform_0, window_bounds = array<i64: 16, 384>}, {transform_indices = @transform_1, window_bounds = array<i64: 384, 128>}, {transform_indices = @transform_2, window_bounds = array<i64: 1, 128>}, {transform_indices = @transform_3, window_bounds = array<i64: 1, 128>}, {transform_indices = @transform_4, window_bounds = array<i64: 16, 128>}, {transform_indices = @transform_5, window_bounds = array<i64: 16, 128>}]} {
    %c0_i32 = arith.constant 0 : i32
    %0 = arith.cmpi eq, %arg2, %c0_i32 : i32
    %1 = arith.extui %0 : i1 to i32
    %c0_i32_0 = arith.constant 0 : i32
    %2 = arith.cmpi ne, %1, %c0_i32_0 : i32
    scf.if %2 {
      %cst_9 = arith.constant 0.000000e+00 : f32
      %12 = vector.broadcast %cst_9 : f32 to vector<16x128xf32>
      %c0_10 = arith.constant 0 : index
      %c0_11 = arith.constant 0 : index
      %13 = vector.load %arg9[%c0_10, %c0_11] : memref<16x128xf32, #tpu.memory_space<vmem>>, vector<16x128xf32>
      tpu.vector_store %arg9[%c0_10, %c0_11], %12 {strides = array<i32>} : memref<16x128xf32, #tpu.memory_space<vmem>>, vector<16x128xf32>,
    } else {
    }
    %c0 = arith.constant 0 : index
    %c0_1 = arith.constant 0 : index
    %3 = vector.load %arg9[%c0, %c0_1] : memref<16x128xf32, #tpu.memory_space<vmem>>, vector<16x128xf32>
    %c0_2 = arith.constant 0 : index
    %c0_3 = arith.constant 0 : index
    %4 = vector.load %arg3[%c0_2, %c0_3] : memref<16x384xbf16, #tpu.memory_space<vmem>>, vector<16x384xbf16>
    %c0_4 = arith.constant 0 : index
    %c0_5 = arith.constant 0 : index
    %5 = vector.load %arg4[%c0_4, %c0_5] : memref<384x128xbf16, #tpu.memory_space<vmem>>, vector<384x128xbf16>
    %cst = arith.constant dense<0.000000e+00> : vector<16x128xf32>
    %6 = tpu.matmul %4, %5, %cst {dimension_numbers = #tpu.dot_dimension_numbers<[1], [0], [0], [1], [0, 0, 1, 1], [], []>} : vector<16x384xbf16>, vector<384x128xbf16>, vector<16x128xf32> -> vector<16x128xf32>
    %7 = arith.addf %3, %6 : vector<16x128xf32>
    %c0_6 = arith.constant 0 : index
    %c0_7 = arith.constant 0 : index
    %8 = vector.load %arg9[%c0_6, %c0_7] : memref<16x128xf32, #tpu.memory_space<vmem>>, vector<16x128xf32>
    tpu.vector_store %arg9[%c0_6, %c0_7], %7 {strides = array<i32>} : memref<16x128xf32, #tpu.memory_space<vmem>>, vector<16x128xf32>,
    %c2_i32 = arith.constant 2 : i32
    %9 = arith.cmpi eq, %arg2, %c2_i32 : i32
    %10 = arith.extui %9 : i1 to i32
    %c0_i32_8 = arith.constant 0 : i32
    %11 = arith.cmpi ne, %10, %c0_i32_8 : i32
    scf.if %11 {
      %c0_9 = arith.constant 0 : index
      %c0_10 = arith.constant 0 : index
      %12 = vector.load %arg9[%c0_9, %c0_10] : memref<16x128xf32, #tpu.memory_space<vmem>>, vector<16x128xf32>
      %c0_11 = arith.constant 0 : index
      %c0_12 = arith.constant 0 : index
      %13 = vector.load %arg5[%c0_11, %c0_12] : memref<1x128xf32, #tpu.memory_space<vmem>>, vector<1x128xf32>
      %14 = vector.broadcast %13 : vector<1x128xf32> to vector<16x128xf32>
      %15 = arith.mulf %12, %14 : vector<16x128xf32>
      %c0_13 = arith.constant 0 : index
      %c0_14 = arith.constant 0 : index
      %16 = vector.load %arg6[%c0_13, %c0_14] : memref<1x128xf32, #tpu.memory_space<vmem>>, vector<1x128xf32>
      %17 = vector.broadcast %16 : vector<1x128xf32> to vector<16x128xf32>
      %18 = arith.addf %15, %17 : vector<16x128xf32>
      %c0_15 = arith.constant 0 : index
      %c0_16 = arith.constant 0 : index
      %19 = vector.load %arg7[%c0_15, %c0_16] : memref<16x128xbf16, #tpu.memory_space<vmem>>, vector<16x128xbf16>
      %20 = arith.extf %19 : vector<16x128xbf16> to vector<16x128xf32>
      %21 = arith.addf %18, %20 : vector<16x128xf32>
      %cst_17 = arith.constant 0.000000e+00 : f32
      %22 = vector.broadcast %cst_17 : f32 to vector<16x128xf32>
      %23 = arith.maximumf %21, %22 : vector<16x128xf32>
      %24 = arith.truncf %23 : vector<16x128xf32> to vector<16x128xbf16>
      %c0_18 = arith.constant 0 : index
      %c0_19 = arith.constant 0 : index
      %25 = vector.load %arg8[%c0_18, %c0_19] : memref<16x128xbf16, #tpu.memory_space<vmem>>, vector<16x128xbf16>
      tpu.vector_store %arg8[%c0_18, %c0_19], %24 {strides = array<i32>} : memref<16x128xbf16, #tpu.memory_space<vmem>>, vector<16x128xbf16>,
    } else {
    }
    return
  }
  func.func @transform_0(%arg0: i32, %arg1: i32, %arg2: i32) -> (i32, i32) {
    %c0_i32 = arith.constant 0 : i32
    return %arg0, %arg2 : i32, i32
  }
  func.func @transform_1(%arg0: i32, %arg1: i32, %arg2: i32) -> (i32, i32) {
    %c0_i32 = arith.constant 0 : i32
    return %arg2, %arg1 : i32, i32
  }
  func.func @transform_2(%arg0: i32, %arg1: i32, %arg2: i32) -> (i32, i32) {
    %c0_i32 = arith.constant 0 : i32
    %c0_i32_0 = arith.constant 0 : i32
    return %c0_i32, %arg1 : i32, i32
  }
  func.func @transform_3(%arg0: i32, %arg1: i32, %arg2: i32) -> (i32, i32) {
    %c0_i32 = arith.constant 0 : i32
    %c0_i32_0 = arith.constant 0 : i32
    return %c0_i32, %arg1 : i32, i32
  }
  func.func @transform_4(%arg0: i32, %arg1: i32, %arg2: i32) -> (i32, i32) {
    %c0_i32 = arith.constant 0 : i32
    return %arg0, %arg1 : i32, i32
  }
  func.func @transform_5(%arg0: i32, %arg1: i32, %arg2: i32) -> (i32, i32) {
    %c0_i32 = arith.constant 0 : i32
    return %arg0, %arg1 : i32, i32
  }
}

module attributes {stable_mosaic.version = 11 : i64} {
  func.func @_gemm_bn_kernel(%arg0: i32, %arg1: i32, %arg2: i32, %arg3: memref<16x128xbf16, #tpu.memory_space<vmem>>, %arg4: memref<128x128xbf16, #tpu.memory_space<vmem>>, %arg5: memref<1x128xf32, #tpu.memory_space<vmem>>, %arg6: memref<1x128xf32, #tpu.memory_space<vmem>>, %arg7: memref<16x128xbf16, #tpu.memory_space<vmem>>, %arg8: memref<16x128xf32, #tpu.memory_space<vmem>>) attributes {dimension_semantics = [#tpu.dimension_semantics<parallel>, #tpu.dimension_semantics<parallel>, #tpu.dimension_semantics<arbitrary>], iteration_bounds = array<i64: 2, 1, 1>, scalar_prefetch = 0 : i64, scratch_operands = 1 : i64, tpu.core_type = #tpu.core_type<tc>, window_params = [{transform_indices = @transform_0, window_bounds = array<i64: 16, 128>}, {transform_indices = @transform_1, window_bounds = array<i64: 128, 128>}, {transform_indices = @transform_2, window_bounds = array<i64: 1, 128>}, {transform_indices = @transform_3, window_bounds = array<i64: 1, 128>}, {transform_indices = @transform_4, window_bounds = array<i64: 16, 128>}]} {
    %c0_i32 = arith.constant 0 : i32
    %0 = arith.cmpi eq, %arg2, %c0_i32 : i32
    %1 = arith.extui %0 : i1 to i32
    %c0_i32_0 = arith.constant 0 : i32
    %2 = arith.cmpi ne, %1, %c0_i32_0 : i32
    scf.if %2 {
      %cst_10 = arith.constant 0.000000e+00 : f32
      %12 = vector.broadcast %cst_10 : f32 to vector<16x128xf32>
      %c0_11 = arith.constant 0 : index
      %c0_12 = arith.constant 0 : index
      %13 = vector.load %arg8[%c0_11, %c0_12] : memref<16x128xf32, #tpu.memory_space<vmem>>, vector<16x128xf32>
      tpu.vector_store %arg8[%c0_11, %c0_12], %12 {strides = array<i32>} : memref<16x128xf32, #tpu.memory_space<vmem>>, vector<16x128xf32>,
    } else {
    }
    %c0 = arith.constant 0 : index
    %c0_1 = arith.constant 0 : index
    %3 = vector.load %arg8[%c0, %c0_1] : memref<16x128xf32, #tpu.memory_space<vmem>>, vector<16x128xf32>
    %c0_2 = arith.constant 0 : index
    %c0_3 = arith.constant 0 : index
    %4 = vector.load %arg3[%c0_2, %c0_3] : memref<16x128xbf16, #tpu.memory_space<vmem>>, vector<16x128xbf16>
    %c0_4 = arith.constant 0 : index
    %c0_5 = arith.constant 0 : index
    %5 = vector.load %arg4[%c0_4, %c0_5] : memref<128x128xbf16, #tpu.memory_space<vmem>>, vector<128x128xbf16>
    %cst = arith.constant dense<0.000000e+00> : vector<16x128xf32>
    %6 = tpu.matmul %4, %5, %cst {dimension_numbers = #tpu.dot_dimension_numbers<[1], [0], [0], [1], [0, 0, 1, 1], [], []>} : vector<16x128xbf16>, vector<128x128xbf16>, vector<16x128xf32> -> vector<16x128xf32>
    %7 = arith.addf %3, %6 : vector<16x128xf32>
    %c0_6 = arith.constant 0 : index
    %c0_7 = arith.constant 0 : index
    %8 = vector.load %arg8[%c0_6, %c0_7] : memref<16x128xf32, #tpu.memory_space<vmem>>, vector<16x128xf32>
    tpu.vector_store %arg8[%c0_6, %c0_7], %7 {strides = array<i32>} : memref<16x128xf32, #tpu.memory_space<vmem>>, vector<16x128xf32>,
    %c0_i32_8 = arith.constant 0 : i32
    %9 = arith.cmpi eq, %arg2, %c0_i32_8 : i32
    %10 = arith.extui %9 : i1 to i32
    %c0_i32_9 = arith.constant 0 : i32
    %11 = arith.cmpi ne, %10, %c0_i32_9 : i32
    scf.if %11 {
      %c0_10 = arith.constant 0 : index
      %c0_11 = arith.constant 0 : index
      %12 = vector.load %arg8[%c0_10, %c0_11] : memref<16x128xf32, #tpu.memory_space<vmem>>, vector<16x128xf32>
      %c0_12 = arith.constant 0 : index
      %c0_13 = arith.constant 0 : index
      %13 = vector.load %arg5[%c0_12, %c0_13] : memref<1x128xf32, #tpu.memory_space<vmem>>, vector<1x128xf32>
      %14 = vector.broadcast %13 : vector<1x128xf32> to vector<16x128xf32>
      %15 = arith.mulf %12, %14 : vector<16x128xf32>
      %c0_14 = arith.constant 0 : index
      %c0_15 = arith.constant 0 : index
      %16 = vector.load %arg6[%c0_14, %c0_15] : memref<1x128xf32, #tpu.memory_space<vmem>>, vector<1x128xf32>
      %17 = vector.broadcast %16 : vector<1x128xf32> to vector<16x128xf32>
      %18 = arith.addf %15, %17 : vector<16x128xf32>
      %19 = arith.truncf %18 : vector<16x128xf32> to vector<16x128xbf16>
      %c0_16 = arith.constant 0 : index
      %c0_17 = arith.constant 0 : index
      %20 = vector.load %arg7[%c0_16, %c0_17] : memref<16x128xbf16, #tpu.memory_space<vmem>>, vector<16x128xbf16>
      tpu.vector_store %arg7[%c0_16, %c0_17], %19 {strides = array<i32>} : memref<16x128xbf16, #tpu.memory_space<vmem>>, vector<16x128xbf16>,
    } else {
    }
    return
  }
  func.func @transform_0(%arg0: i32, %arg1: i32, %arg2: i32) -> (i32, i32) {
    %c0_i32 = arith.constant 0 : i32
    return %arg0, %arg2 : i32, i32
  }
  func.func @transform_1(%arg0: i32, %arg1: i32, %arg2: i32) -> (i32, i32) {
    %c0_i32 = arith.constant 0 : i32
    return %arg2, %arg1 : i32, i32
  }
  func.func @transform_2(%arg0: i32, %arg1: i32, %arg2: i32) -> (i32, i32) {
    %c0_i32 = arith.constant 0 : i32
    %c0_i32_0 = arith.constant 0 : i32
    return %c0_i32, %arg1 : i32, i32
  }
  func.func @transform_3(%arg0: i32, %arg1: i32, %arg2: i32) -> (i32, i32) {
    %c0_i32 = arith.constant 0 : i32
    %c0_i32_0 = arith.constant 0 : i32
    return %c0_i32, %arg1 : i32, i32
  }
  func.func @transform_4(%arg0: i32, %arg1: i32, %arg2: i32) -> (i32, i32) {
    %c0_i32 = arith.constant 0 : i32
    return %arg0, %arg1 : i32, i32
  }
}

module attributes {stable_mosaic.version = 11 : i64} {
  func.func @_gemm_bn_kernel(%arg0: i32, %arg1: i32, %arg2: i32, %arg3: memref<16x384xbf16, #tpu.memory_space<vmem>>, %arg4: memref<384x128xbf16, #tpu.memory_space<vmem>>, %arg5: memref<1x128xf32, #tpu.memory_space<vmem>>, %arg6: memref<1x128xf32, #tpu.memory_space<vmem>>, %arg7: memref<16x128xbf16, #tpu.memory_space<vmem>>, %arg8: memref<16x128xf32, #tpu.memory_space<vmem>>) attributes {dimension_semantics = [#tpu.dimension_semantics<parallel>, #tpu.dimension_semantics<parallel>, #tpu.dimension_semantics<arbitrary>], iteration_bounds = array<i64: 1, 2, 3>, scalar_prefetch = 0 : i64, scratch_operands = 1 : i64, tpu.core_type = #tpu.core_type<tc>, window_params = [{transform_indices = @transform_0, window_bounds = array<i64: 16, 384>}, {transform_indices = @transform_1, window_bounds = array<i64: 384, 128>}, {transform_indices = @transform_2, window_bounds = array<i64: 1, 128>}, {transform_indices = @transform_3, window_bounds = array<i64: 1, 128>}, {transform_indices = @transform_4, window_bounds = array<i64: 16, 128>}]} {
    %c0_i32 = arith.constant 0 : i32
    %0 = arith.cmpi eq, %arg2, %c0_i32 : i32
    %1 = arith.extui %0 : i1 to i32
    %c0_i32_0 = arith.constant 0 : i32
    %2 = arith.cmpi ne, %1, %c0_i32_0 : i32
    scf.if %2 {
      %cst_9 = arith.constant 0.000000e+00 : f32
      %12 = vector.broadcast %cst_9 : f32 to vector<16x128xf32>
      %c0_10 = arith.constant 0 : index
      %c0_11 = arith.constant 0 : index
      %13 = vector.load %arg8[%c0_10, %c0_11] : memref<16x128xf32, #tpu.memory_space<vmem>>, vector<16x128xf32>
      tpu.vector_store %arg8[%c0_10, %c0_11], %12 {strides = array<i32>} : memref<16x128xf32, #tpu.memory_space<vmem>>, vector<16x128xf32>,
    } else {
    }
    %c0 = arith.constant 0 : index
    %c0_1 = arith.constant 0 : index
    %3 = vector.load %arg8[%c0, %c0_1] : memref<16x128xf32, #tpu.memory_space<vmem>>, vector<16x128xf32>
    %c0_2 = arith.constant 0 : index
    %c0_3 = arith.constant 0 : index
    %4 = vector.load %arg3[%c0_2, %c0_3] : memref<16x384xbf16, #tpu.memory_space<vmem>>, vector<16x384xbf16>
    %c0_4 = arith.constant 0 : index
    %c0_5 = arith.constant 0 : index
    %5 = vector.load %arg4[%c0_4, %c0_5] : memref<384x128xbf16, #tpu.memory_space<vmem>>, vector<384x128xbf16>
    %cst = arith.constant dense<0.000000e+00> : vector<16x128xf32>
    %6 = tpu.matmul %4, %5, %cst {dimension_numbers = #tpu.dot_dimension_numbers<[1], [0], [0], [1], [0, 0, 1, 1], [], []>} : vector<16x384xbf16>, vector<384x128xbf16>, vector<16x128xf32> -> vector<16x128xf32>
    %7 = arith.addf %3, %6 : vector<16x128xf32>
    %c0_6 = arith.constant 0 : index
    %c0_7 = arith.constant 0 : index
    %8 = vector.load %arg8[%c0_6, %c0_7] : memref<16x128xf32, #tpu.memory_space<vmem>>, vector<16x128xf32>
    tpu.vector_store %arg8[%c0_6, %c0_7], %7 {strides = array<i32>} : memref<16x128xf32, #tpu.memory_space<vmem>>, vector<16x128xf32>,
    %c2_i32 = arith.constant 2 : i32
    %9 = arith.cmpi eq, %arg2, %c2_i32 : i32
    %10 = arith.extui %9 : i1 to i32
    %c0_i32_8 = arith.constant 0 : i32
    %11 = arith.cmpi ne, %10, %c0_i32_8 : i32
    scf.if %11 {
      %c0_9 = arith.constant 0 : index
      %c0_10 = arith.constant 0 : index
      %12 = vector.load %arg8[%c0_9, %c0_10] : memref<16x128xf32, #tpu.memory_space<vmem>>, vector<16x128xf32>
      %c0_11 = arith.constant 0 : index
      %c0_12 = arith.constant 0 : index
      %13 = vector.load %arg5[%c0_11, %c0_12] : memref<1x128xf32, #tpu.memory_space<vmem>>, vector<1x128xf32>
      %14 = vector.broadcast %13 : vector<1x128xf32> to vector<16x128xf32>
      %15 = arith.mulf %12, %14 : vector<16x128xf32>
      %c0_13 = arith.constant 0 : index
      %c0_14 = arith.constant 0 : index
      %16 = vector.load %arg6[%c0_13, %c0_14] : memref<1x128xf32, #tpu.memory_space<vmem>>, vector<1x128xf32>
      %17 = vector.broadcast %16 : vector<1x128xf32> to vector<16x128xf32>
      %18 = arith.addf %15, %17 : vector<16x128xf32>
      %cst_15 = arith.constant 0.000000e+00 : f32
      %19 = vector.broadcast %cst_15 : f32 to vector<16x128xf32>
      %20 = arith.maximumf %18, %19 : vector<16x128xf32>
      %21 = arith.truncf %20 : vector<16x128xf32> to vector<16x128xbf16>
      %c0_16 = arith.constant 0 : index
      %c0_17 = arith.constant 0 : index
      %22 = vector.load %arg7[%c0_16, %c0_17] : memref<16x128xbf16, #tpu.memory_space<vmem>>, vector<16x128xbf16>
      tpu.vector_store %arg7[%c0_16, %c0_17], %21 {strides = array<i32>} : memref<16x128xbf16, #tpu.memory_space<vmem>>, vector<16x128xbf16>,
    } else {
    }
    return
  }
  func.func @transform_0(%arg0: i32, %arg1: i32, %arg2: i32) -> (i32, i32) {
    %c0_i32 = arith.constant 0 : i32
    return %arg0, %arg2 : i32, i32
  }
  func.func @transform_1(%arg0: i32, %arg1: i32, %arg2: i32) -> (i32, i32) {
    %c0_i32 = arith.constant 0 : i32
    return %arg2, %arg1 : i32, i32
  }
  func.func @transform_2(%arg0: i32, %arg1: i32, %arg2: i32) -> (i32, i32) {
    %c0_i32 = arith.constant 0 : i32
    %c0_i32_0 = arith.constant 0 : i32
    return %c0_i32, %arg1 : i32, i32
  }
  func.func @transform_3(%arg0: i32, %arg1: i32, %arg2: i32) -> (i32, i32) {
    %c0_i32 = arith.constant 0 : i32
    %c0_i32_0 = arith.constant 0 : i32
    return %c0_i32, %arg1 : i32, i32
  }
  func.func @transform_4(%arg0: i32, %arg1: i32, %arg2: i32) -> (i32, i32) {
    %c0_i32 = arith.constant 0 : i32
    return %arg0, %arg1 : i32, i32
  }
}

module attributes {stable_mosaic.version = 11 : i64} {
  func.func @_gemm_bn_kernel(%arg0: i32, %arg1: i32, %arg2: i32, %arg3: memref<16x128xbf16, #tpu.memory_space<vmem>>, %arg4: memref<128x128xbf16, #tpu.memory_space<vmem>>, %arg5: memref<1x128xf32, #tpu.memory_space<vmem>>, %arg6: memref<1x128xf32, #tpu.memory_space<vmem>>, %arg7: memref<16x128xbf16, #tpu.memory_space<vmem>>, %arg8: memref<16x128xf32, #tpu.memory_space<vmem>>) attributes {dimension_semantics = [#tpu.dimension_semantics<parallel>, #tpu.dimension_semantics<parallel>, #tpu.dimension_semantics<arbitrary>], iteration_bounds = array<i64: 1, 2, 1>, scalar_prefetch = 0 : i64, scratch_operands = 1 : i64, tpu.core_type = #tpu.core_type<tc>, window_params = [{transform_indices = @transform_0, window_bounds = array<i64: 16, 128>}, {transform_indices = @transform_1, window_bounds = array<i64: 128, 128>}, {transform_indices = @transform_2, window_bounds = array<i64: 1, 128>}, {transform_indices = @transform_3, window_bounds = array<i64: 1, 128>}, {transform_indices = @transform_4, window_bounds = array<i64: 16, 128>}]} {
    %c0_i32 = arith.constant 0 : i32
    %0 = arith.cmpi eq, %arg2, %c0_i32 : i32
    %1 = arith.extui %0 : i1 to i32
    %c0_i32_0 = arith.constant 0 : i32
    %2 = arith.cmpi ne, %1, %c0_i32_0 : i32
    scf.if %2 {
      %cst_10 = arith.constant 0.000000e+00 : f32
      %12 = vector.broadcast %cst_10 : f32 to vector<16x128xf32>
      %c0_11 = arith.constant 0 : index
      %c0_12 = arith.constant 0 : index
      %13 = vector.load %arg8[%c0_11, %c0_12] : memref<16x128xf32, #tpu.memory_space<vmem>>, vector<16x128xf32>
      tpu.vector_store %arg8[%c0_11, %c0_12], %12 {strides = array<i32>} : memref<16x128xf32, #tpu.memory_space<vmem>>, vector<16x128xf32>,
    } else {
    }
    %c0 = arith.constant 0 : index
    %c0_1 = arith.constant 0 : index
    %3 = vector.load %arg8[%c0, %c0_1] : memref<16x128xf32, #tpu.memory_space<vmem>>, vector<16x128xf32>
    %c0_2 = arith.constant 0 : index
    %c0_3 = arith.constant 0 : index
    %4 = vector.load %arg3[%c0_2, %c0_3] : memref<16x128xbf16, #tpu.memory_space<vmem>>, vector<16x128xbf16>
    %c0_4 = arith.constant 0 : index
    %c0_5 = arith.constant 0 : index
    %5 = vector.load %arg4[%c0_4, %c0_5] : memref<128x128xbf16, #tpu.memory_space<vmem>>, vector<128x128xbf16>
    %cst = arith.constant dense<0.000000e+00> : vector<16x128xf32>
    %6 = tpu.matmul %4, %5, %cst {dimension_numbers = #tpu.dot_dimension_numbers<[1], [0], [0], [1], [0, 0, 1, 1], [], []>} : vector<16x128xbf16>, vector<128x128xbf16>, vector<16x128xf32> -> vector<16x128xf32>
    %7 = arith.addf %3, %6 : vector<16x128xf32>
    %c0_6 = arith.constant 0 : index
    %c0_7 = arith.constant 0 : index
    %8 = vector.load %arg8[%c0_6, %c0_7] : memref<16x128xf32, #tpu.memory_space<vmem>>, vector<16x128xf32>
    tpu.vector_store %arg8[%c0_6, %c0_7], %7 {strides = array<i32>} : memref<16x128xf32, #tpu.memory_space<vmem>>, vector<16x128xf32>,
    %c0_i32_8 = arith.constant 0 : i32
    %9 = arith.cmpi eq, %arg2, %c0_i32_8 : i32
    %10 = arith.extui %9 : i1 to i32
    %c0_i32_9 = arith.constant 0 : i32
    %11 = arith.cmpi ne, %10, %c0_i32_9 : i32
    scf.if %11 {
      %c0_10 = arith.constant 0 : index
      %c0_11 = arith.constant 0 : index
      %12 = vector.load %arg8[%c0_10, %c0_11] : memref<16x128xf32, #tpu.memory_space<vmem>>, vector<16x128xf32>
      %c0_12 = arith.constant 0 : index
      %c0_13 = arith.constant 0 : index
      %13 = vector.load %arg5[%c0_12, %c0_13] : memref<1x128xf32, #tpu.memory_space<vmem>>, vector<1x128xf32>
      %14 = vector.broadcast %13 : vector<1x128xf32> to vector<16x128xf32>
      %15 = arith.mulf %12, %14 : vector<16x128xf32>
      %c0_14 = arith.constant 0 : index
      %c0_15 = arith.constant 0 : index
      %16 = vector.load %arg6[%c0_14, %c0_15] : memref<1x128xf32, #tpu.memory_space<vmem>>, vector<1x128xf32>
      %17 = vector.broadcast %16 : vector<1x128xf32> to vector<16x128xf32>
      %18 = arith.addf %15, %17 : vector<16x128xf32>
      %19 = arith.truncf %18 : vector<16x128xf32> to vector<16x128xbf16>
      %c0_16 = arith.constant 0 : index
      %c0_17 = arith.constant 0 : index
      %20 = vector.load %arg7[%c0_16, %c0_17] : memref<16x128xbf16, #tpu.memory_space<vmem>>, vector<16x128xbf16>
      tpu.vector_store %arg7[%c0_16, %c0_17], %19 {strides = array<i32>} : memref<16x128xbf16, #tpu.memory_space<vmem>>, vector<16x128xbf16>,
    } else {
    }
    return
  }
  func.func @transform_0(%arg0: i32, %arg1: i32, %arg2: i32) -> (i32, i32) {
    %c0_i32 = arith.constant 0 : i32
    return %arg0, %arg2 : i32, i32
  }
  func.func @transform_1(%arg0: i32, %arg1: i32, %arg2: i32) -> (i32, i32) {
    %c0_i32 = arith.constant 0 : i32
    return %arg2, %arg1 : i32, i32
  }
  func.func @transform_2(%arg0: i32, %arg1: i32, %arg2: i32) -> (i32, i32) {
    %c0_i32 = arith.constant 0 : i32
    %c0_i32_0 = arith.constant 0 : i32
    return %c0_i32, %arg1 : i32, i32
  }
  func.func @transform_3(%arg0: i32, %arg1: i32, %arg2: i32) -> (i32, i32) {
    %c0_i32 = arith.constant 0 : i32
    %c0_i32_0 = arith.constant 0 : i32
    return %c0_i32, %arg1 : i32, i32
  }
  func.func @transform_4(%arg0: i32, %arg1: i32, %arg2: i32) -> (i32, i32) {
    %c0_i32 = arith.constant 0 : i32
    return %arg0, %arg1 : i32, i32
  }
}

module attributes {stable_mosaic.version = 11 : i64} {
  func.func @_gemm_bn_res_kernel(%arg0: i32, %arg1: i32, %arg2: i32, %arg3: memref<16x768xbf16, #tpu.memory_space<vmem>>, %arg4: memref<768x128xbf16, #tpu.memory_space<vmem>>, %arg5: memref<1x128xf32, #tpu.memory_space<vmem>>, %arg6: memref<1x128xf32, #tpu.memory_space<vmem>>, %arg7: memref<16x128xbf16, #tpu.memory_space<vmem>>, %arg8: memref<16x128xbf16, #tpu.memory_space<vmem>>, %arg9: memref<16x128xf32, #tpu.memory_space<vmem>>) attributes {dimension_semantics = [#tpu.dimension_semantics<parallel>, #tpu.dimension_semantics<parallel>, #tpu.dimension_semantics<arbitrary>], iteration_bounds = array<i64: 1, 2, 3>, scalar_prefetch = 0 : i64, scratch_operands = 1 : i64, tpu.core_type = #tpu.core_type<tc>, window_params = [{transform_indices = @transform_0, window_bounds = array<i64: 16, 768>}, {transform_indices = @transform_1, window_bounds = array<i64: 768, 128>}, {transform_indices = @transform_2, window_bounds = array<i64: 1, 128>}, {transform_indices = @transform_3, window_bounds = array<i64: 1, 128>}, {transform_indices = @transform_4, window_bounds = array<i64: 16, 128>}, {transform_indices = @transform_5, window_bounds = array<i64: 16, 128>}]} {
    %c0_i32 = arith.constant 0 : i32
    %0 = arith.cmpi eq, %arg2, %c0_i32 : i32
    %1 = arith.extui %0 : i1 to i32
    %c0_i32_0 = arith.constant 0 : i32
    %2 = arith.cmpi ne, %1, %c0_i32_0 : i32
    scf.if %2 {
      %cst_9 = arith.constant 0.000000e+00 : f32
      %12 = vector.broadcast %cst_9 : f32 to vector<16x128xf32>
      %c0_10 = arith.constant 0 : index
      %c0_11 = arith.constant 0 : index
      %13 = vector.load %arg9[%c0_10, %c0_11] : memref<16x128xf32, #tpu.memory_space<vmem>>, vector<16x128xf32>
      tpu.vector_store %arg9[%c0_10, %c0_11], %12 {strides = array<i32>} : memref<16x128xf32, #tpu.memory_space<vmem>>, vector<16x128xf32>,
    } else {
    }
    %c0 = arith.constant 0 : index
    %c0_1 = arith.constant 0 : index
    %3 = vector.load %arg9[%c0, %c0_1] : memref<16x128xf32, #tpu.memory_space<vmem>>, vector<16x128xf32>
    %c0_2 = arith.constant 0 : index
    %c0_3 = arith.constant 0 : index
    %4 = vector.load %arg3[%c0_2, %c0_3] : memref<16x768xbf16, #tpu.memory_space<vmem>>, vector<16x768xbf16>
    %c0_4 = arith.constant 0 : index
    %c0_5 = arith.constant 0 : index
    %5 = vector.load %arg4[%c0_4, %c0_5] : memref<768x128xbf16, #tpu.memory_space<vmem>>, vector<768x128xbf16>
    %cst = arith.constant dense<0.000000e+00> : vector<16x128xf32>
    %6 = tpu.matmul %4, %5, %cst {dimension_numbers = #tpu.dot_dimension_numbers<[1], [0], [0], [1], [0, 0, 1, 1], [], []>} : vector<16x768xbf16>, vector<768x128xbf16>, vector<16x128xf32> -> vector<16x128xf32>
    %7 = arith.addf %3, %6 : vector<16x128xf32>
    %c0_6 = arith.constant 0 : index
    %c0_7 = arith.constant 0 : index
    %8 = vector.load %arg9[%c0_6, %c0_7] : memref<16x128xf32, #tpu.memory_space<vmem>>, vector<16x128xf32>
    tpu.vector_store %arg9[%c0_6, %c0_7], %7 {strides = array<i32>} : memref<16x128xf32, #tpu.memory_space<vmem>>, vector<16x128xf32>,
    %c2_i32 = arith.constant 2 : i32
    %9 = arith.cmpi eq, %arg2, %c2_i32 : i32
    %10 = arith.extui %9 : i1 to i32
    %c0_i32_8 = arith.constant 0 : i32
    %11 = arith.cmpi ne, %10, %c0_i32_8 : i32
    scf.if %11 {
      %c0_9 = arith.constant 0 : index
      %c0_10 = arith.constant 0 : index
      %12 = vector.load %arg9[%c0_9, %c0_10] : memref<16x128xf32, #tpu.memory_space<vmem>>, vector<16x128xf32>
      %c0_11 = arith.constant 0 : index
      %c0_12 = arith.constant 0 : index
      %13 = vector.load %arg5[%c0_11, %c0_12] : memref<1x128xf32, #tpu.memory_space<vmem>>, vector<1x128xf32>
      %14 = vector.broadcast %13 : vector<1x128xf32> to vector<16x128xf32>
      %15 = arith.mulf %12, %14 : vector<16x128xf32>
      %c0_13 = arith.constant 0 : index
      %c0_14 = arith.constant 0 : index
      %16 = vector.load %arg6[%c0_13, %c0_14] : memref<1x128xf32, #tpu.memory_space<vmem>>, vector<1x128xf32>
      %17 = vector.broadcast %16 : vector<1x128xf32> to vector<16x128xf32>
      %18 = arith.addf %15, %17 : vector<16x128xf32>
      %c0_15 = arith.constant 0 : index
      %c0_16 = arith.constant 0 : index
      %19 = vector.load %arg7[%c0_15, %c0_16] : memref<16x128xbf16, #tpu.memory_space<vmem>>, vector<16x128xbf16>
      %20 = arith.extf %19 : vector<16x128xbf16> to vector<16x128xf32>
      %21 = arith.addf %18, %20 : vector<16x128xf32>
      %cst_17 = arith.constant 0.000000e+00 : f32
      %22 = vector.broadcast %cst_17 : f32 to vector<16x128xf32>
      %23 = arith.maximumf %21, %22 : vector<16x128xf32>
      %24 = arith.truncf %23 : vector<16x128xf32> to vector<16x128xbf16>
      %c0_18 = arith.constant 0 : index
      %c0_19 = arith.constant 0 : index
      %25 = vector.load %arg8[%c0_18, %c0_19] : memref<16x128xbf16, #tpu.memory_space<vmem>>, vector<16x128xbf16>
      tpu.vector_store %arg8[%c0_18, %c0_19], %24 {strides = array<i32>} : memref<16x128xbf16, #tpu.memory_space<vmem>>, vector<16x128xbf16>,
    } else {
    }
    return
  }
  func.func @transform_0(%arg0: i32, %arg1: i32, %arg2: i32) -> (i32, i32) {
    %c0_i32 = arith.constant 0 : i32
    return %arg0, %arg2 : i32, i32
  }
  func.func @transform_1(%arg0: i32, %arg1: i32, %arg2: i32) -> (i32, i32) {
    %c0_i32 = arith.constant 0 : i32
    return %arg2, %arg1 : i32, i32
  }
  func.func @transform_2(%arg0: i32, %arg1: i32, %arg2: i32) -> (i32, i32) {
    %c0_i32 = arith.constant 0 : i32
    %c0_i32_0 = arith.constant 0 : i32
    return %c0_i32, %arg1 : i32, i32
  }
  func.func @transform_3(%arg0: i32, %arg1: i32, %arg2: i32) -> (i32, i32) {
    %c0_i32 = arith.constant 0 : i32
    %c0_i32_0 = arith.constant 0 : i32
    return %c0_i32, %arg1 : i32, i32
  }
  func.func @transform_4(%arg0: i32, %arg1: i32, %arg2: i32) -> (i32, i32) {
    %c0_i32 = arith.constant 0 : i32
    return %arg0, %arg1 : i32, i32
  }
  func.func @transform_5(%arg0: i32, %arg1: i32, %arg2: i32) -> (i32, i32) {
    %c0_i32 = arith.constant 0 : i32
    return %arg0, %arg1 : i32, i32
  }
}

module attributes {stable_mosaic.version = 11 : i64} {
  func.func @_gemm_bn_kernel(%arg0: i32, %arg1: i32, %arg2: i32, %arg3: memref<16x768xbf16, #tpu.memory_space<vmem>>, %arg4: memref<768x128xbf16, #tpu.memory_space<vmem>>, %arg5: memref<1x128xf32, #tpu.memory_space<vmem>>, %arg6: memref<1x128xf32, #tpu.memory_space<vmem>>, %arg7: memref<16x128xbf16, #tpu.memory_space<vmem>>, %arg8: memref<16x128xf32, #tpu.memory_space<vmem>>) attributes {dimension_semantics = [#tpu.dimension_semantics<parallel>, #tpu.dimension_semantics<parallel>, #tpu.dimension_semantics<arbitrary>], iteration_bounds = array<i64: 1, 2, 3>, scalar_prefetch = 0 : i64, scratch_operands = 1 : i64, tpu.core_type = #tpu.core_type<tc>, window_params = [{transform_indices = @transform_0, window_bounds = array<i64: 16, 768>}, {transform_indices = @transform_1, window_bounds = array<i64: 768, 128>}, {transform_indices = @transform_2, window_bounds = array<i64: 1, 128>}, {transform_indices = @transform_3, window_bounds = array<i64: 1, 128>}, {transform_indices = @transform_4, window_bounds = array<i64: 16, 128>}]} {
    %c0_i32 = arith.constant 0 : i32
    %0 = arith.cmpi eq, %arg2, %c0_i32 : i32
    %1 = arith.extui %0 : i1 to i32
    %c0_i32_0 = arith.constant 0 : i32
    %2 = arith.cmpi ne, %1, %c0_i32_0 : i32
    scf.if %2 {
      %cst_9 = arith.constant 0.000000e+00 : f32
      %12 = vector.broadcast %cst_9 : f32 to vector<16x128xf32>
      %c0_10 = arith.constant 0 : index
      %c0_11 = arith.constant 0 : index
      %13 = vector.load %arg8[%c0_10, %c0_11] : memref<16x128xf32, #tpu.memory_space<vmem>>, vector<16x128xf32>
      tpu.vector_store %arg8[%c0_10, %c0_11], %12 {strides = array<i32>} : memref<16x128xf32, #tpu.memory_space<vmem>>, vector<16x128xf32>,
    } else {
    }
    %c0 = arith.constant 0 : index
    %c0_1 = arith.constant 0 : index
    %3 = vector.load %arg8[%c0, %c0_1] : memref<16x128xf32, #tpu.memory_space<vmem>>, vector<16x128xf32>
    %c0_2 = arith.constant 0 : index
    %c0_3 = arith.constant 0 : index
    %4 = vector.load %arg3[%c0_2, %c0_3] : memref<16x768xbf16, #tpu.memory_space<vmem>>, vector<16x768xbf16>
    %c0_4 = arith.constant 0 : index
    %c0_5 = arith.constant 0 : index
    %5 = vector.load %arg4[%c0_4, %c0_5] : memref<768x128xbf16, #tpu.memory_space<vmem>>, vector<768x128xbf16>
    %cst = arith.constant dense<0.000000e+00> : vector<16x128xf32>
    %6 = tpu.matmul %4, %5, %cst {dimension_numbers = #tpu.dot_dimension_numbers<[1], [0], [0], [1], [0, 0, 1, 1], [], []>} : vector<16x768xbf16>, vector<768x128xbf16>, vector<16x128xf32> -> vector<16x128xf32>
    %7 = arith.addf %3, %6 : vector<16x128xf32>
    %c0_6 = arith.constant 0 : index
    %c0_7 = arith.constant 0 : index
    %8 = vector.load %arg8[%c0_6, %c0_7] : memref<16x128xf32, #tpu.memory_space<vmem>>, vector<16x128xf32>
    tpu.vector_store %arg8[%c0_6, %c0_7], %7 {strides = array<i32>} : memref<16x128xf32, #tpu.memory_space<vmem>>, vector<16x128xf32>,
    %c2_i32 = arith.constant 2 : i32
    %9 = arith.cmpi eq, %arg2, %c2_i32 : i32
    %10 = arith.extui %9 : i1 to i32
    %c0_i32_8 = arith.constant 0 : i32
    %11 = arith.cmpi ne, %10, %c0_i32_8 : i32
    scf.if %11 {
      %c0_9 = arith.constant 0 : index
      %c0_10 = arith.constant 0 : index
      %12 = vector.load %arg8[%c0_9, %c0_10] : memref<16x128xf32, #tpu.memory_space<vmem>>, vector<16x128xf32>
      %c0_11 = arith.constant 0 : index
      %c0_12 = arith.constant 0 : index
      %13 = vector.load %arg5[%c0_11, %c0_12] : memref<1x128xf32, #tpu.memory_space<vmem>>, vector<1x128xf32>
      %14 = vector.broadcast %13 : vector<1x128xf32> to vector<16x128xf32>
      %15 = arith.mulf %12, %14 : vector<16x128xf32>
      %c0_13 = arith.constant 0 : index
      %c0_14 = arith.constant 0 : index
      %16 = vector.load %arg6[%c0_13, %c0_14] : memref<1x128xf32, #tpu.memory_space<vmem>>, vector<1x128xf32>
      %17 = vector.broadcast %16 : vector<1x128xf32> to vector<16x128xf32>
      %18 = arith.addf %15, %17 : vector<16x128xf32>
      %cst_15 = arith.constant 0.000000e+00 : f32
      %19 = vector.broadcast %cst_15 : f32 to vector<16x128xf32>
      %20 = arith.maximumf %18, %19 : vector<16x128xf32>
      %21 = arith.truncf %20 : vector<16x128xf32> to vector<16x128xbf16>
      %c0_16 = arith.constant 0 : index
      %c0_17 = arith.constant 0 : index
      %22 = vector.load %arg7[%c0_16, %c0_17] : memref<16x128xbf16, #tpu.memory_space<vmem>>, vector<16x128xbf16>
      tpu.vector_store %arg7[%c0_16, %c0_17], %21 {strides = array<i32>} : memref<16x128xbf16, #tpu.memory_space<vmem>>, vector<16x128xbf16>,
    } else {
    }
    return
  }
  func.func @transform_0(%arg0: i32, %arg1: i32, %arg2: i32) -> (i32, i32) {
    %c0_i32 = arith.constant 0 : i32
    return %arg0, %arg2 : i32, i32
  }
  func.func @transform_1(%arg0: i32, %arg1: i32, %arg2: i32) -> (i32, i32) {
    %c0_i32 = arith.constant 0 : i32
    return %arg2, %arg1 : i32, i32
  }
  func.func @transform_2(%arg0: i32, %arg1: i32, %arg2: i32) -> (i32, i32) {
    %c0_i32 = arith.constant 0 : i32
    %c0_i32_0 = arith.constant 0 : i32
    return %c0_i32, %arg1 : i32, i32
  }
  func.func @transform_3(%arg0: i32, %arg1: i32, %arg2: i32) -> (i32, i32) {
    %c0_i32 = arith.constant 0 : i32
    %c0_i32_0 = arith.constant 0 : i32
    return %c0_i32, %arg1 : i32, i32
  }
  func.func @transform_4(%arg0: i32, %arg1: i32, %arg2: i32) -> (i32, i32) {
    %c0_i32 = arith.constant 0 : i32
    return %arg0, %arg1 : i32, i32
  }
}

module attributes {stable_mosaic.version = 11 : i64} {
  func.func @_gemm_bn_kernel(%arg0: i32, %arg1: i32, %arg2: i32, %arg3: memref<16x768xbf16, #tpu.memory_space<vmem>>, %arg4: memref<768x256xbf16, #tpu.memory_space<vmem>>, %arg5: memref<1x256xf32, #tpu.memory_space<vmem>>, %arg6: memref<1x256xf32, #tpu.memory_space<vmem>>, %arg7: memref<16x256xbf16, #tpu.memory_space<vmem>>, %arg8: memref<16x256xf32, #tpu.memory_space<vmem>>) attributes {dimension_semantics = [#tpu.dimension_semantics<parallel>, #tpu.dimension_semantics<parallel>, #tpu.dimension_semantics<arbitrary>], iteration_bounds = array<i64: 1, 2, 3>, scalar_prefetch = 0 : i64, scratch_operands = 1 : i64, tpu.core_type = #tpu.core_type<tc>, window_params = [{transform_indices = @transform_0, window_bounds = array<i64: 16, 768>}, {transform_indices = @transform_1, window_bounds = array<i64: 768, 256>}, {transform_indices = @transform_2, window_bounds = array<i64: 1, 256>}, {transform_indices = @transform_3, window_bounds = array<i64: 1, 256>}, {transform_indices = @transform_4, window_bounds = array<i64: 16, 256>}]} {
    %c0_i32 = arith.constant 0 : i32
    %0 = arith.cmpi eq, %arg2, %c0_i32 : i32
    %1 = arith.extui %0 : i1 to i32
    %c0_i32_0 = arith.constant 0 : i32
    %2 = arith.cmpi ne, %1, %c0_i32_0 : i32
    scf.if %2 {
      %cst_9 = arith.constant 0.000000e+00 : f32
      %12 = vector.broadcast %cst_9 : f32 to vector<16x256xf32>
      %c0_10 = arith.constant 0 : index
      %c0_11 = arith.constant 0 : index
      %13 = vector.load %arg8[%c0_10, %c0_11] : memref<16x256xf32, #tpu.memory_space<vmem>>, vector<16x256xf32>
      tpu.vector_store %arg8[%c0_10, %c0_11], %12 {strides = array<i32>} : memref<16x256xf32, #tpu.memory_space<vmem>>, vector<16x256xf32>,
    } else {
    }
    %c0 = arith.constant 0 : index
    %c0_1 = arith.constant 0 : index
    %3 = vector.load %arg8[%c0, %c0_1] : memref<16x256xf32, #tpu.memory_space<vmem>>, vector<16x256xf32>
    %c0_2 = arith.constant 0 : index
    %c0_3 = arith.constant 0 : index
    %4 = vector.load %arg3[%c0_2, %c0_3] : memref<16x768xbf16, #tpu.memory_space<vmem>>, vector<16x768xbf16>
    %c0_4 = arith.constant 0 : index
    %c0_5 = arith.constant 0 : index
    %5 = vector.load %arg4[%c0_4, %c0_5] : memref<768x256xbf16, #tpu.memory_space<vmem>>, vector<768x256xbf16>
    %cst = arith.constant dense<0.000000e+00> : vector<16x256xf32>
    %6 = tpu.matmul %4, %5, %cst {dimension_numbers = #tpu.dot_dimension_numbers<[1], [0], [0], [1], [0, 0, 1, 1], [], []>} : vector<16x768xbf16>, vector<768x256xbf16>, vector<16x256xf32> -> vector<16x256xf32>
    %7 = arith.addf %3, %6 : vector<16x256xf32>
    %c0_6 = arith.constant 0 : index
    %c0_7 = arith.constant 0 : index
    %8 = vector.load %arg8[%c0_6, %c0_7] : memref<16x256xf32, #tpu.memory_space<vmem>>, vector<16x256xf32>
    tpu.vector_store %arg8[%c0_6, %c0_7], %7 {strides = array<i32>} : memref<16x256xf32, #tpu.memory_space<vmem>>, vector<16x256xf32>,
    %c2_i32 = arith.constant 2 : i32
    %9 = arith.cmpi eq, %arg2, %c2_i32 : i32
    %10 = arith.extui %9 : i1 to i32
    %c0_i32_8 = arith.constant 0 : i32
    %11 = arith.cmpi ne, %10, %c0_i32_8 : i32
    scf.if %11 {
      %c0_9 = arith.constant 0 : index
      %c0_10 = arith.constant 0 : index
      %12 = vector.load %arg8[%c0_9, %c0_10] : memref<16x256xf32, #tpu.memory_space<vmem>>, vector<16x256xf32>
      %c0_11 = arith.constant 0 : index
      %c0_12 = arith.constant 0 : index
      %13 = vector.load %arg5[%c0_11, %c0_12] : memref<1x256xf32, #tpu.memory_space<vmem>>, vector<1x256xf32>
      %14 = vector.broadcast %13 : vector<1x256xf32> to vector<16x256xf32>
      %15 = arith.mulf %12, %14 : vector<16x256xf32>
      %c0_13 = arith.constant 0 : index
      %c0_14 = arith.constant 0 : index
      %16 = vector.load %arg6[%c0_13, %c0_14] : memref<1x256xf32, #tpu.memory_space<vmem>>, vector<1x256xf32>
      %17 = vector.broadcast %16 : vector<1x256xf32> to vector<16x256xf32>
      %18 = arith.addf %15, %17 : vector<16x256xf32>
      %cst_15 = arith.constant 0.000000e+00 : f32
      %19 = vector.broadcast %cst_15 : f32 to vector<16x256xf32>
      %20 = arith.maximumf %18, %19 : vector<16x256xf32>
      %21 = arith.truncf %20 : vector<16x256xf32> to vector<16x256xbf16>
      %c0_16 = arith.constant 0 : index
      %c0_17 = arith.constant 0 : index
      %22 = vector.load %arg7[%c0_16, %c0_17] : memref<16x256xbf16, #tpu.memory_space<vmem>>, vector<16x256xbf16>
      tpu.vector_store %arg7[%c0_16, %c0_17], %21 {strides = array<i32>} : memref<16x256xbf16, #tpu.memory_space<vmem>>, vector<16x256xbf16>,
    } else {
    }
    return
  }
  func.func @transform_0(%arg0: i32, %arg1: i32, %arg2: i32) -> (i32, i32) {
    %c0_i32 = arith.constant 0 : i32
    return %arg0, %arg2 : i32, i32
  }
  func.func @transform_1(%arg0: i32, %arg1: i32, %arg2: i32) -> (i32, i32) {
    %c0_i32 = arith.constant 0 : i32
    return %arg2, %arg1 : i32, i32
  }
  func.func @transform_2(%arg0: i32, %arg1: i32, %arg2: i32) -> (i32, i32) {
    %c0_i32 = arith.constant 0 : i32
    %c0_i32_0 = arith.constant 0 : i32
    return %c0_i32, %arg1 : i32, i32
  }
  func.func @transform_3(%arg0: i32, %arg1: i32, %arg2: i32) -> (i32, i32) {
    %c0_i32 = arith.constant 0 : i32
    %c0_i32_0 = arith.constant 0 : i32
    return %c0_i32, %arg1 : i32, i32
  }
  func.func @transform_4(%arg0: i32, %arg1: i32, %arg2: i32) -> (i32, i32) {
    %c0_i32 = arith.constant 0 : i32
    return %arg0, %arg1 : i32, i32
  }
}

module attributes {stable_mosaic.version = 11 : i64} {
  func.func @_gemm_bn_kernel(%arg0: i32, %arg1: i32, %arg2: i32, %arg3: memref<16x256xbf16, #tpu.memory_space<vmem>>, %arg4: memref<256x256xbf16, #tpu.memory_space<vmem>>, %arg5: memref<1x256xf32, #tpu.memory_space<vmem>>, %arg6: memref<1x256xf32, #tpu.memory_space<vmem>>, %arg7: memref<16x256xbf16, #tpu.memory_space<vmem>>, %arg8: memref<16x256xf32, #tpu.memory_space<vmem>>) attributes {dimension_semantics = [#tpu.dimension_semantics<parallel>, #tpu.dimension_semantics<parallel>, #tpu.dimension_semantics<arbitrary>], iteration_bounds = array<i64: 1, 2, 1>, scalar_prefetch = 0 : i64, scratch_operands = 1 : i64, tpu.core_type = #tpu.core_type<tc>, window_params = [{transform_indices = @transform_0, window_bounds = array<i64: 16, 256>}, {transform_indices = @transform_1, window_bounds = array<i64: 256, 256>}, {transform_indices = @transform_2, window_bounds = array<i64: 1, 256>}, {transform_indices = @transform_3, window_bounds = array<i64: 1, 256>}, {transform_indices = @transform_4, window_bounds = array<i64: 16, 256>}]} {
    %c0_i32 = arith.constant 0 : i32
    %0 = arith.cmpi eq, %arg2, %c0_i32 : i32
    %1 = arith.extui %0 : i1 to i32
    %c0_i32_0 = arith.constant 0 : i32
    %2 = arith.cmpi ne, %1, %c0_i32_0 : i32
    scf.if %2 {
      %cst_10 = arith.constant 0.000000e+00 : f32
      %12 = vector.broadcast %cst_10 : f32 to vector<16x256xf32>
      %c0_11 = arith.constant 0 : index
      %c0_12 = arith.constant 0 : index
      %13 = vector.load %arg8[%c0_11, %c0_12] : memref<16x256xf32, #tpu.memory_space<vmem>>, vector<16x256xf32>
      tpu.vector_store %arg8[%c0_11, %c0_12], %12 {strides = array<i32>} : memref<16x256xf32, #tpu.memory_space<vmem>>, vector<16x256xf32>,
    } else {
    }
    %c0 = arith.constant 0 : index
    %c0_1 = arith.constant 0 : index
    %3 = vector.load %arg8[%c0, %c0_1] : memref<16x256xf32, #tpu.memory_space<vmem>>, vector<16x256xf32>
    %c0_2 = arith.constant 0 : index
    %c0_3 = arith.constant 0 : index
    %4 = vector.load %arg3[%c0_2, %c0_3] : memref<16x256xbf16, #tpu.memory_space<vmem>>, vector<16x256xbf16>
    %c0_4 = arith.constant 0 : index
    %c0_5 = arith.constant 0 : index
    %5 = vector.load %arg4[%c0_4, %c0_5] : memref<256x256xbf16, #tpu.memory_space<vmem>>, vector<256x256xbf16>
    %cst = arith.constant dense<0.000000e+00> : vector<16x256xf32>
    %6 = tpu.matmul %4, %5, %cst {dimension_numbers = #tpu.dot_dimension_numbers<[1], [0], [0], [1], [0, 0, 1, 1], [], []>} : vector<16x256xbf16>, vector<256x256xbf16>, vector<16x256xf32> -> vector<16x256xf32>
    %7 = arith.addf %3, %6 : vector<16x256xf32>
    %c0_6 = arith.constant 0 : index
    %c0_7 = arith.constant 0 : index
    %8 = vector.load %arg8[%c0_6, %c0_7] : memref<16x256xf32, #tpu.memory_space<vmem>>, vector<16x256xf32>
    tpu.vector_store %arg8[%c0_6, %c0_7], %7 {strides = array<i32>} : memref<16x256xf32, #tpu.memory_space<vmem>>, vector<16x256xf32>,
    %c0_i32_8 = arith.constant 0 : i32
    %9 = arith.cmpi eq, %arg2, %c0_i32_8 : i32
    %10 = arith.extui %9 : i1 to i32
    %c0_i32_9 = arith.constant 0 : i32
    %11 = arith.cmpi ne, %10, %c0_i32_9 : i32
    scf.if %11 {
      %c0_10 = arith.constant 0 : index
      %c0_11 = arith.constant 0 : index
      %12 = vector.load %arg8[%c0_10, %c0_11] : memref<16x256xf32, #tpu.memory_space<vmem>>, vector<16x256xf32>
      %c0_12 = arith.constant 0 : index
      %c0_13 = arith.constant 0 : index
      %13 = vector.load %arg5[%c0_12, %c0_13] : memref<1x256xf32, #tpu.memory_space<vmem>>, vector<1x256xf32>
      %14 = vector.broadcast %13 : vector<1x256xf32> to vector<16x256xf32>
      %15 = arith.mulf %12, %14 : vector<16x256xf32>
      %c0_14 = arith.constant 0 : index
      %c0_15 = arith.constant 0 : index
      %16 = vector.load %arg6[%c0_14, %c0_15] : memref<1x256xf32, #tpu.memory_space<vmem>>, vector<1x256xf32>
      %17 = vector.broadcast %16 : vector<1x256xf32> to vector<16x256xf32>
      %18 = arith.addf %15, %17 : vector<16x256xf32>
      %19 = arith.truncf %18 : vector<16x256xf32> to vector<16x256xbf16>
      %c0_16 = arith.constant 0 : index
      %c0_17 = arith.constant 0 : index
      %20 = vector.load %arg7[%c0_16, %c0_17] : memref<16x256xbf16, #tpu.memory_space<vmem>>, vector<16x256xbf16>
      tpu.vector_store %arg7[%c0_16, %c0_17], %19 {strides = array<i32>} : memref<16x256xbf16, #tpu.memory_space<vmem>>, vector<16x256xbf16>,
    } else {
    }
    return
  }
  func.func @transform_0(%arg0: i32, %arg1: i32, %arg2: i32) -> (i32, i32) {
    %c0_i32 = arith.constant 0 : i32
    return %arg0, %arg2 : i32, i32
  }
  func.func @transform_1(%arg0: i32, %arg1: i32, %arg2: i32) -> (i32, i32) {
    %c0_i32 = arith.constant 0 : i32
    return %arg2, %arg1 : i32, i32
  }
  func.func @transform_2(%arg0: i32, %arg1: i32, %arg2: i32) -> (i32, i32) {
    %c0_i32 = arith.constant 0 : i32
    %c0_i32_0 = arith.constant 0 : i32
    return %c0_i32, %arg1 : i32, i32
  }
  func.func @transform_3(%arg0: i32, %arg1: i32, %arg2: i32) -> (i32, i32) {
    %c0_i32 = arith.constant 0 : i32
    %c0_i32_0 = arith.constant 0 : i32
    return %c0_i32, %arg1 : i32, i32
  }
  func.func @transform_4(%arg0: i32, %arg1: i32, %arg2: i32) -> (i32, i32) {
    %c0_i32 = arith.constant 0 : i32
    return %arg0, %arg1 : i32, i32
  }
}

module attributes {stable_mosaic.version = 11 : i64} {
  func.func @_gemm_bn_res_kernel(%arg0: i32, %arg1: i32, %arg2: i32, %arg3: memref<16x768xbf16, #tpu.memory_space<vmem>>, %arg4: memref<768x256xbf16, #tpu.memory_space<vmem>>, %arg5: memref<1x256xf32, #tpu.memory_space<vmem>>, %arg6: memref<1x256xf32, #tpu.memory_space<vmem>>, %arg7: memref<16x256xbf16, #tpu.memory_space<vmem>>, %arg8: memref<16x256xbf16, #tpu.memory_space<vmem>>, %arg9: memref<16x256xf32, #tpu.memory_space<vmem>>) attributes {dimension_semantics = [#tpu.dimension_semantics<parallel>, #tpu.dimension_semantics<parallel>, #tpu.dimension_semantics<arbitrary>], iteration_bounds = array<i64: 1, 2, 6>, scalar_prefetch = 0 : i64, scratch_operands = 1 : i64, tpu.core_type = #tpu.core_type<tc>, window_params = [{transform_indices = @transform_0, window_bounds = array<i64: 16, 768>}, {transform_indices = @transform_1, window_bounds = array<i64: 768, 256>}, {transform_indices = @transform_2, window_bounds = array<i64: 1, 256>}, {transform_indices = @transform_3, window_bounds = array<i64: 1, 256>}, {transform_indices = @transform_4, window_bounds = array<i64: 16, 256>}, {transform_indices = @transform_5, window_bounds = array<i64: 16, 256>}]} {
    %c0_i32 = arith.constant 0 : i32
    %0 = arith.cmpi eq, %arg2, %c0_i32 : i32
    %1 = arith.extui %0 : i1 to i32
    %c0_i32_0 = arith.constant 0 : i32
    %2 = arith.cmpi ne, %1, %c0_i32_0 : i32
    scf.if %2 {
      %cst_9 = arith.constant 0.000000e+00 : f32
      %12 = vector.broadcast %cst_9 : f32 to vector<16x256xf32>
      %c0_10 = arith.constant 0 : index
      %c0_11 = arith.constant 0 : index
      %13 = vector.load %arg9[%c0_10, %c0_11] : memref<16x256xf32, #tpu.memory_space<vmem>>, vector<16x256xf32>
      tpu.vector_store %arg9[%c0_10, %c0_11], %12 {strides = array<i32>} : memref<16x256xf32, #tpu.memory_space<vmem>>, vector<16x256xf32>,
    } else {
    }
    %c0 = arith.constant 0 : index
    %c0_1 = arith.constant 0 : index
    %3 = vector.load %arg9[%c0, %c0_1] : memref<16x256xf32, #tpu.memory_space<vmem>>, vector<16x256xf32>
    %c0_2 = arith.constant 0 : index
    %c0_3 = arith.constant 0 : index
    %4 = vector.load %arg3[%c0_2, %c0_3] : memref<16x768xbf16, #tpu.memory_space<vmem>>, vector<16x768xbf16>
    %c0_4 = arith.constant 0 : index
    %c0_5 = arith.constant 0 : index
    %5 = vector.load %arg4[%c0_4, %c0_5] : memref<768x256xbf16, #tpu.memory_space<vmem>>, vector<768x256xbf16>
    %cst = arith.constant dense<0.000000e+00> : vector<16x256xf32>
    %6 = tpu.matmul %4, %5, %cst {dimension_numbers = #tpu.dot_dimension_numbers<[1], [0], [0], [1], [0, 0, 1, 1], [], []>} : vector<16x768xbf16>, vector<768x256xbf16>, vector<16x256xf32> -> vector<16x256xf32>
    %7 = arith.addf %3, %6 : vector<16x256xf32>
    %c0_6 = arith.constant 0 : index
    %c0_7 = arith.constant 0 : index
    %8 = vector.load %arg9[%c0_6, %c0_7] : memref<16x256xf32, #tpu.memory_space<vmem>>, vector<16x256xf32>
    tpu.vector_store %arg9[%c0_6, %c0_7], %7 {strides = array<i32>} : memref<16x256xf32, #tpu.memory_space<vmem>>, vector<16x256xf32>,
    %c5_i32 = arith.constant 5 : i32
    %9 = arith.cmpi eq, %arg2, %c5_i32 : i32
    %10 = arith.extui %9 : i1 to i32
    %c0_i32_8 = arith.constant 0 : i32
    %11 = arith.cmpi ne, %10, %c0_i32_8 : i32
    scf.if %11 {
      %c0_9 = arith.constant 0 : index
      %c0_10 = arith.constant 0 : index
      %12 = vector.load %arg9[%c0_9, %c0_10] : memref<16x256xf32, #tpu.memory_space<vmem>>, vector<16x256xf32>
      %c0_11 = arith.constant 0 : index
      %c0_12 = arith.constant 0 : index
      %13 = vector.load %arg5[%c0_11, %c0_12] : memref<1x256xf32, #tpu.memory_space<vmem>>, vector<1x256xf32>
      %14 = vector.broadcast %13 : vector<1x256xf32> to vector<16x256xf32>
      %15 = arith.mulf %12, %14 : vector<16x256xf32>
      %c0_13 = arith.constant 0 : index
      %c0_14 = arith.constant 0 : index
      %16 = vector.load %arg6[%c0_13, %c0_14] : memref<1x256xf32, #tpu.memory_space<vmem>>, vector<1x256xf32>
      %17 = vector.broadcast %16 : vector<1x256xf32> to vector<16x256xf32>
      %18 = arith.addf %15, %17 : vector<16x256xf32>
      %c0_15 = arith.constant 0 : index
      %c0_16 = arith.constant 0 : index
      %19 = vector.load %arg7[%c0_15, %c0_16] : memref<16x256xbf16, #tpu.memory_space<vmem>>, vector<16x256xbf16>
      %20 = arith.extf %19 : vector<16x256xbf16> to vector<16x256xf32>
      %21 = arith.addf %18, %20 : vector<16x256xf32>
      %cst_17 = arith.constant 0.000000e+00 : f32
      %22 = vector.broadcast %cst_17 : f32 to vector<16x256xf32>
      %23 = arith.maximumf %21, %22 : vector<16x256xf32>
      %24 = arith.truncf %23 : vector<16x256xf32> to vector<16x256xbf16>
      %c0_18 = arith.constant 0 : index
      %c0_19 = arith.constant 0 : index
      %25 = vector.load %arg8[%c0_18, %c0_19] : memref<16x256xbf16, #tpu.memory_space<vmem>>, vector<16x256xbf16>
      tpu.vector_store %arg8[%c0_18, %c0_19], %24 {strides = array<i32>} : memref<16x256xbf16, #tpu.memory_space<vmem>>, vector<16x256xbf16>,
    } else {
    }
    return
  }
  func.func @transform_0(%arg0: i32, %arg1: i32, %arg2: i32) -> (i32, i32) {
    %c0_i32 = arith.constant 0 : i32
    return %arg0, %arg2 : i32, i32
  }
  func.func @transform_1(%arg0: i32, %arg1: i32, %arg2: i32) -> (i32, i32) {
    %c0_i32 = arith.constant 0 : i32
    return %arg2, %arg1 : i32, i32
  }
  func.func @transform_2(%arg0: i32, %arg1: i32, %arg2: i32) -> (i32, i32) {
    %c0_i32 = arith.constant 0 : i32
    %c0_i32_0 = arith.constant 0 : i32
    return %c0_i32, %arg1 : i32, i32
  }
  func.func @transform_3(%arg0: i32, %arg1: i32, %arg2: i32) -> (i32, i32) {
    %c0_i32 = arith.constant 0 : i32
    %c0_i32_0 = arith.constant 0 : i32
    return %c0_i32, %arg1 : i32, i32
  }
  func.func @transform_4(%arg0: i32, %arg1: i32, %arg2: i32) -> (i32, i32) {
    %c0_i32 = arith.constant 0 : i32
    return %arg0, %arg1 : i32, i32
  }
  func.func @transform_5(%arg0: i32, %arg1: i32, %arg2: i32) -> (i32, i32) {
    %c0_i32 = arith.constant 0 : i32
    return %arg0, %arg1 : i32, i32
  }
}

module attributes {stable_mosaic.version = 11 : i64} {
  func.func @_gemm_bn_kernel(%arg0: i32, %arg1: i32, %arg2: i32, %arg3: memref<16x768xbf16, #tpu.memory_space<vmem>>, %arg4: memref<768x256xbf16, #tpu.memory_space<vmem>>, %arg5: memref<1x256xf32, #tpu.memory_space<vmem>>, %arg6: memref<1x256xf32, #tpu.memory_space<vmem>>, %arg7: memref<16x256xbf16, #tpu.memory_space<vmem>>, %arg8: memref<16x256xf32, #tpu.memory_space<vmem>>) attributes {dimension_semantics = [#tpu.dimension_semantics<parallel>, #tpu.dimension_semantics<parallel>, #tpu.dimension_semantics<arbitrary>], iteration_bounds = array<i64: 1, 2, 6>, scalar_prefetch = 0 : i64, scratch_operands = 1 : i64, tpu.core_type = #tpu.core_type<tc>, window_params = [{transform_indices = @transform_0, window_bounds = array<i64: 16, 768>}, {transform_indices = @transform_1, window_bounds = array<i64: 768, 256>}, {transform_indices = @transform_2, window_bounds = array<i64: 1, 256>}, {transform_indices = @transform_3, window_bounds = array<i64: 1, 256>}, {transform_indices = @transform_4, window_bounds = array<i64: 16, 256>}]} {
    %c0_i32 = arith.constant 0 : i32
    %0 = arith.cmpi eq, %arg2, %c0_i32 : i32
    %1 = arith.extui %0 : i1 to i32
    %c0_i32_0 = arith.constant 0 : i32
    %2 = arith.cmpi ne, %1, %c0_i32_0 : i32
    scf.if %2 {
      %cst_9 = arith.constant 0.000000e+00 : f32
      %12 = vector.broadcast %cst_9 : f32 to vector<16x256xf32>
      %c0_10 = arith.constant 0 : index
      %c0_11 = arith.constant 0 : index
      %13 = vector.load %arg8[%c0_10, %c0_11] : memref<16x256xf32, #tpu.memory_space<vmem>>, vector<16x256xf32>
      tpu.vector_store %arg8[%c0_10, %c0_11], %12 {strides = array<i32>} : memref<16x256xf32, #tpu.memory_space<vmem>>, vector<16x256xf32>,
    } else {
    }
    %c0 = arith.constant 0 : index
    %c0_1 = arith.constant 0 : index
    %3 = vector.load %arg8[%c0, %c0_1] : memref<16x256xf32, #tpu.memory_space<vmem>>, vector<16x256xf32>
    %c0_2 = arith.constant 0 : index
    %c0_3 = arith.constant 0 : index
    %4 = vector.load %arg3[%c0_2, %c0_3] : memref<16x768xbf16, #tpu.memory_space<vmem>>, vector<16x768xbf16>
    %c0_4 = arith.constant 0 : index
    %c0_5 = arith.constant 0 : index
    %5 = vector.load %arg4[%c0_4, %c0_5] : memref<768x256xbf16, #tpu.memory_space<vmem>>, vector<768x256xbf16>
    %cst = arith.constant dense<0.000000e+00> : vector<16x256xf32>
    %6 = tpu.matmul %4, %5, %cst {dimension_numbers = #tpu.dot_dimension_numbers<[1], [0], [0], [1], [0, 0, 1, 1], [], []>} : vector<16x768xbf16>, vector<768x256xbf16>, vector<16x256xf32> -> vector<16x256xf32>
    %7 = arith.addf %3, %6 : vector<16x256xf32>
    %c0_6 = arith.constant 0 : index
    %c0_7 = arith.constant 0 : index
    %8 = vector.load %arg8[%c0_6, %c0_7] : memref<16x256xf32, #tpu.memory_space<vmem>>, vector<16x256xf32>
    tpu.vector_store %arg8[%c0_6, %c0_7], %7 {strides = array<i32>} : memref<16x256xf32, #tpu.memory_space<vmem>>, vector<16x256xf32>,
    %c5_i32 = arith.constant 5 : i32
    %9 = arith.cmpi eq, %arg2, %c5_i32 : i32
    %10 = arith.extui %9 : i1 to i32
    %c0_i32_8 = arith.constant 0 : i32
    %11 = arith.cmpi ne, %10, %c0_i32_8 : i32
    scf.if %11 {
      %c0_9 = arith.constant 0 : index
      %c0_10 = arith.constant 0 : index
      %12 = vector.load %arg8[%c0_9, %c0_10] : memref<16x256xf32, #tpu.memory_space<vmem>>, vector<16x256xf32>
      %c0_11 = arith.constant 0 : index
      %c0_12 = arith.constant 0 : index
      %13 = vector.load %arg5[%c0_11, %c0_12] : memref<1x256xf32, #tpu.memory_space<vmem>>, vector<1x256xf32>
      %14 = vector.broadcast %13 : vector<1x256xf32> to vector<16x256xf32>
      %15 = arith.mulf %12, %14 : vector<16x256xf32>
      %c0_13 = arith.constant 0 : index
      %c0_14 = arith.constant 0 : index
      %16 = vector.load %arg6[%c0_13, %c0_14] : memref<1x256xf32, #tpu.memory_space<vmem>>, vector<1x256xf32>
      %17 = vector.broadcast %16 : vector<1x256xf32> to vector<16x256xf32>
      %18 = arith.addf %15, %17 : vector<16x256xf32>
      %cst_15 = arith.constant 0.000000e+00 : f32
      %19 = vector.broadcast %cst_15 : f32 to vector<16x256xf32>
      %20 = arith.maximumf %18, %19 : vector<16x256xf32>
      %21 = arith.truncf %20 : vector<16x256xf32> to vector<16x256xbf16>
      %c0_16 = arith.constant 0 : index
      %c0_17 = arith.constant 0 : index
      %22 = vector.load %arg7[%c0_16, %c0_17] : memref<16x256xbf16, #tpu.memory_space<vmem>>, vector<16x256xbf16>
      tpu.vector_store %arg7[%c0_16, %c0_17], %21 {strides = array<i32>} : memref<16x256xbf16, #tpu.memory_space<vmem>>, vector<16x256xbf16>,
    } else {
    }
    return
  }
  func.func @transform_0(%arg0: i32, %arg1: i32, %arg2: i32) -> (i32, i32) {
    %c0_i32 = arith.constant 0 : i32
    return %arg0, %arg2 : i32, i32
  }
  func.func @transform_1(%arg0: i32, %arg1: i32, %arg2: i32) -> (i32, i32) {
    %c0_i32 = arith.constant 0 : i32
    return %arg2, %arg1 : i32, i32
  }
  func.func @transform_2(%arg0: i32, %arg1: i32, %arg2: i32) -> (i32, i32) {
    %c0_i32 = arith.constant 0 : i32
    %c0_i32_0 = arith.constant 0 : i32
    return %c0_i32, %arg1 : i32, i32
  }
  func.func @transform_3(%arg0: i32, %arg1: i32, %arg2: i32) -> (i32, i32) {
    %c0_i32 = arith.constant 0 : i32
    %c0_i32_0 = arith.constant 0 : i32
    return %c0_i32, %arg1 : i32, i32
  }
  func.func @transform_4(%arg0: i32, %arg1: i32, %arg2: i32) -> (i32, i32) {
    %c0_i32 = arith.constant 0 : i32
    return %arg0, %arg1 : i32, i32
  }
}

module attributes {stable_mosaic.version = 11 : i64} {
  func.func @_avgpool_kernel(%arg0: i32, %arg1: memref<1x1x512xbf16, #tpu.memory_space<vmem>>, %arg2: memref<1x1x512xf32, #tpu.memory_space<vmem>>) attributes {dimension_semantics = [#tpu.dimension_semantics<parallel>], iteration_bounds = array<i64: 2>, scalar_prefetch = 0 : i64, scratch_operands = 0 : i64, tpu.core_type = #tpu.core_type<tc>, window_params = [{transform_indices = @transform_0, window_bounds = array<i64: 1, 1, 512>}, {transform_indices = @transform_1, window_bounds = array<i64: 1, 1, 512>}]} {
    %c0 = arith.constant 0 : index
    %c0_0 = arith.constant 0 : index
    %c0_1 = arith.constant 0 : index
    %0 = vector.load %arg1[%c0, %c0_0, %c0_1] : memref<1x1x512xbf16, #tpu.memory_space<vmem>>, vector<1x1x512xbf16>
    %1 = arith.extf %0 : vector<1x1x512xbf16> to vector<1x1x512xf32>
    %cst = arith.constant dense<0.000000e+00> : vector<1x512xf32>
    %2 = vector.multi_reduction <add>, %1, %cst [1] : vector<1x1x512xf32> to vector<1x512xf32>
    %3 = vector.shape_cast %2 : vector<1x512xf32> to vector<1x1x512xf32>
    %cst_2 = arith.constant 1.000000e+00 : f32
    %4 = vector.broadcast %cst_2 : f32 to vector<1x1x512xf32>
    %5 = arith.divf %3, %4 : vector<1x1x512xf32>
    %c0_3 = arith.constant 0 : index
    %c0_4 = arith.constant 0 : index
    %c0_5 = arith.constant 0 : index
    %6 = vector.load %arg2[%c0_3, %c0_4, %c0_5] : memref<1x1x512xf32, #tpu.memory_space<vmem>>, vector<1x1x512xf32>
    tpu.vector_store %arg2[%c0_3, %c0_4, %c0_5], %5 {strides = array<i32>} : memref<1x1x512xf32, #tpu.memory_space<vmem>>, vector<1x1x512xf32>,
    return
  }
  func.func @transform_0(%arg0: i32) -> (i32, i32, i32) {
    %c0_i32 = arith.constant 0 : i32
    %c0_i32_0 = arith.constant 0 : i32
    %c0_i32_1 = arith.constant 0 : i32
    return %arg0, %c0_i32, %c0_i32_0 : i32, i32, i32
  }
  func.func @transform_1(%arg0: i32) -> (i32, i32, i32) {
    %c0_i32 = arith.constant 0 : i32
    %c0_i32_0 = arith.constant 0 : i32
    %c0_i32_1 = arith.constant 0 : i32
    return %arg0, %c0_i32, %c0_i32_0 : i32, i32, i32
  }
}

</mosaic_0001>

<bundles_post_ra>
// kernel: resnet34_features.38
= control target key start
LH: loop header
LB: loop body
LE: loop exit
PB: predicated region body
PF: predicated region fallthrough
CT: control target
= control target key end

     0   :  { %s1843_s15 = smov 0   ;;  %s1845_s16 = smov 0   ;;  %s2054_s0 = inlined_call_operand.vmem [shape: bf16[512,256], index: 0, kind: input, shape index: {}]   ;;  %s2055_s1 = inlined_call_operand.vmem [shape: bf16[256,128], index: 1, kind: input, shape index: {}]   ;;  %s2056_s2 = inlined_call_operand.vmem [shape: f32[1,128], index: 2, kind: input, shape index: {}]   ;;  %s2057_s3 = inlined_call_operand.vmem [shape: f32[1,128], index: 3, kind: input, shape index: {}]   ;;  %s2058_s4 = inlined_call_operand.vmem [shape: bf16[512,128], index: 4, kind: output, shape index: {}]  }
   0x1   :  { %s1847_s17 = smov 0  }
   0x2 LB: > { %s33_s18 = sadd.s32 1, %s1812_s16  ;;  %p1360_p0 = scmp.ge.s32.totalorder %s1816_s17, 1  ;;  %s1816_s17 = sphi %s1847_s17, %s14_s17   ;;  %s1812_s16 = sphi %s1845_s16, %s2060_s16   ;;  %s1808_s15 = sphi %s1843_s15, %s2059_s15  }
   0x3   : > { %p35_p1 = scmp.ge.s32.totalorder %s33_s18, 2  ;;  %p224_p2 = scmp.lt.s32.totalorder %s1816_s17, 3 }
   0x5   : > { %s2062_s18 = smov (%p35_p1, %s33_s18), 0  ;;  %p225_p3 = pnand %p1360_p0, %p224_p2 }
   0x6   : > { %v1730_v0 = vld [vmem:[%s2055_s1 + $0x40] sm:$0xff] (!%p225_p3)   ;;  %s1361_s21 = sshll.u32 (!%p225_p3), %s1808_s15, 5  ;;  %v1732_v2 = vld [vmem:[%s2055_s1 + $0x48] sm:$0xff] (!%p225_p3)   ;;  %v1734_v4 = vld [vmem:[%s2055_s1 + $0x50] sm:$0xff] (!%p225_p3)  }
   0x7   : > { %228 = sbr.rel (%p225_p3) target bundleno = 322 (0x142), region = 36  ;;  %v1731_v1 = vld [vmem:[%s2055_s1] sm:$0xff] (!%p225_p3)   ;;  %1578 = vmatprep.subr.bf16.mxu0 (!%p225_p3), %v1730_v0  ;;  %1690 = vmatprep.subr.bf16.mxu1 (!%p225_p3), %v1730_v0  ;;  %v1733_v3 = vld [vmem:[%s2055_s1 + $0x8] sm:$0xff] (!%p225_p3)   ;;  %p274_p4 = scmp.lt.s32.totalorder (!%p225_p3), %s1361_s21, 63  ;;  %v1735_v5 = vld [vmem:[%s2055_s1 + $0x10] sm:$0xff] (!%p225_p3)  }
   0x8   : > { %1579 = vmatpush3.bf16.msra.mxu0 (!%p225_p3), %v1731_v1  ;;  %1698 = vmatpush3.bf16.msra.mxu1 (!%p225_p3), %v1731_v1  ;;  %v1736_v6 = vld [vmem:[%s2055_s1 + $0x58] sm:$0xff] (!%p225_p3)   ;;  %v1738_v8 = vld [vmem:[%s2055_s1 + $0x60] sm:$0xff] (!%p225_p3)   ;;  %v1740_v10 = vld [vmem:[%s2055_s1 + $0x68] sm:$0xff] (!%p225_p3)  }
   0x9   : > { %1580 = vmatprep.subr.bf16.mxu0 (!%p225_p3), %v1732_v2  ;;  %1691 = vmatprep.subr.bf16.mxu1 (!%p225_p3), %v1732_v2  ;;  %v1737_v7 = vld [vmem:[%s2055_s1 + $0x18] sm:$0xff] (!%p225_p3)   ;;  %v1739_v9 = vld [vmem:[%s2055_s1 + $0x20] sm:$0xff] (!%p225_p3)   ;;  %v1741_v13 = vld [vmem:[%s2055_s1 + $0x28] sm:$0xff] (!%p225_p3)  }
   0xa   : > { %v1742_v14 = vld [vmem:[%s2055_s1 + $0x70] sm:$0xff] (!%p225_p3)   ;;  %v1744_v16 = vld [vmem:[%s2055_s1 + $0x78] sm:$0xff] (!%p225_p3)   ;;  %v1952_v51 = vld [vmem:[%s2056_s2] ss:$0 sm:$0xff] (!%p225_p3) }
   0xb   : > { %v1743_v15 = vld [vmem:[%s2055_s1 + $0x30] sm:$0xff] (!%p225_p3)   ;;  %v1745_v17 = vld [vmem:[%s2055_s1 + $0x38] sm:$0xff] (!%p225_p3)   ;;  %v1957_v57 = vld [vmem:[%s2057_s3] ss:$0 sm:$0xff] (!%p225_p3) }
   0xc   : > { %1581 = vmatpush3.bf16.msra.mxu0 (!%p225_p3), %v1733_v3  ;;  %1699 = vmatpush3.bf16.msra.mxu1 (!%p225_p3), %v1733_v3 }
   0xd   : > { %1582 = vmatprep.subr.bf16.mxu0 (!%p225_p3), %v1734_v4  ;;  %1692 = vmatprep.subr.bf16.mxu1 (!%p225_p3), %v1734_v4 }
   0xe   : > { %s2064_s21 = smov (!%p274_p4, %s1361_s21), 63 }
   0xf   : > { %s1450_s10 = sshll.u32 %s2064_s21, 3  ;;  %s1365_s12 = sshll.u32 %s2064_s21, 2 }
  0x10   : > { %1583 = vmatpush3.bf16.msra.mxu0 %v1735_v5  ;;  %1700 = vmatpush3.bf16.msra.mxu1 %v1735_v5  ;;  %s1894_s15 = scalar_lea.vmem %s2054_s0, %s1450_s10  ;;  %s1971_s21 = scalar_lea.vmem %s2058_s4, %s1365_s12 }
  0x11   : > { %1584 = vmatprep.subr.bf16.mxu0 %v1736_v6  ;;  %1693 = vmatprep.subr.bf16.mxu1 %v1736_v6  ;;  %v1748_v11 = vld [vmem:[%s1894_s15 + $0x4] ss:$8 sps:$4 sm:$0xff]   ;;  %v1746_v18 = vld [vmem:[%s1894_s15] ss:$8 sps:$4 sm:$0xff]   ;;  %v1752_v20 = vld [vmem:[%s1894_s15 + $0x14] ss:$8 sps:$4 sm:$0xff]  }
  0x12   : > { %v1751_v12 = vld [vmem:[%s1894_s15 + $0x84] ss:$8 sps:$4 sm:$0xff]   ;;  %729 = vmatprep.mubr.bf16.mxu0 %v1748_v11  ;;  %v1749_v19 = vld [vmem:[%s1894_s15 + $0x80] ss:$8 sps:$4 sm:$0xff]   ;;  %v1754_v21 = vld [vmem:[%s1894_s15 + $0x94] ss:$8 sps:$4 sm:$0xff]  }
  0x13   : > { %793 = vmatprep.mubr.bf16.mxu1 %v1751_v12  ;;  %v1756_v22 = vld [vmem:[%s1894_s15 + $0x10] ss:$8 sps:$4 sm:$0xff]   ;;  %v1758_v24 = vld [vmem:[%s1894_s15 + $0x24] ss:$8 sps:$4 sm:$0xff]   ;;  %v1762_v26 = vld [vmem:[%s1894_s15 + $0x20] ss:$8 sps:$4 sm:$0xff]  }
  0x14   : > { %1585 = vmatpush3.bf16.msra.mxu0 %v1737_v7  ;;  %1701 = vmatpush3.bf16.msra.mxu1 %v1737_v7  ;;  %v1757_v23 = vld [vmem:[%s1894_s15 + $0x90] ss:$8 sps:$4 sm:$0xff]   ;;  %v1760_v25 = vld [vmem:[%s1894_s15 + $0xa4] ss:$8 sps:$4 sm:$0xff]   ;;  %v1763_v27 = vld [vmem:[%s1894_s15 + $0xa0] ss:$8 sps:$4 sm:$0xff]  }
  0x15   : > { %1586 = vmatprep.subr.bf16.mxu0 %v1738_v8  ;;  %1694 = vmatprep.subr.bf16.mxu1 %v1738_v8  ;;  %v1764_v28 = vld [vmem:[%s1894_s15 + $0x34] ss:$8 sps:$4 sm:$0xff]   ;;  %v1768_v30 = vld [vmem:[%s1894_s15 + $0x30] ss:$8 sps:$4 sm:$0xff]   ;;  %v1770_v32 = vld [vmem:[%s1894_s15 + $0x44] ss:$8 sps:$4 sm:$0xff]  }
  0x16   : > { %v1766_v29 = vld [vmem:[%s1894_s15 + $0xb4] ss:$8 sps:$4 sm:$0xff]   ;;  %v1769_v31 = vld [vmem:[%s1894_s15 + $0xb0] ss:$8 sps:$4 sm:$0xff]   ;;  %v1772_v33 = vld [vmem:[%s1894_s15 + $0xc4] ss:$8 sps:$4 sm:$0xff]  }
  0x17   : > { %v1774_v34 = vld [vmem:[%s1894_s15 + $0x40] ss:$8 sps:$4 sm:$0xff]   ;;  %v1776_v36 = vld [vmem:[%s1894_s15 + $0x54] ss:$8 sps:$4 sm:$0xff]   ;;  %v1780_v38 = vld [vmem:[%s1894_s15 + $0x50] ss:$8 sps:$4 sm:$0xff]  }
  0x18   : > { %1587 = vmatpush3.bf16.msra.mxu0 %v1739_v9  ;;  %1702 = vmatpush3.bf16.msra.mxu1 %v1739_v9  ;;  %v1775_v35 = vld [vmem:[%s1894_s15 + $0xc0] ss:$8 sps:$4 sm:$0xff]   ;;  %v1778_v37 = vld [vmem:[%s1894_s15 + $0xd4] ss:$8 sps:$4 sm:$0xff]   ;;  %v1781_v39 = vld [vmem:[%s1894_s15 + $0xd0] ss:$8 sps:$4 sm:$0xff]  }
  0x19   : > { %1588 = vmatprep.subr.bf16.mxu0 %v1740_v10  ;;  %1695 = vmatprep.subr.bf16.mxu1 %v1740_v10  ;;  %v1782_v40 = vld [vmem:[%s1894_s15 + $0x64] ss:$8 sps:$4 sm:$0xff]   ;;  %v1786_v42 = vld [vmem:[%s1894_s15 + $0x60] ss:$8 sps:$4 sm:$0xff]   ;;  %v1788_v44 = vld [vmem:[%s1894_s15 + $0x74] ss:$8 sps:$4 sm:$0xff]  }
  0x1a   : > { %v1784_v41 = vld [vmem:[%s1894_s15 + $0xe4] ss:$8 sps:$4 sm:$0xff]   ;;  %v1787_v43 = vld [vmem:[%s1894_s15 + $0xe0] ss:$8 sps:$4 sm:$0xff]   ;;  %v1790_v45 = vld [vmem:[%s1894_s15 + $0xf4] ss:$8 sps:$4 sm:$0xff]  }
  0x1b   : > { %v1792_v46 = vld [vmem:[%s1894_s15 + $0x70] ss:$8 sps:$4 sm:$0xff]  }
  0x1c   : > { %1589 = vmatpush3.bf16.msra.mxu0 %v1741_v13  ;;  %1703 = vmatpush3.bf16.msra.mxu1 %v1741_v13  ;;  %v1793_v47 = vld [vmem:[%s1894_s15 + $0xf0] ss:$8 sps:$4 sm:$0xff]  }
  0x1d   : > { %1590 = vmatprep.subr.bf16.mxu0 %v1742_v14  ;;  %1696 = vmatprep.subr.bf16.mxu1 %v1742_v14 }
  0x20   : > { %1591 = vmatpush3.bf16.msra.mxu0 %v1743_v15  ;;  %1704 = vmatpush3.bf16.msra.mxu1 %v1743_v15 }
  0x21   : > { %1592 = vmatprep.subr.bf16.mxu0 %v1744_v16  ;;  %1697 = vmatprep.subr.bf16.mxu1 %v1744_v16 }
  0x24   : > { %1593 = vmatpush3.bf16.msra.mxu0 %v1745_v17  ;;  %1705 = vmatpush3.bf16.msra.mxu1 %v1745_v17 }
  0x27   : > { %730 = vmatmul.mubr.bf16.vlgmr.msra.gmra.mrb[0].mxu0 %v1746_v18  ;;  %794 = vmatmul.mubr.bf16.vlgmr.msra.gmra.mrb[0].mxu1 %v1749_v19 }
  0x28   : > { %737 = vmatprep.mubr.bf16.mxu0 %v1752_v20  ;;  %801 = vmatprep.mubr.bf16.mxu1 %v1754_v21 }
  0x2f   : > { %738 = vmatmul.mubr.bf16.gmra.mrb[4].mxu0 %v1756_v22  ;;  %802 = vmatmul.mubr.bf16.gmra.mrb[4].mxu1 %v1757_v23 }
  0x30   : > { %745 = vmatprep.mubr.bf16.mxu0 %v1758_v24  ;;  %809 = vmatprep.mubr.bf16.mxu1 %v1760_v25 }
  0x37   : > { %746 = vmatmul.mubr.bf16.gmra.mrb[8].mxu0 %v1762_v26  ;;  %810 = vmatmul.mubr.bf16.gmra.mrb[8].mxu1 %v1763_v27 }
  0x38   : > { %753 = vmatprep.mubr.bf16.mxu0 %v1764_v28  ;;  %817 = vmatprep.mubr.bf16.mxu1 %v1766_v29 }
  0x3f   : > { %754 = vmatmul.mubr.bf16.gmra.mrb[12].mxu0 %v1768_v30  ;;  %818 = vmatmul.mubr.bf16.gmra.mrb[12].mxu1 %v1769_v31 }
  0x40   : > { %761 = vmatprep.mubr.bf16.mxu0 %v1770_v32  ;;  %825 = vmatprep.mubr.bf16.mxu1 %v1772_v33 }
  0x47   : > { %762 = vmatmul.mubr.bf16.gmra.mrb[16].mxu0 %v1774_v34  ;;  %826 = vmatmul.mubr.bf16.gmra.mrb[16].mxu1 %v1775_v35 }
  0x48   : > { %769 = vmatprep.mubr.bf16.mxu0 %v1776_v36  ;;  %833 = vmatprep.mubr.bf16.mxu1 %v1778_v37 }
  0x4f   : > { %770 = vmatmul.mubr.bf16.gmra.mrb[20].mxu0 %v1780_v38  ;;  %834 = vmatmul.mubr.bf16.gmra.mrb[20].mxu1 %v1781_v39 }
  0x50   : > { %777 = vmatprep.mubr.bf16.mxu0 %v1782_v40  ;;  %841 = vmatprep.mubr.bf16.mxu1 %v1784_v41 }
  0x57   : > { %778 = vmatmul.mubr.bf16.gmra.mrb[24].mxu0 %v1786_v42  ;;  %842 = vmatmul.mubr.bf16.gmra.mrb[24].mxu1 %v1787_v43 }
  0x58   : > { %785 = vmatprep.mubr.bf16.mxu0 %v1788_v44  ;;  %849 = vmatprep.mubr.bf16.mxu1 %v1790_v45 }
  0x5f   : > { %786 = vmatmul.mubr.bf16.gmra.mrb[28].mxu0 %v1792_v46  ;;  %850 = vmatmul.mubr.bf16.gmra.mrb[28].mxu1 %v1793_v47 }
  0xfa   : > { %v1594_v48 = vpop.f32.mrb[0].mxu0  ;;  %v1642_v49 = vpop.f32.mrb[0].mxu1 }
  0xfb   : > { %v1595_v50 = vpop.f32.mrb[1].mxu0  ;;  %v1643_v52 = vpop.f32.mrb[1].mxu1 }
  0xfc   : > { %v1596_v53 = vadd.f32 %v1595_v50, %v1594_v48  ;;  %v1644_v54 = vadd.f32 %v1643_v52, %v1642_v49  ;;  %v1597_v55 = vpop.f32.mrb[2].mxu0  ;;  %v1645_v56 = vpop.f32.mrb[2].mxu1 }
  0xfd   : > { %v1598_v58 = vpop.f32.mrb[3].mxu0  ;;  %v1646_v59 = vpop.f32.mrb[3].mxu1 }
  0xfe   : > { %v964_v60 = vmul.f32 %v1596_v53, %v1952_v51  ;;  %v980_v61 = vmul.f32 %v1644_v54, %v1952_v51  ;;  %v1599_v62 = vadd.f32 %v1598_v58, %v1597_v55  ;;  %v1647_v63 = vadd.f32 %v1646_v59, %v1645_v56 }
 0x100   : > { %v1003_v0 = vadd.f32 %v1957_v57, %v964_v60  ;;  %v1019_v1 = vadd.f32 %v1957_v57, %v980_v61  ;;  %v965_v2 = vmul.f32 %v1599_v62, %v1952_v51  ;;  %v981_v3 = vmul.f32 %v1647_v63, %v1952_v51 }
 0x102   : > { %v1004_v4 = vadd.f32 %v1957_v57, %v965_v2  ;;  %v1020_v5 = vadd.f32 %v1957_v57, %v981_v3  ;;  %v1600_v6 = vpop.f32.mrb[4].mxu0  ;;  %v1648_v7 = vpop.f32.mrb[4].mxu1  ;;  %v1035_v8 = vmax.f32 %v1003_v0, 0.0  ;;  %v1051_v9 = vmax.f32 %v1019_v1, 0.0 }
 0x103   : > { %v1601_v10 = vpop.f32.mrb[5].mxu0  ;;  %v1649_v11 = vpop.f32.mrb[5].mxu1 }
 0x104   : > { %v1036_v12 = vmax.f32 %v1004_v4, 0.0  ;;  %v1052_v13 = vmax.f32 %v1020_v5, 0.0  ;;  %v1602_v14 = vadd.f32 %v1601_v10, %v1600_v6  ;;  %v1650_v15 = vadd.f32 %v1649_v11, %v1648_v7  ;;  %v1603_v16 = vpop.f32.mrb[6].mxu0  ;;  %v1651_v17 = vpop.f32.mrb[6].mxu1 }
 0x105   : > { %v1604_v18 = vpop.f32.mrb[7].mxu0  ;;  %v1652_v19 = vpop.f32.mrb[7].mxu1 }
 0x106   : > { %v1486_v20 = vpack.c.bf16 %v1036_v12, %v1035_v8  ;;  %v1526_v21 = vpack.c.bf16 %v1052_v13, %v1051_v9  ;;  %v966_v22 = vmul.f32 %v1602_v14, %v1952_v51  ;;  %v982_v23 = vmul.f32 %v1650_v15, %v1952_v51 }
 0x107   : > { %v1605_v24 = vadd.f32 %v1604_v18, %v1603_v16  ;;  %v1653_v25 = vadd.f32 %v1652_v19, %v1651_v17 }
 0x108   : > { %1487 = vst [vmem:[%s1971_s21] sm:$0xff] %v1486_v20   ;;  %1570 = vst [vmem:[%s1971_s21 + $0x40] sm:$0xff] %v1526_v21   ;;  %v1005_v26 = vadd.f32 %v1957_v57, %v966_v22  ;;  %v1021_v27 = vadd.f32 %v1957_v57, %v982_v23 }
 0x109   : > { %v967_v28 = vmul.f32 %v1605_v24, %v1952_v51  ;;  %v983_v29 = vmul.f32 %v1653_v25, %v1952_v51 }
 0x10a   : > { %v1606_v30 = vpop.f32.mrb[8].mxu0  ;;  %v1654_v31 = vpop.f32.mrb[8].mxu1  ;;  %v1037_v40 = vmax.f32 %v1005_v26, 0.0  ;;  %v1053_v41 = vmax.f32 %v1021_v27, 0.0 }
 0x10b   : > { %v1006_v32 = vadd.f32 %v1957_v57, %v967_v28  ;;  %v1022_v33 = vadd.f32 %v1957_v57, %v983_v29  ;;  %v1607_v34 = vpop.f32.mrb[9].mxu0  ;;  %v1655_v35 = vpop.f32.mrb[9].mxu1 }
 0x10c   : > { %v1608_v36 = vadd.f32 %v1607_v34, %v1606_v30  ;;  %v1656_v37 = vadd.f32 %v1655_v35, %v1654_v31  ;;  %v1609_v38 = vpop.f32.mrb[10].mxu0  ;;  %v1657_v39 = vpop.f32.mrb[10].mxu1 }
 0x10d   : > { %v1038_v42 = vmax.f32 %v1006_v32, 0.0  ;;  %v1054_v43 = vmax.f32 %v1022_v33, 0.0  ;;  %v1610_v44 = vpop.f32.mrb[11].mxu0  ;;  %v1658_v45 = vpop.f32.mrb[11].mxu1 }
 0x10e   : > { %v968_v46 = vmul.f32 %v1608_v36, %v1952_v51  ;;  %v984_v47 = vmul.f32 %v1656_v37, %v1952_v51  ;;  %v1611_v48 = vadd.f32 %v1610_v44, %v1609_v38  ;;  %v1659_v49 = vadd.f32 %v1658_v45, %v1657_v39 }
 0x10f   : > { %v1491_v50 = vpack.c.bf16 %v1038_v42, %v1037_v40  ;;  %v1531_v52 = vpack.c.bf16 %v1054_v43, %v1053_v41 }
 0x110   : > { %v1007_v53 = vadd.f32 %v1957_v57, %v968_v46  ;;  %v1023_v54 = vadd.f32 %v1957_v57, %v984_v47  ;;  %v969_v55 = vmul.f32 %v1611_v48, %v1952_v51  ;;  %v985_v56 = vmul.f32 %v1659_v49, %v1952_v51 }
 0x111   : > { %1563 = vst [vmem:[%s1971_s21 + $0x8] sm:$0xff] %v1491_v50   ;;  %1571 = vst [vmem:[%s1971_s21 + $0x48] sm:$0xff] %v1531_v52  }
 0x112   : > { %v1008_v58 = vadd.f32 %v1957_v57, %v969_v55  ;;  %v1024_v59 = vadd.f32 %v1957_v57, %v985_v56  ;;  %v1612_v60 = vpop.f32.mrb[12].mxu0  ;;  %v1660_v61 = vpop.f32.mrb[12].mxu1  ;;  %v1039_v62 = vmax.f32 %v1007_v53, 0.0  ;;  %v1055_v63 = vmax.f32 %v1023_v54, 0.0 }
 0x113   : > { %v1613_v0 = vpop.f32.mrb[13].mxu0  ;;  %v1661_v1 = vpop.f32.mrb[13].mxu1 }
 0x114   : > { %v1040_v2 = vmax.f32 %v1008_v58, 0.0  ;;  %v1056_v3 = vmax.f32 %v1024_v59, 0.0  ;;  %v1614_v4 = vadd.f32 %v1613_v0, %v1612_v60  ;;  %v1662_v5 = vadd.f32 %v1661_v1, %v1660_v61  ;;  %v1615_v6 = vpop.f32.mrb[14].mxu0  ;;  %v1663_v7 = vpop.f32.mrb[14].mxu1 }
 0x115   : > { %v1616_v8 = vpop.f32.mrb[15].mxu0  ;;  %v1664_v9 = vpop.f32.mrb[15].mxu1 }
 0x116   : > { %v1496_v10 = vpack.c.bf16 %v1040_v2, %v1039_v62  ;;  %v1536_v11 = vpack.c.bf16 %v1056_v3, %v1055_v63  ;;  %v970_v12 = vmul.f32 %v1614_v4, %v1952_v51  ;;  %v986_v13 = vmul.f32 %v1662_v5, %v1952_v51 }
 0x117   : > { %v1617_v14 = vadd.f32 %v1616_v8, %v1615_v6  ;;  %v1665_v15 = vadd.f32 %v1664_v9, %v1663_v7 }
 0x118   : > { %1564 = vst [vmem:[%s1971_s21 + $0x10] sm:$0xff] %v1496_v10   ;;  %1572 = vst [vmem:[%s1971_s21 + $0x50] sm:$0xff] %v1536_v11   ;;  %v1009_v16 = vadd.f32 %v1957_v57, %v970_v12  ;;  %v1025_v17 = vadd.f32 %v1957_v57, %v986_v13 }
 0x119   : > { %v971_v18 = vmul.f32 %v1617_v14, %v1952_v51  ;;  %v987_v19 = vmul.f32 %v1665_v15, %v1952_v51 }
 0x11a   : > { %v1618_v20 = vpop.f32.mrb[16].mxu0  ;;  %v1666_v21 = vpop.f32.mrb[16].mxu1  ;;  %v1041_v30 = vmax.f32 %v1009_v16, 0.0  ;;  %v1057_v31 = vmax.f32 %v1025_v17, 0.0 }
 0x11b   : > { %v1010_v22 = vadd.f32 %v1957_v57, %v971_v18  ;;  %v1026_v23 = vadd.f32 %v1957_v57, %v987_v19  ;;  %v1619_v24 = vpop.f32.mrb[17].mxu0  ;;  %v1667_v25 = vpop.f32.mrb[17].mxu1 }
 0x11c   : > { %v1620_v26 = vadd.f32 %v1619_v24, %v1618_v20  ;;  %v1668_v27 = vadd.f32 %v1667_v25, %v1666_v21  ;;  %v1621_v28 = vpop.f32.mrb[18].mxu0  ;;  %v1669_v29 = vpop.f32.mrb[18].mxu1 }
 0x11d   : > { %v1042_v32 = vmax.f32 %v1010_v22, 0.0  ;;  %v1058_v33 = vmax.f32 %v1026_v23, 0.0  ;;  %v1622_v34 = vpop.f32.mrb[19].mxu0  ;;  %v1670_v35 = vpop.f32.mrb[19].mxu1 }
 0x11e   : > { %v972_v36 = vmul.f32 %v1620_v26, %v1952_v51  ;;  %v988_v37 = vmul.f32 %v1668_v27, %v1952_v51  ;;  %v1623_v38 = vadd.f32 %v1622_v34, %v1621_v28  ;;  %v1671_v39 = vadd.f32 %v1670_v35, %v1669_v29 }
 0x11f   : > { %v1501_v40 = vpack.c.bf16 %v1042_v32, %v1041_v30  ;;  %v1541_v41 = vpack.c.bf16 %v1058_v33, %v1057_v31 }
 0x120   : > { %v1011_v42 = vadd.f32 %v1957_v57, %v972_v36  ;;  %v1027_v43 = vadd.f32 %v1957_v57, %v988_v37  ;;  %v973_v44 = vmul.f32 %v1623_v38, %v1952_v51  ;;  %v989_v45 = vmul.f32 %v1671_v39, %v1952_v51 }
 0x121   : > { %1565 = vst [vmem:[%s1971_s21 + $0x18] sm:$0xff] %v1501_v40   ;;  %1573 = vst [vmem:[%s1971_s21 + $0x58] sm:$0xff] %v1541_v41  }
 0x122   : > { %v1012_v46 = vadd.f32 %v1957_v57, %v973_v44  ;;  %v1028_v47 = vadd.f32 %v1957_v57, %v989_v45  ;;  %v1624_v48 = vpop.f32.mrb[20].mxu0  ;;  %v1672_v49 = vpop.f32.mrb[20].mxu1  ;;  %v1043_v50 = vmax.f32 %v1011_v42, 0.0  ;;  %v1059_v52 = vmax.f32 %v1027_v43, 0.0 }
 0x123   : > { %v1625_v53 = vpop.f32.mrb[21].mxu0  ;;  %v1673_v54 = vpop.f32.mrb[21].mxu1 }
 0x124   : > { %v1044_v55 = vmax.f32 %v1012_v46, 0.0  ;;  %v1060_v56 = vmax.f32 %v1028_v47, 0.0  ;;  %v1626_v58 = vadd.f32 %v1625_v53, %v1624_v48  ;;  %v1674_v59 = vadd.f32 %v1673_v54, %v1672_v49  ;;  %v1627_v60 = vpop.f32.mrb[22].mxu0  ;;  %v1675_v61 = vpop.f32.mrb[22].mxu1 }
 0x125   : > { %v1628_v62 = vpop.f32.mrb[23].mxu0  ;;  %v1676_v63 = vpop.f32.mrb[23].mxu1 }
 0x126   : > { %v1506_v0 = vpack.c.bf16 %v1044_v55, %v1043_v50  ;;  %v1546_v1 = vpack.c.bf16 %v1060_v56, %v1059_v52  ;;  %v974_v2 = vmul.f32 %v1626_v58, %v1952_v51  ;;  %v990_v3 = vmul.f32 %v1674_v59, %v1952_v51 }
 0x127   : > { %v1629_v4 = vadd.f32 %v1628_v62, %v1627_v60  ;;  %v1677_v5 = vadd.f32 %v1676_v63, %v1675_v61 }
 0x128   : > { %1566 = vst [vmem:[%s1971_s21 + $0x20] sm:$0xff] %v1506_v0   ;;  %1574 = vst [vmem:[%s1971_s21 + $0x60] sm:$0xff] %v1546_v1   ;;  %v1013_v6 = vadd.f32 %v1957_v57, %v974_v2  ;;  %v1029_v7 = vadd.f32 %v1957_v57, %v990_v3 }
 0x129   : > { %v975_v8 = vmul.f32 %v1629_v4, %v1952_v51  ;;  %v991_v9 = vmul.f32 %v1677_v5, %v1952_v51 }
 0x12a   : > { %v1630_v10 = vpop.f32.mrb[24].mxu0  ;;  %v1678_v11 = vpop.f32.mrb[24].mxu1  ;;  %v1045_v20 = vmax.f32 %v1013_v6, 0.0  ;;  %v1061_v21 = vmax.f32 %v1029_v7, 0.0 }
 0x12b   : > { %v1014_v12 = vadd.f32 %v1957_v57, %v975_v8  ;;  %v1030_v13 = vadd.f32 %v1957_v57, %v991_v9  ;;  %v1631_v14 = vpop.f32.mrb[25].mxu0  ;;  %v1679_v15 = vpop.f32.mrb[25].mxu1 }
 0x12c   : > { %v1632_v16 = vadd.f32 %v1631_v14, %v1630_v10  ;;  %v1680_v17 = vadd.f32 %v1679_v15, %v1678_v11  ;;  %v1633_v18 = vpop.f32.mrb[26].mxu0  ;;  %v1681_v19 = vpop.f32.mrb[26].mxu1 }
 0x12d   : > { %v1046_v22 = vmax.f32 %v1014_v12, 0.0  ;;  %v1062_v23 = vmax.f32 %v1030_v13, 0.0  ;;  %v1634_v24 = vpop.f32.mrb[27].mxu0  ;;  %v1682_v25 = vpop.f32.mrb[27].mxu1 }
 0x12e   : > { %v976_v26 = vmul.f32 %v1632_v16, %v1952_v51  ;;  %v992_v27 = vmul.f32 %v1680_v17, %v1952_v51  ;;  %v1635_v28 = vadd.f32 %v1634_v24, %v1633_v18  ;;  %v1683_v29 = vadd.f32 %v1682_v25, %v1681_v19 }
 0x12f   : > { %v1511_v30 = vpack.c.bf16 %v1046_v22, %v1045_v20  ;;  %v1551_v31 = vpack.c.bf16 %v1062_v23, %v1061_v21 }
 0x130   : > { %v1015_v32 = vadd.f32 %v1957_v57, %v976_v26  ;;  %v1031_v33 = vadd.f32 %v1957_v57, %v992_v27  ;;  %v977_v34 = vmul.f32 %v1635_v28, %v1952_v51  ;;  %v993_v35 = vmul.f32 %v1683_v29, %v1952_v51 }
 0x131   : > { %1567 = vst [vmem:[%s1971_s21 + $0x28] sm:$0xff] %v1511_v30   ;;  %1575 = vst [vmem:[%s1971_s21 + $0x68] sm:$0xff] %v1551_v31  }
 0x132   : > { %v1016_v36 = vadd.f32 %v1957_v57, %v977_v34  ;;  %v1032_v37 = vadd.f32 %v1957_v57, %v993_v35  ;;  %v1636_v38 = vpop.f32.mrb[28].mxu0  ;;  %v1684_v39 = vpop.f32.mrb[28].mxu1  ;;  %v1047_v40 = vmax.f32 %v1015_v32, 0.0  ;;  %v1063_v41 = vmax.f32 %v1031_v33, 0.0 }
 0x133   : > { %v1637_v42 = vpop.f32.mrb[29].mxu0  ;;  %v1685_v43 = vpop.f32.mrb[29].mxu1 }
 0x134   : > { %v1048_v44 = vmax.f32 %v1016_v36, 0.0  ;;  %v1064_v45 = vmax.f32 %v1032_v37, 0.0  ;;  %v1638_v46 = vadd.f32 %v1637_v42, %v1636_v38  ;;  %v1686_v47 = vadd.f32 %v1685_v43, %v1684_v39  ;;  %v1639_v48 = vpop.f32.mrb[30].mxu0  ;;  %v1687_v49 = vpop.f32.mrb[30].mxu1 }
 0x135   : > { %v1640_v50 = vpop.f32.mrb[31].mxu0  ;;  %v1688_v52 = vpop.f32.mrb[31].mxu1 }
 0x136   : > { %v1516_v53 = vpack.c.bf16 %v1048_v44, %v1047_v40  ;;  %v1556_v54 = vpack.c.bf16 %v1064_v45, %v1063_v41  ;;  %v978_v55 = vmul.f32 %v1638_v46, %v1952_v51  ;;  %v994_v56 = vmul.f32 %v1686_v47, %v1952_v51 }
 0x137   : > { %v1641_v58 = vadd.f32 %v1640_v50, %v1639_v48  ;;  %v1689_v59 = vadd.f32 %v1688_v52, %v1687_v49 }
 0x138   : > { %1568 = vst [vmem:[%s1971_s21 + $0x30] sm:$0xff] %v1516_v53   ;;  %1576 = vst [vmem:[%s1971_s21 + $0x70] sm:$0xff] %v1556_v54   ;;  %v1017_v60 = vadd.f32 %v1957_v57, %v978_v55  ;;  %v1033_v61 = vadd.f32 %v1957_v57, %v994_v56 }
 0x139   : > { %v979_v62 = vmul.f32 %v1641_v58, %v1952_v51  ;;  %v995_v63 = vmul.f32 %v1689_v59, %v1952_v51 }
 0x13a   : > { %v1049_v2 = vmax.f32 %v1017_v60, 0.0  ;;  %v1065_v3 = vmax.f32 %v1033_v61, 0.0 }
 0x13b   : > { %v1018_v0 = vadd.f32 %v1957_v57, %v979_v62  ;;  %v1034_v1 = vadd.f32 %v1957_v57, %v995_v63 }
 0x13d   : > { %v1050_v4 = vmax.f32 %v1018_v0, 0.0  ;;  %v1066_v5 = vmax.f32 %v1034_v1, 0.0 }
 0x13f   : > { %v1521_v6 = vpack.c.bf16 %v1050_v4, %v1049_v2  ;;  %v1561_v7 = vpack.c.bf16 %v1066_v5, %v1065_v3 }
 0x141   : > { %1569 = vst [vmem:[%s1971_s21 + $0x38] sm:$0xff] %v1521_v6   ;;  %1577 = vst [vmem:[%s1971_s21 + $0x78] sm:$0xff] %v1561_v7  }
 0x142 PF: > { %s14_s17 = sadd.s32 1, %s1816_s17   ;;  %s2059_s15 = smov %s1812_s16 }
 0x143   : > { %p11_p5 = scmp.ge.s32.totalorder %s14_s17, 4   ;;  %s2060_s16 = smov %s2062_s18 }
 0x145   :  { %13 = sbr.rel (!%p11_p5) target bundleno = 2 (0x2), region = 83 }

// kernel: resnet34_features.39
= control target key start
LH: loop header
LB: loop body
LE: loop exit
PB: predicated region body
PF: predicated region fallthrough
CT: control target
= control target key end

     0   :  { %vm153_vm0 = vcmask 1043456   ;;  %s1400_s0 = inlined_call_operand.vmem [shape: bf16[9,128,128], index: 0, kind: input, shape index: {}]   ;;  %s1401_s1 = inlined_call_operand.vmem [shape: bf16[128,128], index: 1, kind: output, shape index: {}]  }
   0x1   :  { %v9_v0 = vld [vmem:[%s1400_s0] sm:$0xf]  ;;  %v10_v3 = vld [vmem:[%s1400_s0 + $0x4] sm:$0xf]  ;;  %v11_v39 = vld [vmem:[%s1400_s0 + $0x8] sm:$0xf] }
   0x2   :  { %v25_v1 = vld [vmem:[%s1400_s0 + $0x40] sm:$0xf]  ;;  %v26_v4 = vld [vmem:[%s1400_s0 + $0x44] sm:$0xf]  ;;  %v156_v7 = vsel %vm153_vm0, %v9_v0, 4286644096 }
   0x3   :  { %v41_v2 = vld [vmem:[%s1400_s0 + $0x80] sm:$0xf]  ;;  %v42_v5 = vld [vmem:[%s1400_s0 + $0x84] sm:$0xf]  ;;  %v159_v8 = vsel %vm153_vm0, %v25_v1, 4286644096 }
   0x4   :  { %v57_v6 = vld [vmem:[%s1400_s0 + $0xc0] sm:$0xf]  ;;  %v163_v9 = vsel %vm153_vm0, %v41_v2, 4286644096  ;;  %v161_v11 = vmax.bf16 %v159_v8, %v156_v7  ;;  %v58_v12 = vld [vmem:[%s1400_s0 + $0xc4] sm:$0xf] }
   0x5   :  { %v73_v10 = vld [vmem:[%s1400_s0 + $0x100] sm:$0xf]  ;;  %v167_v14 = vsel %vm153_vm0, %v57_v6, 4286644096  ;;  %v191_v16 = vsel %vm153_vm0, %v10_v3, 4286644096 }
   0x6   :  { %v89_v13 = vld [vmem:[%s1400_s0 + $0x140] sm:$0xf]  ;;  %v165_v15 = vmax.bf16 %v163_v9, %v161_v11  ;;  %v194_v17 = vsel %vm153_vm0, %v26_v4, 4286644096  ;;  %v198_v18 = vsel %vm153_vm0, %v42_v5, 4286644096 }
   0x7   :  { %v74_v19 = vld [vmem:[%s1400_s0 + $0x104] sm:$0xf]  ;;  %v171_v20 = vsel %vm153_vm0, %v73_v10, 4286644096  ;;  %v196_v21 = vmax.bf16 %v194_v17, %v191_v16  ;;  %v105_v23 = vld [vmem:[%s1400_s0 + $0x180] sm:$0xf] }
   0x8   :  { %v90_v22 = vld [vmem:[%s1400_s0 + $0x144] sm:$0xf]  ;;  %v169_v24 = vmax.bf16 %v167_v14, %v165_v15  ;;  %v202_v25 = vsel %vm153_vm0, %v58_v12, 4286644096  ;;  %v175_v27 = vsel %vm153_vm0, %v89_v13, 4286644096 }
   0x9   :  { %v106_v26 = vld [vmem:[%s1400_s0 + $0x184] sm:$0xf]  ;;  %v200_v28 = vmax.bf16 %v198_v18, %v196_v21  ;;  %v121_v29 = vld [vmem:[%s1400_s0 + $0x1c0] sm:$0xf]  ;;  %v206_v32 = vsel %vm153_vm0, %v74_v19, 4286644096 }
   0xa   :  { %v137_v30 = vld [vmem:[%s1400_s0 + $0x200] sm:$0xf]  ;;  %v173_v31 = vmax.bf16 %v171_v20, %v169_v24  ;;  %v122_v33 = vld [vmem:[%s1400_s0 + $0x1c4] sm:$0xf]  ;;  %v179_v34 = vsel %vm153_vm0, %v105_v23, 4286644096 }
   0xb   :  { %v204_v35 = vmax.bf16 %v202_v25, %v200_v28  ;;  %v210_v36 = vsel %vm153_vm0, %v90_v22, 4286644096  ;;  %v138_v37 = vld [vmem:[%s1400_s0 + $0x204] sm:$0xf]  ;;  %v27_v40 = vld [vmem:[%s1400_s0 + $0x48] sm:$0xf] }
   0xc   :  { %v177_v38 = vmax.bf16 %v175_v27, %v173_v31  ;;  %v43_v41 = vld [vmem:[%s1400_s0 + $0x88] sm:$0xf]  ;;  %v183_v42 = vsel %vm153_vm0, %v121_v29, 4286644096  ;;  %v187_v43 = vsel %vm153_vm0, %v137_v30, 4286644096 }
   0xd   :  { %v208_v44 = vmax.bf16 %v206_v32, %v204_v35  ;;  %v214_v45 = vsel %vm153_vm0, %v106_v26, 4286644096  ;;  %v12_v47 = vld [vmem:[%s1400_s0 + $0xc] sm:$0xf]  ;;  %v59_v48 = vld [vmem:[%s1400_s0 + $0xc8] sm:$0xf] }
   0xe   :  { %v181_v46 = vmax.bf16 %v179_v34, %v177_v38  ;;  %v75_v49 = vld [vmem:[%s1400_s0 + $0x108] sm:$0xf]  ;;  %v226_v51 = vsel %vm153_vm0, %v11_v39, 4286644096  ;;  %v229_v52 = vsel %vm153_vm0, %v27_v40, 4286644096 }
   0xf   :  { %v212_v50 = vmax.bf16 %v210_v36, %v208_v44  ;;  %v233_v53 = vsel %vm153_vm0, %v43_v41, 4286644096  ;;  %v218_v55 = vsel %vm153_vm0, %v122_v33, 4286644096  ;;  %v28_v56 = vld [vmem:[%s1400_s0 + $0x4c] sm:$0xf]  ;;  %v231_v58 = vmax.bf16 %v229_v52, %v226_v51 }
  0x10   :  { %v185_v54 = vmax.bf16 %v183_v42, %v181_v46  ;;  %v44_v57 = vld [vmem:[%s1400_s0 + $0x8c] sm:$0xf]  ;;  %v222_v60 = vsel %vm153_vm0, %v138_v37, 4286644096  ;;  %v237_v62 = vsel %vm153_vm0, %v59_v48, 4286644096 }
  0x11   :  { %v216_v59 = vmax.bf16 %v214_v45, %v212_v50  ;;  %v60_v61 = vld [vmem:[%s1400_s0 + $0xcc] sm:$0xf]  ;;  %v91_v63 = vld [vmem:[%s1400_s0 + $0x148] sm:$0xf]  ;;  %v235_v0 = vmax.bf16 %v233_v53, %v231_v58  ;;  %v241_v1 = vsel %vm153_vm0, %v75_v49, 4286644096 }
  0x12   :  { %v261_v2 = vsel %vm153_vm0, %v12_v47, 4286644096  ;;  %v189_v3 = vmax.bf16 %v187_v43, %v185_v54  ;;  %v264_v5 = vsel %vm153_vm0, %v28_v56, 4286644096  ;;  %v268_v6 = vsel %vm153_vm0, %v44_v57, 4286644096 }
  0x13   :  { %v220_v4 = vmax.bf16 %v218_v55, %v216_v59  ;;  %v76_v7 = vld [vmem:[%s1400_s0 + $0x10c] sm:$0xf]  ;;  %v107_v8 = vld [vmem:[%s1400_s0 + $0x188] sm:$0xf]  ;;  %v239_v9 = vmax.bf16 %v237_v62, %v235_v0  ;;  %v266_v10 = vmax.bf16 %v264_v5, %v261_v2  ;;  %v245_v12 = vsel %vm153_vm0, %v91_v63, 4286644096 }
  0x14   :  { %v272_v13 = vsel %vm153_vm0, %v60_v61, 4286644096  ;;  %v92_v14 = vld [vmem:[%s1400_s0 + $0x14c] sm:$0xf]  ;;  %v123_v16 = vld [vmem:[%s1400_s0 + $0x1c8] sm:$0xf] }
  0x15   :  { %v224_v11 = vmax.bf16 %v222_v60, %v220_v4  ;;  %v108_v15 = vld [vmem:[%s1400_s0 + $0x18c] sm:$0xf]  ;;  %v243_v17 = vmax.bf16 %v241_v1, %v239_v9  ;;  %v270_v18 = vmax.bf16 %v268_v6, %v266_v10  ;;  %v139_v20 = vld [vmem:[%s1400_s0 + $0x208] sm:$0xf]  ;;  %v249_v21 = vsel %vm153_vm0, %v107_v8, 4286644096 }
  0x16   :  { %v276_v22 = vsel %vm153_vm0, %v76_v7, 4286644096  ;;  %v124_v23 = vld [vmem:[%s1400_s0 + $0x1cc] sm:$0xf]  ;;  %v13_v26 = vld [vmem:[%s1400_s0 + $0x10] sm:$0xf] }
  0x17   :  { %v775_v19 = vcombine.low %v189_v3, %v224_v11  ;;  %v247_v24 = vmax.bf16 %v245_v12, %v243_v17  ;;  %v274_v25 = vmax.bf16 %v272_v13, %v270_v18  ;;  %v29_v27 = vld [vmem:[%s1400_s0 + $0x50] sm:$0xf]  ;;  %v140_v29 = vld [vmem:[%s1400_s0 + $0x20c] sm:$0xf]  ;;  %v253_v30 = vsel %vm153_vm0, %v123_v16, 4286644096 }
  0x18   :  { %v45_v28 = vld [vmem:[%s1400_s0 + $0x90] sm:$0xf]  ;;  %v280_v31 = vsel %vm153_vm0, %v92_v14, 4286644096  ;;  %v257_v33 = vsel %vm153_vm0, %v139_v20, 4286644096 }
  0x19   :  { %739 = vst [vmem:[%s1401_s1] sm:$0xff] %v775_v19   ;;  %v251_v32 = vmax.bf16 %v249_v21, %v247_v24  ;;  %v278_v34 = vmax.bf16 %v276_v22, %v274_v25  ;;  %v284_v35 = vsel %vm153_vm0, %v108_v15, 4286644096  ;;  %v61_v36 = vld [vmem:[%s1400_s0 + $0xd0] sm:$0xf]  ;;  %v296_v37 = vsel %vm153_vm0, %v13_v26, 4286644096 }
  0x1a   :  { %v299_v38 = vsel %vm153_vm0, %v29_v27, 4286644096  ;;  %v303_v39 = vsel %vm153_vm0, %v45_v28, 4286644096  ;;  %v14_v42 = vld [vmem:[%s1400_s0 + $0x14] sm:$0xf] }
  0x1b   :  { %v255_v40 = vmax.bf16 %v253_v30, %v251_v32  ;;  %v282_v41 = vmax.bf16 %v280_v31, %v278_v34  ;;  %v30_v43 = vld [vmem:[%s1400_s0 + $0x54] sm:$0xf]  ;;  %v77_v44 = vld [vmem:[%s1400_s0 + $0x110] sm:$0xf]  ;;  %v301_v45 = vmax.bf16 %v299_v38, %v296_v37  ;;  %v288_v46 = vsel %vm153_vm0, %v124_v23, 4286644096 }
  0x1c   :  { %v46_v47 = vld [vmem:[%s1400_s0 + $0x94] sm:$0xf]  ;;  %v307_v48 = vsel %vm153_vm0, %v61_v36, 4286644096  ;;  %v292_v50 = vsel %vm153_vm0, %v140_v29, 4286644096 }
  0x1d   :  { %v286_v49 = vmax.bf16 %v284_v35, %v282_v41  ;;  %v62_v51 = vld [vmem:[%s1400_s0 + $0xd4] sm:$0xf]  ;;  %v93_v52 = vld [vmem:[%s1400_s0 + $0x150] sm:$0xf]  ;;  %v305_v53 = vmax.bf16 %v303_v39, %v301_v45  ;;  %v259_v54 = vmax.bf16 %v257_v33, %v255_v40  ;;  %v311_v55 = vsel %vm153_vm0, %v77_v44, 4286644096 }
  0x1e   :  { %v331_v56 = vsel %vm153_vm0, %v14_v42, 4286644096  ;;  %v334_v57 = vsel %vm153_vm0, %v30_v43, 4286644096  ;;  %v78_v59 = vld [vmem:[%s1400_s0 + $0x114] sm:$0xf] }
  0x1f   :  { %v290_v58 = vmax.bf16 %v288_v46, %v286_v49  ;;  %v109_v60 = vld [vmem:[%s1400_s0 + $0x190] sm:$0xf]  ;;  %v309_v61 = vmax.bf16 %v307_v48, %v305_v53  ;;  %v336_v62 = vmax.bf16 %v334_v57, %v331_v56  ;;  %v338_v63 = vsel %vm153_vm0, %v46_v47, 4286644096  ;;  %v94_v3 = vld [vmem:[%s1400_s0 + $0x154] sm:$0xf] }
  0x20   :  { %v315_v0 = vsel %vm153_vm0, %v93_v52, 4286644096  ;;  %v342_v1 = vsel %vm153_vm0, %v62_v51, 4286644096  ;;  %v110_v4 = vld [vmem:[%s1400_s0 + $0x194] sm:$0xf] }
  0x21   :  { %v294_v2 = vmax.bf16 %v292_v50, %v290_v58  ;;  %v125_v5 = vld [vmem:[%s1400_s0 + $0x1d0] sm:$0xf]  ;;  %v313_v6 = vmax.bf16 %v311_v55, %v309_v61  ;;  %v340_v7 = vmax.bf16 %v338_v63, %v336_v62  ;;  %v319_v9 = vsel %vm153_vm0, %v109_v60, 4286644096  ;;  %v126_v12 = vld [vmem:[%s1400_s0 + $0x1d4] sm:$0xf] }
  0x22   :  { %v141_v8 = vld [vmem:[%s1400_s0 + $0x210] sm:$0xf]  ;;  %v346_v10 = vsel %vm153_vm0, %v78_v59, 4286644096  ;;  %v15_v15 = vld [vmem:[%s1400_s0 + $0x18] sm:$0xf] }
  0x23   :  { %v776_v11 = vcombine.low %v259_v54, %v294_v2  ;;  %v317_v13 = vmax.bf16 %v315_v0, %v313_v6  ;;  %v344_v14 = vmax.bf16 %v342_v1, %v340_v7  ;;  %v31_v16 = vld [vmem:[%s1400_s0 + $0x58] sm:$0xf]  ;;  %v142_v18 = vld [vmem:[%s1400_s0 + $0x214] sm:$0xf]  ;;  %v323_v19 = vsel %vm153_vm0, %v125_v5, 4286644096 }
  0x24   :  { %v47_v17 = vld [vmem:[%s1400_s0 + $0x98] sm:$0xf]  ;;  %v350_v20 = vsel %vm153_vm0, %v94_v3, 4286644096  ;;  %v354_v23 = vsel %vm153_vm0, %v110_v4, 4286644096 }
  0x25   :  { %777 = vst [vmem:[%s1401_s1 + $0x8] sm:$0xff] %v776_v11   ;;  %v321_v21 = vmax.bf16 %v319_v9, %v317_v13  ;;  %v348_v22 = vmax.bf16 %v346_v10, %v344_v14  ;;  %v16_v24 = vld [vmem:[%s1400_s0 + $0x1c] sm:$0xf]  ;;  %v63_v25 = vld [vmem:[%s1400_s0 + $0xd8] sm:$0xf] }
  0x26   :  { %v366_v26 = vsel %vm153_vm0, %v15_v15, 4286644096  ;;  %v369_v27 = vsel %vm153_vm0, %v31_v16, 4286644096  ;;  %v373_v28 = vsel %vm153_vm0, %v47_v17, 4286644096 }
  0x27   :  { %v325_v29 = vmax.bf16 %v323_v19, %v321_v21  ;;  %v327_v30 = vsel %vm153_vm0, %v141_v8, 4286644096  ;;  %v352_v31 = vmax.bf16 %v350_v20, %v348_v22  ;;  %v32_v32 = vld [vmem:[%s1400_s0 + $0x5c] sm:$0xf]  ;;  %v79_v33 = vld [vmem:[%s1400_s0 + $0x118] sm:$0xf]  ;;  %v371_v34 = vmax.bf16 %v369_v27, %v366_v26 }
  0x28   :  { %v358_v35 = vsel %vm153_vm0, %v126_v12, 4286644096  ;;  %v48_v36 = vld [vmem:[%s1400_s0 + $0x9c] sm:$0xf]  ;;  %v377_v37 = vsel %vm153_vm0, %v63_v25, 4286644096 }
  0x29   :  { %v356_v38 = vmax.bf16 %v354_v23, %v352_v31  ;;  %v362_v39 = vsel %vm153_vm0, %v142_v18, 4286644096  ;;  %v64_v40 = vld [vmem:[%s1400_s0 + $0xdc] sm:$0xf]  ;;  %v95_v41 = vld [vmem:[%s1400_s0 + $0x158] sm:$0xf]  ;;  %v375_v42 = vmax.bf16 %v373_v28, %v371_v34  ;;  %v329_v43 = vmax.bf16 %v327_v30, %v325_v29 }
  0x2a   :  { %v381_v44 = vsel %vm153_vm0, %v79_v33, 4286644096  ;;  %v401_v45 = vsel %vm153_vm0, %v16_v24, 4286644096  ;;  %v404_v46 = vsel %vm153_vm0, %v32_v32, 4286644096 }
  0x2b   :  { %v360_v47 = vmax.bf16 %v358_v35, %v356_v38  ;;  %v80_v48 = vld [vmem:[%s1400_s0 + $0x11c] sm:$0xf]  ;;  %v111_v49 = vld [vmem:[%s1400_s0 + $0x198] sm:$0xf]  ;;  %v379_v50 = vmax.bf16 %v377_v37, %v375_v42  ;;  %v406_v51 = vmax.bf16 %v404_v46, %v401_v45  ;;  %v408_v52 = vsel %vm153_vm0, %v48_v36, 4286644096 }
  0x2c   :  { %v385_v53 = vsel %vm153_vm0, %v95_v41, 4286644096  ;;  %v412_v54 = vsel %vm153_vm0, %v64_v40, 4286644096  ;;  %v96_v56 = vld [vmem:[%s1400_s0 + $0x15c] sm:$0xf] }
  0x2d   :  { %v364_v55 = vmax.bf16 %v362_v39, %v360_v47  ;;  %v112_v57 = vld [vmem:[%s1400_s0 + $0x19c] sm:$0xf]  ;;  %v127_v58 = vld [vmem:[%s1400_s0 + $0x1d8] sm:$0xf]  ;;  %v383_v59 = vmax.bf16 %v381_v44, %v379_v50  ;;  %v410_v60 = vmax.bf16 %v408_v52, %v406_v51  ;;  %v389_v62 = vsel %vm153_vm0, %v111_v49, 4286644096 }
  0x2e   :  { %v143_v61 = vld [vmem:[%s1400_s0 + $0x218] sm:$0xf]  ;;  %v416_v63 = vsel %vm153_vm0, %v80_v48, 4286644096  ;;  %v128_v1 = vld [vmem:[%s1400_s0 + $0x1dc] sm:$0xf] }
  0x2f   :  { %v778_v0 = vcombine.low %v329_v43, %v364_v55  ;;  %v387_v2 = vmax.bf16 %v385_v53, %v383_v59  ;;  %v414_v3 = vmax.bf16 %v412_v54, %v410_v60  ;;  %v17_v4 = vld [vmem:[%s1400_s0 + $0x20] sm:$0xf]  ;;  %v144_v7 = vld [vmem:[%s1400_s0 + $0x21c] sm:$0xf]  ;;  %v393_v8 = vsel %vm153_vm0, %v127_v58, 4286644096 }
  0x30   :  { %v33_v5 = vld [vmem:[%s1400_s0 + $0x60] sm:$0xf]  ;;  %v420_v9 = vsel %vm153_vm0, %v96_v56, 4286644096  ;;  %v424_v12 = vsel %vm153_vm0, %v112_v57, 4286644096 }
  0x31   :  { %v49_v6 = vld [vmem:[%s1400_s0 + $0xa0] sm:$0xf]  ;;  %779 = vst [vmem:[%s1401_s1 + $0x10] sm:$0xff] %v778_v0   ;;  %v391_v10 = vmax.bf16 %v389_v62, %v387_v2  ;;  %v418_v11 = vmax.bf16 %v416_v63, %v414_v3  ;;  %v18_v13 = vld [vmem:[%s1400_s0 + $0x24] sm:$0xf] }
  0x32   :  { %v65_v14 = vld [vmem:[%s1400_s0 + $0xe0] sm:$0xf]  ;;  %v436_v15 = vsel %vm153_vm0, %v17_v4, 4286644096  ;;  %v439_v16 = vsel %vm153_vm0, %v33_v5, 4286644096 }
  0x33   :  { %v443_v17 = vsel %vm153_vm0, %v49_v6, 4286644096  ;;  %v395_v18 = vmax.bf16 %v393_v8, %v391_v10  ;;  %v397_v19 = vsel %vm153_vm0, %v143_v61, 4286644096  ;;  %v422_v20 = vmax.bf16 %v420_v9, %v418_v11  ;;  %v34_v21 = vld [vmem:[%s1400_s0 + $0x64] sm:$0xf] }
  0x34   :  { %v81_v22 = vld [vmem:[%s1400_s0 + $0x120] sm:$0xf]  ;;  %v441_v23 = vmax.bf16 %v439_v16, %v436_v15  ;;  %v428_v24 = vsel %vm153_vm0, %v128_v1, 4286644096  ;;  %v50_v25 = vld [vmem:[%s1400_s0 + $0xa4] sm:$0xf] }
  0x35   :  { %v447_v26 = vsel %vm153_vm0, %v65_v14, 4286644096  ;;  %v426_v27 = vmax.bf16 %v424_v12, %v422_v20  ;;  %v432_v28 = vsel %vm153_vm0, %v144_v7, 4286644096  ;;  %v66_v29 = vld [vmem:[%s1400_s0 + $0xe4] sm:$0xf]  ;;  %v399_v32 = vmax.bf16 %v397_v19, %v395_v18 }
  0x36   :  { %v97_v30 = vld [vmem:[%s1400_s0 + $0x160] sm:$0xf]  ;;  %v445_v31 = vmax.bf16 %v443_v17, %v441_v23  ;;  %v451_v33 = vsel %vm153_vm0, %v81_v22, 4286644096  ;;  %v471_v34 = vsel %vm153_vm0, %v18_v13, 4286644096 }
  0x37   :  { %v474_v35 = vsel %vm153_vm0, %v34_v21, 4286644096  ;;  %v430_v36 = vmax.bf16 %v428_v24, %v426_v27  ;;  %v82_v37 = vld [vmem:[%s1400_s0 + $0x124] sm:$0xf]  ;;  %v113_v38 = vld [vmem:[%s1400_s0 + $0x1a0] sm:$0xf] }
  0x38   :  { %v449_v39 = vmax.bf16 %v447_v26, %v445_v31  ;;  %v476_v40 = vmax.bf16 %v474_v35, %v471_v34  ;;  %v478_v41 = vsel %vm153_vm0, %v50_v25, 4286644096  ;;  %v455_v42 = vsel %vm153_vm0, %v97_v30, 4286644096  ;;  %v98_v45 = vld [vmem:[%s1400_s0 + $0x164] sm:$0xf] }
  0x39   :  { %v482_v43 = vsel %vm153_vm0, %v66_v29, 4286644096  ;;  %v434_v44 = vmax.bf16 %v432_v28, %v430_v36  ;;  %v114_v46 = vld [vmem:[%s1400_s0 + $0x1a4] sm:$0xf]  ;;  %v129_v47 = vld [vmem:[%s1400_s0 + $0x1e0] sm:$0xf] }
  0x3a   :  { %v453_v48 = vmax.bf16 %v451_v33, %v449_v39  ;;  %v480_v49 = vmax.bf16 %v478_v41, %v476_v40  ;;  %v145_v50 = vld [vmem:[%s1400_s0 + $0x220] sm:$0xf]  ;;  %v459_v51 = vsel %vm153_vm0, %v113_v38, 4286644096  ;;  %v486_v52 = vsel %vm153_vm0, %v82_v37, 4286644096 }
  0x3b   :  { %v780_v53 = vcombine.low %v399_v32, %v434_v44  ;;  %v130_v54 = vld [vmem:[%s1400_s0 + $0x1e4] sm:$0xf]  ;;  %v19_v57 = vld [vmem:[%s1400_s0 + $0x28] sm:$0xf]  ;;  %v463_v61 = vsel %vm153_vm0, %v129_v47, 4286644096 }
  0x3c   :  { %v457_v55 = vmax.bf16 %v455_v42, %v453_v48  ;;  %v484_v56 = vmax.bf16 %v482_v43, %v480_v49  ;;  %v35_v58 = vld [vmem:[%s1400_s0 + $0x68] sm:$0xf]  ;;  %v146_v60 = vld [vmem:[%s1400_s0 + $0x224] sm:$0xf]  ;;  %v490_v62 = vsel %vm153_vm0, %v98_v45, 4286644096 }
  0x3d   :  { %v51_v59 = vld [vmem:[%s1400_s0 + $0xa8] sm:$0xf]  ;;  %781 = vst [vmem:[%s1401_s1 + $0x18] sm:$0xff] %v780_v53   ;;  %v494_v1 = vsel %vm153_vm0, %v114_v46, 4286644096 }
  0x3e   :  { %v461_v63 = vmax.bf16 %v459_v51, %v457_v55  ;;  %v488_v0 = vmax.bf16 %v486_v52, %v484_v56  ;;  %v20_v2 = vld [vmem:[%s1400_s0 + $0x2c] sm:$0xf]  ;;  %v67_v3 = vld [vmem:[%s1400_s0 + $0xe8] sm:$0xf]  ;;  %v506_v4 = vsel %vm153_vm0, %v19_v57, 4286644096 }
  0x3f   :  { %v509_v5 = vsel %vm153_vm0, %v35_v58, 4286644096  ;;  %v513_v6 = vsel %vm153_vm0, %v51_v59, 4286644096  ;;  %v467_v8 = vsel %vm153_vm0, %v145_v50, 4286644096 }
  0x40   :  { %v465_v7 = vmax.bf16 %v463_v61, %v461_v63  ;;  %v492_v9 = vmax.bf16 %v490_v62, %v488_v0  ;;  %v36_v10 = vld [vmem:[%s1400_s0 + $0x6c] sm:$0xf]  ;;  %v83_v11 = vld [vmem:[%s1400_s0 + $0x128] sm:$0xf]  ;;  %v511_v12 = vmax.bf16 %v509_v5, %v506_v4  ;;  %v498_v13 = vsel %vm153_vm0, %v130_v54, 4286644096 }
  0x41   :  { %v52_v14 = vld [vmem:[%s1400_s0 + $0xac] sm:$0xf]  ;;  %v517_v15 = vsel %vm153_vm0, %v67_v3, 4286644096  ;;  %v502_v17 = vsel %vm153_vm0, %v146_v60, 4286644096 }
  0x42   :  { %v496_v16 = vmax.bf16 %v494_v1, %v492_v9  ;;  %v68_v18 = vld [vmem:[%s1400_s0 + $0xec] sm:$0xf]  ;;  %v99_v19 = vld [vmem:[%s1400_s0 + $0x168] sm:$0xf]  ;;  %v515_v20 = vmax.bf16 %v513_v6, %v511_v12  ;;  %v469_v21 = vmax.bf16 %v467_v8, %v465_v7  ;;  %v521_v22 = vsel %vm153_vm0, %v83_v11, 4286644096 }
  0x43   :  { %v541_v23 = vsel %vm153_vm0, %v20_v2, 4286644096  ;;  %v544_v24 = vsel %vm153_vm0, %v36_v10, 4286644096  ;;  %v84_v26 = vld [vmem:[%s1400_s0 + $0x12c] sm:$0xf] }
  0x44   :  { %v500_v25 = vmax.bf16 %v498_v13, %v496_v16  ;;  %v115_v27 = vld [vmem:[%s1400_s0 + $0x1a8] sm:$0xf]  ;;  %v519_v28 = vmax.bf16 %v517_v15, %v515_v20  ;;  %v546_v29 = vmax.bf16 %v544_v24, %v541_v23  ;;  %v548_v30 = vsel %vm153_vm0, %v52_v14, 4286644096  ;;  %v100_v34 = vld [vmem:[%s1400_s0 + $0x16c] sm:$0xf] }
  0x45   :  { %v525_v31 = vsel %vm153_vm0, %v99_v19, 4286644096  ;;  %v552_v32 = vsel %vm153_vm0, %v68_v18, 4286644096  ;;  %v116_v35 = vld [vmem:[%s1400_s0 + $0x1ac] sm:$0xf] }
  0x46   :  { %v504_v33 = vmax.bf16 %v502_v17, %v500_v25  ;;  %v131_v36 = vld [vmem:[%s1400_s0 + $0x1e8] sm:$0xf]  ;;  %v523_v37 = vmax.bf16 %v521_v22, %v519_v28  ;;  %v550_v38 = vmax.bf16 %v548_v30, %v546_v29  ;;  %v529_v40 = vsel %vm153_vm0, %v115_v27, 4286644096  ;;  %v132_v43 = vld [vmem:[%s1400_s0 + $0x1ec] sm:$0xf] }
  0x47   :  { %v147_v39 = vld [vmem:[%s1400_s0 + $0x228] sm:$0xf]  ;;  %v556_v41 = vsel %vm153_vm0, %v84_v26, 4286644096  ;;  %v21_v46 = vld [vmem:[%s1400_s0 + $0x30] sm:$0xf] }
  0x48   :  { %v782_v42 = vcombine.low %v469_v21, %v504_v33  ;;  %v527_v44 = vmax.bf16 %v525_v31, %v523_v37  ;;  %v554_v45 = vmax.bf16 %v552_v32, %v550_v38  ;;  %v37_v47 = vld [vmem:[%s1400_s0 + $0x70] sm:$0xf]  ;;  %v148_v49 = vld [vmem:[%s1400_s0 + $0x22c] sm:$0xf]  ;;  %v533_v50 = vsel %vm153_vm0, %v131_v36, 4286644096 }
  0x49   :  { %v53_v48 = vld [vmem:[%s1400_s0 + $0xb0] sm:$0xf]  ;;  %v560_v51 = vsel %vm153_vm0, %v100_v34, 4286644096  ;;  %v564_v54 = vsel %vm153_vm0, %v116_v35, 4286644096 }
  0x4a   :  { %783 = vst [vmem:[%s1401_s1 + $0x20] sm:$0xff] %v782_v42   ;;  %v531_v52 = vmax.bf16 %v529_v40, %v527_v44  ;;  %v558_v53 = vmax.bf16 %v556_v41, %v554_v45  ;;  %v22_v55 = vld [vmem:[%s1400_s0 + $0x34] sm:$0xf]  ;;  %v69_v56 = vld [vmem:[%s1400_s0 + $0xf0] sm:$0xf] }
  0x4b   :  { %v576_v57 = vsel %vm153_vm0, %v21_v46, 4286644096  ;;  %v579_v58 = vsel %vm153_vm0, %v37_v47, 4286644096  ;;  %v583_v59 = vsel %vm153_vm0, %v53_v48, 4286644096 }
  0x4c   :  { %v535_v60 = vmax.bf16 %v533_v50, %v531_v52  ;;  %v537_v61 = vsel %vm153_vm0, %v147_v39, 4286644096  ;;  %v562_v62 = vmax.bf16 %v560_v51, %v558_v53  ;;  %v38_v63 = vld [vmem:[%s1400_s0 + $0x74] sm:$0xf]  ;;  %v85_v0 = vld [vmem:[%s1400_s0 + $0x130] sm:$0xf]  ;;  %v581_v1 = vmax.bf16 %v579_v58, %v576_v57 }
  0x4d   :  { %v568_v2 = vsel %vm153_vm0, %v132_v43, 4286644096  ;;  %v54_v3 = vld [vmem:[%s1400_s0 + $0xb4] sm:$0xf]  ;;  %v587_v4 = vsel %vm153_vm0, %v69_v56, 4286644096 }
  0x4e   :  { %v566_v5 = vmax.bf16 %v564_v54, %v562_v62  ;;  %v572_v6 = vsel %vm153_vm0, %v148_v49, 4286644096  ;;  %v70_v7 = vld [vmem:[%s1400_s0 + $0xf4] sm:$0xf]  ;;  %v101_v8 = vld [vmem:[%s1400_s0 + $0x170] sm:$0xf]  ;;  %v585_v9 = vmax.bf16 %v583_v59, %v581_v1  ;;  %v539_v10 = vmax.bf16 %v537_v61, %v535_v60 }
  0x4f   :  { %v591_v11 = vsel %vm153_vm0, %v85_v0, 4286644096  ;;  %v611_v12 = vsel %vm153_vm0, %v22_v55, 4286644096  ;;  %v614_v13 = vsel %vm153_vm0, %v38_v63, 4286644096 }
  0x50   :  { %v570_v14 = vmax.bf16 %v568_v2, %v566_v5  ;;  %v86_v15 = vld [vmem:[%s1400_s0 + $0x134] sm:$0xf]  ;;  %v117_v16 = vld [vmem:[%s1400_s0 + $0x1b0] sm:$0xf]  ;;  %v589_v17 = vmax.bf16 %v587_v4, %v585_v9  ;;  %v616_v18 = vmax.bf16 %v614_v13, %v611_v12  ;;  %v618_v19 = vsel %vm153_vm0, %v54_v3, 4286644096 }
  0x51   :  { %v595_v20 = vsel %vm153_vm0, %v101_v8, 4286644096  ;;  %v622_v21 = vsel %vm153_vm0, %v70_v7, 4286644096  ;;  %v102_v23 = vld [vmem:[%s1400_s0 + $0x174] sm:$0xf] }
  0x52   :  { %v574_v22 = vmax.bf16 %v572_v6, %v570_v14  ;;  %v118_v24 = vld [vmem:[%s1400_s0 + $0x1b4] sm:$0xf]  ;;  %v133_v25 = vld [vmem:[%s1400_s0 + $0x1f0] sm:$0xf]  ;;  %v593_v26 = vmax.bf16 %v591_v11, %v589_v17  ;;  %v620_v27 = vmax.bf16 %v618_v19, %v616_v18  ;;  %v599_v29 = vsel %vm153_vm0, %v117_v16, 4286644096 }
  0x53   :  { %v149_v28 = vld [vmem:[%s1400_s0 + $0x230] sm:$0xf]  ;;  %v626_v30 = vsel %vm153_vm0, %v86_v15, 4286644096  ;;  %v134_v32 = vld [vmem:[%s1400_s0 + $0x1f4] sm:$0xf] }
  0x54   :  { %v784_v31 = vcombine.low %v539_v10, %v574_v22  ;;  %v597_v33 = vmax.bf16 %v595_v20, %v593_v26  ;;  %v624_v34 = vmax.bf16 %v622_v21, %v620_v27  ;;  %v23_v35 = vld [vmem:[%s1400_s0 + $0x38] sm:$0xf]  ;;  %v150_v38 = vld [vmem:[%s1400_s0 + $0x234] sm:$0xf]  ;;  %v603_v39 = vsel %vm153_vm0, %v133_v25, 4286644096 }
  0x55   :  { %v39_v36 = vld [vmem:[%s1400_s0 + $0x78] sm:$0xf]  ;;  %v630_v40 = vsel %vm153_vm0, %v102_v23, 4286644096  ;;  %v634_v43 = vsel %vm153_vm0, %v118_v24, 4286644096 }
  0x56   :  { %v55_v37 = vld [vmem:[%s1400_s0 + $0xb8] sm:$0xf]  ;;  %785 = vst [vmem:[%s1401_s1 + $0x28] sm:$0xff] %v784_v31   ;;  %v601_v41 = vmax.bf16 %v599_v29, %v597_v33  ;;  %v628_v42 = vmax.bf16 %v626_v30, %v624_v34  ;;  %v24_v44 = vld [vmem:[%s1400_s0 + $0x3c] sm:$0xf] }
  0x57   :  { %v71_v45 = vld [vmem:[%s1400_s0 + $0xf8] sm:$0xf]  ;;  %v646_v46 = vsel %vm153_vm0, %v23_v35, 4286644096  ;;  %v649_v47 = vsel %vm153_vm0, %v39_v36, 4286644096 }
  0x58   :  { %v653_v48 = vsel %vm153_vm0, %v55_v37, 4286644096  ;;  %v605_v49 = vmax.bf16 %v603_v39, %v601_v41  ;;  %v607_v50 = vsel %vm153_vm0, %v149_v28, 4286644096  ;;  %v632_v51 = vmax.bf16 %v630_v40, %v628_v42  ;;  %v40_v52 = vld [vmem:[%s1400_s0 + $0x7c] sm:$0xf] }
  0x59   :  { %v87_v53 = vld [vmem:[%s1400_s0 + $0x138] sm:$0xf]  ;;  %v651_v54 = vmax.bf16 %v649_v47, %v646_v46  ;;  %v638_v55 = vsel %vm153_vm0, %v134_v32, 4286644096  ;;  %v56_v56 = vld [vmem:[%s1400_s0 + $0xbc] sm:$0xf] }
  0x5a   :  { %v657_v57 = vsel %vm153_vm0, %v71_v45, 4286644096  ;;  %v636_v58 = vmax.bf16 %v634_v43, %v632_v51  ;;  %v642_v59 = vsel %vm153_vm0, %v150_v38, 4286644096  ;;  %v72_v60 = vld [vmem:[%s1400_s0 + $0xfc] sm:$0xf]  ;;  %v609_v63 = vmax.bf16 %v607_v50, %v605_v49 }
  0x5b   :  { %v103_v61 = vld [vmem:[%s1400_s0 + $0x178] sm:$0xf]  ;;  %v655_v62 = vmax.bf16 %v653_v48, %v651_v54  ;;  %v661_v0 = vsel %vm153_vm0, %v87_v53, 4286644096  ;;  %v681_v1 = vsel %vm153_vm0, %v24_v44, 4286644096 }
  0x5c   :  { %v684_v2 = vsel %vm153_vm0, %v40_v52, 4286644096  ;;  %v640_v3 = vmax.bf16 %v638_v55, %v636_v58  ;;  %v88_v4 = vld [vmem:[%s1400_s0 + $0x13c] sm:$0xf]  ;;  %v119_v5 = vld [vmem:[%s1400_s0 + $0x1b8] sm:$0xf] }
  0x5d   :  { %v659_v6 = vmax.bf16 %v657_v57, %v655_v62  ;;  %v686_v7 = vmax.bf16 %v684_v2, %v681_v1  ;;  %v688_v8 = vsel %vm153_vm0, %v56_v56, 4286644096  ;;  %v665_v9 = vsel %vm153_vm0, %v103_v61, 4286644096  ;;  %v104_v12 = vld [vmem:[%s1400_s0 + $0x17c] sm:$0xf] }
  0x5e   :  { %v692_v10 = vsel %vm153_vm0, %v72_v60, 4286644096  ;;  %v644_v11 = vmax.bf16 %v642_v59, %v640_v3  ;;  %v135_v13 = vld [vmem:[%s1400_s0 + $0x1f8] sm:$0xf]  ;;  %v669_v16 = vsel %vm153_vm0, %v119_v5, 4286644096 }
  0x5f   :  { %v663_v14 = vmax.bf16 %v661_v0, %v659_v6  ;;  %v690_v15 = vmax.bf16 %v688_v8, %v686_v7  ;;  %v696_v17 = vsel %vm153_vm0, %v88_v4, 4286644096  ;;  %v120_v19 = vld [vmem:[%s1400_s0 + $0x1bc] sm:$0xf]  ;;  %v673_v22 = vsel %vm153_vm0, %v135_v13, 4286644096 }
  0x60   :  { %v786_v18 = vcombine.low %v609_v63, %v644_v11  ;;  %v700_v23 = vsel %vm153_vm0, %v104_v12, 4286644096  ;;  %v136_v24 = vld [vmem:[%s1400_s0 + $0x1fc] sm:$0xf]  ;;  %v151_v25 = vld [vmem:[%s1400_s0 + $0x238] sm:$0xf] }
  0x61   :  { %v667_v20 = vmax.bf16 %v665_v9, %v663_v14  ;;  %v694_v21 = vmax.bf16 %v692_v10, %v690_v15  ;;  %v704_v28 = vsel %vm153_vm0, %v120_v19, 4286644096  ;;  %v152_v29 = vld [vmem:[%s1400_s0 + $0x23c] sm:$0xf]  ;;  %v677_v32 = vsel %vm153_vm0, %v151_v25, 4286644096 }
  0x62   :  { %787 = vst [vmem:[%s1401_s1 + $0x30] sm:$0xff] %v786_v18   ;;  %v708_v33 = vsel %vm153_vm0, %v136_v24, 4286644096  ;;  %v712_v35 = vsel %vm153_vm0, %v152_v29, 4286644096 }
  0x63   :  { %v671_v26 = vmax.bf16 %v669_v16, %v667_v20  ;;  %v698_v27 = vmax.bf16 %v696_v17, %v694_v21 }
  0x65   :  { %v675_v30 = vmax.bf16 %v673_v22, %v671_v26  ;;  %v702_v31 = vmax.bf16 %v700_v23, %v698_v27 }
  0x67   :  { %v706_v34 = vmax.bf16 %v704_v28, %v702_v31  ;;  %v679_v36 = vmax.bf16 %v677_v32, %v675_v30 }
  0x69   :  { %v710_v37 = vmax.bf16 %v708_v33, %v706_v34 }
  0x6b   :  { %v714_v38 = vmax.bf16 %v712_v35, %v710_v37 }
  0x6d   :  { %v788_v39 = vcombine.low %v679_v36, %v714_v38 }
  0x6f   :  { %789 = vst [vmem:[%s1401_s1 + $0x38] sm:$0xff] %v788_v39  }

// kernel: resnet34_features.41
= control target key start
LH: loop header
LB: loop body
LE: loop exit
PB: predicated region body
PF: predicated region fallthrough
CT: control target
= control target key end

     0   :  { %s1508_s18 = smov 0   ;;  %s1510_s19 = smov 0   ;;  %s1681_s0 = inlined_call_operand.vmem [shape: bf16[128,1152], index: 0, kind: input, shape index: {}]   ;;  %s1682_s1 = inlined_call_operand.vmem [shape: bf16[1152,128], index: 1, kind: input, shape index: {}]   ;;  %s1683_s2 = inlined_call_operand.vmem [shape: f32[1,128], index: 2, kind: input, shape index: {}]   ;;  %s1684_s3 = inlined_call_operand.vmem [shape: f32[1,128], index: 3, kind: input, shape index: {}]   ;;  %s1685_s4 = inlined_call_operand.vmem [shape: bf16[128,128], index: 4, kind: input, shape index: {}]   ;;  %s1686_s5 = inlined_call_operand.vmem [shape: bf16[128,128], index: 5, kind: output, shape index: {}]  }
   0x1   :  { %s1512_s20 = smov 0   ;;  %s1514_s21 = smov 0  }
   0x2   :  { %s1516_s22 = smov 0   ;;  %s1518_s23 = smov 0  }
   0x3   :  { %s1520_s24 = smov 0  }
   0x4 LB: > { %s27_s25 = sadd.s32 1, %s1467_s22  ;;  %s34_s26 = sadd.s32 1, %s1471_s23  ;;  %s1475_s24 = sphi %s1520_s24, %s15_s24   ;;  %s1471_s23 = sphi %s1518_s23, %s1692_s23   ;;  %s1467_s22 = sphi %s1516_s22, %s1691_s22   ;;  %s1463_s21 = sphi %s1514_s21, %s1690_s21   ;;  %s1459_s20 = sphi %s1512_s20, %s1689_s20   ;;  %s1455_s19 = sphi %s1510_s19, %s1688_s19   ;;  %s1451_s18 = sphi %s1508_s18, %s1687_s18  }
   0x5   : > { %p28_p0 = scmp.ge.s32.totalorder %s27_s25, 3  ;;  %p50_p1 = scmp.ne.s32.totalorder %s1455_s19, %s1451_s18 }
   0x6   : > { %p51_p2 = scmp.eq.s32.totalorder %s1475_s24, 0  ;;  %s43_s30 = sadd.s32 1, %s1455_s19 }
   0x7   : > { %s1694_s25 = smov (%p28_p0, %s27_s25), 0  ;;  %s1696_s26 = smov (!%p28_p0, %s34_s26), %s1471_s23 }
   0x8   : > { %p52_p3 = por %p51_p2, %p50_p1  ;;  %p36_p4 = scmp.ge.s32.totalorder %s1696_s26, 2 }
   0x9   : > { %s39_s27 = ssub.s32 %s1467_s22, %s1694_s25  ;;  %p1119_p6 = scmp.ge.s32.totalorder %s1475_s24, 6 }
   0xa   : > { %s1698_s26 = smov (%p36_p4, %s1696_s26), 0 }
   0xb   : > { %s38_s28 = ssub.s32 %s1471_s23, %s1698_s26  ;;  %224 = sbr.rel (%p1119_p6) target bundleno = 36 (0x24), region = 24 }
   0xc   : > { %s40_s29 = sor.u32 %s39_s27, %s38_s28 }
   0xd   : > { %p41_p5 = scmp.eq.s32.totalorder %s40_s29, 0 }
   0xf   : > { %s1559_s6 = scalar_select %p41_p5, %s1455_s19, %s43_s30  }
  0x12   : > { %227 = sbr.rel (!%p52_p3) target bundleno = 36 (0x24), region = 28  ;;  %s229_s7 = sand.u32 (%p52_p3), 1, %s1455_s19  }
  0x13   : > { %s233_s8 = smul.u32 (%p52_p3), 3, %s1467_s22 }
  0x14   : > { %s1321_s9 = smul.u32 (%p52_p3), 96, %s229_s7 }
  0x15   : > { %s1322_s10 = smul.u32 (%p52_p3), 72, %s1471_s23 }
  0x16   : > { %s231_s16 = scalar_lea.vmem (%p52_p3), [#allocation3], %s1321_s9 }
  0x17   : > { %s235_s11 = sadd.s32 (%p52_p3), %s1322_s10, %s233_s8 }
  0x18   : > { %s1122_s12 = sshll.u32 (%p52_p3), %s235_s11, 2 }
  0x19   : > { %s1568_s15 = scalar_lea.vmem %s1681_s0, %s1122_s12 }
  0x1a   : > { %v252_v0 = vld [vmem:[%s1568_s15] sm:$0xff]  ;;  %v256_v2 = vld [vmem:[%s1568_s15 + $0x48] sm:$0xff]  ;;  %v260_v4 = vld [vmem:[%s1568_s15 + $0x90] sm:$0xff] }
  0x1b   : > { %v254_v1 = vld [vmem:[%s1568_s15 + $0x24] sm:$0xff]  ;;  %253 = vst [vmem:[%s231_s16] sm:$0xff] %v252_v0  ;;  %257 = vst [vmem:[%s231_s16 + $0x18] sm:$0xff] %v256_v2  ;;  %v258_v3 = vld [vmem:[%s1568_s15 + $0x6c] sm:$0xff] }
  0x1c   : > { %255 = vst [vmem:[%s231_s16 + $0xc] sm:$0xff] %v254_v1  ;;  %v262_v5 = vld [vmem:[%s1568_s15 + $0xb4] sm:$0xff]  ;;  %259 = vst [vmem:[%s231_s16 + $0x24] sm:$0xff] %v258_v3  ;;  %v266_v7 = vld [vmem:[%s1568_s15 + $0xfc] sm:$0xff] }
  0x1d   : > { %261 = vst [vmem:[%s231_s16 + $0x30] sm:$0xff] %v260_v4  ;;  %263 = vst [vmem:[%s231_s16 + $0x3c] sm:$0xff] %v262_v5  ;;  %v264_v6 = vld [vmem:[%s1568_s15 + $0xd8] sm:$0xff]  ;;  %v1123_v8 = vld [vmem:[%s1568_s15 + $0x8] sm:$0xf] }
  0x1e   : > { %265 = vst [vmem:[%s231_s16 + $0x48] sm:$0xff] %v264_v6  ;;  %267 = vst [vmem:[%s231_s16 + $0x54] sm:$0xff] %v266_v7  ;;  %v1125_v9 = vld [vmem:[%s1568_s15 + $0x2c] sm:$0xf]  ;;  %v1127_v10 = vld [vmem:[%s1568_s15 + $0x50] sm:$0xf] }
  0x1f   : > { %1124 = vst [vmem:[%s231_s16 + $0x8] sm:$0xf] %v1123_v8  ;;  %v1129_v11 = vld [vmem:[%s1568_s15 + $0x74] sm:$0xf]  ;;  %1126 = vst [vmem:[%s231_s16 + $0x14] sm:$0xf] %v1125_v9 }
  0x20   : > { %1128 = vst [vmem:[%s231_s16 + $0x20] sm:$0xf] %v1127_v10  ;;  %1130 = vst [vmem:[%s231_s16 + $0x2c] sm:$0xf] %v1129_v11  ;;  %v1131_v12 = vld [vmem:[%s1568_s15 + $0x98] sm:$0xf] }
  0x21   : > { %v1133_v13 = vld [vmem:[%s1568_s15 + $0xbc] sm:$0xf]  ;;  %v1135_v14 = vld [vmem:[%s1568_s15 + $0xe0] sm:$0xf]  ;;  %1132 = vst [vmem:[%s231_s16 + $0x38] sm:$0xf] %v1131_v12 }
  0x22   : > { %1134 = vst [vmem:[%s231_s16 + $0x44] sm:$0xf] %v1133_v13  ;;  %1136 = vst [vmem:[%s231_s16 + $0x50] sm:$0xf] %v1135_v14  ;;  %v1137_v15 = vld [vmem:[%s1568_s15 + $0x104] sm:$0xf] }
  0x23   : > { %1138 = vst [vmem:[%s231_s16 + $0x5c] sm:$0xf] %v1137_v15 }
  0x24 PF: > { %p1139_p7 = scmp.ge.s32.totalorder %s1475_s24, 1  ;;  %p319_p8 = scmp.lt.s32.totalorder %s1475_s24, 7 }
  0x26   : > { %p320_p9 = pnand %p1139_p7, %p319_p8 }
  0x27   : > { %s326_s17 = sand.u32 (!%p320_p9), 1, %s1451_s18   ;;  %s380_s27 = smul.u32 (!%p320_p9), 48, %s1459_s20 }
  0x28   : > { %323 = sbr.rel (%p320_p9) target bundleno = 354 (0x162), region = 62  ;;  %s1141_s29 = sshll.u32 (!%p320_p9), %s1463_s21, 3 }
  0x29   : > { %s1323_s28 = smul.u32 (!%p320_p9), 96, %s326_s17  ;;  %p381_p10 = scmp.lt.s32.totalorder (!%p320_p9), %s380_s27, 143 }
  0x2a   : > { %p396_p11 = scmp.lt.s32.totalorder (!%p320_p9), %s1141_s29, 15  ;;  %p1145_p12 = scmp.ne.s32.totalorder (!%p320_p9), %s1459_s20, 0 }
  0x2b   : > { %s1606_s15 = scalar_lea.vmem (!%p320_p9), [#allocation3], %s1323_s28 }
  0x2f   : > { %s1700_s27 = smov (!%p381_p10, %s380_s27), 143  ;;  %s1702_s29 = smov (!%p396_p11, %s1141_s29), 15 }
  0x30   : > { %s1140_s30 = sshll.u32 %s1700_s27, 2  ;;  %s1142_s10 = sshll.u32 %s1702_s29, 2  ;;  %v1477_v16 = vmov (!%p1145_p12), 0.0  }
  0x31   : > { %s1594_s9 = scalar_lea.vmem %s1682_s1, %s1140_s30  ;;  %s1599_s13 = scalar_lea.vmem %s1685_s4, %s1142_s10  ;;  %418 = vst [vmem:[#allocation2] sm:$0xff] (!%p1145_p12), %v1477_v16  ;;  %419 = vst [vmem:[#allocation2 + $0x8] sm:$0xff] (!%p1145_p12), %v1477_v16 }
  0x32   : > { %s1604_s21 = scalar_lea.vmem %s1686_s5, %s1142_s10  ;;  %417 = sbr.rel (%p1145_p12) target bundleno = 57 (0x39), region = 70  ;;  %420 = vst [vmem:[#allocation2 + $0x10] sm:$0xff] (!%p1145_p12), %v1477_v16  ;;  %421 = vst [vmem:[#allocation2 + $0x18] sm:$0xff] (!%p1145_p12), %v1477_v16 }
  0x33   : > { %422 = vst [vmem:[#allocation2 + $0x20] sm:$0xff] (!%p1145_p12), %v1477_v16  ;;  %423 = vst [vmem:[#allocation2 + $0x28] sm:$0xff] (!%p1145_p12), %v1477_v16 }
  0x34   : > { %424 = vst [vmem:[#allocation2 + $0x30] sm:$0xff] (!%p1145_p12), %v1477_v16  ;;  %425 = vst [vmem:[#allocation2 + $0x38] sm:$0xff] (!%p1145_p12), %v1477_v16 }
  0x39 PF: > { %v1381_v17 = vld [vmem:[%s1594_s9 + $0x40] sm:$0xff]   ;;  %v1384_v20 = vld [vmem:[%s1594_s9 + $0x48] sm:$0xff]   ;;  %v1387_v23 = vld [vmem:[%s1594_s9 + $0x50] sm:$0xff]   ;;  %p1182_p13 = scmp.ne.s32.totalorder %s1459_s20, 2 }
  0x3a   : > { %v1382_v18 = vld [vmem:[%s1594_s9] sm:$0xff]   ;;  %1245 = vmatprep.subr.bf16.mxu0 %v1381_v17  ;;  %v1385_v21 = vld [vmem:[%s1594_s9 + $0x8] sm:$0xff]   ;;  %v1388_v24 = vld [vmem:[%s1594_s9 + $0x10] sm:$0xff]  }
  0x3b   : > { %v1383_v19 = vld [vmem:[%s1594_s9 + $0x80] sm:$0xff]   ;;  %1246 = vmatpush3.bf16.msra.mxu0 %v1382_v18  ;;  %v1386_v22 = vld [vmem:[%s1594_s9 + $0x88] sm:$0xff]   ;;  %v1389_v25 = vld [vmem:[%s1594_s9 + $0x90] sm:$0xff]  }
  0x3c   : > { %1297 = vmatprep.subr.bf16.mxu1 %v1383_v19  ;;  %1247 = vmatprep.subr.bf16.mxu0 %v1384_v20  ;;  %v1390_v26 = vld [vmem:[%s1594_s9 + $0x58] sm:$0xff]   ;;  %v1393_v29 = vld [vmem:[%s1594_s9 + $0x60] sm:$0xff]   ;;  %v1396_v32 = vld [vmem:[%s1594_s9 + $0x68] sm:$0xff]  }
  0x3d   : > { %1298 = vmatpush3.bf16.msra.mxu1 %v1383_v19  ;;  %v1391_v27 = vld [vmem:[%s1594_s9 + $0x18] sm:$0xff]   ;;  %v1395_v30 = vld [vmem:[%s1594_s9 + $0xa0] sm:$0xff]   ;;  %v1398_v33 = vld [vmem:[%s1594_s9 + $0xa8] sm:$0xff]  }
  0x3e   : > { %1299 = vmatprep.subr.bf16.mxu1 %v1386_v22  ;;  %v1392_v28 = vld [vmem:[%s1594_s9 + $0x98] sm:$0xff]   ;;  %v1394_v31 = vld [vmem:[%s1594_s9 + $0x20] sm:$0xff]   ;;  %v1397_v34 = vld [vmem:[%s1594_s9 + $0x28] sm:$0xff]  }
  0x3f   : > { %1248 = vmatpush3.bf16.msra.mxu0 %v1385_v21  ;;  %v1399_v35 = vld [vmem:[%s1594_s9 + $0x70] sm:$0xff]   ;;  %v1402_v38 = vld [vmem:[%s1594_s9 + $0x78] sm:$0xff]   ;;  %v1405_v43 = vld [vmem:[%s1606_s15] ss:$12 sps:$4 sm:$0xff]  }
  0x40   : > { %1249 = vmatprep.subr.bf16.mxu0 %v1387_v23  ;;  %v1400_v36 = vld [vmem:[%s1594_s9 + $0x30] sm:$0xff]   ;;  %v1404_v39 = vld [vmem:[%s1594_s9 + $0xb8] sm:$0xff]   ;;  %v1409_v45 = vld [vmem:[%s1606_s15 + $0x20] ss:$12 sps:$4 sm:$0xff]  }
  0x41   : > { %1300 = vmatpush3.bf16.msra.mxu1 %v1386_v22  ;;  %v1401_v37 = vld [vmem:[%s1594_s9 + $0xb0] sm:$0xff]   ;;  %v1403_v42 = vld [vmem:[%s1594_s9 + $0x38] sm:$0xff]   ;;  %v426_v59 = vld [vmem:[#allocation2] sm:$0xff] }
  0x42   : > { %1301 = vmatprep.subr.bf16.mxu1 %v1389_v25  ;;  %v1407_v40 = vld [vmem:[%s1606_s15 + $0x4] ss:$12 sps:$4 sm:$0xff]   ;;  %v1408_v41 = vld [vmem:[%s1606_s15 + $0x8] ss:$12 sps:$4 sm:$0xff]   ;;  %v1418_v51 = vld [vmem:[%s1606_s15 + $0x4c] ss:$12 sps:$4 sm:$0xff]  }
  0x43   : > { %1250 = vmatpush3.bf16.msra.mxu0 %v1388_v24  ;;  %738 = vmatprep.mubr.bf16.mxu0 %v1407_v40  ;;  %v1410_v44 = vld [vmem:[%s1606_s15 + $0x1c] ss:$12 sps:$4 sm:$0xff]   ;;  %v1416_v46 = vld [vmem:[%s1606_s15 + $0x38] ss:$12 sps:$4 sm:$0xff]   ;;  %v1413_v48 = vld [vmem:[%s1606_s15 + $0x34] ss:$12 sps:$4 sm:$0xff]  }
  0x44   : > { %1251 = vmatprep.subr.bf16.mxu0 %v1390_v26  ;;  %1313 = vmatprep.mubr.bf16.mxu1 %v1408_v41  ;;  %v1412_v47 = vld [vmem:[%s1606_s15 + $0x18] ss:$12 sps:$4 sm:$0xff]   ;;  %v1417_v49 = vld [vmem:[%s1606_s15 + $0x50] ss:$12 sps:$4 sm:$0xff]   ;;  %v1420_v52 = vld [vmem:[%s1606_s15 + $0x48] ss:$12 sps:$4 sm:$0xff]  }
  0x45   : > { %1302 = vmatpush3.bf16.msra.mxu1 %v1389_v25  ;;  %v1415_v50 = vld [vmem:[%s1606_s15 + $0x30] ss:$12 sps:$4 sm:$0xff]   ;;  %v427_v0 = vld [vmem:[#allocation2 + $0x8] sm:$0xff]  ;;  %v430_v26 = vld [vmem:[#allocation2 + $0x20] sm:$0xff] }
  0x46   : > { %1303 = vmatprep.subr.bf16.mxu1 %v1392_v28  ;;  %v428_v10 = vld [vmem:[#allocation2 + $0x10] sm:$0xff]  ;;  %v429_v16 = vld [vmem:[#allocation2 + $0x18] sm:$0xff] }
  0x47   : > { %1252 = vmatpush3.bf16.msra.mxu0 %v1391_v27  ;;  %v433_v41 = vld [vmem:[#allocation2 + $0x38] sm:$0xff] }
  0x48   : > { %1253 = vmatprep.subr.bf16.mxu0 %v1393_v29  ;;  %v431_v29 = vld [vmem:[#allocation2 + $0x28] sm:$0xff] }
  0x49   : > { %1304 = vmatpush3.bf16.msra.mxu1 %v1392_v28 }
  0x4a   : > { %1305 = vmatprep.subr.bf16.mxu1 %v1395_v30 }
  0x4b   : > { %1254 = vmatpush3.bf16.msra.mxu0 %v1394_v31 }
  0x4c   : > { %1255 = vmatprep.subr.bf16.mxu0 %v1396_v32 }
  0x4d   : > { %1306 = vmatpush3.bf16.msra.mxu1 %v1395_v30 }
  0x4e   : > { %1307 = vmatprep.subr.bf16.mxu1 %v1398_v33 }
  0x4f   : > { %1256 = vmatpush3.bf16.msra.mxu0 %v1397_v34 }
  0x50   : > { %1257 = vmatprep.subr.bf16.mxu0 %v1399_v35 }
  0x51   : > { %1308 = vmatpush3.bf16.msra.mxu1 %v1398_v33 }
  0x52   : > { %1309 = vmatprep.subr.bf16.mxu1 %v1401_v37 }
  0x53   : > { %1258 = vmatpush3.bf16.msra.mxu0 %v1400_v36 }
  0x54   : > { %1259 = vmatprep.subr.bf16.mxu0 %v1402_v38 }
  0x55   : > { %1310 = vmatpush3.bf16.msra.mxu1 %v1401_v37  ;;  %v432_v37 = vld [vmem:[#allocation2 + $0x30] sm:$0xff] }
  0x56   : > { %1311 = vmatprep.subr.bf16.mxu1 %v1404_v39 }
  0x57   : > { %1260 = vmatpush3.bf16.msra.mxu0 %v1403_v42 }
  0x59   : > { %1312 = vmatpush3.bf16.msra.mxu1 %v1404_v39 }
  0x5a   : > { %739 = vmatmul.mubr.bf16.vlgmr.msra.gmra.mrb[0].mxu0 %v1405_v43 }
  0x5b   : > { %746 = vmatprep.mubr.bf16.mxu0 %v1410_v44 }
  0x5c   : > { %1314 = vmatmul.mubr.bf16.vlgmr.msra.gmra.mrb[0].mxu1 %v1409_v45 }
  0x5d   : > { %1317 = vmatprep.mubr.bf16.mxu1 %v1416_v46 }
  0x62   : > { %747 = vmatmul.mubr.bf16.gmra.mrb[4].mxu0 %v1412_v47  ;;  %v1183_v47 = vld [vmem:[%s1683_s2] ss:$0 sm:$0xff] (!%p1182_p13) }
  0x63   : > { %754 = vmatprep.mubr.bf16.mxu0 %v1413_v48 }
  0x64   : > { %1318 = vmatmul.mubr.bf16.gmra.mrb[4].mxu1 %v1417_v49 }
  0x6a   : > { %755 = vmatmul.mubr.bf16.gmra.mrb[8].mxu0 %v1415_v50  ;;  %v1184_v50 = vld [vmem:[%s1684_s3] ss:$0 sm:$0xff] (!%p1182_p13) }
  0x6b   : > { %762 = vmatprep.mubr.bf16.mxu0 %v1418_v51  ;;  %v1204_v51 = vld [vmem:[%s1599_s13] sm:$0xff] (!%p1182_p13)  }
  0x72   : > { %763 = vmatmul.mubr.bf16.gmra.mrb[12].mxu0 %v1420_v52 }
 0x12d   : > { %v1261_v53 = vpop.f32.mrb[0].mxu0 }
 0x12e   : > { %v1262_v54 = vpop.f32.mrb[1].mxu0 }
 0x12f   : > { %v1263_v55 = vadd.f32 %v1262_v54, %v1261_v53  ;;  %v1264_v56 = vpop.f32.mrb[2].mxu0  ;;  %v1315_v57 = vpop.f32.mrb[0].mxu1  ;;  %v1205_v53 = vunpack.c.l.bf16 (!%p1182_p13), %v1204_v51  ;;  %v1206_v54 = vunpack.c.h.bf16 (!%p1182_p13), %v1204_v51 }
 0x130   : > { %v1265_v58 = vpop.f32.mrb[3].mxu0  ;;  %v805_v60 = vpop.f32.mrb[1].mxu1 }
 0x131   : > { %v1266_v61 = vadd.f32 %v1265_v58, %v1264_v56  ;;  %v806_v62 = vadd.f32 %v1263_v55, %v805_v60  ;;  %v1316_v63 = vpop.f32.mrb[2].mxu1 }
 0x132   : > { %v808_v1 = vpop.f32.mrb[3].mxu1 }
 0x133   : > { %v836_v2 = vadd.f32 %v806_v62, %v426_v59  ;;  %v809_v3 = vadd.f32 %v1266_v61, %v808_v1 }
 0x135   : > { %844 = vst [vmem:[#allocation2] sm:$0xff] %v836_v2  ;;  %v837_v4 = vadd.f32 %v809_v3, %v427_v0  ;;  %v1267_v5 = vpop.f32.mrb[4].mxu0  ;;  %v1240_v0 = vld [vmem:[%s1599_s13 + $0x10] sm:$0xff] (!%p1182_p13)  }
 0x136   : > { %v1268_v6 = vpop.f32.mrb[5].mxu0 }
 0x137   : > { %845 = vst [vmem:[#allocation2 + $0x8] sm:$0xff] %v837_v4  ;;  %v1269_v7 = vadd.f32 %v1268_v6, %v1267_v5  ;;  %v1270_v8 = vpop.f32.mrb[6].mxu0  ;;  %v1319_v9 = vpop.f32.mrb[4].mxu1 }
 0x138   : > { %v1271_v11 = vpop.f32.mrb[7].mxu0  ;;  %v821_v12 = vpop.f32.mrb[5].mxu1 }
 0x139   : > { %v814_v13 = vadd.f32 %v1315_v57, %v1269_v7  ;;  %v1272_v14 = vadd.f32 %v1271_v11, %v1270_v8  ;;  %v1320_v15 = vpop.f32.mrb[6].mxu1  ;;  %v1239_v57 = vld [vmem:[%s1599_s13 + $0x8] sm:$0xff] (!%p1182_p13)  }
 0x13a   : > { %v824_v17 = vpop.f32.mrb[7].mxu1  ;;  %v1209_v62 = vunpack.c.l.bf16 (!%p1182_p13), %v1239_v57  ;;  %v1210_v2 = vunpack.c.h.bf16 (!%p1182_p13), %v1239_v57 }
 0x13b   : > { %v838_v18 = vadd.f32 %v814_v13, %v428_v10  ;;  %v817_v19 = vadd.f32 %v1316_v63, %v1272_v14  ;;  %v1214_v14 = vunpack.c.h.bf16 (!%p1182_p13), %v1240_v0 }
 0x13c   : > { %v856_v45 = vld [vmem:[#allocation2] sm:$0xff] (!%p1182_p13) }
 0x13d   : > { %846 = vst [vmem:[#allocation2 + $0x10] sm:$0xff] %v838_v18  ;;  %v839_v20 = vadd.f32 %v817_v19, %v429_v16  ;;  %v1273_v21 = vpop.f32.mrb[8].mxu0  ;;  %v871_v48 = vmul.f32 (!%p1182_p13), %v1183_v47, %v856_v45 }
 0x13e   : > { %v1274_v22 = vpop.f32.mrb[9].mxu0  ;;  %v857_v46 = vld [vmem:[#allocation2 + $0x8] sm:$0xff] (!%p1182_p13) }
 0x13f   : > { %847 = vst [vmem:[#allocation2 + $0x18] sm:$0xff] %v839_v20  ;;  %v1275_v23 = vadd.f32 %v1274_v22, %v1273_v21  ;;  %v1276_v24 = vpop.f32.mrb[10].mxu0  ;;  %v872_v49 = vmul.f32 (!%p1182_p13), %v1183_v47, %v857_v46  ;;  %v886_v59 = vadd.f32 (!%p1182_p13), %v1184_v50, %v871_v48 }
 0x140   : > { %v1277_v25 = vpop.f32.mrb[11].mxu0 }
 0x141   : > { %v1278_v27 = vadd.f32 %v1277_v25, %v1276_v24  ;;  %v822_v28 = vadd.f32 %v1275_v23, %v821_v12  ;;  %v887_v60 = vadd.f32 (!%p1182_p13), %v1184_v50, %v872_v49  ;;  %v910_v6 = vadd.f32 (!%p1182_p13), %v1205_v53, %v886_v59 }
 0x143   : > { %v840_v30 = vadd.f32 %v822_v28, %v430_v26  ;;  %v825_v31 = vadd.f32 %v1278_v27, %v824_v17  ;;  %v911_v7 = vadd.f32 (!%p1182_p13), %v1206_v54, %v887_v60  ;;  %v918_v16 = vmax.f32 (!%p1182_p13), %v910_v6, 0.0 }
 0x144   : > { %v858_v52 = vld [vmem:[#allocation2 + $0x10] sm:$0xff] (!%p1182_p13) }
 0x145   : > { %848 = vst [vmem:[#allocation2 + $0x20] sm:$0xff] %v840_v30  ;;  %v841_v32 = vadd.f32 %v825_v31, %v431_v29  ;;  %v1279_v33 = vpop.f32.mrb[12].mxu0  ;;  %v873_v56 = vmul.f32 (!%p1182_p13), %v1183_v47, %v858_v52  ;;  %v919_v17 = vmax.f32 (!%p1182_p13), %v911_v7, 0.0 }
 0x146   : > { %v1280_v34 = vpop.f32.mrb[13].mxu0  ;;  %v859_v55 = vld [vmem:[#allocation2 + $0x18] sm:$0xff] (!%p1182_p13) }
 0x147   : > { %849 = vst [vmem:[#allocation2 + $0x28] sm:$0xff] %v841_v32  ;;  %v1281_v35 = vadd.f32 %v1280_v34, %v1279_v33  ;;  %v1282_v36 = vpop.f32.mrb[14].mxu0  ;;  %v874_v61 = vmul.f32 (!%p1182_p13), %v1183_v47, %v859_v55  ;;  %v888_v1 = vadd.f32 (!%p1182_p13), %v1184_v50, %v873_v56  ;;  %v1222_v24 = vpack.c.bf16 (!%p1182_p13), %v919_v17, %v918_v16 }
 0x148   : > { %v1283_v38 = vpop.f32.mrb[15].mxu0 }
 0x149   : > { %v830_v39 = vadd.f32 %v1319_v9, %v1281_v35  ;;  %v1284_v40 = vadd.f32 %v1283_v38, %v1282_v36  ;;  %855 = sbr.rel (%p1182_p13) target bundleno = 354 (0x162), region = 74  ;;  %v889_v8 = vadd.f32 (!%p1182_p13), %v1184_v50, %v874_v61  ;;  %v1213_v9 = vunpack.c.l.bf16 (!%p1182_p13), %v1240_v0  ;;  %1223 = vst [vmem:[%s1604_s21] sm:$0xff] (!%p1182_p13), %v1222_v24  }
 0x14a   : > { %v912_v11 = vadd.f32 (!%p1182_p13), %v1209_v62, %v888_v1 }
 0x14b   : > { %v842_v42 = vadd.f32 %v830_v39, %v432_v37  ;;  %v833_v43 = vadd.f32 %v1320_v15, %v1284_v40  ;;  %v1241_v15 = vld [vmem:[%s1599_s13 + $0x18] sm:$0xff] (!%p1182_p13)   ;;  %v913_v18 = vadd.f32 (!%p1182_p13), %v1210_v2, %v889_v8 }
 0x14c   : > { %v860_v58 = vld [vmem:[#allocation2 + $0x20] sm:$0xff] (!%p1182_p13)  ;;  %v920_v20 = vmax.f32 (!%p1182_p13), %v912_v11, 0.0  ;;  %v1217_v27 = vunpack.c.l.bf16 (!%p1182_p13), %v1241_v15  ;;  %v1218_v31 = vunpack.c.h.bf16 (!%p1182_p13), %v1241_v15 }
 0x14d   : > { %850 = vst [vmem:[#allocation2 + $0x30] sm:$0xff] %v842_v42  ;;  %v843_v44 = vadd.f32 %v833_v43, %v433_v41  ;;  %v875_v3 = vmul.f32 (!%p1182_p13), %v1183_v47, %v860_v58  ;;  %v921_v25 = vmax.f32 (!%p1182_p13), %v913_v18, 0.0 }
 0x14e   : > { %v861_v63 = vld [vmem:[#allocation2 + $0x28] sm:$0xff] (!%p1182_p13) }
 0x14f   : > { %851 = vst [vmem:[#allocation2 + $0x38] sm:$0xff] %v843_v44  ;;  %v876_v4 = vmul.f32 (!%p1182_p13), %v1183_v47, %v861_v63  ;;  %v890_v12 = vadd.f32 (!%p1182_p13), %v1184_v50, %v875_v3  ;;  %v1227_v32 = vpack.c.bf16 (!%p1182_p13), %v921_v25, %v920_v20 }
 0x151   : > { %v891_v13 = vadd.f32 %v1184_v50, %v876_v4  ;;  %v914_v21 = vadd.f32 %v1213_v9, %v890_v12  ;;  %1242 = vst [vmem:[%s1604_s21 + $0x8] sm:$0xff] %v1227_v32  }
 0x153   : > { %v915_v22 = vadd.f32 %v1214_v14, %v891_v13  ;;  %v922_v28 = vmax.f32 %v914_v21, 0.0 }
 0x154   : > { %v862_v5 = vld [vmem:[#allocation2 + $0x30] sm:$0xff] }
 0x155   : > { %v877_v19 = vmul.f32 %v1183_v47, %v862_v5  ;;  %v923_v29 = vmax.f32 %v915_v22, 0.0 }
 0x156   : > { %v863_v10 = vld [vmem:[#allocation2 + $0x38] sm:$0xff] }
 0x157   : > { %v878_v23 = vmul.f32 %v1183_v47, %v863_v10  ;;  %v892_v26 = vadd.f32 %v1184_v50, %v877_v19  ;;  %v1232_v34 = vpack.c.bf16 %v923_v29, %v922_v28 }
 0x159   : > { %v893_v30 = vadd.f32 %v1184_v50, %v878_v23  ;;  %v916_v33 = vadd.f32 %v1217_v27, %v892_v26  ;;  %1243 = vst [vmem:[%s1604_s21 + $0x10] sm:$0xff] %v1232_v34  }
 0x15b   : > { %v917_v35 = vadd.f32 %v1218_v31, %v893_v30  ;;  %v924_v36 = vmax.f32 %v916_v33, 0.0 }
 0x15d   : > { %v925_v37 = vmax.f32 %v917_v35, 0.0 }
 0x15f   : > { %v1237_v38 = vpack.c.bf16 %v925_v37, %v924_v36 }
 0x161   : > { %1244 = vst [vmem:[%s1604_s21 + $0x18] sm:$0xff] %v1237_v38  }
 0x162 PF: > { %s15_s24 = sadd.s32 1, %s1475_s24   ;;  %s1687_s18 = smov %s1455_s19 }
 0x163   : > { %p12_p0 = scmp.ge.s32.totalorder %s15_s24, 8   ;;  %s1688_s19 = smov %s1559_s6 }
 0x164   : > { %s1689_s20 = smov %s1467_s22  ;;  %s1690_s21 = smov %s1471_s23 }
 0x165   : > { %s1691_s22 = smov %s1694_s25  ;;  %s1692_s23 = smov %s1698_s26 }
 0x166   :  { %14 = sbr.rel (!%p12_p0) target bundleno = 4 (0x4), region = 127 }

// kernel: resnet34_features.40
= control target key start
LH: loop header
LB: loop body
LE: loop exit
PB: predicated region body
PF: predicated region fallthrough
CT: control target
= control target key end

     0   :  { %s1383_s15 = smov 0   ;;  %s1385_s16 = smov 0   ;;  %s1547_s0 = inlined_call_operand.vmem [shape: bf16[128,1152], index: 0, kind: input, shape index: {}]   ;;  %s1548_s1 = inlined_call_operand.vmem [shape: bf16[1152,128], index: 1, kind: input, shape index: {}]   ;;  %s1549_s2 = inlined_call_operand.vmem [shape: f32[1,128], index: 2, kind: input, shape index: {}]   ;;  %s1550_s3 = inlined_call_operand.vmem [shape: f32[1,128], index: 3, kind: input, shape index: {}]   ;;  %s1551_s4 = inlined_call_operand.vmem [shape: bf16[128,128], index: 4, kind: output, shape index: {}]  }
   0x1   :  { %s1387_s17 = smov 0   ;;  %s1389_s18 = smov 0  }
   0x2   :  { %s1391_s19 = smov 0   ;;  %s1393_s20 = smov 0  }
   0x3   :  { %s1395_s21 = smov 0  }
   0x4 LB: > { %s26_s22 = sadd.s32 1, %s1347_s19  ;;  %s33_s23 = sadd.s32 1, %s1351_s20  ;;  %s1355_s21 = sphi %s1395_s21, %s14_s21   ;;  %s1351_s20 = sphi %s1393_s20, %s1557_s20   ;;  %s1347_s19 = sphi %s1391_s19, %s1556_s19   ;;  %s1343_s18 = sphi %s1389_s18, %s1555_s18   ;;  %s1339_s17 = sphi %s1387_s17, %s1554_s17   ;;  %s1335_s16 = sphi %s1385_s16, %s1553_s16   ;;  %s1331_s15 = sphi %s1383_s15, %s1552_s15  }
   0x5   : > { %p27_p0 = scmp.ge.s32.totalorder %s26_s22, 3  ;;  %p49_p1 = scmp.ne.s32.totalorder %s1335_s16, %s1331_s15 }
   0x6   : > { %p50_p2 = scmp.eq.s32.totalorder %s1355_s21, 0  ;;  %s42_s27 = sadd.s32 1, %s1335_s16 }
   0x7   : > { %s1559_s22 = smov (%p27_p0, %s26_s22), 0  ;;  %s1561_s23 = smov (!%p27_p0, %s33_s23), %s1351_s20 }
   0x8   : > { %p51_p3 = por %p50_p2, %p49_p1  ;;  %p35_p4 = scmp.ge.s32.totalorder %s1561_s23, 2 }
   0x9   : > { %s38_s24 = ssub.s32 %s1347_s19, %s1559_s22  ;;  %p1020_p6 = scmp.ge.s32.totalorder %s1355_s21, 6 }
   0xa   : > { %s1563_s23 = smov (%p35_p4, %s1561_s23), 0 }
   0xb   : > { %s37_s25 = ssub.s32 %s1351_s20, %s1563_s23  ;;  %195 = sbr.rel (%p1020_p6) target bundleno = 36 (0x24), region = 24 }
   0xc   : > { %s39_s26 = sor.u32 %s38_s24, %s37_s25 }
   0xd   : > { %p40_p5 = scmp.eq.s32.totalorder %s39_s26, 0 }
   0xf   : > { %s1434_s28 = scalar_select %p40_p5, %s1335_s16, %s42_s27  }
  0x12   : > { %198 = sbr.rel (!%p51_p3) target bundleno = 36 (0x24), region = 28  ;;  %s200_s29 = sand.u32 (%p51_p3), 1, %s1335_s16  }
  0x13   : > { %s204_s30 = smul.u32 (%p51_p3), 3, %s1347_s19 }
  0x14   : > { %s1201_s5 = smul.u32 (%p51_p3), 96, %s200_s29 }
  0x15   : > { %s1202_s6 = smul.u32 (%p51_p3), 72, %s1351_s20 }
  0x16   : > { %s202_s12 = scalar_lea.vmem (%p51_p3), [#allocation3], %s1201_s5 }
  0x17   : > { %s206_s7 = sadd.s32 (%p51_p3), %s1202_s6, %s204_s30 }
  0x18   : > { %s1023_s8 = sshll.u32 (%p51_p3), %s206_s7, 2 }
  0x19   : > { %s1443_s11 = scalar_lea.vmem %s1547_s0, %s1023_s8 }
  0x1a   : > { %v223_v0 = vld [vmem:[%s1443_s11] sm:$0xff]  ;;  %v227_v2 = vld [vmem:[%s1443_s11 + $0x48] sm:$0xff]  ;;  %v231_v4 = vld [vmem:[%s1443_s11 + $0x90] sm:$0xff] }
  0x1b   : > { %v225_v1 = vld [vmem:[%s1443_s11 + $0x24] sm:$0xff]  ;;  %224 = vst [vmem:[%s202_s12] sm:$0xff] %v223_v0  ;;  %228 = vst [vmem:[%s202_s12 + $0x18] sm:$0xff] %v227_v2  ;;  %v229_v3 = vld [vmem:[%s1443_s11 + $0x6c] sm:$0xff] }
  0x1c   : > { %226 = vst [vmem:[%s202_s12 + $0xc] sm:$0xff] %v225_v1  ;;  %v233_v5 = vld [vmem:[%s1443_s11 + $0xb4] sm:$0xff]  ;;  %230 = vst [vmem:[%s202_s12 + $0x24] sm:$0xff] %v229_v3  ;;  %v237_v7 = vld [vmem:[%s1443_s11 + $0xfc] sm:$0xff] }
  0x1d   : > { %232 = vst [vmem:[%s202_s12 + $0x30] sm:$0xff] %v231_v4  ;;  %234 = vst [vmem:[%s202_s12 + $0x3c] sm:$0xff] %v233_v5  ;;  %v235_v6 = vld [vmem:[%s1443_s11 + $0xd8] sm:$0xff]  ;;  %v1024_v8 = vld [vmem:[%s1443_s11 + $0x8] sm:$0xf] }
  0x1e   : > { %236 = vst [vmem:[%s202_s12 + $0x48] sm:$0xff] %v235_v6  ;;  %238 = vst [vmem:[%s202_s12 + $0x54] sm:$0xff] %v237_v7  ;;  %v1026_v9 = vld [vmem:[%s1443_s11 + $0x2c] sm:$0xf]  ;;  %v1028_v10 = vld [vmem:[%s1443_s11 + $0x50] sm:$0xf] }
  0x1f   : > { %1025 = vst [vmem:[%s202_s12 + $0x8] sm:$0xf] %v1024_v8  ;;  %v1030_v11 = vld [vmem:[%s1443_s11 + $0x74] sm:$0xf]  ;;  %1027 = vst [vmem:[%s202_s12 + $0x14] sm:$0xf] %v1026_v9 }
  0x20   : > { %1029 = vst [vmem:[%s202_s12 + $0x20] sm:$0xf] %v1028_v10  ;;  %1031 = vst [vmem:[%s202_s12 + $0x2c] sm:$0xf] %v1030_v11  ;;  %v1032_v12 = vld [vmem:[%s1443_s11 + $0x98] sm:$0xf] }
  0x21   : > { %v1034_v13 = vld [vmem:[%s1443_s11 + $0xbc] sm:$0xf]  ;;  %v1036_v14 = vld [vmem:[%s1443_s11 + $0xe0] sm:$0xf]  ;;  %1033 = vst [vmem:[%s202_s12 + $0x38] sm:$0xf] %v1032_v12 }
  0x22   : > { %1035 = vst [vmem:[%s202_s12 + $0x44] sm:$0xf] %v1034_v13  ;;  %1037 = vst [vmem:[%s202_s12 + $0x50] sm:$0xf] %v1036_v14  ;;  %v1038_v15 = vld [vmem:[%s1443_s11 + $0x104] sm:$0xf] }
  0x23   : > { %1039 = vst [vmem:[%s202_s12 + $0x5c] sm:$0xf] %v1038_v15 }
  0x24 PF: > { %p1040_p7 = scmp.ge.s32.totalorder %s1355_s21, 1  ;;  %p278_p8 = scmp.lt.s32.totalorder %s1355_s21, 7 }
  0x26   : > { %p279_p9 = pnand %p1040_p7, %p278_p8 }
  0x27   : > { %s285_s13 = sand.u32 (!%p279_p9), 1, %s1331_s15   ;;  %s329_s14 = smul.u32 (!%p279_p9), 48, %s1339_s17 }
  0x28   : > { %282 = sbr.rel (%p279_p9) target bundleno = 352 (0x160), region = 58  ;;  %s1042_s25 = sshll.u32 (!%p279_p9), %s1343_s18, 3 }
  0x29   : > { %s1203_s24 = smul.u32 (!%p279_p9), 96, %s285_s13  ;;  %p330_p10 = scmp.lt.s32.totalorder (!%p279_p9), %s329_s14, 143 }
  0x2a   : > { %p345_p11 = scmp.lt.s32.totalorder (!%p279_p9), %s1042_s25, 15  ;;  %p1044_p12 = scmp.ne.s32.totalorder (!%p279_p9), %s1339_s17, 0 }
  0x2b   : > { %s1476_s15 = scalar_lea.vmem (!%p279_p9), [#allocation3], %s1203_s24 }
  0x2f   : > { %s1565_s14 = smov (!%p330_p10, %s329_s14), 143  ;;  %s1567_s25 = smov (!%p345_p11, %s1042_s25), 15 }
  0x30   : > { %s1041_s26 = sshll.u32 %s1565_s14, 2  ;;  %s1043_s5 = sshll.u32 %s1567_s25, 2  ;;  %v1357_v16 = vmov (!%p1044_p12), 0.0  }
  0x31   : > { %s1469_s30 = scalar_lea.vmem %s1548_s1, %s1041_s26  ;;  %s1474_s8 = scalar_lea.vmem %s1551_s4, %s1043_s5  ;;  %358 = vst [vmem:[#allocation2] sm:$0xff] (!%p1044_p12), %v1357_v16  ;;  %359 = vst [vmem:[#allocation2 + $0x8] sm:$0xff] (!%p1044_p12), %v1357_v16 }
  0x32   : > { %357 = sbr.rel (%p1044_p12) target bundleno = 57 (0x39), region = 66  ;;  %360 = vst [vmem:[#allocation2 + $0x10] sm:$0xff] (!%p1044_p12), %v1357_v16  ;;  %361 = vst [vmem:[#allocation2 + $0x18] sm:$0xff] (!%p1044_p12), %v1357_v16 }
  0x33   : > { %362 = vst [vmem:[#allocation2 + $0x20] sm:$0xff] (!%p1044_p12), %v1357_v16  ;;  %363 = vst [vmem:[#allocation2 + $0x28] sm:$0xff] (!%p1044_p12), %v1357_v16 }
  0x34   : > { %364 = vst [vmem:[#allocation2 + $0x30] sm:$0xff] (!%p1044_p12), %v1357_v16  ;;  %365 = vst [vmem:[#allocation2 + $0x38] sm:$0xff] (!%p1044_p12), %v1357_v16 }
  0x39 PF: > { %v1261_v17 = vld [vmem:[%s1469_s30 + $0x40] sm:$0xff]   ;;  %v1264_v20 = vld [vmem:[%s1469_s30 + $0x48] sm:$0xff]   ;;  %v1267_v23 = vld [vmem:[%s1469_s30 + $0x50] sm:$0xff]   ;;  %p1081_p13 = scmp.ne.s32.totalorder %s1339_s17, 2 }
  0x3a   : > { %v1262_v18 = vld [vmem:[%s1469_s30] sm:$0xff]   ;;  %1125 = vmatprep.subr.bf16.mxu0 %v1261_v17  ;;  %v1265_v21 = vld [vmem:[%s1469_s30 + $0x8] sm:$0xff]   ;;  %v1268_v24 = vld [vmem:[%s1469_s30 + $0x10] sm:$0xff]  }
  0x3b   : > { %v1263_v19 = vld [vmem:[%s1469_s30 + $0x80] sm:$0xff]   ;;  %1126 = vmatpush3.bf16.msra.mxu0 %v1262_v18  ;;  %v1266_v22 = vld [vmem:[%s1469_s30 + $0x88] sm:$0xff]   ;;  %v1269_v25 = vld [vmem:[%s1469_s30 + $0x90] sm:$0xff]  }
  0x3c   : > { %1177 = vmatprep.subr.bf16.mxu1 %v1263_v19  ;;  %1127 = vmatprep.subr.bf16.mxu0 %v1264_v20  ;;  %v1270_v26 = vld [vmem:[%s1469_s30 + $0x58] sm:$0xff]   ;;  %v1273_v29 = vld [vmem:[%s1469_s30 + $0x60] sm:$0xff]   ;;  %v1276_v32 = vld [vmem:[%s1469_s30 + $0x68] sm:$0xff]  }
  0x3d   : > { %1178 = vmatpush3.bf16.msra.mxu1 %v1263_v19  ;;  %v1271_v27 = vld [vmem:[%s1469_s30 + $0x18] sm:$0xff]   ;;  %v1275_v30 = vld [vmem:[%s1469_s30 + $0xa0] sm:$0xff]   ;;  %v1278_v33 = vld [vmem:[%s1469_s30 + $0xa8] sm:$0xff]  }
  0x3e   : > { %1179 = vmatprep.subr.bf16.mxu1 %v1266_v22  ;;  %v1272_v28 = vld [vmem:[%s1469_s30 + $0x98] sm:$0xff]   ;;  %v1274_v31 = vld [vmem:[%s1469_s30 + $0x20] sm:$0xff]   ;;  %v1277_v34 = vld [vmem:[%s1469_s30 + $0x28] sm:$0xff]  }
  0x3f   : > { %1128 = vmatpush3.bf16.msra.mxu0 %v1265_v21  ;;  %v1279_v35 = vld [vmem:[%s1469_s30 + $0x70] sm:$0xff]   ;;  %v1282_v38 = vld [vmem:[%s1469_s30 + $0x78] sm:$0xff]   ;;  %v1285_v43 = vld [vmem:[%s1476_s15] ss:$12 sps:$4 sm:$0xff]  }
  0x40   : > { %1129 = vmatprep.subr.bf16.mxu0 %v1267_v23  ;;  %v1280_v36 = vld [vmem:[%s1469_s30 + $0x30] sm:$0xff]   ;;  %v1284_v39 = vld [vmem:[%s1469_s30 + $0xb8] sm:$0xff]   ;;  %v1289_v45 = vld [vmem:[%s1476_s15 + $0x20] ss:$12 sps:$4 sm:$0xff]  }
  0x41   : > { %1180 = vmatpush3.bf16.msra.mxu1 %v1266_v22  ;;  %v1281_v37 = vld [vmem:[%s1469_s30 + $0xb0] sm:$0xff]   ;;  %v1283_v42 = vld [vmem:[%s1469_s30 + $0x38] sm:$0xff]   ;;  %v366_v59 = vld [vmem:[#allocation2] sm:$0xff] }
  0x42   : > { %1181 = vmatprep.subr.bf16.mxu1 %v1269_v25  ;;  %v1287_v40 = vld [vmem:[%s1476_s15 + $0x4] ss:$12 sps:$4 sm:$0xff]   ;;  %v1288_v41 = vld [vmem:[%s1476_s15 + $0x8] ss:$12 sps:$4 sm:$0xff]   ;;  %v1298_v51 = vld [vmem:[%s1476_s15 + $0x4c] ss:$12 sps:$4 sm:$0xff]  }
  0x43   : > { %1130 = vmatpush3.bf16.msra.mxu0 %v1268_v24  ;;  %678 = vmatprep.mubr.bf16.mxu0 %v1287_v40  ;;  %v1290_v44 = vld [vmem:[%s1476_s15 + $0x1c] ss:$12 sps:$4 sm:$0xff]   ;;  %v1296_v46 = vld [vmem:[%s1476_s15 + $0x38] ss:$12 sps:$4 sm:$0xff]   ;;  %v1293_v48 = vld [vmem:[%s1476_s15 + $0x34] ss:$12 sps:$4 sm:$0xff]  }
  0x44   : > { %1131 = vmatprep.subr.bf16.mxu0 %v1270_v26  ;;  %1193 = vmatprep.mubr.bf16.mxu1 %v1288_v41  ;;  %v1292_v47 = vld [vmem:[%s1476_s15 + $0x18] ss:$12 sps:$4 sm:$0xff]   ;;  %v1297_v49 = vld [vmem:[%s1476_s15 + $0x50] ss:$12 sps:$4 sm:$0xff]   ;;  %v1300_v52 = vld [vmem:[%s1476_s15 + $0x48] ss:$12 sps:$4 sm:$0xff]  }
  0x45   : > { %1182 = vmatpush3.bf16.msra.mxu1 %v1269_v25  ;;  %v1295_v50 = vld [vmem:[%s1476_s15 + $0x30] ss:$12 sps:$4 sm:$0xff]   ;;  %v367_v0 = vld [vmem:[#allocation2 + $0x8] sm:$0xff]  ;;  %v370_v26 = vld [vmem:[#allocation2 + $0x20] sm:$0xff] }
  0x46   : > { %1183 = vmatprep.subr.bf16.mxu1 %v1272_v28  ;;  %v368_v10 = vld [vmem:[#allocation2 + $0x10] sm:$0xff]  ;;  %v369_v16 = vld [vmem:[#allocation2 + $0x18] sm:$0xff] }
  0x47   : > { %1132 = vmatpush3.bf16.msra.mxu0 %v1271_v27  ;;  %v373_v41 = vld [vmem:[#allocation2 + $0x38] sm:$0xff] }
  0x48   : > { %1133 = vmatprep.subr.bf16.mxu0 %v1273_v29  ;;  %v371_v29 = vld [vmem:[#allocation2 + $0x28] sm:$0xff] }
  0x49   : > { %1184 = vmatpush3.bf16.msra.mxu1 %v1272_v28 }
  0x4a   : > { %1185 = vmatprep.subr.bf16.mxu1 %v1275_v30 }
  0x4b   : > { %1134 = vmatpush3.bf16.msra.mxu0 %v1274_v31 }
  0x4c   : > { %1135 = vmatprep.subr.bf16.mxu0 %v1276_v32 }
  0x4d   : > { %1186 = vmatpush3.bf16.msra.mxu1 %v1275_v30 }
  0x4e   : > { %1187 = vmatprep.subr.bf16.mxu1 %v1278_v33 }
  0x4f   : > { %1136 = vmatpush3.bf16.msra.mxu0 %v1277_v34 }
  0x50   : > { %1137 = vmatprep.subr.bf16.mxu0 %v1279_v35 }
  0x51   : > { %1188 = vmatpush3.bf16.msra.mxu1 %v1278_v33 }
  0x52   : > { %1189 = vmatprep.subr.bf16.mxu1 %v1281_v37 }
  0x53   : > { %1138 = vmatpush3.bf16.msra.mxu0 %v1280_v36 }
  0x54   : > { %1139 = vmatprep.subr.bf16.mxu0 %v1282_v38 }
  0x55   : > { %1190 = vmatpush3.bf16.msra.mxu1 %v1281_v37  ;;  %v372_v37 = vld [vmem:[#allocation2 + $0x30] sm:$0xff] }
  0x56   : > { %1191 = vmatprep.subr.bf16.mxu1 %v1284_v39 }
  0x57   : > { %1140 = vmatpush3.bf16.msra.mxu0 %v1283_v42 }
  0x59   : > { %1192 = vmatpush3.bf16.msra.mxu1 %v1284_v39 }
  0x5a   : > { %679 = vmatmul.mubr.bf16.vlgmr.msra.gmra.mrb[0].mxu0 %v1285_v43 }
  0x5b   : > { %686 = vmatprep.mubr.bf16.mxu0 %v1290_v44 }
  0x5c   : > { %1194 = vmatmul.mubr.bf16.vlgmr.msra.gmra.mrb[0].mxu1 %v1289_v45 }
  0x5d   : > { %1197 = vmatprep.mubr.bf16.mxu1 %v1296_v46 }
  0x62   : > { %687 = vmatmul.mubr.bf16.gmra.mrb[4].mxu0 %v1292_v47  ;;  %v1082_v47 = vld [vmem:[%s1549_s2] ss:$0 sm:$0xff] (!%p1081_p13) }
  0x63   : > { %694 = vmatprep.mubr.bf16.mxu0 %v1293_v48 }
  0x64   : > { %1198 = vmatmul.mubr.bf16.gmra.mrb[4].mxu1 %v1297_v49 }
  0x6a   : > { %695 = vmatmul.mubr.bf16.gmra.mrb[8].mxu0 %v1295_v50  ;;  %v1083_v50 = vld [vmem:[%s1550_s3] ss:$0 sm:$0xff] (!%p1081_p13) }
  0x6b   : > { %702 = vmatprep.mubr.bf16.mxu0 %v1298_v51 }
  0x72   : > { %703 = vmatmul.mubr.bf16.gmra.mrb[12].mxu0 %v1300_v52 }
 0x12d   : > { %v1141_v53 = vpop.f32.mrb[0].mxu0 }
 0x12e   : > { %v1142_v54 = vpop.f32.mrb[1].mxu0 }
 0x12f   : > { %v1143_v55 = vadd.f32 %v1142_v54, %v1141_v53  ;;  %v1144_v56 = vpop.f32.mrb[2].mxu0  ;;  %v1195_v57 = vpop.f32.mrb[0].mxu1 }
 0x130   : > { %v1145_v58 = vpop.f32.mrb[3].mxu0  ;;  %v745_v60 = vpop.f32.mrb[1].mxu1 }
 0x131   : > { %v1146_v61 = vadd.f32 %v1145_v58, %v1144_v56  ;;  %v746_v62 = vadd.f32 %v1143_v55, %v745_v60  ;;  %v1196_v63 = vpop.f32.mrb[2].mxu1 }
 0x132   : > { %v748_v1 = vpop.f32.mrb[3].mxu1 }
 0x133   : > { %v776_v2 = vadd.f32 %v746_v62, %v366_v59  ;;  %v749_v3 = vadd.f32 %v1146_v61, %v748_v1 }
 0x135   : > { %784 = vst [vmem:[#allocation2] sm:$0xff] %v776_v2  ;;  %v777_v4 = vadd.f32 %v749_v3, %v367_v0  ;;  %v1147_v5 = vpop.f32.mrb[4].mxu0 }
 0x136   : > { %v1148_v6 = vpop.f32.mrb[5].mxu0 }
 0x137   : > { %785 = vst [vmem:[#allocation2 + $0x8] sm:$0xff] %v777_v4  ;;  %v1149_v7 = vadd.f32 %v1148_v6, %v1147_v5  ;;  %v1150_v8 = vpop.f32.mrb[6].mxu0  ;;  %v1199_v9 = vpop.f32.mrb[4].mxu1 }
 0x138   : > { %v1151_v11 = vpop.f32.mrb[7].mxu0  ;;  %v761_v12 = vpop.f32.mrb[5].mxu1 }
 0x139   : > { %v754_v13 = vadd.f32 %v1195_v57, %v1149_v7  ;;  %v1152_v14 = vadd.f32 %v1151_v11, %v1150_v8  ;;  %v1200_v15 = vpop.f32.mrb[6].mxu1 }
 0x13a   : > { %v764_v17 = vpop.f32.mrb[7].mxu1 }
 0x13b   : > { %v778_v18 = vadd.f32 %v754_v13, %v368_v10  ;;  %v757_v19 = vadd.f32 %v1196_v63, %v1152_v14 }
 0x13c   : > { %v796_v45 = vld [vmem:[#allocation2] sm:$0xff] (!%p1081_p13) }
 0x13d   : > { %786 = vst [vmem:[#allocation2 + $0x10] sm:$0xff] %v778_v18  ;;  %v779_v20 = vadd.f32 %v757_v19, %v369_v16  ;;  %v1153_v21 = vpop.f32.mrb[8].mxu0  ;;  %v811_v48 = vmul.f32 (!%p1081_p13), %v1082_v47, %v796_v45 }
 0x13e   : > { %v1154_v22 = vpop.f32.mrb[9].mxu0  ;;  %v797_v46 = vld [vmem:[#allocation2 + $0x8] sm:$0xff] (!%p1081_p13) }
 0x13f   : > { %787 = vst [vmem:[#allocation2 + $0x18] sm:$0xff] %v779_v20  ;;  %v1155_v23 = vadd.f32 %v1154_v22, %v1153_v21  ;;  %v1156_v24 = vpop.f32.mrb[10].mxu0  ;;  %v812_v49 = vmul.f32 (!%p1081_p13), %v1082_v47, %v797_v46  ;;  %v826_v58 = vadd.f32 (!%p1081_p13), %v1083_v50, %v811_v48 }
 0x140   : > { %v1157_v25 = vpop.f32.mrb[11].mxu0 }
 0x141   : > { %v1158_v27 = vadd.f32 %v1157_v25, %v1156_v24  ;;  %v762_v28 = vadd.f32 %v1155_v23, %v761_v12  ;;  %v827_v59 = vadd.f32 (!%p1081_p13), %v1083_v50, %v812_v49  ;;  %v834_v3 = vmax.f32 (!%p1081_p13), %v826_v58, 0.0 }
 0x143   : > { %v780_v30 = vadd.f32 %v762_v28, %v370_v26  ;;  %v765_v31 = vadd.f32 %v1158_v27, %v764_v17  ;;  %v835_v4 = vmax.f32 (!%p1081_p13), %v827_v59, 0.0 }
 0x144   : > { %v798_v51 = vld [vmem:[#allocation2 + $0x10] sm:$0xff] (!%p1081_p13) }
 0x145   : > { %788 = vst [vmem:[#allocation2 + $0x20] sm:$0xff] %v780_v30  ;;  %v781_v32 = vadd.f32 %v765_v31, %v371_v29  ;;  %v1159_v33 = vpop.f32.mrb[12].mxu0  ;;  %v813_v53 = vmul.f32 (!%p1081_p13), %v1082_v47, %v798_v51  ;;  %v1105_v11 = vpack.c.bf16 (!%p1081_p13), %v835_v4, %v834_v3 }
 0x146   : > { %v1160_v34 = vpop.f32.mrb[13].mxu0  ;;  %v799_v52 = vld [vmem:[#allocation2 + $0x18] sm:$0xff] (!%p1081_p13) }
 0x147   : > { %789 = vst [vmem:[#allocation2 + $0x28] sm:$0xff] %v781_v32  ;;  %v1161_v35 = vadd.f32 %v1160_v34, %v1159_v33  ;;  %v1162_v36 = vpop.f32.mrb[14].mxu0  ;;  %v814_v54 = vmul.f32 (!%p1081_p13), %v1082_v47, %v799_v52  ;;  %v828_v63 = vadd.f32 (!%p1081_p13), %v1083_v50, %v813_v53  ;;  %1106 = vst [vmem:[%s1474_s8] sm:$0xff] (!%p1081_p13), %v1105_v11  }
 0x148   : > { %v1163_v38 = vpop.f32.mrb[15].mxu0 }
 0x149   : > { %v770_v39 = vadd.f32 %v1199_v9, %v1161_v35  ;;  %v1164_v40 = vadd.f32 %v1163_v38, %v1162_v36  ;;  %795 = sbr.rel (%p1081_p13) target bundleno = 352 (0x160), region = 70  ;;  %v829_v0 = vadd.f32 (!%p1081_p13), %v1083_v50, %v814_v54  ;;  %v836_v7 = vmax.f32 (!%p1081_p13), %v828_v63, 0.0 }
 0x14b   : > { %v782_v42 = vadd.f32 %v770_v39, %v372_v37  ;;  %v773_v43 = vadd.f32 %v1200_v15, %v1164_v40  ;;  %v837_v8 = vmax.f32 (!%p1081_p13), %v829_v0, 0.0 }
 0x14c   : > { %v800_v55 = vld [vmem:[#allocation2 + $0x20] sm:$0xff] (!%p1081_p13) }
 0x14d   : > { %790 = vst [vmem:[#allocation2 + $0x30] sm:$0xff] %v782_v42  ;;  %v783_v44 = vadd.f32 %v773_v43, %v373_v41  ;;  %v815_v60 = vmul.f32 (!%p1081_p13), %v1082_v47, %v800_v55  ;;  %v1110_v14 = vpack.c.bf16 (!%p1081_p13), %v837_v8, %v836_v7 }
 0x14e   : > { %v801_v56 = vld [vmem:[#allocation2 + $0x28] sm:$0xff] (!%p1081_p13) }
 0x14f   : > { %791 = vst [vmem:[#allocation2 + $0x38] sm:$0xff] %v783_v44  ;;  %v816_v61 = vmul.f32 (!%p1081_p13), %v1082_v47, %v801_v56  ;;  %v830_v5 = vadd.f32 (!%p1081_p13), %v1083_v50, %v815_v60  ;;  %1122 = vst [vmem:[%s1474_s8 + $0x8] sm:$0xff] (!%p1081_p13), %v1110_v14  }
 0x151   : > { %v831_v6 = vadd.f32 %v1083_v50, %v816_v61  ;;  %v838_v12 = vmax.f32 %v830_v5, 0.0 }
 0x153   : > { %v839_v13 = vmax.f32 %v831_v6, 0.0 }
 0x154   : > { %v802_v57 = vld [vmem:[#allocation2 + $0x30] sm:$0xff] }
 0x155   : > { %v817_v1 = vmul.f32 %v1082_v47, %v802_v57  ;;  %v1115_v17 = vpack.c.bf16 %v839_v13, %v838_v12 }
 0x156   : > { %v803_v62 = vld [vmem:[#allocation2 + $0x38] sm:$0xff] }
 0x157   : > { %v818_v2 = vmul.f32 %v1082_v47, %v803_v62  ;;  %v832_v9 = vadd.f32 %v1083_v50, %v817_v1  ;;  %1123 = vst [vmem:[%s1474_s8 + $0x10] sm:$0xff] %v1115_v17  }
 0x159   : > { %v833_v10 = vadd.f32 %v1083_v50, %v818_v2  ;;  %v840_v15 = vmax.f32 %v832_v9, 0.0 }
 0x15b   : > { %v841_v16 = vmax.f32 %v833_v10, 0.0 }
 0x15d   : > { %v1120_v18 = vpack.c.bf16 %v841_v16, %v840_v15 }
 0x15f   : > { %1124 = vst [vmem:[%s1474_s8 + $0x18] sm:$0xff] %v1120_v18  }
 0x160 PF: > { %s14_s21 = sadd.s32 1, %s1355_s21   ;;  %s1552_s15 = smov %s1335_s16 }
 0x161   : > { %p11_p0 = scmp.ge.s32.totalorder %s14_s21, 8   ;;  %s1553_s16 = smov %s1434_s28 }
 0x162   : > { %s1554_s17 = smov %s1347_s19  ;;  %s1555_s18 = smov %s1351_s20 }
 0x163   : > { %s1556_s19 = smov %s1559_s22  ;;  %s1557_s20 = smov %s1563_s23 }
 0x164   :  { %13 = sbr.rel (!%p11_p0) target bundleno = 4 (0x4), region = 120 }

// kernel: resnet34_features.46
= control target key start
LH: loop header
LB: loop body
LE: loop exit
PB: predicated region body
PF: predicated region fallthrough
CT: control target
= control target key end

     0   :  { %s1089_s15 = smov 0   ;;  %s1091_s16 = smov 0   ;;  %s1223_s0 = inlined_call_operand.vmem [shape: bf16[32,1152], index: 0, kind: input, shape index: {}]   ;;  %s1224_s1 = inlined_call_operand.vmem [shape: bf16[1152,128], index: 1, kind: input, shape index: {}]   ;;  %s1225_s2 = inlined_call_operand.vmem [shape: f32[1,128], index: 2, kind: input, shape index: {}]   ;;  %s1226_s3 = inlined_call_operand.vmem [shape: f32[1,128], index: 3, kind: input, shape index: {}]   ;;  %s1227_s4 = inlined_call_operand.vmem [shape: bf16[32,128], index: 4, kind: output, shape index: {}]  }
   0x1   :  { %s1093_s17 = smov 0   ;;  %s1095_s18 = smov 0  }
   0x2   :  { %s1097_s19 = smov 0   ;;  %s1099_s20 = smov 0  }
   0x3   :  { %s1101_s21 = smov 0  }
   0x4 LB: > { %s26_s22 = sadd.s32 1, %s1051_s19  ;;  %s33_s23 = sadd.s32 1, %s1055_s20  ;;  %s1059_s21 = sphi %s1101_s21, %s14_s21   ;;  %s1055_s20 = sphi %s1099_s20, %s1233_s20   ;;  %s1051_s19 = sphi %s1097_s19, %s1232_s19   ;;  %s1047_s18 = sphi %s1095_s18, %s1231_s18   ;;  %s1043_s17 = sphi %s1093_s17, %s1230_s17   ;;  %s1039_s16 = sphi %s1091_s16, %s1229_s16   ;;  %s1035_s15 = sphi %s1089_s15, %s1228_s15  }
   0x5   : > { %p27_p0 = scmp.ge.s32.totalorder %s26_s22, 3  ;;  %p49_p1 = scmp.ne.s32.totalorder %s1039_s16, %s1035_s15 }
   0x6   : > { %p50_p2 = scmp.eq.s32.totalorder %s1059_s21, 0  ;;  %s42_s27 = sadd.s32 1, %s1039_s16 }
   0x7   : > { %s1235_s22 = smov (%p27_p0, %s26_s22), 0  ;;  %s1237_s23 = smov (!%p27_p0, %s33_s23), %s1055_s20 }
   0x8   : > { %p51_p3 = por %p50_p2, %p49_p1  ;;  %p35_p4 = scmp.ge.s32.totalorder %s1237_s23, 2 }
   0x9   : > { %s38_s24 = ssub.s32 %s1051_s19, %s1235_s22  ;;  %p810_p6 = scmp.ge.s32.totalorder %s1059_s21, 6 }
   0xa   : > { %s1239_s23 = smov (%p35_p4, %s1237_s23), 0 }
   0xb   : > { %s37_s25 = ssub.s32 %s1055_s20, %s1239_s23  ;;  %195 = sbr.rel (%p810_p6) target bundleno = 29 (0x1d), region = 24 }
   0xc   : > { %s39_s26 = sor.u32 %s38_s24, %s37_s25 }
   0xd   : > { %p40_p5 = scmp.eq.s32.totalorder %s39_s26, 0 }
   0xf   : > { %s1140_s28 = scalar_select %p40_p5, %s1039_s16, %s42_s27  }
  0x12   : > { %198 = sbr.rel (!%p51_p3) target bundleno = 29 (0x1d), region = 28  ;;  %s200_s29 = sand.u32 (%p51_p3), 1, %s1039_s16  }
  0x13   : > { %s204_s30 = smul.u32 (%p51_p3), 3, %s1051_s19 }
  0x14   : > { %s915_s5 = smul.u32 (%p51_p3), 24, %s200_s29 }
  0x15   : > { %s916_s6 = smul.u32 (%p51_p3), 18, %s1055_s20 }
  0x16   : > { %s202_s12 = scalar_lea.vmem (%p51_p3), [#allocation3], %s915_s5 }
  0x17   : > { %s206_s7 = sadd.s32 (%p51_p3), %s916_s6, %s204_s30 }
  0x18   : > { %s813_s8 = sshll.u32 (%p51_p3), %s206_s7, 2 }
  0x19   : > { %s208_s11 = scalar_lea.vmem %s1223_s0, %s813_s8 }
  0x1a   : > { %v223_v0 = vld [vmem:[%s208_s11] sm:$0xff]  ;;  %v814_v2 = vld [vmem:[%s208_s11 + $0x8] sm:$0xf]  ;;  %v816_v3 = vld [vmem:[%s208_s11 + $0x2c] sm:$0xf] }
  0x1b   : > { %v225_v1 = vld [vmem:[%s208_s11 + $0x24] sm:$0xff]  ;;  %224 = vst [vmem:[%s202_s12] sm:$0xff] %v223_v0  ;;  %815 = vst [vmem:[%s202_s12 + $0x8] sm:$0xf] %v814_v2 }
  0x1c   : > { %226 = vst [vmem:[%s202_s12 + $0xc] sm:$0xff] %v225_v1  ;;  %817 = vst [vmem:[%s202_s12 + $0x14] sm:$0xf] %v816_v3 }
  0x1d PF: > { %p818_p7 = scmp.ge.s32.totalorder %s1059_s21, 1  ;;  %p254_p8 = scmp.lt.s32.totalorder %s1059_s21, 7 }
  0x1f   : > { %p255_p9 = pnand %p818_p7, %p254_p8 }
  0x20   : > { %s261_s13 = sand.u32 (!%p255_p9), 1, %s1035_s15   ;;  %s305_s14 = smul.u32 (!%p255_p9), 48, %s1043_s17 }
  0x21   : > { %258 = sbr.rel (%p255_p9) target bundleno = 321 (0x141), region = 58  ;;  %s820_s25 = sshll.u32 (!%p255_p9), %s1047_s18, 1 }
  0x22   : > { %s917_s24 = smul.u32 (!%p255_p9), 24, %s261_s13  ;;  %p306_p10 = scmp.lt.s32.totalorder (!%p255_p9), %s305_s14, 143 }
  0x23   : > { %p321_p11 = scmp.lt.s32.totalorder (!%p255_p9), %s820_s25, 3  ;;  %p822_p12 = scmp.ne.s32.totalorder (!%p255_p9), %s1043_s17, 0 }
  0x24   : > { %s1164_s15 = scalar_lea.vmem (!%p255_p9), [#allocation3], %s917_s24 }
  0x28   : > { %s1241_s14 = smov (!%p306_p10, %s305_s14), 143  ;;  %s1243_s25 = smov (!%p321_p11, %s820_s25), 3 }
  0x29   : > { %s819_s26 = sshll.u32 %s1241_s14, 2  ;;  %s821_s5 = sshll.u32 %s1243_s25, 2  ;;  %v1061_v4 = vmov (!%p822_p12), 0.0  }
  0x2a   : > { %s1157_s30 = scalar_lea.vmem %s1224_s1, %s819_s26  ;;  %s1162_s8 = scalar_lea.vmem %s1227_s4, %s821_s5  ;;  %334 = vst [vmem:[#allocation2] sm:$0xff] (!%p822_p12), %v1061_v4  ;;  %335 = vst [vmem:[#allocation2 + $0x8] sm:$0xff] (!%p822_p12), %v1061_v4 }
  0x2b   : > { %333 = sbr.rel (%p822_p12) target bundleno = 50 (0x32), region = 66 }
  0x32 PF: > { %v977_v5 = vld [vmem:[%s1157_s30 + $0x40] sm:$0xff]   ;;  %v1062_v6 = vmov 0.0   ;;  %vm1063_vm0 = vmmov 0   ;;  %v980_v9 = vld [vmem:[%s1157_s30 + $0x48] sm:$0xff]   ;;  %v983_v12 = vld [vmem:[%s1157_s30 + $0x50] sm:$0xff]   ;;  %p850_p13 = scmp.ne.s32.totalorder %s1043_s17, 2 }
  0x33   : > { %895 = vmatprep.subr.bf16.mxu1 %v1062_v6  ;;  %v978_v7 = vld [vmem:[%s1157_s30] sm:$0xff]   ;;  %864 = vmatprep.subr.bf16.mxu0 %v977_v5  ;;  %v981_v10 = vld [vmem:[%s1157_s30 + $0x8] sm:$0xff]   ;;  %v984_v13 = vld [vmem:[%s1157_s30 + $0x10] sm:$0xff]  }
  0x34   : > { %v979_v8 = vld [vmem:[%s1157_s30 + $0x80] sm:$0xff]   ;;  %911 = vmatprep.mubr.msk.bf16.mxu1 %vm1063_vm0, %v1062_v6  ;;  %865 = vmatpush3.bf16.msra.mxu0 %v978_v7  ;;  %v982_v11 = vld [vmem:[%s1157_s30 + $0x88] sm:$0xff]   ;;  %v985_v14 = vld [vmem:[%s1157_s30 + $0x90] sm:$0xff]  }
  0x35   : > { %896 = vmatpush3.bf16.msra.mxu1 %v979_v8  ;;  %866 = vmatprep.subr.bf16.mxu0 %v980_v9  ;;  %v986_v15 = vld [vmem:[%s1157_s30 + $0x58] sm:$0xff]   ;;  %v989_v18 = vld [vmem:[%s1157_s30 + $0x60] sm:$0xff]   ;;  %v992_v21 = vld [vmem:[%s1157_s30 + $0x68] sm:$0xff]  }
  0x36   : > { %897 = vmatprep.subr.bf16.mxu1 %v1062_v6  ;;  %v987_v16 = vld [vmem:[%s1157_s30 + $0x18] sm:$0xff]   ;;  %v990_v19 = vld [vmem:[%s1157_s30 + $0x20] sm:$0xff]   ;;  %v993_v22 = vld [vmem:[%s1157_s30 + $0x28] sm:$0xff]  }
  0x37   : > { %v988_v17 = vld [vmem:[%s1157_s30 + $0x98] sm:$0xff]   ;;  %v991_v20 = vld [vmem:[%s1157_s30 + $0xa0] sm:$0xff]   ;;  %v994_v23 = vld [vmem:[%s1157_s30 + $0xa8] sm:$0xff]  }
  0x38   : > { %867 = vmatpush3.bf16.msra.mxu0 %v981_v10  ;;  %v995_v24 = vld [vmem:[%s1157_s30 + $0x70] sm:$0xff]   ;;  %v998_v27 = vld [vmem:[%s1157_s30 + $0x78] sm:$0xff]   ;;  %v336_v39 = vld [vmem:[#allocation2] sm:$0xff] }
  0x39   : > { %898 = vmatpush3.bf16.msra.mxu1 %v982_v11  ;;  %868 = vmatprep.subr.bf16.mxu0 %v983_v12  ;;  %v996_v25 = vld [vmem:[%s1157_s30 + $0x30] sm:$0xff]   ;;  %v999_v29 = vld [vmem:[%s1157_s30 + $0x38] sm:$0xff]   ;;  %v337_v45 = vld [vmem:[#allocation2 + $0x8] sm:$0xff] }
  0x3a   : > { %899 = vmatprep.subr.bf16.mxu1 %v1062_v6  ;;  %v997_v26 = vld [vmem:[%s1157_s30 + $0xb0] sm:$0xff]   ;;  %v1000_v30 = vld [vmem:[%s1157_s30 + $0xb8] sm:$0xff]   ;;  %v851_v51 = vld [vmem:[%s1225_s2] ss:$0 sm:$0xff] (!%p850_p13) }
  0x3b   : > { %v1003_v28 = vld [vmem:[%s1164_s15 + $0x4] ss:$12 sps:$4 sm:$0xff]   ;;  %v1001_v31 = vld [vmem:[%s1164_s15] ss:$12 sps:$4 sm:$0xff]   ;;  %v1004_v32 = vld [vmem:[%s1164_s15 + $0x8] ss:$12 sps:$4 sm:$0xff]  }
  0x3c   : > { %869 = vmatpush3.bf16.msra.mxu0 %v984_v13  ;;  %582 = vmatprep.mubr.bf16.mxu0 %v1003_v28  ;;  %v852_v54 = vld [vmem:[%s1226_s3] ss:$0 sm:$0xff] (!%p850_p13) }
  0x3d   : > { %900 = vmatpush3.bf16.msra.mxu1 %v985_v14  ;;  %870 = vmatprep.subr.bf16.mxu0 %v986_v15 }
  0x3e   : > { %901 = vmatprep.subr.bf16.mxu1 %v1062_v6 }
  0x40   : > { %871 = vmatpush3.bf16.msra.mxu0 %v987_v16 }
  0x41   : > { %902 = vmatpush3.bf16.msra.mxu1 %v988_v17  ;;  %872 = vmatprep.subr.bf16.mxu0 %v989_v18 }
  0x42   : > { %903 = vmatprep.subr.bf16.mxu1 %v1062_v6 }
  0x44   : > { %873 = vmatpush3.bf16.msra.mxu0 %v990_v19 }
  0x45   : > { %904 = vmatpush3.bf16.msra.mxu1 %v991_v20  ;;  %874 = vmatprep.subr.bf16.mxu0 %v992_v21 }
  0x46   : > { %905 = vmatprep.subr.bf16.mxu1 %v1062_v6 }
  0x48   : > { %875 = vmatpush3.bf16.msra.mxu0 %v993_v22 }
  0x49   : > { %906 = vmatpush3.bf16.msra.mxu1 %v994_v23  ;;  %876 = vmatprep.subr.bf16.mxu0 %v995_v24 }
  0x4a   : > { %907 = vmatprep.subr.bf16.mxu1 %v1062_v6 }
  0x4c   : > { %877 = vmatpush3.bf16.msra.mxu0 %v996_v25 }
  0x4d   : > { %908 = vmatpush3.bf16.msra.mxu1 %v997_v26  ;;  %878 = vmatprep.subr.bf16.mxu0 %v998_v27 }
  0x4e   : > { %909 = vmatprep.subr.bf16.mxu1 %v1062_v6 }
  0x50   : > { %879 = vmatpush3.bf16.msra.mxu0 %v999_v29 }
  0x51   : > { %910 = vmatpush3.bf16.msra.mxu1 %v1000_v30 }
  0x53   : > { %583 = vmatmul.mubr.bf16.vlgmr.msra.gmra.mrb[0].mxu0 %v1001_v31 }
  0x54   : > { %912 = vmatmul.mubr.bf16.vlgmr.msra.gmra.mrb[0].mxu1 %v1004_v32 }
 0x126   : > { %v880_v33 = vpop.f32.mrb[0].mxu0 }
 0x127   : > { %v625_v34 = vpop.f32.mrb[0].mxu1  ;;  %v881_v35 = vpop.f32.mrb[1].mxu0 }
 0x128   : > { %v882_v36 = vadd.f32 %v881_v35, %v880_v33  ;;  %v913_v37 = vpop.f32.mrb[1].mxu1  ;;  %v883_v38 = vpop.f32.mrb[2].mxu0 }
 0x129   : > { %v628_v40 = vpop.f32.mrb[2].mxu1  ;;  %v884_v41 = vpop.f32.mrb[3].mxu0 }
 0x12a   : > { %v626_v42 = vadd.f32 %v882_v36, %v625_v34  ;;  %v885_v43 = vadd.f32 %v884_v41, %v883_v38  ;;  %v914_v44 = vpop.f32.mrb[3].mxu1  ;;  %639 = sbr.rel (%p850_p13) target bundleno = 321 (0x141), region = 70 }
 0x12c   : > { %v632_v46 = vadd.f32 %v626_v42, %v336_v39  ;;  %v629_v47 = vadd.f32 %v885_v43, %v628_v40 }
 0x12e   : > { %634 = vst [vmem:[#allocation2] sm:$0xff] %v632_v46  ;;  %v633_v48 = vadd.f32 %v629_v47, %v337_v45 }
 0x130   : > { %635 = vst [vmem:[#allocation2 + $0x8] sm:$0xff] %v633_v48 }
 0x135   : > { %v640_v49 = vld [vmem:[#allocation2] sm:$0xff] }
 0x136   : > { %v649_v52 = vmul.f32 %v851_v51, %v640_v49 }
 0x137   : > { %v641_v50 = vld [vmem:[#allocation2 + $0x8] sm:$0xff] }
 0x138   : > { %v650_v53 = vmul.f32 %v851_v51, %v641_v50  ;;  %v658_v55 = vadd.f32 %v852_v54, %v649_v52 }
 0x13a   : > { %v659_v56 = vadd.f32 %v852_v54, %v650_v53  ;;  %v660_v57 = vmax.f32 %v658_v55, 0.0 }
 0x13c   : > { %v661_v58 = vmax.f32 %v659_v56, 0.0 }
 0x13e   : > { %v862_v59 = vpack.c.bf16 %v661_v58, %v660_v57 }
 0x140   : > { %863 = vst [vmem:[%s1162_s8] sm:$0xff] %v862_v59  }
 0x141 PF: > { %s14_s21 = sadd.s32 1, %s1059_s21   ;;  %s1228_s15 = smov %s1039_s16 }
 0x142   : > { %p11_p0 = scmp.ge.s32.totalorder %s14_s21, 8   ;;  %s1229_s16 = smov %s1140_s28 }
 0x143   : > { %s1230_s17 = smov %s1051_s19  ;;  %s1231_s18 = smov %s1055_s20 }
 0x144   : > { %s1232_s19 = smov %s1235_s22  ;;  %s1233_s20 = smov %s1239_s23 }
 0x145   :  { %13 = sbr.rel (!%p11_p0) target bundleno = 4 (0x4), region = 120 }

// kernel: resnet34_features.47
= control target key start
LH: loop header
LB: loop body
LE: loop exit
PB: predicated region body
PF: predicated region fallthrough
CT: control target
= control target key end

     0   :  { %s731_s15 = smov 0   ;;  %s733_s16 = smov 0   ;;  %s801_s0 = inlined_call_operand.vmem [shape: bf16[32,128], index: 0, kind: input, shape index: {}]   ;;  %s802_s1 = inlined_call_operand.vmem [shape: bf16[128,128], index: 1, kind: input, shape index: {}]   ;;  %s803_s2 = inlined_call_operand.vmem [shape: f32[1,128], index: 2, kind: input, shape index: {}]   ;;  %s804_s3 = inlined_call_operand.vmem [shape: f32[1,128], index: 3, kind: input, shape index: {}]   ;;  %s805_s4 = inlined_call_operand.vmem [shape: bf16[32,128], index: 4, kind: output, shape index: {}]  }
   0x1   :  { %s735_s17 = smov 0  }
   0x2 LB: > { %s33_s18 = sadd.s32 1, %s698_s16  ;;  %p589_p0 = scmp.ge.s32.totalorder %s702_s17, 1  ;;  %s702_s17 = sphi %s735_s17, %s14_s17   ;;  %s698_s16 = sphi %s733_s16, %s807_s16   ;;  %s694_s15 = sphi %s731_s15, %s806_s15  }
   0x3   : > { %p35_p1 = scmp.ge.s32.totalorder %s33_s18, 2  ;;  %p221_p2 = scmp.lt.s32.totalorder %s702_s17, 3 }
   0x5   : > { %s809_s18 = smov (%p35_p1, %s33_s18), 0  ;;  %p222_p3 = pnand %p589_p0, %p221_p2 }
   0x6   : > { %v671_v0 = vld [vmem:[%s802_s1] sm:$0xff] (!%p222_p3)   ;;  %v704_v1 = vmov (!%p222_p3), 0.0   ;;  %v672_v2 = vld [vmem:[%s802_s1 + $0x8] sm:$0xff] (!%p222_p3)   ;;  %vm705_vm0 = vmmov (!%p222_p3), 0   ;;  %s590_s23 = sshll.u32 (!%p222_p3), %s694_s15, 1  ;;  %v673_v3 = vld [vmem:[%s802_s1 + $0x10] sm:$0xff] (!%p222_p3)  }
   0x7   : > { %225 = sbr.rel (%p222_p3) target bundleno = 260 (0x104), region = 36  ;;  %625 = vmatprep.subr.bf16.mxu0 (!%p222_p3), %v704_v1  ;;  %641 = vmatprep.mubr.msk.bf16.mxu0 (!%p222_p3), %vm705_vm0, %v704_v1  ;;  %p268_p4 = scmp.lt.s32.totalorder (!%p222_p3), %s590_s23, 3  ;;  %v674_v4 = vld [vmem:[%s802_s1 + $0x18] sm:$0xff] (!%p222_p3)   ;;  %v675_v5 = vld [vmem:[%s802_s1 + $0x20] sm:$0xff] (!%p222_p3)   ;;  %v676_v6 = vld [vmem:[%s802_s1 + $0x28] sm:$0xff] (!%p222_p3)  }
   0x8   : > { %626 = vmatpush3.bf16.msra.mxu0 (!%p222_p3), %v671_v0  ;;  %v677_v7 = vld [vmem:[%s802_s1 + $0x30] sm:$0xff] (!%p222_p3)   ;;  %v678_v8 = vld [vmem:[%s802_s1 + $0x38] sm:$0xff] (!%p222_p3)   ;;  %v603_v10 = vld [vmem:[%s803_s2] ss:$0 sm:$0xff] (!%p222_p3) }
   0x9   : > { %627 = vmatprep.subr.bf16.mxu0 (!%p222_p3), %v704_v1  ;;  %v604_v14 = vld [vmem:[%s804_s3] ss:$0 sm:$0xff] (!%p222_p3) }
   0xc   : > { %628 = vmatpush3.bf16.msra.mxu0 (!%p222_p3), %v672_v2 }
   0xd   : > { %629 = vmatprep.subr.bf16.mxu0 (!%p222_p3), %v704_v1 }
   0xe   : > { %s811_s23 = smov (!%p268_p4, %s590_s23), 3 }
   0xf   : > { %s591_s26 = sshll.u32 %s811_s23, 2 }
  0x10   : > { %s274_s29 = scalar_lea.vmem %s801_s0, %s591_s26  ;;  %630 = vmatpush3.bf16.msra.mxu0 %v673_v3  ;;  %s298_s24 = scalar_lea.vmem %s805_s4, %s591_s26 }
  0x11   : > { %631 = vmatprep.subr.bf16.mxu0 %v704_v1  ;;  %v679_v9 = vld [vmem:[%s274_s29] sm:$0xff]  }
  0x14   : > { %632 = vmatpush3.bf16.msra.mxu0 %v674_v4 }
  0x15   : > { %633 = vmatprep.subr.bf16.mxu0 %v704_v1 }
  0x18   : > { %634 = vmatpush3.bf16.msra.mxu0 %v675_v5 }
  0x19   : > { %635 = vmatprep.subr.bf16.mxu0 %v704_v1 }
  0x1c   : > { %636 = vmatpush3.bf16.msra.mxu0 %v676_v6 }
  0x1d   : > { %637 = vmatprep.subr.bf16.mxu0 %v704_v1 }
  0x20   : > { %638 = vmatpush3.bf16.msra.mxu0 %v677_v7 }
  0x21   : > { %639 = vmatprep.subr.bf16.mxu0 %v704_v1 }
  0x24   : > { %640 = vmatpush3.bf16.msra.mxu0 %v678_v8 }
  0x27   : > { %642 = vmatmul.mubr.bf16.vlgmr.msra.gmra.mrb[0].mxu0 %v679_v9 }
  0xfa   : > { %v415_v11 = vpop.f32.mrb[0].mxu0 }
  0xfb   : > { %v438_v12 = vmul.f32 %v603_v10, %v415_v11  ;;  %v643_v13 = vpop.f32.mrb[1].mxu0 }
  0xfc   : > { %v418_v15 = vpop.f32.mrb[2].mxu0 }
  0xfd   : > { %v439_v16 = vmul.f32 %v603_v10, %v418_v15  ;;  %v644_v17 = vpop.f32.mrb[3].mxu0  ;;  %v447_v18 = vadd.f32 %v604_v14, %v438_v12 }
  0xff   : > { %v448_v19 = vadd.f32 %v604_v14, %v439_v16 }
 0x101   : > { %v614_v20 = vpack.c.bf16 %v448_v19, %v447_v18 }
 0x103   : > { %615 = vst [vmem:[%s298_s24] sm:$0xff] %v614_v20  }
 0x104 PF: > { %s14_s17 = sadd.s32 1, %s702_s17   ;;  %s806_s15 = smov %s698_s16 }
 0x105   : > { %p11_p5 = scmp.ge.s32.totalorder %s14_s17, 4   ;;  %s807_s16 = smov %s809_s18 }
 0x107   :  { %13 = sbr.rel (!%p11_p5) target bundleno = 2 (0x2), region = 83 }

// kernel: resnet34_features.48
= control target key start
LH: loop header
LB: loop body
LE: loop exit
PB: predicated region body
PF: predicated region fallthrough
CT: control target
= control target key end

     0   :  { %s1181_s18 = smov 0   ;;  %s1183_s19 = smov 0   ;;  %s1321_s0 = inlined_call_operand.vmem [shape: bf16[32,1152], index: 0, kind: input, shape index: {}]   ;;  %s1322_s1 = inlined_call_operand.vmem [shape: bf16[1152,128], index: 1, kind: input, shape index: {}]   ;;  %s1323_s2 = inlined_call_operand.vmem [shape: f32[1,128], index: 2, kind: input, shape index: {}]   ;;  %s1324_s3 = inlined_call_operand.vmem [shape: f32[1,128], index: 3, kind: input, shape index: {}]   ;;  %s1325_s4 = inlined_call_operand.vmem [shape: bf16[32,128], index: 4, kind: input, shape index: {}]   ;;  %s1326_s5 = inlined_call_operand.vmem [shape: bf16[32,128], index: 5, kind: output, shape index: {}]  }
   0x1   :  { %s1185_s20 = smov 0   ;;  %s1187_s21 = smov 0  }
   0x2   :  { %s1189_s22 = smov 0   ;;  %s1191_s23 = smov 0  }
   0x3   :  { %s1193_s24 = smov 0  }
   0x4 LB: > { %s27_s25 = sadd.s32 1, %s1138_s22  ;;  %s34_s26 = sadd.s32 1, %s1142_s23  ;;  %s1146_s24 = sphi %s1193_s24, %s15_s24   ;;  %s1142_s23 = sphi %s1191_s23, %s1332_s23   ;;  %s1138_s22 = sphi %s1189_s22, %s1331_s22   ;;  %s1134_s21 = sphi %s1187_s21, %s1330_s21   ;;  %s1130_s20 = sphi %s1185_s20, %s1329_s20   ;;  %s1126_s19 = sphi %s1183_s19, %s1328_s19   ;;  %s1122_s18 = sphi %s1181_s18, %s1327_s18  }
   0x5   : > { %p28_p0 = scmp.ge.s32.totalorder %s27_s25, 3  ;;  %p50_p1 = scmp.ne.s32.totalorder %s1126_s19, %s1122_s18 }
   0x6   : > { %p51_p2 = scmp.eq.s32.totalorder %s1146_s24, 0  ;;  %s43_s30 = sadd.s32 1, %s1126_s19 }
   0x7   : > { %s1334_s25 = smov (%p28_p0, %s27_s25), 0  ;;  %s1336_s26 = smov (!%p28_p0, %s34_s26), %s1142_s23 }
   0x8   : > { %p52_p3 = por %p51_p2, %p50_p1  ;;  %p36_p4 = scmp.ge.s32.totalorder %s1336_s26, 2 }
   0x9   : > { %s39_s27 = ssub.s32 %s1138_s22, %s1334_s25  ;;  %p891_p6 = scmp.ge.s32.totalorder %s1146_s24, 6 }
   0xa   : > { %s1338_s26 = smov (%p36_p4, %s1336_s26), 0 }
   0xb   : > { %s38_s28 = ssub.s32 %s1142_s23, %s1338_s26  ;;  %224 = sbr.rel (%p891_p6) target bundleno = 29 (0x1d), region = 24 }
   0xc   : > { %s40_s29 = sor.u32 %s39_s27, %s38_s28 }
   0xd   : > { %p41_p5 = scmp.eq.s32.totalorder %s40_s29, 0 }
   0xf   : > { %s1232_s6 = scalar_select %p41_p5, %s1126_s19, %s43_s30  }
  0x12   : > { %227 = sbr.rel (!%p52_p3) target bundleno = 29 (0x1d), region = 28  ;;  %s229_s7 = sand.u32 (%p52_p3), 1, %s1126_s19  }
  0x13   : > { %s233_s8 = smul.u32 (%p52_p3), 3, %s1138_s22 }
  0x14   : > { %s1002_s9 = smul.u32 (%p52_p3), 24, %s229_s7 }
  0x15   : > { %s1003_s10 = smul.u32 (%p52_p3), 18, %s1142_s23 }
  0x16   : > { %s231_s16 = scalar_lea.vmem (%p52_p3), [#allocation3], %s1002_s9 }
  0x17   : > { %s235_s11 = sadd.s32 (%p52_p3), %s1003_s10, %s233_s8 }
  0x18   : > { %s894_s12 = sshll.u32 (%p52_p3), %s235_s11, 2 }
  0x19   : > { %s237_s15 = scalar_lea.vmem %s1321_s0, %s894_s12 }
  0x1a   : > { %v252_v0 = vld [vmem:[%s237_s15] sm:$0xff]  ;;  %v895_v2 = vld [vmem:[%s237_s15 + $0x8] sm:$0xf]  ;;  %v897_v3 = vld [vmem:[%s237_s15 + $0x2c] sm:$0xf] }
  0x1b   : > { %v254_v1 = vld [vmem:[%s237_s15 + $0x24] sm:$0xff]  ;;  %253 = vst [vmem:[%s231_s16] sm:$0xff] %v252_v0  ;;  %896 = vst [vmem:[%s231_s16 + $0x8] sm:$0xf] %v895_v2 }
  0x1c   : > { %255 = vst [vmem:[%s231_s16 + $0xc] sm:$0xff] %v254_v1  ;;  %898 = vst [vmem:[%s231_s16 + $0x14] sm:$0xf] %v897_v3 }
  0x1d PF: > { %p899_p7 = scmp.ge.s32.totalorder %s1146_s24, 1  ;;  %p295_p8 = scmp.lt.s32.totalorder %s1146_s24, 7 }
  0x1f   : > { %p296_p9 = pnand %p899_p7, %p295_p8 }
  0x20   : > { %s302_s17 = sand.u32 (!%p296_p9), 1, %s1122_s18   ;;  %s356_s27 = smul.u32 (!%p296_p9), 48, %s1130_s20 }
  0x21   : > { %299 = sbr.rel (%p296_p9) target bundleno = 323 (0x143), region = 62  ;;  %s901_s29 = sshll.u32 (!%p296_p9), %s1134_s21, 1 }
  0x22   : > { %s1004_s28 = smul.u32 (!%p296_p9), 24, %s302_s17  ;;  %p357_p10 = scmp.lt.s32.totalorder (!%p296_p9), %s356_s27, 143 }
  0x23   : > { %p372_p11 = scmp.lt.s32.totalorder (!%p296_p9), %s901_s29, 3  ;;  %p905_p12 = scmp.ne.s32.totalorder (!%p296_p9), %s1130_s20, 0 }
  0x24   : > { %s1261_s15 = scalar_lea.vmem (!%p296_p9), [#allocation3], %s1004_s28 }
  0x28   : > { %s1340_s27 = smov (!%p357_p10, %s356_s27), 143  ;;  %s1342_s29 = smov (!%p372_p11, %s901_s29), 3 }
  0x29   : > { %s900_s30 = sshll.u32 %s1340_s27, 2  ;;  %s902_s10 = sshll.u32 %s1342_s29, 2  ;;  %v1148_v4 = vmov (!%p905_p12), 0.0  }
  0x2a   : > { %s1249_s9 = scalar_lea.vmem %s1322_s1, %s900_s30  ;;  %s1254_s13 = scalar_lea.vmem %s1325_s4, %s902_s10  ;;  %394 = vst [vmem:[#allocation2] sm:$0xff] (!%p905_p12), %v1148_v4  ;;  %395 = vst [vmem:[#allocation2 + $0x8] sm:$0xff] (!%p905_p12), %v1148_v4 }
  0x2b   : > { %s1259_s21 = scalar_lea.vmem %s1326_s5, %s902_s10  ;;  %393 = sbr.rel (%p905_p12) target bundleno = 50 (0x32), region = 70 }
  0x32 PF: > { %v1064_v5 = vld [vmem:[%s1249_s9 + $0x40] sm:$0xff]   ;;  %v1149_v6 = vmov 0.0   ;;  %vm1150_vm0 = vmmov 0   ;;  %v1067_v9 = vld [vmem:[%s1249_s9 + $0x48] sm:$0xff]   ;;  %v1070_v12 = vld [vmem:[%s1249_s9 + $0x50] sm:$0xff]   ;;  %p933_p13 = scmp.ne.s32.totalorder %s1130_s20, 2 }
  0x33   : > { %982 = vmatprep.subr.bf16.mxu1 %v1149_v6  ;;  %v1065_v7 = vld [vmem:[%s1249_s9] sm:$0xff]   ;;  %951 = vmatprep.subr.bf16.mxu0 %v1064_v5  ;;  %v1068_v10 = vld [vmem:[%s1249_s9 + $0x8] sm:$0xff]   ;;  %v1071_v13 = vld [vmem:[%s1249_s9 + $0x10] sm:$0xff]  }
  0x34   : > { %v1066_v8 = vld [vmem:[%s1249_s9 + $0x80] sm:$0xff]   ;;  %998 = vmatprep.mubr.msk.bf16.mxu1 %vm1150_vm0, %v1149_v6  ;;  %952 = vmatpush3.bf16.msra.mxu0 %v1065_v7  ;;  %v1069_v11 = vld [vmem:[%s1249_s9 + $0x88] sm:$0xff]   ;;  %v1072_v14 = vld [vmem:[%s1249_s9 + $0x90] sm:$0xff]  }
  0x35   : > { %983 = vmatpush3.bf16.msra.mxu1 %v1066_v8  ;;  %953 = vmatprep.subr.bf16.mxu0 %v1067_v9  ;;  %v1073_v15 = vld [vmem:[%s1249_s9 + $0x58] sm:$0xff]   ;;  %v1076_v18 = vld [vmem:[%s1249_s9 + $0x60] sm:$0xff]   ;;  %v1079_v21 = vld [vmem:[%s1249_s9 + $0x68] sm:$0xff]  }
  0x36   : > { %984 = vmatprep.subr.bf16.mxu1 %v1149_v6  ;;  %v1074_v16 = vld [vmem:[%s1249_s9 + $0x18] sm:$0xff]   ;;  %v1077_v19 = vld [vmem:[%s1249_s9 + $0x20] sm:$0xff]   ;;  %v1080_v22 = vld [vmem:[%s1249_s9 + $0x28] sm:$0xff]  }
  0x37   : > { %v1075_v17 = vld [vmem:[%s1249_s9 + $0x98] sm:$0xff]   ;;  %v1078_v20 = vld [vmem:[%s1249_s9 + $0xa0] sm:$0xff]   ;;  %v1081_v23 = vld [vmem:[%s1249_s9 + $0xa8] sm:$0xff]  }
  0x38   : > { %954 = vmatpush3.bf16.msra.mxu0 %v1068_v10  ;;  %v1082_v24 = vld [vmem:[%s1249_s9 + $0x70] sm:$0xff]   ;;  %v1085_v27 = vld [vmem:[%s1249_s9 + $0x78] sm:$0xff]   ;;  %v396_v39 = vld [vmem:[#allocation2] sm:$0xff] }
  0x39   : > { %985 = vmatpush3.bf16.msra.mxu1 %v1069_v11  ;;  %955 = vmatprep.subr.bf16.mxu0 %v1070_v12  ;;  %v1083_v25 = vld [vmem:[%s1249_s9 + $0x30] sm:$0xff]   ;;  %v1086_v29 = vld [vmem:[%s1249_s9 + $0x38] sm:$0xff]   ;;  %v397_v45 = vld [vmem:[#allocation2 + $0x8] sm:$0xff] }
  0x3a   : > { %986 = vmatprep.subr.bf16.mxu1 %v1149_v6  ;;  %v1084_v26 = vld [vmem:[%s1249_s9 + $0xb0] sm:$0xff]   ;;  %v1087_v30 = vld [vmem:[%s1249_s9 + $0xb8] sm:$0xff]   ;;  %v934_v51 = vld [vmem:[%s1323_s2] ss:$0 sm:$0xff] (!%p933_p13) }
  0x3b   : > { %v1090_v28 = vld [vmem:[%s1261_s15 + $0x4] ss:$12 sps:$4 sm:$0xff]   ;;  %v1088_v31 = vld [vmem:[%s1261_s15] ss:$12 sps:$4 sm:$0xff]   ;;  %v1091_v32 = vld [vmem:[%s1261_s15 + $0x8] ss:$12 sps:$4 sm:$0xff]  }
  0x3c   : > { %956 = vmatpush3.bf16.msra.mxu0 %v1071_v13  ;;  %642 = vmatprep.mubr.bf16.mxu0 %v1090_v28  ;;  %v935_v54 = vld [vmem:[%s1324_s3] ss:$0 sm:$0xff] (!%p933_p13) }
  0x3d   : > { %987 = vmatpush3.bf16.msra.mxu1 %v1072_v14  ;;  %957 = vmatprep.subr.bf16.mxu0 %v1073_v15  ;;  %v943_v55 = vld [vmem:[%s1254_s13] sm:$0xff] (!%p933_p13)  }
  0x3e   : > { %988 = vmatprep.subr.bf16.mxu1 %v1149_v6  ;;  %v944_v56 = vunpack.c.l.bf16 (!%p933_p13), %v943_v55  ;;  %v945_v57 = vunpack.c.h.bf16 (!%p933_p13), %v943_v55 }
  0x40   : > { %958 = vmatpush3.bf16.msra.mxu0 %v1074_v16 }
  0x41   : > { %989 = vmatpush3.bf16.msra.mxu1 %v1075_v17  ;;  %959 = vmatprep.subr.bf16.mxu0 %v1076_v18 }
  0x42   : > { %990 = vmatprep.subr.bf16.mxu1 %v1149_v6 }
  0x44   : > { %960 = vmatpush3.bf16.msra.mxu0 %v1077_v19 }
  0x45   : > { %991 = vmatpush3.bf16.msra.mxu1 %v1078_v20  ;;  %961 = vmatprep.subr.bf16.mxu0 %v1079_v21 }
  0x46   : > { %992 = vmatprep.subr.bf16.mxu1 %v1149_v6 }
  0x48   : > { %962 = vmatpush3.bf16.msra.mxu0 %v1080_v22 }
  0x49   : > { %993 = vmatpush3.bf16.msra.mxu1 %v1081_v23  ;;  %963 = vmatprep.subr.bf16.mxu0 %v1082_v24 }
  0x4a   : > { %994 = vmatprep.subr.bf16.mxu1 %v1149_v6 }
  0x4c   : > { %964 = vmatpush3.bf16.msra.mxu0 %v1083_v25 }
  0x4d   : > { %995 = vmatpush3.bf16.msra.mxu1 %v1084_v26  ;;  %965 = vmatprep.subr.bf16.mxu0 %v1085_v27 }
  0x4e   : > { %996 = vmatprep.subr.bf16.mxu1 %v1149_v6 }
  0x50   : > { %966 = vmatpush3.bf16.msra.mxu0 %v1086_v29 }
  0x51   : > { %997 = vmatpush3.bf16.msra.mxu1 %v1087_v30 }
  0x53   : > { %643 = vmatmul.mubr.bf16.vlgmr.msra.gmra.mrb[0].mxu0 %v1088_v31 }
  0x54   : > { %999 = vmatmul.mubr.bf16.vlgmr.msra.gmra.mrb[0].mxu1 %v1091_v32 }
 0x126   : > { %v967_v33 = vpop.f32.mrb[0].mxu0 }
 0x127   : > { %v685_v34 = vpop.f32.mrb[0].mxu1  ;;  %v968_v35 = vpop.f32.mrb[1].mxu0 }
 0x128   : > { %v969_v36 = vadd.f32 %v968_v35, %v967_v33  ;;  %v1000_v37 = vpop.f32.mrb[1].mxu1  ;;  %v970_v38 = vpop.f32.mrb[2].mxu0 }
 0x129   : > { %v688_v40 = vpop.f32.mrb[2].mxu1  ;;  %v971_v41 = vpop.f32.mrb[3].mxu0 }
 0x12a   : > { %v686_v42 = vadd.f32 %v969_v36, %v685_v34  ;;  %v972_v43 = vadd.f32 %v971_v41, %v970_v38  ;;  %v1001_v44 = vpop.f32.mrb[3].mxu1  ;;  %699 = sbr.rel (%p933_p13) target bundleno = 323 (0x143), region = 74 }
 0x12c   : > { %v692_v46 = vadd.f32 %v686_v42, %v396_v39  ;;  %v689_v47 = vadd.f32 %v972_v43, %v688_v40 }
 0x12e   : > { %694 = vst [vmem:[#allocation2] sm:$0xff] %v692_v46  ;;  %v693_v48 = vadd.f32 %v689_v47, %v397_v45 }
 0x130   : > { %695 = vst [vmem:[#allocation2 + $0x8] sm:$0xff] %v693_v48 }
 0x135   : > { %v700_v49 = vld [vmem:[#allocation2] sm:$0xff] }
 0x136   : > { %v709_v52 = vmul.f32 %v934_v51, %v700_v49 }
 0x137   : > { %v701_v50 = vld [vmem:[#allocation2 + $0x8] sm:$0xff] }
 0x138   : > { %v710_v53 = vmul.f32 %v934_v51, %v701_v50  ;;  %v718_v58 = vadd.f32 %v935_v54, %v709_v52 }
 0x13a   : > { %v719_v59 = vadd.f32 %v935_v54, %v710_v53  ;;  %v724_v60 = vadd.f32 %v944_v56, %v718_v58 }
 0x13c   : > { %v725_v61 = vadd.f32 %v945_v57, %v719_v59  ;;  %v726_v62 = vmax.f32 %v724_v60, 0.0 }
 0x13e   : > { %v727_v63 = vmax.f32 %v725_v61, 0.0 }
 0x140   : > { %v949_v0 = vpack.c.bf16 %v727_v63, %v726_v62 }
 0x142   : > { %950 = vst [vmem:[%s1259_s21] sm:$0xff] %v949_v0  }
 0x143 PF: > { %s15_s24 = sadd.s32 1, %s1146_s24   ;;  %s1327_s18 = smov %s1126_s19 }
 0x144   : > { %p12_p0 = scmp.ge.s32.totalorder %s15_s24, 8   ;;  %s1328_s19 = smov %s1232_s6 }
 0x145   : > { %s1329_s20 = smov %s1138_s22  ;;  %s1330_s21 = smov %s1142_s23 }
 0x146   : > { %s1331_s22 = smov %s1334_s25  ;;  %s1332_s23 = smov %s1338_s26 }
 0x147   :  { %14 = sbr.rel (!%p12_p0) target bundleno = 4 (0x4), region = 127 }

// kernel: resnet34_features.55
= control target key start
LH: loop header
LB: loop body
LE: loop exit
PB: predicated region body
PF: predicated region fallthrough
CT: control target
= control target key end

     0   :  { %s1722_s0 = inlined_call_operand.vmem [shape: bf16[16,1152], index: 0, kind: input, shape index: {}]   ;;  %s1723_s1 = inlined_call_operand.vmem [shape: bf16[1152,256], index: 1, kind: input, shape index: {}]   ;;  %s1724_s2 = inlined_call_operand.vmem [shape: f32[1,256], index: 2, kind: input, shape index: {}]   ;;  %s1725_s3 = inlined_call_operand.vmem [shape: f32[1,256], index: 3, kind: input, shape index: {}]   ;;  %s1726_s4 = inlined_call_operand.vmem [shape: bf16[16,256], index: 4, kind: output, shape index: {}]  }
   0x1   :  { %1730 = sst [smem:[#allocation9_spill]] %s1722_s0 }
   0x2   :  { %1731 = sst [smem:[#allocation10_spill]] %s1723_s1 }
   0x3   :  { %s1404_s15 = smov 0   ;;  %s1406_s16 = smov 0  }
   0x4   :  { %s1408_s17 = smov 0   ;;  %s1410_s18 = smov 0  }
   0x5   :  { %s1412_s19 = smov 0   ;;  %s1414_s20 = smov 0  }
   0x6   :  { %s1416_s21 = smov 0   ;;  %s1418_s22 = smov 0  }
   0x7   :  { %s1420_s23 = smov 0   ;;  %s1422_s24 = smov 0  }
   0x8   :  { %s1424_s25 = smov 0  }
   0x9 LB: > { %1732 = sst [smem:[#allocation6_spill]] %s1370_s24  ;;  %s1055_s26 = sadd.s32 4294967295, %s1374_s25   ;;  %s1374_s25 = sphi %s1424_s25, %s14_s25   ;;  %s1370_s24 = sphi %s1422_s24, %s1742_s24   ;;  %s1366_s23 = sphi %s1420_s23, %s1750_s23   ;;  %s1362_s22 = sphi %s1418_s22, %s1740_s22   ;;  %s1358_s21 = sphi %s1416_s21, %s1749_s21   ;;  %s1354_s20 = sphi %s1414_s20, %s1748_s20   ;;  %s1350_s19 = sphi %s1412_s19, %s1747_s19   ;;  %s1346_s18 = sphi %s1410_s18, %s1746_s18   ;;  %s1342_s17 = sphi %s1408_s17, %s1745_s17   ;;  %s1338_s16 = sphi %s1406_s16, %s1744_s16   ;;  %s1334_s15 = sphi %s1404_s15, %s1743_s15  }
   0xa   : > { %s26_s27 = sadd.s32 1, %s1366_s23  ;;  %s29_s28 = sadd.s32 1, %s1370_s24 }
   0xb   : > { %p27_p0 = scmp.ge.s32.totalorder %s26_s27, 3  ;;  %s42_s29 = sadd.s32 1, %s1354_s20 }
   0xc   : > { %p49_p1 = scmp.ne.s32.totalorder %s1354_s20, %s1350_s19  ;;  %p50_p2 = scmp.eq.s32.totalorder %s1374_s25, 0 }
   0xd   : > { %s1752_s27 = smov (%p27_p0, %s26_s27), 0  ;;  %s1754_s28 = smov (!%p27_p0, %s29_s28), %s1370_s24 }
   0xe   : > { %1733 = sst [smem:[#allocation7_spill]] %s1752_s27  ;;  %s38_s30 = ssub.s32 %s1366_s23, %s1752_s27 }
   0xf   : > { %p31_p3 = scmp.ge.s32.totalorder %s1754_s28, 2  ;;  %p40_p4 = scmp.eq.s32.totalorder %s38_s30, 0 }
  0x10   : > { %p1471_p5 = por %p50_p2, %p49_p1  ;;  %s70_s6 = sadd.s32 1, %s1346_s18 }
  0x11   : > { %s1756_s28 = smov (%p31_p3, %s1754_s28), 0  ;;  %p77_p6 = scmp.ne.s32.totalorder %s1346_s18, %s1342_s17 }
  0x12   : > { %1735 = sst [smem:[#allocation8_spill]] %s1756_s28  ;;  %s66_s8 = ssub.s32 %s1370_s24, %s1756_s28 }
  0x13   : > { %s1479_s7 = scalar_select %p40_p4, %s1354_s20, %s42_s29  }
  0x14   : > { %s67_s9 = sor.u32 %s66_s8, %s38_s30  ;;  %p148_p7 = scmp.eq.s32.totalorder %s66_s8, 0 }
  0x15   : > { %p68_p8 = scmp.eq.s32.totalorder %s67_s9, 0  ;;  %p1485_p9 = por %p77_p6, %p50_p2 }
  0x16   : > { %s150_s11 = sadd.s32 1, %s1338_s16  ;;  %p160_p10 = scmp.ne.s32.totalorder %s1338_s16, %s1334_s15 }
  0x17   : > { %s1493_s12 = scalar_select %p68_p8, %s1346_s18, %s70_s6  }
  0x18   : > { %s1496_s13 = scalar_select %p148_p7, %s1338_s16, %s150_s11  }
  0x19   : > { %p161_p11 = scmp.eq.s32.totalorder %s1055_s26, 5  ;;  %p1058_p13 = scmp.ge.s32.totalorder %s1374_s25, 6 }
  0x1b   : > { %p1498_p12 = por %p161_p11, %p160_p10  ;;  %183 = sbr.rel (%p1058_p13) target bundleno = 86 (0x56), region = 16 }
  0x22   : > { %186 = sbr.rel (!%p1471_p5) target bundleno = 45 (0x2d), region = 20  ;;  %s188_s29 = sand.u32 (%p1471_p5), 1, %s1354_s20  }
  0x23   : > { %s1105_s30 = smul.u32 (%p1471_p5), 12, %s1366_s23  ;;  %s1738_s0 = sld [smem:[#allocation9_spill]] (%p1471_p5) }
  0x24   : > { %s1165_s8 = smul.u32 (%p1471_p5), 24, %s188_s29 }
  0x26   : > { %s190_s26 = scalar_lea.vmem (%p1471_p5), [#allocation3], %s1165_s8 }
  0x29   : > { %s196_s11 = scalar_lea.vmem %s1738_s0, %s1105_s30 }
  0x2a   : > { %v211_v0 = vld [vmem:[%s196_s11] sm:$0xff]  ;;  %v1060_v2 = vld [vmem:[%s196_s11 + $0x8] sm:$0xf]  ;;  %v1062_v3 = vld [vmem:[%s196_s11 + $0x2c] sm:$0xf] }
  0x2b   : > { %v213_v1 = vld [vmem:[%s196_s11 + $0x24] sm:$0xff]  ;;  %212 = vst [vmem:[%s190_s26] sm:$0xff] %v211_v0  ;;  %1061 = vst [vmem:[%s190_s26 + $0x8] sm:$0xf] %v1060_v2 }
  0x2c   : > { %214 = vst [vmem:[%s190_s26 + $0xc] sm:$0xff] %v213_v1  ;;  %1063 = vst [vmem:[%s190_s26 + $0x14] sm:$0xf] %v1062_v3 }
  0x2d PF: > { %231 = sbr.rel (!%p1485_p9) target bundleno = 86 (0x56), region = 46  ;;  %s233_s5 = sand.u32 (%p1485_p9), 1, %s1346_s18  }
  0x2e   : > { %s1106_s29 = smul.u32 (%p1485_p9), 96, %s1366_s23  ;;  %s1739_s1 = sld [smem:[#allocation10_spill]] (%p1485_p9) }
  0x2f   : > { %s1166_s6 = smul.u32 (%p1485_p9), 192, %s233_s5 }
  0x30   : > { %s238_s30 = sadd.s32 (%p1485_p9), %s1370_s24, %s1106_s29 }
  0x31   : > { %s1065_s9 = sshll.u32 (%p1485_p9), %s238_s30, 2  ;;  %s1523_s10 = scalar_lea.vmem (%p1485_p9), [#allocation4], %s1166_s6 }
  0x34   : > { %s1518_s8 = scalar_lea.vmem %s1739_s1, %s1065_s9 }
  0x35   : > { %v256_v4 = vld [vmem:[%s1518_s8] sm:$0xf]  ;;  %v258_v5 = vld [vmem:[%s1518_s8 + $0x8] sm:$0xf]  ;;  %v260_v6 = vld [vmem:[%s1518_s8 + $0x10] sm:$0xf] }
  0x36   : > { %257 = vst [vmem:[%s1523_s10] sm:$0xf] %v256_v4  ;;  %259 = vst [vmem:[%s1523_s10 + $0x4] sm:$0xf] %v258_v5  ;;  %v262_v7 = vld [vmem:[%s1518_s8 + $0x18] sm:$0xf] }
  0x37   : > { %261 = vst [vmem:[%s1523_s10 + $0x8] sm:$0xf] %v260_v6  ;;  %v264_v8 = vld [vmem:[%s1518_s8 + $0x20] sm:$0xf]  ;;  %v266_v9 = vld [vmem:[%s1518_s8 + $0x28] sm:$0xf] }
  0x38   : > { %263 = vst [vmem:[%s1523_s10 + $0xc] sm:$0xf] %v262_v7  ;;  %265 = vst [vmem:[%s1523_s10 + $0x10] sm:$0xf] %v264_v8  ;;  %v268_v10 = vld [vmem:[%s1518_s8 + $0x30] sm:$0xf] }
  0x39   : > { %267 = vst [vmem:[%s1523_s10 + $0x14] sm:$0xf] %v266_v9  ;;  %v270_v11 = vld [vmem:[%s1518_s8 + $0x38] sm:$0xf]  ;;  %v272_v12 = vld [vmem:[%s1518_s8 + $0x40] sm:$0xf] }
  0x3a   : > { %269 = vst [vmem:[%s1523_s10 + $0x18] sm:$0xf] %v268_v10  ;;  %271 = vst [vmem:[%s1523_s10 + $0x1c] sm:$0xf] %v270_v11  ;;  %v274_v13 = vld [vmem:[%s1518_s8 + $0x48] sm:$0xf] }
  0x3b   : > { %273 = vst [vmem:[%s1523_s10 + $0x20] sm:$0xf] %v272_v12  ;;  %v276_v14 = vld [vmem:[%s1518_s8 + $0x50] sm:$0xf]  ;;  %v278_v15 = vld [vmem:[%s1518_s8 + $0x58] sm:$0xf] }
  0x3c   : > { %275 = vst [vmem:[%s1523_s10 + $0x24] sm:$0xf] %v274_v13  ;;  %277 = vst [vmem:[%s1523_s10 + $0x28] sm:$0xf] %v276_v14  ;;  %v280_v16 = vld [vmem:[%s1518_s8 + $0x60] sm:$0xf] }
  0x3d   : > { %279 = vst [vmem:[%s1523_s10 + $0x2c] sm:$0xf] %v278_v15  ;;  %v282_v17 = vld [vmem:[%s1518_s8 + $0x68] sm:$0xf]  ;;  %v284_v18 = vld [vmem:[%s1518_s8 + $0x70] sm:$0xf] }
  0x3e   : > { %281 = vst [vmem:[%s1523_s10 + $0x30] sm:$0xf] %v280_v16  ;;  %283 = vst [vmem:[%s1523_s10 + $0x34] sm:$0xf] %v282_v17  ;;  %v286_v19 = vld [vmem:[%s1518_s8 + $0x78] sm:$0xf] }
  0x3f   : > { %285 = vst [vmem:[%s1523_s10 + $0x38] sm:$0xf] %v284_v18  ;;  %v288_v20 = vld [vmem:[%s1518_s8 + $0x80] sm:$0xf]  ;;  %v290_v21 = vld [vmem:[%s1518_s8 + $0x88] sm:$0xf] }
  0x40   : > { %287 = vst [vmem:[%s1523_s10 + $0x3c] sm:$0xf] %v286_v19  ;;  %289 = vst [vmem:[%s1523_s10 + $0x40] sm:$0xf] %v288_v20  ;;  %v292_v22 = vld [vmem:[%s1518_s8 + $0x90] sm:$0xf] }
  0x41   : > { %291 = vst [vmem:[%s1523_s10 + $0x44] sm:$0xf] %v290_v21  ;;  %v294_v23 = vld [vmem:[%s1518_s8 + $0x98] sm:$0xf]  ;;  %v296_v24 = vld [vmem:[%s1518_s8 + $0xa0] sm:$0xf] }
  0x42   : > { %293 = vst [vmem:[%s1523_s10 + $0x48] sm:$0xf] %v292_v22  ;;  %295 = vst [vmem:[%s1523_s10 + $0x4c] sm:$0xf] %v294_v23  ;;  %v298_v25 = vld [vmem:[%s1518_s8 + $0xa8] sm:$0xf] }
  0x43   : > { %297 = vst [vmem:[%s1523_s10 + $0x50] sm:$0xf] %v296_v24  ;;  %v300_v26 = vld [vmem:[%s1518_s8 + $0xb0] sm:$0xf]  ;;  %v302_v27 = vld [vmem:[%s1518_s8 + $0xb8] sm:$0xf] }
  0x44   : > { %299 = vst [vmem:[%s1523_s10 + $0x54] sm:$0xf] %v298_v25  ;;  %301 = vst [vmem:[%s1523_s10 + $0x58] sm:$0xf] %v300_v26  ;;  %v304_v28 = vld [vmem:[%s1518_s8 + $0xc0] sm:$0xf] }
  0x45   : > { %303 = vst [vmem:[%s1523_s10 + $0x5c] sm:$0xf] %v302_v27  ;;  %v306_v29 = vld [vmem:[%s1518_s8 + $0xc8] sm:$0xf]  ;;  %v308_v30 = vld [vmem:[%s1518_s8 + $0xd0] sm:$0xf] }
  0x46   : > { %305 = vst [vmem:[%s1523_s10 + $0x60] sm:$0xf] %v304_v28  ;;  %307 = vst [vmem:[%s1523_s10 + $0x64] sm:$0xf] %v306_v29  ;;  %v310_v31 = vld [vmem:[%s1518_s8 + $0xd8] sm:$0xf] }
  0x47   : > { %309 = vst [vmem:[%s1523_s10 + $0x68] sm:$0xf] %v308_v30  ;;  %v312_v32 = vld [vmem:[%s1518_s8 + $0xe0] sm:$0xf]  ;;  %v314_v33 = vld [vmem:[%s1518_s8 + $0xe8] sm:$0xf] }
  0x48   : > { %311 = vst [vmem:[%s1523_s10 + $0x6c] sm:$0xf] %v310_v31  ;;  %313 = vst [vmem:[%s1523_s10 + $0x70] sm:$0xf] %v312_v32  ;;  %v316_v34 = vld [vmem:[%s1518_s8 + $0xf0] sm:$0xf] }
  0x49   : > { %315 = vst [vmem:[%s1523_s10 + $0x74] sm:$0xf] %v314_v33  ;;  %v318_v35 = vld [vmem:[%s1518_s8 + $0xf8] sm:$0xf]  ;;  %v320_v36 = vld [vmem:[%s1518_s8 + $0x100] sm:$0xf] }
  0x4a   : > { %317 = vst [vmem:[%s1523_s10 + $0x78] sm:$0xf] %v316_v34  ;;  %319 = vst [vmem:[%s1523_s10 + $0x7c] sm:$0xf] %v318_v35  ;;  %v322_v37 = vld [vmem:[%s1518_s8 + $0x108] sm:$0xf] }
  0x4b   : > { %321 = vst [vmem:[%s1523_s10 + $0x80] sm:$0xf] %v320_v36  ;;  %v324_v38 = vld [vmem:[%s1518_s8 + $0x110] sm:$0xf]  ;;  %v326_v39 = vld [vmem:[%s1518_s8 + $0x118] sm:$0xf] }
  0x4c   : > { %323 = vst [vmem:[%s1523_s10 + $0x84] sm:$0xf] %v322_v37  ;;  %325 = vst [vmem:[%s1523_s10 + $0x88] sm:$0xf] %v324_v38  ;;  %v328_v40 = vld [vmem:[%s1518_s8 + $0x120] sm:$0xf] }
  0x4d   : > { %327 = vst [vmem:[%s1523_s10 + $0x8c] sm:$0xf] %v326_v39  ;;  %v330_v41 = vld [vmem:[%s1518_s8 + $0x128] sm:$0xf]  ;;  %v332_v42 = vld [vmem:[%s1518_s8 + $0x130] sm:$0xf] }
  0x4e   : > { %329 = vst [vmem:[%s1523_s10 + $0x90] sm:$0xf] %v328_v40  ;;  %331 = vst [vmem:[%s1523_s10 + $0x94] sm:$0xf] %v330_v41  ;;  %v334_v43 = vld [vmem:[%s1518_s8 + $0x138] sm:$0xf] }
  0x4f   : > { %333 = vst [vmem:[%s1523_s10 + $0x98] sm:$0xf] %v332_v42  ;;  %v336_v44 = vld [vmem:[%s1518_s8 + $0x140] sm:$0xf]  ;;  %v338_v45 = vld [vmem:[%s1518_s8 + $0x148] sm:$0xf] }
  0x50   : > { %335 = vst [vmem:[%s1523_s10 + $0x9c] sm:$0xf] %v334_v43  ;;  %337 = vst [vmem:[%s1523_s10 + $0xa0] sm:$0xf] %v336_v44  ;;  %v340_v46 = vld [vmem:[%s1518_s8 + $0x150] sm:$0xf] }
  0x51   : > { %339 = vst [vmem:[%s1523_s10 + $0xa4] sm:$0xf] %v338_v45  ;;  %v342_v47 = vld [vmem:[%s1518_s8 + $0x158] sm:$0xf]  ;;  %v344_v48 = vld [vmem:[%s1518_s8 + $0x160] sm:$0xf] }
  0x52   : > { %341 = vst [vmem:[%s1523_s10 + $0xa8] sm:$0xf] %v340_v46  ;;  %343 = vst [vmem:[%s1523_s10 + $0xac] sm:$0xf] %v342_v47  ;;  %v346_v49 = vld [vmem:[%s1518_s8 + $0x168] sm:$0xf] }
  0x53   : > { %345 = vst [vmem:[%s1523_s10 + $0xb0] sm:$0xf] %v344_v48  ;;  %v348_v50 = vld [vmem:[%s1518_s8 + $0x170] sm:$0xf]  ;;  %v350_v51 = vld [vmem:[%s1518_s8 + $0x178] sm:$0xf] }
  0x54   : > { %347 = vst [vmem:[%s1523_s10 + $0xb4] sm:$0xf] %v346_v49  ;;  %349 = vst [vmem:[%s1523_s10 + $0xb8] sm:$0xf] %v348_v50 }
  0x55   : > { %351 = vst [vmem:[%s1523_s10 + $0xbc] sm:$0xf] %v350_v51 }
  0x56 PF: > { %p1066_p0 = scmp.ge.s32.totalorder %s1374_s25, 1  ;;  %p481_p1 = scmp.lt.s32.totalorder %s1374_s25, 7 }
  0x58   : > { %p482_p2 = pnand %p1066_p0, %p481_p1 }
  0x59   : > { %s488_s0 = sand.u32 (!%p482_p2), 1, %s1350_s19   ;;  %s495_s28 = sand.u32 (!%p482_p2), 1, %s1342_s17  }
  0x5a   : > { %485 = sbr.rel (%p482_p2) target bundleno = 384 (0x180), region = 95  ;;  %s526_s26 = sand.u32 (!%p482_p2), 1, %s1334_s15  }
  0x5b   : > { %s1167_s11 = smul.u32 (!%p482_p2), 24, %s488_s0  ;;  %s1067_s29 = sshll.u32 (!%p482_p2), %s526_s26, 3 }
  0x5c   : > { %s1168_s5 = smul.u32 (!%p482_p2), 192, %s495_s28  ;;  %p532_p3 = scmp.lt.s32.totalorder (!%p482_p2), %s1362_s22, 1 }
  0x5d   : > { %s1635_s24 = scalar_lea.vmem (!%p482_p2), [#allocation3], %s1167_s11  ;;  %s1639_s15 = scalar_lea.vmem (!%p482_p2), [#allocation5], %s1067_s29 }
  0x5e   : > { %s1637_s17 = scalar_lea.vmem (!%p482_p2), [#allocation4], %s1168_s5  ;;  %p1068_p4 = scmp.ne.s32.totalorder (!%p482_p2), %s1358_s21, 0 }
  0x61   : > { %s1625_s6 = scalar_select %p532_p3, %s1362_s22, 1 }
  0x62   : > { %543 = sbr.rel (%p1068_p4) target bundleno = 105 (0x69), region = 107  ;;  %v1376_v52 = vmov (!%p1068_p4), 0.0  }
  0x63   : > { %s534_s8 = scalar_lea.vmem %s1724_s2, %s1625_s6  ;;  %s537_s27 = scalar_lea.vmem %s1725_s3, %s1625_s6  ;;  %544 = vst [vmem:[#allocation2] sm:$0xff] (!%p1068_p4), %v1376_v52  ;;  %545 = vst [vmem:[#allocation2 + $0x8] sm:$0xff] (!%p1068_p4), %v1376_v52 }
  0x69 PF: > { %v1260_v53 = vld [vmem:[%s1637_s17 + $0x40] sm:$0xff]   ;;  %v1377_v54 = vmov 0.0   ;;  %vm1378_vm0 = vmmov 0   ;;  %v1263_v57 = vld [vmem:[%s1637_s17 + $0x48] sm:$0xff]   ;;  %v1266_v60 = vld [vmem:[%s1637_s17 + $0x50] sm:$0xff]   ;;  %p1096_p5 = scmp.ne.s32.totalorder %s1358_s21, 2 }
  0x6a   : > { %1145 = vmatprep.subr.bf16.mxu1 %v1377_v54  ;;  %v1261_v55 = vld [vmem:[%s1637_s17] sm:$0xff]   ;;  %1114 = vmatprep.subr.bf16.mxu0 %v1260_v53  ;;  %v1264_v58 = vld [vmem:[%s1637_s17 + $0x8] sm:$0xff]   ;;  %v1267_v61 = vld [vmem:[%s1637_s17 + $0x10] sm:$0xff]  }
  0x6b   : > { %v1262_v56 = vld [vmem:[%s1637_s17 + $0x80] sm:$0xff]   ;;  %1161 = vmatprep.mubr.msk.bf16.mxu1 %vm1378_vm0, %v1377_v54  ;;  %1115 = vmatpush3.bf16.msra.mxu0 %v1261_v55  ;;  %v1265_v59 = vld [vmem:[%s1637_s17 + $0x88] sm:$0xff]   ;;  %v1268_v62 = vld [vmem:[%s1637_s17 + $0x90] sm:$0xff]  }
  0x6c   : > { %1146 = vmatpush3.bf16.msra.mxu1 %v1262_v56  ;;  %1116 = vmatprep.subr.bf16.mxu0 %v1263_v57  ;;  %v1269_v63 = vld [vmem:[%s1637_s17 + $0x58] sm:$0xff]   ;;  %v1272_v2 = vld [vmem:[%s1637_s17 + $0x60] sm:$0xff]   ;;  %v1275_v5 = vld [vmem:[%s1637_s17 + $0x68] sm:$0xff]  }
  0x6d   : > { %1147 = vmatprep.subr.bf16.mxu1 %v1377_v54  ;;  %v1270_v0 = vld [vmem:[%s1637_s17 + $0x18] sm:$0xff]   ;;  %v1273_v3 = vld [vmem:[%s1637_s17 + $0x20] sm:$0xff]   ;;  %v1276_v6 = vld [vmem:[%s1637_s17 + $0x28] sm:$0xff]  }
  0x6e   : > { %v1271_v1 = vld [vmem:[%s1637_s17 + $0x98] sm:$0xff]   ;;  %v1274_v4 = vld [vmem:[%s1637_s17 + $0xa0] sm:$0xff]   ;;  %v1277_v7 = vld [vmem:[%s1637_s17 + $0xa8] sm:$0xff]  }
  0x6f   : > { %1117 = vmatpush3.bf16.msra.mxu0 %v1264_v58  ;;  %v1278_v8 = vld [vmem:[%s1637_s17 + $0x70] sm:$0xff]   ;;  %v1281_v11 = vld [vmem:[%s1637_s17 + $0x78] sm:$0xff]   ;;  %v546_v23 = vld [vmem:[#allocation2] sm:$0xff] }
  0x70   : > { %1148 = vmatpush3.bf16.msra.mxu1 %v1265_v59  ;;  %1118 = vmatprep.subr.bf16.mxu0 %v1266_v60  ;;  %v1279_v9 = vld [vmem:[%s1637_s17 + $0x30] sm:$0xff]   ;;  %v1282_v13 = vld [vmem:[%s1637_s17 + $0x38] sm:$0xff]   ;;  %v547_v29 = vld [vmem:[#allocation2 + $0x8] sm:$0xff] }
  0x71   : > { %1149 = vmatprep.subr.bf16.mxu1 %v1377_v54  ;;  %v1280_v10 = vld [vmem:[%s1637_s17 + $0xb0] sm:$0xff]   ;;  %v1283_v14 = vld [vmem:[%s1637_s17 + $0xb8] sm:$0xff]   ;;  %v1097_v35 = vld [vmem:[%s534_s8] ss:$0 sm:$0xff] (!%p1096_p5) }
  0x72   : > { %v1286_v12 = vld [vmem:[%s1635_s24 + $0x4] ss:$12 sps:$4 sm:$0xff]   ;;  %v1284_v15 = vld [vmem:[%s1635_s24] ss:$12 sps:$4 sm:$0xff]   ;;  %v1287_v16 = vld [vmem:[%s1635_s24 + $0x8] ss:$12 sps:$4 sm:$0xff]  }
  0x73   : > { %1119 = vmatpush3.bf16.msra.mxu0 %v1267_v61  ;;  %792 = vmatprep.mubr.bf16.mxu0 %v1286_v12  ;;  %v1098_v38 = vld [vmem:[%s537_s27] ss:$0 sm:$0xff] (!%p1096_p5) }
  0x74   : > { %1150 = vmatpush3.bf16.msra.mxu1 %v1268_v62  ;;  %1120 = vmatprep.subr.bf16.mxu0 %v1269_v63 }
  0x75   : > { %1151 = vmatprep.subr.bf16.mxu1 %v1377_v54 }
  0x77   : > { %1121 = vmatpush3.bf16.msra.mxu0 %v1270_v0 }
  0x78   : > { %1152 = vmatpush3.bf16.msra.mxu1 %v1271_v1  ;;  %1122 = vmatprep.subr.bf16.mxu0 %v1272_v2 }
  0x79   : > { %1153 = vmatprep.subr.bf16.mxu1 %v1377_v54 }
  0x7b   : > { %1123 = vmatpush3.bf16.msra.mxu0 %v1273_v3 }
  0x7c   : > { %1154 = vmatpush3.bf16.msra.mxu1 %v1274_v4  ;;  %1124 = vmatprep.subr.bf16.mxu0 %v1275_v5 }
  0x7d   : > { %1155 = vmatprep.subr.bf16.mxu1 %v1377_v54 }
  0x7f   : > { %1125 = vmatpush3.bf16.msra.mxu0 %v1276_v6 }
  0x80   : > { %1156 = vmatpush3.bf16.msra.mxu1 %v1277_v7  ;;  %1126 = vmatprep.subr.bf16.mxu0 %v1278_v8 }
  0x81   : > { %1157 = vmatprep.subr.bf16.mxu1 %v1377_v54 }
  0x83   : > { %1127 = vmatpush3.bf16.msra.mxu0 %v1279_v9 }
  0x84   : > { %1158 = vmatpush3.bf16.msra.mxu1 %v1280_v10  ;;  %1128 = vmatprep.subr.bf16.mxu0 %v1281_v11 }
  0x85   : > { %1159 = vmatprep.subr.bf16.mxu1 %v1377_v54 }
  0x87   : > { %1129 = vmatpush3.bf16.msra.mxu0 %v1282_v13 }
  0x88   : > { %1160 = vmatpush3.bf16.msra.mxu1 %v1283_v14 }
  0x8a   : > { %793 = vmatmul.mubr.bf16.vlgmr.msra.gmra.mrb[0].mxu0 %v1284_v15 }
  0x8b   : > { %1162 = vmatmul.mubr.bf16.vlgmr.msra.gmra.mrb[0].mxu1 %v1287_v16 }
 0x15d   : > { %v1130_v17 = vpop.f32.mrb[0].mxu0 }
 0x15e   : > { %v835_v18 = vpop.f32.mrb[0].mxu1  ;;  %v1131_v19 = vpop.f32.mrb[1].mxu0 }
 0x15f   : > { %v1132_v20 = vadd.f32 %v1131_v19, %v1130_v17  ;;  %v1163_v21 = vpop.f32.mrb[1].mxu1  ;;  %v1133_v22 = vpop.f32.mrb[2].mxu0 }
 0x160   : > { %v838_v24 = vpop.f32.mrb[2].mxu1  ;;  %v1134_v25 = vpop.f32.mrb[3].mxu0 }
 0x161   : > { %v836_v26 = vadd.f32 %v1132_v20, %v835_v18  ;;  %v1135_v27 = vadd.f32 %v1134_v25, %v1133_v22  ;;  %v1164_v28 = vpop.f32.mrb[3].mxu1  ;;  %849 = sbr.rel (%p1096_p5) target bundleno = 376 (0x178), region = 111 }
 0x163   : > { %v842_v30 = vadd.f32 %v836_v26, %v546_v23  ;;  %v839_v31 = vadd.f32 %v1135_v27, %v838_v24 }
 0x165   : > { %844 = vst [vmem:[#allocation2] sm:$0xff] %v842_v30  ;;  %v843_v32 = vadd.f32 %v839_v31, %v547_v29 }
 0x167   : > { %845 = vst [vmem:[#allocation2 + $0x8] sm:$0xff] %v843_v32 }
 0x16c   : > { %v850_v33 = vld [vmem:[#allocation2] sm:$0xff] }
 0x16d   : > { %v859_v36 = vmul.f32 %v1097_v35, %v850_v33 }
 0x16e   : > { %v851_v34 = vld [vmem:[#allocation2 + $0x8] sm:$0xff] }
 0x16f   : > { %v860_v37 = vmul.f32 %v1097_v35, %v851_v34  ;;  %v868_v39 = vadd.f32 %v1098_v38, %v859_v36 }
 0x171   : > { %v869_v40 = vadd.f32 %v1098_v38, %v860_v37  ;;  %v870_v41 = vmax.f32 %v868_v39, 0.0 }
 0x173   : > { %v871_v42 = vmax.f32 %v869_v40, 0.0 }
 0x175   : > { %v1112_v43 = vpack.c.bf16 %v871_v42, %v870_v41 }
 0x177   : > { %1113 = vst [vmem:[%s1639_s15] sm:$0xff] %v1112_v43  }
 0x178 PF: > { %888 = sbr.rel (!%p1498_p12) target bundleno = 384 (0x180), region = 115  ;;  %s1102_s21 = sshll.u32 (%p1498_p12), %s1362_s22, 2 }
 0x179   : > { %s893_s27 = scalar_lea.vmem (%p1498_p12), %s1726_s4, %s1102_s21 }
 0x17e   : > { %v909_v44 = vld [vmem:[%s1639_s15] sm:$0xf] (%p1498_p12)  ;;  %v911_v45 = vld [vmem:[%s1639_s15 + $0x4] sm:$0xf] (%p1498_p12) }
 0x17f   : > { %910 = vst [vmem:[%s893_s27] sm:$0xf] %v909_v44  ;;  %912 = vst [vmem:[%s893_s27 + $0x8] sm:$0xf] %v911_v45 }
 0x180 PF: > { %s14_s25 = sadd.s32 1, %s1374_s25   ;;  %s1740_s22 = sld [smem:[#allocation6_spill]] }
 0x181   : > { %p11_p6 = scmp.ge.s32.totalorder %s14_s25, 8   ;;  %s1741_s14 = sld [smem:[#allocation7_spill]] }
 0x182   : > { %s1742_s24 = sld [smem:[#allocation8_spill]]  ;;  %s1743_s15 = smov %s1338_s16 }
 0x183   : > { %s1744_s16 = smov %s1496_s13  ;;  %s1745_s17 = smov %s1346_s18 }
 0x184   : > { %s1746_s18 = smov %s1493_s12  ;;  %s1747_s19 = smov %s1354_s20 }
 0x185   : > { %s1748_s20 = smov %s1479_s7  ;;  %s1749_s21 = smov %s1366_s23 }
 0x186   :  { %13 = sbr.rel (!%p11_p6) target bundleno = 9 (0x9), region = 207 }
 0x187   : > { %s1750_s23 = smov %s1741_s14 }

// kernel: resnet34_features.56
= control target key start
LH: loop header
LB: loop body
LE: loop exit
PB: predicated region body
PF: predicated region fallthrough
CT: control target
= control target key end

     0   :  { %s885_s15 = smov 0   ;;  %s887_s16 = smov 0   ;;  %s990_s0 = inlined_call_operand.vmem [shape: bf16[16,128], index: 0, kind: input, shape index: {}]   ;;  %s991_s1 = inlined_call_operand.vmem [shape: bf16[128,256], index: 1, kind: input, shape index: {}]   ;;  %s992_s2 = inlined_call_operand.vmem [shape: f32[1,256], index: 2, kind: input, shape index: {}]   ;;  %s993_s3 = inlined_call_operand.vmem [shape: f32[1,256], index: 3, kind: input, shape index: {}]   ;;  %s994_s4 = inlined_call_operand.vmem [shape: bf16[16,256], index: 4, kind: output, shape index: {}]  }
   0x1   :  { %s889_s17 = smov 0   ;;  %s891_s18 = smov 0  }
   0x2   :  { %s893_s19 = smov 0  }
   0x3 LB: > { %s29_s20 = sadd.s32 1, %s852_s18  ;;  %s704_s21 = sadd.s32 4294967295, %s856_s19   ;;  %s856_s19 = sphi %s893_s19, %s14_s19   ;;  %s852_s18 = sphi %s891_s18, %s999_s18   ;;  %s848_s17 = sphi %s889_s17, %s998_s17   ;;  %s844_s16 = sphi %s887_s16, %s997_s16   ;;  %s840_s15 = sphi %s885_s15, %s996_s15  }
   0x4   : > { %p31_p0 = scmp.ge.s32.totalorder %s29_s20, 2  ;;  %p77_p1 = scmp.ne.s32.totalorder %s844_s16, %s840_s15 }
   0x5   : > { %p78_p2 = scmp.eq.s32.totalorder %s856_s19, 0  ;;  %p161_p4 = scmp.eq.s32.totalorder %s704_s21, 1 }
   0x6   : > { %s1001_s20 = smov (%p31_p0, %s29_s20), 0  ;;  %s70_s23 = sadd.s32 1, %s844_s16 }
   0x7   : > { %p79_p3 = por %p78_p2, %p77_p1  ;;  %s66_s22 = ssub.s32 %s852_s18, %s1001_s20 }
   0x8   : > { %p68_p5 = scmp.eq.s32.totalorder %s66_s22, 0  ;;  %p920_p6 = por %p161_p4, %p77_p1 }
   0x9   : > { %p708_p7 = scmp.ge.s32.totalorder %s856_s19, 2 }
   0xa   : > { %s925_s25 = scalar_select %p68_p5, %s844_s16, %s70_s23  }
   0xb   : > { %195 = sbr.rel (%p708_p7) target bundleno = 32 (0x20), region = 20 }
  0x12   : > { %198 = sbr.rel (!%p79_p3) target bundleno = 32 (0x20), region = 24  ;;  %s200_s26 = sand.u32 (%p79_p3), 1, %s844_s16  }
  0x13   : > { %s710_s27 = sshll.u32 (%p79_p3), %s852_s18, 2  ;;  %s709_s28 = sshll.u32 (%p79_p3), %s200_s26, 6 }
  0x14   : > { %s933_s5 = scalar_lea.vmem (%p79_p3), %s991_s1, %s710_s27  ;;  %s202_s6 = scalar_lea.vmem (%p79_p3), [#allocation3], %s709_s28 }
  0x15   : > { %v223_v0 = vld [vmem:[%s933_s5] sm:$0xf] (%p79_p3)  ;;  %v225_v1 = vld [vmem:[%s933_s5 + $0x8] sm:$0xf] (%p79_p3)  ;;  %v227_v2 = vld [vmem:[%s933_s5 + $0x10] sm:$0xf] (%p79_p3) }
  0x16   : > { %224 = vst [vmem:[%s202_s6] sm:$0xf] (%p79_p3), %v223_v0  ;;  %226 = vst [vmem:[%s202_s6 + $0x4] sm:$0xf] (%p79_p3), %v225_v1  ;;  %v229_v3 = vld [vmem:[%s933_s5 + $0x18] sm:$0xf] (%p79_p3) }
  0x17   : > { %v231_v4 = vld [vmem:[%s933_s5 + $0x20] sm:$0xf] (%p79_p3)  ;;  %228 = vst [vmem:[%s202_s6 + $0x8] sm:$0xf] (%p79_p3), %v227_v2  ;;  %230 = vst [vmem:[%s202_s6 + $0xc] sm:$0xf] (%p79_p3), %v229_v3 }
  0x18   : > { %232 = vst [vmem:[%s202_s6 + $0x10] sm:$0xf] (%p79_p3), %v231_v4  ;;  %v233_v5 = vld [vmem:[%s933_s5 + $0x28] sm:$0xf] (%p79_p3)  ;;  %v235_v6 = vld [vmem:[%s933_s5 + $0x30] sm:$0xf] (%p79_p3) }
  0x19   : > { %v237_v7 = vld [vmem:[%s933_s5 + $0x38] sm:$0xf]  ;;  %234 = vst [vmem:[%s202_s6 + $0x14] sm:$0xf] %v233_v5  ;;  %236 = vst [vmem:[%s202_s6 + $0x18] sm:$0xf] %v235_v6 }
  0x1a   : > { %238 = vst [vmem:[%s202_s6 + $0x1c] sm:$0xf] %v237_v7  ;;  %v239_v8 = vld [vmem:[%s933_s5 + $0x40] sm:$0xf]  ;;  %v241_v9 = vld [vmem:[%s933_s5 + $0x48] sm:$0xf] }
  0x1b   : > { %v243_v10 = vld [vmem:[%s933_s5 + $0x50] sm:$0xf]  ;;  %240 = vst [vmem:[%s202_s6 + $0x20] sm:$0xf] %v239_v8  ;;  %242 = vst [vmem:[%s202_s6 + $0x24] sm:$0xf] %v241_v9 }
  0x1c   : > { %244 = vst [vmem:[%s202_s6 + $0x28] sm:$0xf] %v243_v10  ;;  %v245_v11 = vld [vmem:[%s933_s5 + $0x58] sm:$0xf]  ;;  %v247_v12 = vld [vmem:[%s933_s5 + $0x60] sm:$0xf] }
  0x1d   : > { %v249_v13 = vld [vmem:[%s933_s5 + $0x68] sm:$0xf]  ;;  %246 = vst [vmem:[%s202_s6 + $0x2c] sm:$0xf] %v245_v11  ;;  %248 = vst [vmem:[%s202_s6 + $0x30] sm:$0xf] %v247_v12 }
  0x1e   : > { %250 = vst [vmem:[%s202_s6 + $0x34] sm:$0xf] %v249_v13  ;;  %v251_v14 = vld [vmem:[%s933_s5 + $0x70] sm:$0xf]  ;;  %v253_v15 = vld [vmem:[%s933_s5 + $0x78] sm:$0xf] }
  0x1f   : > { %252 = vst [vmem:[%s202_s6 + $0x38] sm:$0xf] %v251_v14  ;;  %254 = vst [vmem:[%s202_s6 + $0x3c] sm:$0xf] %v253_v15 }
  0x20 PF: > { %p711_p8 = scmp.ge.s32.totalorder %s856_s19, 1  ;;  %p320_p9 = scmp.lt.s32.totalorder %s856_s19, 3 }
  0x22   : > { %p321_p10 = pnand %p711_p8, %p320_p9 }
  0x23   : > { %s327_s7 = sand.u32 (!%p321_p10), 1, %s840_s15   ;;  %v858_v16 = vmov (!%p321_p10), 0.0   ;;  %vm859_vm0 = vmmov (!%p321_p10), 0   ;;  %v817_v25 = vld [vmem:[%s990_s0] sm:$0xff] (!%p321_p10)   ;;  %p375_p11 = scmp.lt.s32.totalorder (!%p321_p10), %s848_s17, 1 }
  0x24   : > { %324 = sbr.rel (%p321_p10) target bundleno = 299 (0x12b), region = 73  ;;  %747 = vmatprep.subr.bf16.mxu0 (!%p321_p10), %v858_v16  ;;  %s712_s8 = sshll.u32 (!%p321_p10), %s327_s7, 6  ;;  %763 = vmatprep.mubr.msk.bf16.mxu0 (!%p321_p10), %vm859_vm0, %v858_v16 }
  0x25   : > { %s329_s9 = scalar_lea.vmem (!%p321_p10), [#allocation3], %s712_s8  ;;  %s713_s27 = sshll.u32 (!%p321_p10), %s327_s7, 3 }
  0x26   : > { %v809_v17 = vld [vmem:[%s329_s9] sm:$0xff] (!%p321_p10)   ;;  %v810_v18 = vld [vmem:[%s329_s9 + $0x8] sm:$0xff] (!%p321_p10)   ;;  %v811_v19 = vld [vmem:[%s329_s9 + $0x10] sm:$0xff] (!%p321_p10)   ;;  %s364_s28 = scalar_lea.vmem (!%p321_p10), [#allocation4], %s713_s27 }
  0x27   : > { %748 = vmatpush3.bf16.msra.mxu0 (!%p321_p10), %v809_v17  ;;  %v812_v20 = vld [vmem:[%s329_s9 + $0x18] sm:$0xff] (!%p321_p10)   ;;  %v813_v21 = vld [vmem:[%s329_s9 + $0x20] sm:$0xff] (!%p321_p10)   ;;  %v814_v22 = vld [vmem:[%s329_s9 + $0x28] sm:$0xff] (!%p321_p10)  }
  0x28   : > { %749 = vmatprep.subr.bf16.mxu0 (!%p321_p10), %v858_v16  ;;  %v815_v23 = vld [vmem:[%s329_s9 + $0x30] sm:$0xff] (!%p321_p10)   ;;  %v816_v24 = vld [vmem:[%s329_s9 + $0x38] sm:$0xff] (!%p321_p10)  }
  0x2b   : > { %750 = vmatpush3.bf16.msra.mxu0 %v810_v18  ;;  %s376_s12 = scalar_select %p375_p11, %s848_s17, 1 }
  0x2c   : > { %751 = vmatprep.subr.bf16.mxu0 %v858_v16  ;;  %s728_s29 = sshll.u32 (%p920_p6), %s848_s17, 2 }
  0x2d   : > { %s377_s21 = scalar_lea.vmem %s992_s2, %s376_s12  ;;  %s380_s26 = scalar_lea.vmem %s993_s3, %s376_s12 }
  0x2e   : > { %v723_v26 = vld [vmem:[%s377_s21] ss:$0 sm:$0xff]  ;;  %s552_s6 = scalar_lea.vmem (%p920_p6), %s994_s4, %s728_s29 }
  0x2f   : > { %752 = vmatpush3.bf16.msra.mxu0 %v811_v19  ;;  %v724_v30 = vld [vmem:[%s380_s26] ss:$0 sm:$0xff] }
  0x30   : > { %753 = vmatprep.subr.bf16.mxu0 %v858_v16 }
  0x33   : > { %754 = vmatpush3.bf16.msra.mxu0 %v812_v20 }
  0x34   : > { %755 = vmatprep.subr.bf16.mxu0 %v858_v16 }
  0x37   : > { %756 = vmatpush3.bf16.msra.mxu0 %v813_v21 }
  0x38   : > { %757 = vmatprep.subr.bf16.mxu0 %v858_v16 }
  0x3b   : > { %758 = vmatpush3.bf16.msra.mxu0 %v814_v22 }
  0x3c   : > { %759 = vmatprep.subr.bf16.mxu0 %v858_v16 }
  0x3f   : > { %760 = vmatpush3.bf16.msra.mxu0 %v815_v23 }
  0x40   : > { %761 = vmatprep.subr.bf16.mxu0 %v858_v16 }
  0x43   : > { %762 = vmatpush3.bf16.msra.mxu0 %v816_v24 }
  0x46   : > { %764 = vmatmul.mubr.bf16.vlgmr.msra.gmra.mrb[0].mxu0 %v817_v25 }
 0x119   : > { %v497_v27 = vpop.f32.mrb[0].mxu0 }
 0x11a   : > { %v520_v28 = vmul.f32 %v723_v26, %v497_v27  ;;  %v765_v29 = vpop.f32.mrb[1].mxu0 }
 0x11b   : > { %v500_v31 = vpop.f32.mrb[2].mxu0 }
 0x11c   : > { %v521_v32 = vmul.f32 %v723_v26, %v500_v31  ;;  %v766_v33 = vpop.f32.mrb[3].mxu0  ;;  %v529_v34 = vadd.f32 %v724_v30, %v520_v28  ;;  %547 = sbr.rel (!%p920_p6) target bundleno = 299 (0x12b), region = 89 }
 0x11e   : > { %v530_v35 = vadd.f32 %v724_v30, %v521_v32 }
 0x120   : > { %v736_v36 = vpack.c.bf16 %v530_v35, %v529_v34 }
 0x122   : > { %737 = vst [vmem:[%s364_s28] sm:$0xff] %v736_v36  }
 0x129   : > { %v568_v37 = vld [vmem:[%s364_s28] sm:$0xf]  ;;  %v570_v38 = vld [vmem:[%s364_s28 + $0x4] sm:$0xf] }
 0x12a   : > { %569 = vst [vmem:[%s552_s6] sm:$0xf] %v568_v37  ;;  %571 = vst [vmem:[%s552_s6 + $0x8] sm:$0xf] %v570_v38 }
 0x12b PF: > { %s14_s19 = sadd.s32 1, %s856_s19   ;;  %s996_s15 = smov %s844_s16 }
 0x12c   : > { %p11_p12 = scmp.ge.s32.totalorder %s14_s19, 4   ;;  %s997_s16 = smov %s925_s25 }
 0x12d   : > { %s998_s17 = smov %s852_s18  ;;  %s999_s18 = smov %s1001_s20 }
 0x12e   :  { %13 = sbr.rel (!%p11_p12) target bundleno = 3 (0x3), region = 170 }

// kernel: resnet34_features.57
= control target key start
LH: loop header
LB: loop body
LE: loop exit
PB: predicated region body
PF: predicated region fallthrough
CT: control target
= control target key end

     0   :  { %s2499_s0 = inlined_call_operand.vmem [shape: bf16[16,2304], index: 0, kind: input, shape index: {}]   ;;  %s2500_s1 = inlined_call_operand.vmem [shape: bf16[2304,256], index: 1, kind: input, shape index: {}]   ;;  %s2501_s2 = inlined_call_operand.vmem [shape: f32[1,256], index: 2, kind: input, shape index: {}]   ;;  %s2502_s3 = inlined_call_operand.vmem [shape: f32[1,256], index: 3, kind: input, shape index: {}]   ;;  %s2503_s4 = inlined_call_operand.vmem [shape: bf16[16,256], index: 4, kind: input, shape index: {}]   ;;  %s2504_s5 = inlined_call_operand.vmem [shape: bf16[16,256], index: 5, kind: output, shape index: {}]  }
   0x1   :  { %2507 = sst [smem:[#allocation10_spill]] %s2499_s0 }
   0x2   :  { %s2035_s18 = smov 0   ;;  %s2037_s19 = smov 0  }
   0x3   :  { %s2039_s20 = smov 0   ;;  %s2041_s21 = smov 0  }
   0x4   :  { %s2043_s22 = smov 0   ;;  %s2045_s23 = smov 0  }
   0x5   :  { %s2047_s24 = smov 0   ;;  %s2049_s25 = smov 0  }
   0x6   :  { %s2051_s26 = smov 0   ;;  %s2053_s27 = smov 0  }
   0x7   :  { %s2055_s28 = smov 0  }
   0x8 LB: > { %s1611_s29 = sadd.s32 4294967295, %s2002_s28   ;;  %s27_s30 = sadd.s32 1, %s1994_s26  ;;  %s2002_s28 = sphi %s2055_s28, %s15_s28   ;;  %s1998_s27 = sphi %s2053_s27, %s2528_s27   ;;  %s1994_s26 = sphi %s2051_s26, %s2527_s26   ;;  %s1990_s25 = sphi %s2049_s25, %s2526_s25   ;;  %s1986_s24 = sphi %s2047_s24, %s2525_s24   ;;  %s1982_s23 = sphi %s2045_s23, %s2524_s23   ;;  %s1978_s22 = sphi %s2043_s22, %s2523_s22   ;;  %s1974_s21 = sphi %s2041_s21, %s2522_s21   ;;  %s1970_s20 = sphi %s2039_s20, %s2521_s20   ;;  %s1966_s19 = sphi %s2037_s19, %s2520_s19   ;;  %s1962_s18 = sphi %s2035_s18, %s2519_s18  }
   0x9   : > { %p28_p0 = scmp.ge.s32.totalorder %s27_s30, 3  ;;  %s30_s6 = sadd.s32 1, %s1998_s27 }
   0xa   : > { %s43_s7 = sadd.s32 1, %s1982_s23  ;;  %p50_p1 = scmp.ne.s32.totalorder %s1982_s23, %s1978_s22 }
   0xb   : > { %s2530_s30 = smov (%p28_p0, %s27_s30), 0  ;;  %s2532_s6 = smov (!%p28_p0, %s30_s6), %s1998_s27 }
   0xc   : > { %2508 = sst [smem:[#allocation7_spill]] %s2530_s30  ;;  %s39_s8 = ssub.s32 %s1994_s26, %s2530_s30 }
   0xd   : > { %p51_p2 = scmp.eq.s32.totalorder %s2002_s28, 0  ;;  %p32_p3 = scmp.ge.s32.totalorder %s2532_s6, 2 }
   0xe   : > { %p41_p4 = scmp.eq.s32.totalorder %s39_s8, 0  ;;  %s71_s10 = sadd.s32 1, %s1974_s21 }
   0xf   : > { %p2104_p5 = por %p51_p2, %p50_p1  ;;  %s2534_s6 = smov (%p32_p3, %s2532_s6), 0 }
  0x10   : > { %2510 = sst [smem:[#allocation8_spill]] %s2534_s6  ;;  %s67_s12 = ssub.s32 %s1998_s27, %s2534_s6 }
  0x11   : > { %s2112_s11 = scalar_select %p41_p4, %s1982_s23, %s43_s7  }
  0x12   : > { %p78_p6 = scmp.ne.s32.totalorder %s1974_s21, %s1970_s20  ;;  %s68_s13 = sor.u32 %s67_s12, %s39_s8 }
  0x13   : > { %2511 = sst [smem:[#allocation9_spill]] %s2112_s11  ;;  %p149_p7 = scmp.eq.s32.totalorder %s67_s12, 0 }
  0x14   : > { %p69_p8 = scmp.eq.s32.totalorder %s68_s13, 0  ;;  %p2120_p9 = por %p78_p6, %p51_p2 }
  0x15   : > { %s151_s15 = sadd.s32 1, %s1966_s19  ;;  %p158_p10 = scmp.ne.s32.totalorder %s1966_s19, %s1962_s18 }
  0x16   : > { %s2128_s16 = scalar_select %p69_p8, %s1974_s21, %s71_s10  }
  0x17   : > { %s2131_s17 = scalar_select %p149_p7, %s1966_s19, %s151_s15  }
  0x18   : > { %p2135_p11 = por %p158_p10, %p51_p2  ;;  %p190_p12 = scmp.eq.s32.totalorder %s1611_s29, 5 }
  0x19   : > { %p1614_p0 = scmp.ge.s32.totalorder %s2002_s28, 6 }
  0x1a   : > { %p2139_p13 = por %p190_p12, %p158_p10 }
  0x1b   : > { %212 = sbr.rel (%p1614_p0) target bundleno = 124 (0x7c), region = 16 }
  0x22   : > { %215 = sbr.rel (!%p2104_p5) target bundleno = 46 (0x2e), region = 20  ;;  %s217_s10 = sand.u32 (%p2104_p5), 1, %s1982_s23  }
  0x23   : > { %s1687_s12 = smul.u32 (%p2104_p5), 24, %s1994_s26  ;;  %s2515_s0 = sld [smem:[#allocation10_spill]] (%p2104_p5) }
  0x24   : > { %s1766_s13 = smul.u32 (%p2104_p5), 48, %s217_s10 }
  0x26   : > { %s219_s29 = scalar_lea.vmem (%p2104_p5), [#allocation3], %s1766_s13 }
  0x29   : > { %s225_s30 = scalar_lea.vmem %s2515_s0, %s1687_s12 }
  0x2a   : > { %v238_v0 = vld [vmem:[%s225_s30] sm:$0xff]  ;;  %v240_v1 = vld [vmem:[%s225_s30 + $0x8] sm:$0xff]  ;;  %v242_v2 = vld [vmem:[%s225_s30 + $0x10] sm:$0xff] }
  0x2b   : > { %239 = vst [vmem:[%s219_s29] sm:$0xff] %v238_v0  ;;  %241 = vst [vmem:[%s219_s29 + $0x8] sm:$0xff] %v240_v1  ;;  %v244_v3 = vld [vmem:[%s225_s30 + $0x48] sm:$0xff]  ;;  %v246_v4 = vld [vmem:[%s225_s30 + $0x50] sm:$0xff] }
  0x2c   : > { %243 = vst [vmem:[%s219_s29 + $0x10] sm:$0xff] %v242_v2  ;;  %v248_v5 = vld [vmem:[%s225_s30 + $0x58] sm:$0xff]  ;;  %245 = vst [vmem:[%s219_s29 + $0x18] sm:$0xff] %v244_v3 }
  0x2d   : > { %247 = vst [vmem:[%s219_s29 + $0x20] sm:$0xff] %v246_v4  ;;  %249 = vst [vmem:[%s219_s29 + $0x28] sm:$0xff] %v248_v5 }
  0x2e PF: > { %255 = sbr.rel (!%p2120_p9) target bundleno = 117 (0x75), region = 43  ;;  %s257_s6 = sand.u32 (%p2120_p9), 1, %s1974_s21  }
  0x2f   : > { %s1688_s9 = smul.u32 (%p2120_p9), 192, %s1994_s26 }
  0x30   : > { %s1767_s10 = smul.u32 (%p2120_p9), 384, %s257_s6 }
  0x31   : > { %s262_s12 = sadd.s32 (%p2120_p9), %s1998_s27, %s1688_s9 }
  0x32   : > { %s1617_s13 = sshll.u32 (%p2120_p9), %s262_s12, 2  ;;  %s2164_s30 = scalar_lea.vmem (%p2120_p9), [#allocation4], %s1767_s10 }
  0x33   : > { %s2159_s11 = scalar_lea.vmem (%p2120_p9), %s2500_s1, %s1617_s13 }
  0x34   : > { %v280_v6 = vld [vmem:[%s2159_s11] sm:$0xf] (%p2120_p9)  ;;  %v282_v7 = vld [vmem:[%s2159_s11 + $0x8] sm:$0xf] (%p2120_p9)  ;;  %v284_v8 = vld [vmem:[%s2159_s11 + $0x10] sm:$0xf] (%p2120_p9) }
  0x35   : > { %281 = vst [vmem:[%s2164_s30] sm:$0xf] %v280_v6  ;;  %283 = vst [vmem:[%s2164_s30 + $0x4] sm:$0xf] %v282_v7  ;;  %v286_v9 = vld [vmem:[%s2159_s11 + $0x18] sm:$0xf] }
  0x36   : > { %285 = vst [vmem:[%s2164_s30 + $0x8] sm:$0xf] %v284_v8  ;;  %v288_v10 = vld [vmem:[%s2159_s11 + $0x20] sm:$0xf]  ;;  %v290_v11 = vld [vmem:[%s2159_s11 + $0x28] sm:$0xf] }
  0x37   : > { %287 = vst [vmem:[%s2164_s30 + $0xc] sm:$0xf] %v286_v9  ;;  %289 = vst [vmem:[%s2164_s30 + $0x10] sm:$0xf] %v288_v10  ;;  %v292_v12 = vld [vmem:[%s2159_s11 + $0x30] sm:$0xf] }
  0x38   : > { %291 = vst [vmem:[%s2164_s30 + $0x14] sm:$0xf] %v290_v11  ;;  %v294_v13 = vld [vmem:[%s2159_s11 + $0x38] sm:$0xf]  ;;  %v296_v14 = vld [vmem:[%s2159_s11 + $0x40] sm:$0xf] }
  0x39   : > { %293 = vst [vmem:[%s2164_s30 + $0x18] sm:$0xf] %v292_v12  ;;  %295 = vst [vmem:[%s2164_s30 + $0x1c] sm:$0xf] %v294_v13  ;;  %v298_v15 = vld [vmem:[%s2159_s11 + $0x48] sm:$0xf] }
  0x3a   : > { %297 = vst [vmem:[%s2164_s30 + $0x20] sm:$0xf] %v296_v14  ;;  %v300_v16 = vld [vmem:[%s2159_s11 + $0x50] sm:$0xf]  ;;  %v302_v17 = vld [vmem:[%s2159_s11 + $0x58] sm:$0xf] }
  0x3b   : > { %299 = vst [vmem:[%s2164_s30 + $0x24] sm:$0xf] %v298_v15  ;;  %301 = vst [vmem:[%s2164_s30 + $0x28] sm:$0xf] %v300_v16  ;;  %v304_v18 = vld [vmem:[%s2159_s11 + $0x60] sm:$0xf] }
  0x3c   : > { %303 = vst [vmem:[%s2164_s30 + $0x2c] sm:$0xf] %v302_v17  ;;  %v306_v19 = vld [vmem:[%s2159_s11 + $0x68] sm:$0xf]  ;;  %v308_v20 = vld [vmem:[%s2159_s11 + $0x70] sm:$0xf] }
  0x3d   : > { %305 = vst [vmem:[%s2164_s30 + $0x30] sm:$0xf] %v304_v18  ;;  %307 = vst [vmem:[%s2164_s30 + $0x34] sm:$0xf] %v306_v19  ;;  %v310_v21 = vld [vmem:[%s2159_s11 + $0x78] sm:$0xf] }
  0x3e   : > { %309 = vst [vmem:[%s2164_s30 + $0x38] sm:$0xf] %v308_v20  ;;  %v312_v22 = vld [vmem:[%s2159_s11 + $0x80] sm:$0xf]  ;;  %v314_v23 = vld [vmem:[%s2159_s11 + $0x88] sm:$0xf] }
  0x3f   : > { %311 = vst [vmem:[%s2164_s30 + $0x3c] sm:$0xf] %v310_v21  ;;  %313 = vst [vmem:[%s2164_s30 + $0x40] sm:$0xf] %v312_v22  ;;  %v316_v24 = vld [vmem:[%s2159_s11 + $0x90] sm:$0xf] }
  0x40   : > { %315 = vst [vmem:[%s2164_s30 + $0x44] sm:$0xf] %v314_v23  ;;  %v318_v25 = vld [vmem:[%s2159_s11 + $0x98] sm:$0xf]  ;;  %v320_v26 = vld [vmem:[%s2159_s11 + $0xa0] sm:$0xf] }
  0x41   : > { %317 = vst [vmem:[%s2164_s30 + $0x48] sm:$0xf] %v316_v24  ;;  %319 = vst [vmem:[%s2164_s30 + $0x4c] sm:$0xf] %v318_v25  ;;  %v322_v27 = vld [vmem:[%s2159_s11 + $0xa8] sm:$0xf] }
  0x42   : > { %321 = vst [vmem:[%s2164_s30 + $0x50] sm:$0xf] %v320_v26  ;;  %v324_v28 = vld [vmem:[%s2159_s11 + $0xb0] sm:$0xf]  ;;  %v326_v29 = vld [vmem:[%s2159_s11 + $0xb8] sm:$0xf] }
  0x43   : > { %323 = vst [vmem:[%s2164_s30 + $0x54] sm:$0xf] %v322_v27  ;;  %325 = vst [vmem:[%s2164_s30 + $0x58] sm:$0xf] %v324_v28  ;;  %v328_v30 = vld [vmem:[%s2159_s11 + $0xc0] sm:$0xf] }
  0x44   : > { %327 = vst [vmem:[%s2164_s30 + $0x5c] sm:$0xf] %v326_v29  ;;  %v330_v31 = vld [vmem:[%s2159_s11 + $0xc8] sm:$0xf]  ;;  %v332_v32 = vld [vmem:[%s2159_s11 + $0xd0] sm:$0xf] }
  0x45   : > { %329 = vst [vmem:[%s2164_s30 + $0x60] sm:$0xf] %v328_v30  ;;  %331 = vst [vmem:[%s2164_s30 + $0x64] sm:$0xf] %v330_v31  ;;  %v334_v33 = vld [vmem:[%s2159_s11 + $0xd8] sm:$0xf] }
  0x46   : > { %333 = vst [vmem:[%s2164_s30 + $0x68] sm:$0xf] %v332_v32  ;;  %v336_v34 = vld [vmem:[%s2159_s11 + $0xe0] sm:$0xf]  ;;  %v338_v35 = vld [vmem:[%s2159_s11 + $0xe8] sm:$0xf] }
  0x47   : > { %335 = vst [vmem:[%s2164_s30 + $0x6c] sm:$0xf] %v334_v33  ;;  %337 = vst [vmem:[%s2164_s30 + $0x70] sm:$0xf] %v336_v34  ;;  %v340_v36 = vld [vmem:[%s2159_s11 + $0xf0] sm:$0xf] }
  0x48   : > { %339 = vst [vmem:[%s2164_s30 + $0x74] sm:$0xf] %v338_v35  ;;  %v342_v37 = vld [vmem:[%s2159_s11 + $0xf8] sm:$0xf]  ;;  %v344_v38 = vld [vmem:[%s2159_s11 + $0x100] sm:$0xf] }
  0x49   : > { %341 = vst [vmem:[%s2164_s30 + $0x78] sm:$0xf] %v340_v36  ;;  %343 = vst [vmem:[%s2164_s30 + $0x7c] sm:$0xf] %v342_v37  ;;  %v346_v39 = vld [vmem:[%s2159_s11 + $0x108] sm:$0xf] }
  0x4a   : > { %345 = vst [vmem:[%s2164_s30 + $0x80] sm:$0xf] %v344_v38  ;;  %v348_v40 = vld [vmem:[%s2159_s11 + $0x110] sm:$0xf]  ;;  %v350_v41 = vld [vmem:[%s2159_s11 + $0x118] sm:$0xf] }
  0x4b   : > { %347 = vst [vmem:[%s2164_s30 + $0x84] sm:$0xf] %v346_v39  ;;  %349 = vst [vmem:[%s2164_s30 + $0x88] sm:$0xf] %v348_v40  ;;  %v352_v42 = vld [vmem:[%s2159_s11 + $0x120] sm:$0xf] }
  0x4c   : > { %351 = vst [vmem:[%s2164_s30 + $0x8c] sm:$0xf] %v350_v41  ;;  %v354_v43 = vld [vmem:[%s2159_s11 + $0x128] sm:$0xf]  ;;  %v356_v44 = vld [vmem:[%s2159_s11 + $0x130] sm:$0xf] }
  0x4d   : > { %353 = vst [vmem:[%s2164_s30 + $0x90] sm:$0xf] %v352_v42  ;;  %355 = vst [vmem:[%s2164_s30 + $0x94] sm:$0xf] %v354_v43  ;;  %v358_v45 = vld [vmem:[%s2159_s11 + $0x138] sm:$0xf] }
  0x4e   : > { %357 = vst [vmem:[%s2164_s30 + $0x98] sm:$0xf] %v356_v44  ;;  %v360_v46 = vld [vmem:[%s2159_s11 + $0x140] sm:$0xf]  ;;  %v362_v47 = vld [vmem:[%s2159_s11 + $0x148] sm:$0xf] }
  0x4f   : > { %359 = vst [vmem:[%s2164_s30 + $0x9c] sm:$0xf] %v358_v45  ;;  %361 = vst [vmem:[%s2164_s30 + $0xa0] sm:$0xf] %v360_v46  ;;  %v364_v48 = vld [vmem:[%s2159_s11 + $0x150] sm:$0xf] }
  0x50   : > { %363 = vst [vmem:[%s2164_s30 + $0xa4] sm:$0xf] %v362_v47  ;;  %v366_v49 = vld [vmem:[%s2159_s11 + $0x158] sm:$0xf]  ;;  %v368_v50 = vld [vmem:[%s2159_s11 + $0x160] sm:$0xf] }
  0x51   : > { %365 = vst [vmem:[%s2164_s30 + $0xa8] sm:$0xf] %v364_v48  ;;  %367 = vst [vmem:[%s2164_s30 + $0xac] sm:$0xf] %v366_v49  ;;  %v370_v51 = vld [vmem:[%s2159_s11 + $0x168] sm:$0xf] }
  0x52   : > { %369 = vst [vmem:[%s2164_s30 + $0xb0] sm:$0xf] %v368_v50  ;;  %v372_v52 = vld [vmem:[%s2159_s11 + $0x170] sm:$0xf]  ;;  %v374_v53 = vld [vmem:[%s2159_s11 + $0x178] sm:$0xf] }
  0x53   : > { %371 = vst [vmem:[%s2164_s30 + $0xb4] sm:$0xf] %v370_v51  ;;  %373 = vst [vmem:[%s2164_s30 + $0xb8] sm:$0xf] %v372_v52  ;;  %v376_v54 = vld [vmem:[%s2159_s11 + $0x180] sm:$0xf] }
  0x54   : > { %375 = vst [vmem:[%s2164_s30 + $0xbc] sm:$0xf] %v374_v53  ;;  %v378_v55 = vld [vmem:[%s2159_s11 + $0x188] sm:$0xf]  ;;  %v380_v56 = vld [vmem:[%s2159_s11 + $0x190] sm:$0xf] }
  0x55   : > { %377 = vst [vmem:[%s2164_s30 + $0xc0] sm:$0xf] %v376_v54  ;;  %379 = vst [vmem:[%s2164_s30 + $0xc4] sm:$0xf] %v378_v55  ;;  %v382_v57 = vld [vmem:[%s2159_s11 + $0x198] sm:$0xf] }
  0x56   : > { %381 = vst [vmem:[%s2164_s30 + $0xc8] sm:$0xf] %v380_v56  ;;  %v384_v58 = vld [vmem:[%s2159_s11 + $0x1a0] sm:$0xf]  ;;  %v386_v59 = vld [vmem:[%s2159_s11 + $0x1a8] sm:$0xf] }
  0x57   : > { %383 = vst [vmem:[%s2164_s30 + $0xcc] sm:$0xf] %v382_v57  ;;  %385 = vst [vmem:[%s2164_s30 + $0xd0] sm:$0xf] %v384_v58  ;;  %v388_v60 = vld [vmem:[%s2159_s11 + $0x1b0] sm:$0xf] }
  0x58   : > { %387 = vst [vmem:[%s2164_s30 + $0xd4] sm:$0xf] %v386_v59  ;;  %v390_v61 = vld [vmem:[%s2159_s11 + $0x1b8] sm:$0xf]  ;;  %v392_v62 = vld [vmem:[%s2159_s11 + $0x1c0] sm:$0xf] }
  0x59   : > { %389 = vst [vmem:[%s2164_s30 + $0xd8] sm:$0xf] %v388_v60  ;;  %391 = vst [vmem:[%s2164_s30 + $0xdc] sm:$0xf] %v390_v61  ;;  %v394_v63 = vld [vmem:[%s2159_s11 + $0x1c8] sm:$0xf] }
  0x5a   : > { %393 = vst [vmem:[%s2164_s30 + $0xe0] sm:$0xf] %v392_v62  ;;  %v396_v0 = vld [vmem:[%s2159_s11 + $0x1d0] sm:$0xf]  ;;  %v398_v1 = vld [vmem:[%s2159_s11 + $0x1d8] sm:$0xf] }
  0x5b   : > { %395 = vst [vmem:[%s2164_s30 + $0xe4] sm:$0xf] %v394_v63  ;;  %397 = vst [vmem:[%s2164_s30 + $0xe8] sm:$0xf] %v396_v0  ;;  %v400_v2 = vld [vmem:[%s2159_s11 + $0x1e0] sm:$0xf] }
  0x5c   : > { %399 = vst [vmem:[%s2164_s30 + $0xec] sm:$0xf] %v398_v1  ;;  %v402_v3 = vld [vmem:[%s2159_s11 + $0x1e8] sm:$0xf]  ;;  %v404_v4 = vld [vmem:[%s2159_s11 + $0x1f0] sm:$0xf] }
  0x5d   : > { %401 = vst [vmem:[%s2164_s30 + $0xf0] sm:$0xf] %v400_v2  ;;  %403 = vst [vmem:[%s2164_s30 + $0xf4] sm:$0xf] %v402_v3  ;;  %v406_v5 = vld [vmem:[%s2159_s11 + $0x1f8] sm:$0xf] }
  0x5e   : > { %405 = vst [vmem:[%s2164_s30 + $0xf8] sm:$0xf] %v404_v4  ;;  %v408_v6 = vld [vmem:[%s2159_s11 + $0x200] sm:$0xf]  ;;  %v410_v7 = vld [vmem:[%s2159_s11 + $0x208] sm:$0xf] }
  0x5f   : > { %407 = vst [vmem:[%s2164_s30 + $0xfc] sm:$0xf] %v406_v5  ;;  %409 = vst [vmem:[%s2164_s30 + $0x100] sm:$0xf] %v408_v6  ;;  %v412_v8 = vld [vmem:[%s2159_s11 + $0x210] sm:$0xf] }
  0x60   : > { %411 = vst [vmem:[%s2164_s30 + $0x104] sm:$0xf] %v410_v7  ;;  %v414_v9 = vld [vmem:[%s2159_s11 + $0x218] sm:$0xf]  ;;  %v416_v10 = vld [vmem:[%s2159_s11 + $0x220] sm:$0xf] }
  0x61   : > { %413 = vst [vmem:[%s2164_s30 + $0x108] sm:$0xf] %v412_v8  ;;  %415 = vst [vmem:[%s2164_s30 + $0x10c] sm:$0xf] %v414_v9  ;;  %v418_v11 = vld [vmem:[%s2159_s11 + $0x228] sm:$0xf] }
  0x62   : > { %417 = vst [vmem:[%s2164_s30 + $0x110] sm:$0xf] %v416_v10  ;;  %v420_v12 = vld [vmem:[%s2159_s11 + $0x230] sm:$0xf]  ;;  %v422_v13 = vld [vmem:[%s2159_s11 + $0x238] sm:$0xf] }
  0x63   : > { %419 = vst [vmem:[%s2164_s30 + $0x114] sm:$0xf] %v418_v11  ;;  %421 = vst [vmem:[%s2164_s30 + $0x118] sm:$0xf] %v420_v12  ;;  %v424_v14 = vld [vmem:[%s2159_s11 + $0x240] sm:$0xf] }
  0x64   : > { %423 = vst [vmem:[%s2164_s30 + $0x11c] sm:$0xf] %v422_v13  ;;  %v426_v15 = vld [vmem:[%s2159_s11 + $0x248] sm:$0xf]  ;;  %v428_v16 = vld [vmem:[%s2159_s11 + $0x250] sm:$0xf] }
  0x65   : > { %425 = vst [vmem:[%s2164_s30 + $0x120] sm:$0xf] %v424_v14  ;;  %427 = vst [vmem:[%s2164_s30 + $0x124] sm:$0xf] %v426_v15  ;;  %v430_v17 = vld [vmem:[%s2159_s11 + $0x258] sm:$0xf] }
  0x66   : > { %429 = vst [vmem:[%s2164_s30 + $0x128] sm:$0xf] %v428_v16  ;;  %v432_v18 = vld [vmem:[%s2159_s11 + $0x260] sm:$0xf]  ;;  %v434_v19 = vld [vmem:[%s2159_s11 + $0x268] sm:$0xf] }
  0x67   : > { %431 = vst [vmem:[%s2164_s30 + $0x12c] sm:$0xf] %v430_v17  ;;  %433 = vst [vmem:[%s2164_s30 + $0x130] sm:$0xf] %v432_v18  ;;  %v436_v20 = vld [vmem:[%s2159_s11 + $0x270] sm:$0xf] }
  0x68   : > { %435 = vst [vmem:[%s2164_s30 + $0x134] sm:$0xf] %v434_v19  ;;  %v438_v21 = vld [vmem:[%s2159_s11 + $0x278] sm:$0xf]  ;;  %v440_v22 = vld [vmem:[%s2159_s11 + $0x280] sm:$0xf] }
  0x69   : > { %437 = vst [vmem:[%s2164_s30 + $0x138] sm:$0xf] %v436_v20  ;;  %439 = vst [vmem:[%s2164_s30 + $0x13c] sm:$0xf] %v438_v21  ;;  %v442_v23 = vld [vmem:[%s2159_s11 + $0x288] sm:$0xf] }
  0x6a   : > { %441 = vst [vmem:[%s2164_s30 + $0x140] sm:$0xf] %v440_v22  ;;  %v444_v24 = vld [vmem:[%s2159_s11 + $0x290] sm:$0xf]  ;;  %v446_v25 = vld [vmem:[%s2159_s11 + $0x298] sm:$0xf] }
  0x6b   : > { %443 = vst [vmem:[%s2164_s30 + $0x144] sm:$0xf] %v442_v23  ;;  %445 = vst [vmem:[%s2164_s30 + $0x148] sm:$0xf] %v444_v24  ;;  %v448_v26 = vld [vmem:[%s2159_s11 + $0x2a0] sm:$0xf] }
  0x6c   : > { %447 = vst [vmem:[%s2164_s30 + $0x14c] sm:$0xf] %v446_v25  ;;  %v450_v27 = vld [vmem:[%s2159_s11 + $0x2a8] sm:$0xf]  ;;  %v452_v28 = vld [vmem:[%s2159_s11 + $0x2b0] sm:$0xf] }
  0x6d   : > { %449 = vst [vmem:[%s2164_s30 + $0x150] sm:$0xf] %v448_v26  ;;  %451 = vst [vmem:[%s2164_s30 + $0x154] sm:$0xf] %v450_v27  ;;  %v454_v29 = vld [vmem:[%s2159_s11 + $0x2b8] sm:$0xf] }
  0x6e   : > { %453 = vst [vmem:[%s2164_s30 + $0x158] sm:$0xf] %v452_v28  ;;  %v456_v30 = vld [vmem:[%s2159_s11 + $0x2c0] sm:$0xf]  ;;  %v458_v31 = vld [vmem:[%s2159_s11 + $0x2c8] sm:$0xf] }
  0x6f   : > { %455 = vst [vmem:[%s2164_s30 + $0x15c] sm:$0xf] %v454_v29  ;;  %457 = vst [vmem:[%s2164_s30 + $0x160] sm:$0xf] %v456_v30  ;;  %v460_v32 = vld [vmem:[%s2159_s11 + $0x2d0] sm:$0xf] }
  0x70   : > { %459 = vst [vmem:[%s2164_s30 + $0x164] sm:$0xf] %v458_v31  ;;  %v462_v33 = vld [vmem:[%s2159_s11 + $0x2d8] sm:$0xf]  ;;  %v464_v34 = vld [vmem:[%s2159_s11 + $0x2e0] sm:$0xf] }
  0x71   : > { %461 = vst [vmem:[%s2164_s30 + $0x168] sm:$0xf] %v460_v32  ;;  %463 = vst [vmem:[%s2164_s30 + $0x16c] sm:$0xf] %v462_v33  ;;  %v466_v35 = vld [vmem:[%s2159_s11 + $0x2e8] sm:$0xf] }
  0x72   : > { %465 = vst [vmem:[%s2164_s30 + $0x170] sm:$0xf] %v464_v34  ;;  %v468_v36 = vld [vmem:[%s2159_s11 + $0x2f0] sm:$0xf]  ;;  %v470_v37 = vld [vmem:[%s2159_s11 + $0x2f8] sm:$0xf] }
  0x73   : > { %467 = vst [vmem:[%s2164_s30 + $0x174] sm:$0xf] %v466_v35  ;;  %469 = vst [vmem:[%s2164_s30 + $0x178] sm:$0xf] %v468_v36 }
  0x74   : > { %471 = vst [vmem:[%s2164_s30 + $0x17c] sm:$0xf] %v470_v37 }
  0x75 PF: > { %698 = sbr.rel (!%p2135_p11) target bundleno = 124 (0x7c), region = 92  ;;  %s700_s0 = sand.u32 (%p2135_p11), 1, %s1966_s19  }
  0x76   : > { %s1619_s14 = sshll.u32 (%p2135_p11), %s1998_s27, 2  ;;  %s1618_s29 = sshll.u32 (%p2135_p11), %s700_s0, 3 }
  0x77   : > { %s707_s10 = scalar_lea.vmem (%p2135_p11), %s2503_s4, %s1619_s14  ;;  %s702_s12 = scalar_lea.vmem (%p2135_p11), [#allocation5], %s1618_s29 }
  0x78   : > { %v723_v38 = vld [vmem:[%s707_s10] sm:$0xf] (%p2135_p11)  ;;  %v725_v39 = vld [vmem:[%s707_s10 + $0x8] sm:$0xf] (%p2135_p11) }
  0x79   : > { %724 = vst [vmem:[%s702_s12] sm:$0xf] (%p2135_p11), %v723_v38  ;;  %726 = vst [vmem:[%s702_s12 + $0x4] sm:$0xf] (%p2135_p11), %v725_v39 }
  0x7c PF: > { %p1620_p1 = scmp.ge.s32.totalorder %s2002_s28, 1  ;;  %p752_p2 = scmp.lt.s32.totalorder %s2002_s28, 7 }
  0x7e   : > { %p753_p3 = pnand %p1620_p1, %p752_p2 }
  0x7f   : > { %s759_s11 = sand.u32 (!%p753_p3), 1, %s1978_s22   ;;  %s766_s7 = sand.u32 (!%p753_p3), 1, %s1970_s20  }
  0x80   : > { %756 = sbr.rel (%p753_p3) target bundleno = 457 (0x1c9), region = 133  ;;  %s773_s15 = sand.u32 (!%p753_p3), 1, %s1962_s18  }
  0x81   : > { %s1768_s13 = smul.u32 (!%p753_p3), 48, %s759_s11  ;;  %s2367_s0 = sshll.u32 (!%p753_p3), %s773_s15, 3 }
  0x82   : > { %s1769_s30 = smul.u32 (!%p753_p3), 384, %s766_s7  ;;  %p816_p4 = scmp.lt.s32.totalorder (!%p753_p3), %s1990_s25, 1 }
  0x83   : > { %s2381_s22 = scalar_lea.vmem (!%p753_p3), [#allocation3], %s1768_s13  ;;  %s775_s11 = scalar_lea.vmem (!%p753_p3), [#allocation5], %s2367_s0 }
  0x84   : > { %s2383_s18 = scalar_lea.vmem (!%p753_p3), [#allocation4], %s1769_s30  ;;  %s2387_s7 = scalar_lea.vmem (!%p753_p3), [#allocation6], %s2367_s0 }
  0x85   : > { %p1623_p5 = scmp.ne.s32.totalorder (!%p753_p3), %s1986_s24, 0 }
  0x87   : > { %s2371_s14 = scalar_select %p816_p4, %s1990_s25, 1 }
  0x88   : > { %828 = sbr.rel (%p1623_p5) target bundleno = 143 (0x8f), region = 149  ;;  %v2004_v40 = vmov (!%p1623_p5), 0.0  }
  0x89   : > { %s818_s9 = scalar_lea.vmem %s2501_s2, %s2371_s14  ;;  %s821_s20 = scalar_lea.vmem %s2502_s3, %s2371_s14  ;;  %829 = vst [vmem:[#allocation2] sm:$0xff] (!%p1623_p5), %v2004_v40  ;;  %830 = vst [vmem:[#allocation2 + $0x8] sm:$0xff] (!%p1623_p5), %v2004_v40 }
  0x8f PF: > { %v1859_v41 = vld [vmem:[%s2383_s18 + $0x40] sm:$0xff]   ;;  %v1863_v45 = vld [vmem:[%s2383_s18 + $0x48] sm:$0xff]   ;;  %v1867_v49 = vld [vmem:[%s2383_s18 + $0x50] sm:$0xff]   ;;  %p1678_p6 = scmp.ne.s32.totalorder %s1986_s24, 2 }
  0x90   : > { %v1860_v42 = vld [vmem:[%s2383_s18 + $0xc0] sm:$0xff]   ;;  %1700 = vmatprep.subr.bf16.mxu0 %v1859_v41  ;;  %v1864_v46 = vld [vmem:[%s2383_s18 + $0xc8] sm:$0xff]   ;;  %v1868_v50 = vld [vmem:[%s2383_s18 + $0xd0] sm:$0xff]  }
  0x91   : > { %v1861_v43 = vld [vmem:[%s2383_s18] sm:$0xff]   ;;  %1722 = vmatprep.subr.bf16.mxu1 %v1860_v42  ;;  %v1865_v47 = vld [vmem:[%s2383_s18 + $0x8] sm:$0xff]   ;;  %v1869_v51 = vld [vmem:[%s2383_s18 + $0x10] sm:$0xff]  }
  0x92   : > { %v1862_v44 = vld [vmem:[%s2383_s18 + $0x80] sm:$0xff]   ;;  %1701 = vmatpush3.bf16.msra.mxu0 %v1861_v43  ;;  %v1866_v48 = vld [vmem:[%s2383_s18 + $0x88] sm:$0xff]   ;;  %v1870_v52 = vld [vmem:[%s2383_s18 + $0x90] sm:$0xff]  }
  0x93   : > { %1723 = vmatpush3.bf16.msra.mxu1 %v1862_v44  ;;  %1702 = vmatprep.subr.bf16.mxu0 %v1863_v45  ;;  %v1871_v53 = vld [vmem:[%s2383_s18 + $0x58] sm:$0xff]   ;;  %v1875_v57 = vld [vmem:[%s2383_s18 + $0x60] sm:$0xff]   ;;  %v1879_v61 = vld [vmem:[%s2383_s18 + $0x68] sm:$0xff]  }
  0x94   : > { %1724 = vmatprep.subr.bf16.mxu1 %v1864_v46  ;;  %v1872_v54 = vld [vmem:[%s2383_s18 + $0xd8] sm:$0xff]   ;;  %v1876_v58 = vld [vmem:[%s2383_s18 + $0xe0] sm:$0xff]   ;;  %v1880_v62 = vld [vmem:[%s2383_s18 + $0xe8] sm:$0xff]  }
  0x95   : > { %v1873_v55 = vld [vmem:[%s2383_s18 + $0x18] sm:$0xff]   ;;  %v1877_v59 = vld [vmem:[%s2383_s18 + $0x20] sm:$0xff]   ;;  %v1881_v63 = vld [vmem:[%s2383_s18 + $0x28] sm:$0xff]  }
  0x96   : > { %1703 = vmatpush3.bf16.msra.mxu0 %v1865_v47  ;;  %v1874_v56 = vld [vmem:[%s2383_s18 + $0x98] sm:$0xff]   ;;  %v1878_v60 = vld [vmem:[%s2383_s18 + $0xa0] sm:$0xff]   ;;  %v1882_v0 = vld [vmem:[%s2383_s18 + $0xa8] sm:$0xff]  }
  0x97   : > { %1725 = vmatpush3.bf16.msra.mxu1 %v1866_v48  ;;  %1704 = vmatprep.subr.bf16.mxu0 %v1867_v49  ;;  %v1883_v1 = vld [vmem:[%s2383_s18 + $0x70] sm:$0xff]   ;;  %v1887_v5 = vld [vmem:[%s2383_s18 + $0x78] sm:$0xff]   ;;  %v1897_v13 = vld [vmem:[%s2383_s18 + $0x140] sm:$0xff]  }
  0x98   : > { %1726 = vmatprep.subr.bf16.mxu1 %v1868_v50  ;;  %v1884_v2 = vld [vmem:[%s2383_s18 + $0xf0] sm:$0xff]   ;;  %v1888_v6 = vld [vmem:[%s2383_s18 + $0xf8] sm:$0xff]   ;;  %v1898_v14 = vld [vmem:[%s2383_s18 + $0x100] sm:$0xff]  }
  0x99   : > { %v1885_v3 = vld [vmem:[%s2383_s18 + $0x30] sm:$0xff]   ;;  %v1889_v7 = vld [vmem:[%s2383_s18 + $0x38] sm:$0xff]   ;;  %v1899_v15 = vld [vmem:[%s2383_s18 + $0x148] sm:$0xff]  }
  0x9a   : > { %1705 = vmatpush3.bf16.msra.mxu0 %v1869_v51  ;;  %v1886_v4 = vld [vmem:[%s2383_s18 + $0xb0] sm:$0xff]   ;;  %v1890_v8 = vld [vmem:[%s2383_s18 + $0xb8] sm:$0xff]   ;;  %v1900_v16 = vld [vmem:[%s2383_s18 + $0x108] sm:$0xff]  }
  0x9b   : > { %1727 = vmatpush3.bf16.msra.mxu1 %v1870_v52  ;;  %1706 = vmatprep.subr.bf16.mxu0 %v1871_v53  ;;  %v1891_v9 = vld [vmem:[%s2381_s22] ss:$24 sps:$4 sm:$0xff]   ;;  %v1893_v10 = vld [vmem:[%s2381_s22 + $0x4] ss:$24 sps:$4 sm:$0xff]   ;;  %v1915_v24 = vld [vmem:[%s2381_s22 + $0x14] ss:$24 sps:$4 sm:$0xff]  }
  0x9c   : > { %1728 = vmatprep.subr.bf16.mxu1 %v1872_v54  ;;  %v1894_v11 = vld [vmem:[%s2381_s22 + $0x8] ss:$24 sps:$4 sm:$0xff]   ;;  %v1896_v12 = vld [vmem:[%s2381_s22 + $0xc] ss:$24 sps:$4 sm:$0xff]   ;;  %1285 = vmatprep.mubr.bf16.mxu0 %v1893_v10 }
  0x9d   : > { %1326 = vmatprep.mubr.bf16.mxu1 %v1896_v12  ;;  %v1901_v17 = vld [vmem:[%s2383_s18 + $0x150] sm:$0xff]   ;;  %v1903_v19 = vld [vmem:[%s2383_s18 + $0x158] sm:$0xff]   ;;  %v1905_v21 = vld [vmem:[%s2383_s18 + $0x160] sm:$0xff]  }
  0x9e   : > { %1707 = vmatpush3.bf16.msra.mxu0 %v1873_v55  ;;  %v1902_v18 = vld [vmem:[%s2383_s18 + $0x110] sm:$0xff]   ;;  %v1904_v20 = vld [vmem:[%s2383_s18 + $0x118] sm:$0xff]   ;;  %v1906_v22 = vld [vmem:[%s2383_s18 + $0x120] sm:$0xff]  }
  0x9f   : > { %1729 = vmatpush3.bf16.msra.mxu1 %v1874_v56  ;;  %1708 = vmatprep.subr.bf16.mxu0 %v1875_v57  ;;  %v1907_v23 = vld [vmem:[%s2383_s18 + $0x168] sm:$0xff]   ;;  %v1909_v26 = vld [vmem:[%s2383_s18 + $0x170] sm:$0xff]   ;;  %v1911_v28 = vld [vmem:[%s2383_s18 + $0x178] sm:$0xff]  }
  0xa0   : > { %1730 = vmatprep.subr.bf16.mxu1 %v1876_v58  ;;  %v1908_v25 = vld [vmem:[%s2383_s18 + $0x128] sm:$0xff]   ;;  %v1910_v27 = vld [vmem:[%s2383_s18 + $0x130] sm:$0xff]   ;;  %v1912_v29 = vld [vmem:[%s2383_s18 + $0x138] sm:$0xff]  }
  0xa1   : > { %v1913_v30 = vld [vmem:[%s2381_s22 + $0x10] ss:$24 sps:$4 sm:$0xff]  }
  0xa2   : > { %1709 = vmatpush3.bf16.msra.mxu0 %v1877_v59  ;;  %v831_v49 = vld [vmem:[#allocation2] sm:$0xff]  ;;  %v832_v53 = vld [vmem:[#allocation2 + $0x8] sm:$0xff] }
  0xa3   : > { %1731 = vmatpush3.bf16.msra.mxu1 %v1878_v60  ;;  %1710 = vmatprep.subr.bf16.mxu0 %v1879_v61  ;;  %v1679_v59 = vld [vmem:[%s818_s9] ss:$0 sm:$0xff] (!%p1678_p6) }
  0xa4   : > { %1732 = vmatprep.subr.bf16.mxu1 %v1880_v62  ;;  %v1680_v62 = vld [vmem:[%s821_s20] ss:$0 sm:$0xff] (!%p1678_p6) }
  0xa6   : > { %1711 = vmatpush3.bf16.msra.mxu0 %v1881_v63  ;;  %v1692_v63 = vld [vmem:[%s775_s11] sm:$0xff] (!%p1678_p6)  }
  0xa7   : > { %1733 = vmatpush3.bf16.msra.mxu1 %v1882_v0  ;;  %1712 = vmatprep.subr.bf16.mxu0 %v1883_v1  ;;  %v1693_v0 = vunpack.c.l.bf16 (!%p1678_p6), %v1692_v63  ;;  %v1694_v1 = vunpack.c.h.bf16 (!%p1678_p6), %v1692_v63 }
  0xa8   : > { %1734 = vmatprep.subr.bf16.mxu1 %v1884_v2 }
  0xaa   : > { %1713 = vmatpush3.bf16.msra.mxu0 %v1885_v3 }
  0xab   : > { %1735 = vmatpush3.bf16.msra.mxu1 %v1886_v4  ;;  %1714 = vmatprep.subr.bf16.mxu0 %v1887_v5 }
  0xac   : > { %1736 = vmatprep.subr.bf16.mxu1 %v1888_v6 }
  0xae   : > { %1715 = vmatpush3.bf16.msra.mxu0 %v1889_v7 }
  0xaf   : > { %1737 = vmatpush3.bf16.msra.mxu1 %v1890_v8  ;;  %1744 = vmatprep.subr.bf16.mxu0 %v1897_v13 }
  0xb1   : > { %1286 = vmatmul.mubr.bf16.vlgmr.msra.gmra.mrb[0].mxu0 %v1891_v9 }
  0xb2   : > { %1327 = vmatmul.mubr.bf16.vlgmr.msra.gmra.mrb[0].mxu1 %v1894_v11  ;;  %1745 = vmatpush3.bf16.msra.mxu0 %v1898_v14 }
  0xb3   : > { %1746 = vmatprep.subr.bf16.mxu0 %v1899_v15  ;;  %1367 = vmatprep.mubr.bf16.mxu0 %v1915_v24 }
  0xb6   : > { %1747 = vmatpush3.bf16.msra.mxu0 %v1900_v16 }
  0xb7   : > { %1748 = vmatprep.subr.bf16.mxu0 %v1901_v17 }
  0xba   : > { %1749 = vmatpush3.bf16.msra.mxu0 %v1902_v18 }
  0xbb   : > { %1750 = vmatprep.subr.bf16.mxu0 %v1903_v19 }
  0xbe   : > { %1751 = vmatpush3.bf16.msra.mxu0 %v1904_v20 }
  0xbf   : > { %1752 = vmatprep.subr.bf16.mxu0 %v1905_v21 }
  0xc2   : > { %1753 = vmatpush3.bf16.msra.mxu0 %v1906_v22 }
  0xc3   : > { %1754 = vmatprep.subr.bf16.mxu0 %v1907_v23 }
  0xc6   : > { %1755 = vmatpush3.bf16.msra.mxu0 %v1908_v25 }
  0xc7   : > { %1756 = vmatprep.subr.bf16.mxu0 %v1909_v26 }
  0xca   : > { %1757 = vmatpush3.bf16.msra.mxu0 %v1910_v27 }
  0xcb   : > { %1758 = vmatprep.subr.bf16.mxu0 %v1911_v28 }
  0xce   : > { %1759 = vmatpush3.bf16.msra.mxu0 %v1912_v29 }
  0xd1   : > { %1368 = vmatmul.mubr.bf16.vlgmr.msra.gmra.mrb[4].mxu0 %v1913_v30 }
 0x184   : > { %v1716_v31 = vpop.f32.mrb[0].mxu0 }
 0x185   : > { %v1738_v32 = vpop.f32.mrb[0].mxu1  ;;  %v1717_v33 = vpop.f32.mrb[1].mxu0 }
 0x186   : > { %v1718_v34 = vadd.f32 %v1717_v33, %v1716_v31  ;;  %v1739_v35 = vpop.f32.mrb[1].mxu1  ;;  %v1719_v36 = vpop.f32.mrb[2].mxu0 }
 0x187   : > { %v1740_v37 = vadd.f32 %v1739_v35, %v1738_v32  ;;  %v1741_v38 = vpop.f32.mrb[2].mxu1  ;;  %v1720_v39 = vpop.f32.mrb[3].mxu0 }
 0x188   : > { %v1721_v40 = vadd.f32 %v1720_v39, %v1719_v36  ;;  %v1742_v41 = vpop.f32.mrb[3].mxu1 }
 0x189   : > { %v1329_v42 = vadd.f32 %v1740_v37, %v1718_v34  ;;  %v1743_v43 = vadd.f32 %v1742_v41, %v1741_v38 }
 0x18b   : > { %v1332_v44 = vadd.f32 %v1743_v43, %v1721_v40 }
 0x1a4   : > { %v1760_v45 = vpop.f32.mrb[4].mxu0 }
 0x1a5   : > { %v1761_v46 = vpop.f32.mrb[5].mxu0 }
 0x1a6   : > { %v1762_v47 = vadd.f32 %v1761_v46, %v1760_v45  ;;  %v1763_v48 = vpop.f32.mrb[6].mxu0 }
 0x1a7   : > { %v1764_v50 = vpop.f32.mrb[7].mxu0 }
 0x1a8   : > { %v1370_v51 = vadd.f32 %v1762_v47, %v1329_v42  ;;  %v1765_v52 = vadd.f32 %v1764_v50, %v1763_v48  ;;  %1383 = sbr.rel (%p1678_p6) target bundleno = 449 (0x1c1), region = 153 }
 0x1aa   : > { %v1376_v54 = vadd.f32 %v1370_v51, %v831_v49  ;;  %v1373_v55 = vadd.f32 %v1765_v52, %v1332_v44 }
 0x1ac   : > { %1378 = vst [vmem:[#allocation2] sm:$0xff] %v1376_v54  ;;  %v1377_v56 = vadd.f32 %v1373_v55, %v832_v53 }
 0x1ae   : > { %1379 = vst [vmem:[#allocation2 + $0x8] sm:$0xff] %v1377_v56 }
 0x1b3   : > { %v1384_v57 = vld [vmem:[#allocation2] sm:$0xff] }
 0x1b4   : > { %v1393_v60 = vmul.f32 %v1679_v59, %v1384_v57 }
 0x1b5   : > { %v1385_v58 = vld [vmem:[#allocation2 + $0x8] sm:$0xff] }
 0x1b6   : > { %v1394_v61 = vmul.f32 %v1679_v59, %v1385_v58  ;;  %v1402_v2 = vadd.f32 %v1680_v62, %v1393_v60 }
 0x1b8   : > { %v1403_v3 = vadd.f32 %v1680_v62, %v1394_v61  ;;  %v1408_v4 = vadd.f32 %v1693_v0, %v1402_v2 }
 0x1ba   : > { %v1409_v5 = vadd.f32 %v1694_v1, %v1403_v3  ;;  %v1410_v6 = vmax.f32 %v1408_v4, 0.0 }
 0x1bc   : > { %v1411_v7 = vmax.f32 %v1409_v5, 0.0 }
 0x1be   : > { %v1698_v8 = vpack.c.bf16 %v1411_v7, %v1410_v6 }
 0x1c0   : > { %1699 = vst [vmem:[%s2387_s7] sm:$0xff] %v1698_v8  }
 0x1c1 PF: > { %1428 = sbr.rel (!%p2139_p13) target bundleno = 457 (0x1c9), region = 157  ;;  %s1684_s24 = sshll.u32 (%p2139_p13), %s1990_s25, 2 }
 0x1c2   : > { %s1433_s6 = scalar_lea.vmem (%p2139_p13), %s2504_s5, %s1684_s24 }
 0x1c7   : > { %v1449_v9 = vld [vmem:[%s2387_s7] sm:$0xf] (%p2139_p13)  ;;  %v1451_v10 = vld [vmem:[%s2387_s7 + $0x4] sm:$0xf] (%p2139_p13) }
 0x1c8   : > { %1450 = vst [vmem:[%s1433_s6] sm:$0xf] %v1449_v9  ;;  %1452 = vst [vmem:[%s1433_s6 + $0x8] sm:$0xf] %v1451_v10 }
 0x1c9 PF: > { %s15_s28 = sadd.s32 1, %s2002_s28   ;;  %s2516_s8 = sld [smem:[#allocation9_spill]] }
 0x1ca   : > { %p12_p7 = scmp.ge.s32.totalorder %s15_s28, 8   ;;  %s2517_s9 = sld [smem:[#allocation7_spill]] }
 0x1cb   : > { %s2518_s10 = sld [smem:[#allocation8_spill]]  ;;  %s2519_s18 = smov %s1966_s19 }
 0x1cc   : > { %s2520_s19 = smov %s2131_s17  ;;  %s2521_s20 = smov %s1974_s21 }
 0x1cd   : > { %s2522_s21 = smov %s2128_s16  ;;  %s2523_s22 = smov %s1982_s23 }
 0x1ce   : > { %s2525_s24 = smov %s1994_s26  ;;  %s2526_s25 = smov %s1998_s27 }
 0x1cf   : > { %s2524_s23 = smov %s2516_s8  ;;  %14 = sbr.rel (!%p12_p7) target bundleno = 8 (0x8), region = 251 }
 0x1d0   : > { %s2527_s26 = smov %s2517_s9 }
 0x1d1   : > { %s2528_s27 = smov %s2518_s10 }

// kernel: resnet34_features.58
= control target key start
LH: loop header
LB: loop body
LE: loop exit
PB: predicated region body
PF: predicated region fallthrough
CT: control target
= control target key end

     0   :  { %s2340_s0 = inlined_call_operand.vmem [shape: bf16[16,2304], index: 0, kind: input, shape index: {}]   ;;  %s2341_s1 = inlined_call_operand.vmem [shape: bf16[2304,256], index: 1, kind: input, shape index: {}]   ;;  %s2342_s2 = inlined_call_operand.vmem [shape: f32[1,256], index: 2, kind: input, shape index: {}]   ;;  %s2343_s3 = inlined_call_operand.vmem [shape: f32[1,256], index: 3, kind: input, shape index: {}]   ;;  %s2344_s4 = inlined_call_operand.vmem [shape: bf16[16,256], index: 4, kind: output, shape index: {}]  }
   0x1   :  { %2348 = sst [smem:[#allocation9_spill]] %s2340_s0 }
   0x2   :  { %2349 = sst [smem:[#allocation10_spill]] %s2341_s1 }
   0x3   :  { %s1899_s15 = smov 0   ;;  %s1901_s16 = smov 0  }
   0x4   :  { %s1903_s17 = smov 0   ;;  %s1905_s18 = smov 0  }
   0x5   :  { %s1907_s19 = smov 0   ;;  %s1909_s20 = smov 0  }
   0x6   :  { %s1911_s21 = smov 0   ;;  %s1913_s22 = smov 0  }
   0x7   :  { %s1915_s23 = smov 0   ;;  %s1917_s24 = smov 0  }
   0x8   :  { %s1919_s25 = smov 0  }
   0x9 LB: > { %2350 = sst [smem:[#allocation6_spill]] %s1867_s24  ;;  %s1487_s26 = sadd.s32 4294967295, %s1871_s25   ;;  %s1871_s25 = sphi %s1919_s25, %s14_s25   ;;  %s1867_s24 = sphi %s1917_s24, %s2360_s24   ;;  %s1863_s23 = sphi %s1915_s23, %s2368_s23   ;;  %s1859_s22 = sphi %s1913_s22, %s2358_s22   ;;  %s1855_s21 = sphi %s1911_s21, %s2367_s21   ;;  %s1851_s20 = sphi %s1909_s20, %s2366_s20   ;;  %s1847_s19 = sphi %s1907_s19, %s2365_s19   ;;  %s1843_s18 = sphi %s1905_s18, %s2364_s18   ;;  %s1839_s17 = sphi %s1903_s17, %s2363_s17   ;;  %s1835_s16 = sphi %s1901_s16, %s2362_s16   ;;  %s1831_s15 = sphi %s1899_s15, %s2361_s15  }
   0xa   : > { %s26_s27 = sadd.s32 1, %s1863_s23  ;;  %s29_s28 = sadd.s32 1, %s1867_s24 }
   0xb   : > { %p27_p0 = scmp.ge.s32.totalorder %s26_s27, 3  ;;  %s42_s29 = sadd.s32 1, %s1851_s20 }
   0xc   : > { %p49_p1 = scmp.ne.s32.totalorder %s1851_s20, %s1847_s19  ;;  %p50_p2 = scmp.eq.s32.totalorder %s1871_s25, 0 }
   0xd   : > { %s2370_s27 = smov (%p27_p0, %s26_s27), 0  ;;  %s2372_s28 = smov (!%p27_p0, %s29_s28), %s1867_s24 }
   0xe   : > { %2351 = sst [smem:[#allocation7_spill]] %s2370_s27  ;;  %s38_s30 = ssub.s32 %s1863_s23, %s2370_s27 }
   0xf   : > { %p31_p3 = scmp.ge.s32.totalorder %s2372_s28, 2  ;;  %p40_p4 = scmp.eq.s32.totalorder %s38_s30, 0 }
  0x10   : > { %p1966_p5 = por %p50_p2, %p49_p1  ;;  %s70_s6 = sadd.s32 1, %s1843_s18 }
  0x11   : > { %s2374_s28 = smov (%p31_p3, %s2372_s28), 0  ;;  %p77_p6 = scmp.ne.s32.totalorder %s1843_s18, %s1839_s17 }
  0x12   : > { %2353 = sst [smem:[#allocation8_spill]] %s2374_s28  ;;  %s66_s8 = ssub.s32 %s1867_s24, %s2374_s28 }
  0x13   : > { %s1974_s7 = scalar_select %p40_p4, %s1851_s20, %s42_s29  }
  0x14   : > { %s67_s9 = sor.u32 %s66_s8, %s38_s30  ;;  %p148_p7 = scmp.eq.s32.totalorder %s66_s8, 0 }
  0x15   : > { %p68_p8 = scmp.eq.s32.totalorder %s67_s9, 0  ;;  %p1980_p9 = por %p77_p6, %p50_p2 }
  0x16   : > { %s150_s11 = sadd.s32 1, %s1835_s16  ;;  %p160_p10 = scmp.ne.s32.totalorder %s1835_s16, %s1831_s15 }
  0x17   : > { %s1988_s12 = scalar_select %p68_p8, %s1843_s18, %s70_s6  }
  0x18   : > { %s1991_s13 = scalar_select %p148_p7, %s1835_s16, %s150_s11  }
  0x19   : > { %p161_p11 = scmp.eq.s32.totalorder %s1487_s26, 5  ;;  %p1490_p13 = scmp.ge.s32.totalorder %s1871_s25, 6 }
  0x1b   : > { %p1993_p12 = por %p161_p11, %p160_p10  ;;  %183 = sbr.rel (%p1490_p13) target bundleno = 119 (0x77), region = 16 }
  0x22   : > { %186 = sbr.rel (!%p1966_p5) target bundleno = 46 (0x2e), region = 20  ;;  %s188_s29 = sand.u32 (%p1966_p5), 1, %s1851_s20  }
  0x23   : > { %s1560_s30 = smul.u32 (%p1966_p5), 24, %s1863_s23  ;;  %s2356_s0 = sld [smem:[#allocation9_spill]] (%p1966_p5) }
  0x24   : > { %s1635_s8 = smul.u32 (%p1966_p5), 48, %s188_s29 }
  0x26   : > { %s190_s26 = scalar_lea.vmem (%p1966_p5), [#allocation3], %s1635_s8 }
  0x29   : > { %s196_s11 = scalar_lea.vmem %s2356_s0, %s1560_s30 }
  0x2a   : > { %v209_v0 = vld [vmem:[%s196_s11] sm:$0xff]  ;;  %v211_v1 = vld [vmem:[%s196_s11 + $0x8] sm:$0xff]  ;;  %v213_v2 = vld [vmem:[%s196_s11 + $0x10] sm:$0xff] }
  0x2b   : > { %210 = vst [vmem:[%s190_s26] sm:$0xff] %v209_v0  ;;  %212 = vst [vmem:[%s190_s26 + $0x8] sm:$0xff] %v211_v1  ;;  %v215_v3 = vld [vmem:[%s196_s11 + $0x48] sm:$0xff]  ;;  %v217_v4 = vld [vmem:[%s196_s11 + $0x50] sm:$0xff] }
  0x2c   : > { %214 = vst [vmem:[%s190_s26 + $0x10] sm:$0xff] %v213_v2  ;;  %v219_v5 = vld [vmem:[%s196_s11 + $0x58] sm:$0xff]  ;;  %216 = vst [vmem:[%s190_s26 + $0x18] sm:$0xff] %v215_v3 }
  0x2d   : > { %218 = vst [vmem:[%s190_s26 + $0x20] sm:$0xff] %v217_v4  ;;  %220 = vst [vmem:[%s190_s26 + $0x28] sm:$0xff] %v219_v5 }
  0x2e PF: > { %226 = sbr.rel (!%p1980_p9) target bundleno = 119 (0x77), region = 43  ;;  %s228_s5 = sand.u32 (%p1980_p9), 1, %s1843_s18  }
  0x2f   : > { %s1561_s29 = smul.u32 (%p1980_p9), 192, %s1863_s23  ;;  %s2357_s1 = sld [smem:[#allocation10_spill]] (%p1980_p9) }
  0x30   : > { %s1636_s30 = smul.u32 (%p1980_p9), 384, %s228_s5 }
  0x31   : > { %s233_s8 = sadd.s32 (%p1980_p9), %s1867_s24, %s1561_s29 }
  0x32   : > { %s1493_s6 = sshll.u32 (%p1980_p9), %s233_s8, 2  ;;  %s2018_s10 = scalar_lea.vmem (%p1980_p9), [#allocation4], %s1636_s30 }
  0x35   : > { %s2013_s28 = scalar_lea.vmem %s2357_s1, %s1493_s6 }
  0x36   : > { %v251_v6 = vld [vmem:[%s2013_s28] sm:$0xf]  ;;  %v253_v7 = vld [vmem:[%s2013_s28 + $0x8] sm:$0xf]  ;;  %v255_v8 = vld [vmem:[%s2013_s28 + $0x10] sm:$0xf] }
  0x37   : > { %252 = vst [vmem:[%s2018_s10] sm:$0xf] %v251_v6  ;;  %254 = vst [vmem:[%s2018_s10 + $0x4] sm:$0xf] %v253_v7  ;;  %v257_v9 = vld [vmem:[%s2013_s28 + $0x18] sm:$0xf] }
  0x38   : > { %256 = vst [vmem:[%s2018_s10 + $0x8] sm:$0xf] %v255_v8  ;;  %v259_v10 = vld [vmem:[%s2013_s28 + $0x20] sm:$0xf]  ;;  %v261_v11 = vld [vmem:[%s2013_s28 + $0x28] sm:$0xf] }
  0x39   : > { %258 = vst [vmem:[%s2018_s10 + $0xc] sm:$0xf] %v257_v9  ;;  %260 = vst [vmem:[%s2018_s10 + $0x10] sm:$0xf] %v259_v10  ;;  %v263_v12 = vld [vmem:[%s2013_s28 + $0x30] sm:$0xf] }
  0x3a   : > { %262 = vst [vmem:[%s2018_s10 + $0x14] sm:$0xf] %v261_v11  ;;  %v265_v13 = vld [vmem:[%s2013_s28 + $0x38] sm:$0xf]  ;;  %v267_v14 = vld [vmem:[%s2013_s28 + $0x40] sm:$0xf] }
  0x3b   : > { %264 = vst [vmem:[%s2018_s10 + $0x18] sm:$0xf] %v263_v12  ;;  %266 = vst [vmem:[%s2018_s10 + $0x1c] sm:$0xf] %v265_v13  ;;  %v269_v15 = vld [vmem:[%s2013_s28 + $0x48] sm:$0xf] }
  0x3c   : > { %268 = vst [vmem:[%s2018_s10 + $0x20] sm:$0xf] %v267_v14  ;;  %v271_v16 = vld [vmem:[%s2013_s28 + $0x50] sm:$0xf]  ;;  %v273_v17 = vld [vmem:[%s2013_s28 + $0x58] sm:$0xf] }
  0x3d   : > { %270 = vst [vmem:[%s2018_s10 + $0x24] sm:$0xf] %v269_v15  ;;  %272 = vst [vmem:[%s2018_s10 + $0x28] sm:$0xf] %v271_v16  ;;  %v275_v18 = vld [vmem:[%s2013_s28 + $0x60] sm:$0xf] }
  0x3e   : > { %274 = vst [vmem:[%s2018_s10 + $0x2c] sm:$0xf] %v273_v17  ;;  %v277_v19 = vld [vmem:[%s2013_s28 + $0x68] sm:$0xf]  ;;  %v279_v20 = vld [vmem:[%s2013_s28 + $0x70] sm:$0xf] }
  0x3f   : > { %276 = vst [vmem:[%s2018_s10 + $0x30] sm:$0xf] %v275_v18  ;;  %278 = vst [vmem:[%s2018_s10 + $0x34] sm:$0xf] %v277_v19  ;;  %v281_v21 = vld [vmem:[%s2013_s28 + $0x78] sm:$0xf] }
  0x40   : > { %280 = vst [vmem:[%s2018_s10 + $0x38] sm:$0xf] %v279_v20  ;;  %v283_v22 = vld [vmem:[%s2013_s28 + $0x80] sm:$0xf]  ;;  %v285_v23 = vld [vmem:[%s2013_s28 + $0x88] sm:$0xf] }
  0x41   : > { %282 = vst [vmem:[%s2018_s10 + $0x3c] sm:$0xf] %v281_v21  ;;  %284 = vst [vmem:[%s2018_s10 + $0x40] sm:$0xf] %v283_v22  ;;  %v287_v24 = vld [vmem:[%s2013_s28 + $0x90] sm:$0xf] }
  0x42   : > { %286 = vst [vmem:[%s2018_s10 + $0x44] sm:$0xf] %v285_v23  ;;  %v289_v25 = vld [vmem:[%s2013_s28 + $0x98] sm:$0xf]  ;;  %v291_v26 = vld [vmem:[%s2013_s28 + $0xa0] sm:$0xf] }
  0x43   : > { %288 = vst [vmem:[%s2018_s10 + $0x48] sm:$0xf] %v287_v24  ;;  %290 = vst [vmem:[%s2018_s10 + $0x4c] sm:$0xf] %v289_v25  ;;  %v293_v27 = vld [vmem:[%s2013_s28 + $0xa8] sm:$0xf] }
  0x44   : > { %292 = vst [vmem:[%s2018_s10 + $0x50] sm:$0xf] %v291_v26  ;;  %v295_v28 = vld [vmem:[%s2013_s28 + $0xb0] sm:$0xf]  ;;  %v297_v29 = vld [vmem:[%s2013_s28 + $0xb8] sm:$0xf] }
  0x45   : > { %294 = vst [vmem:[%s2018_s10 + $0x54] sm:$0xf] %v293_v27  ;;  %296 = vst [vmem:[%s2018_s10 + $0x58] sm:$0xf] %v295_v28  ;;  %v299_v30 = vld [vmem:[%s2013_s28 + $0xc0] sm:$0xf] }
  0x46   : > { %298 = vst [vmem:[%s2018_s10 + $0x5c] sm:$0xf] %v297_v29  ;;  %v301_v31 = vld [vmem:[%s2013_s28 + $0xc8] sm:$0xf]  ;;  %v303_v32 = vld [vmem:[%s2013_s28 + $0xd0] sm:$0xf] }
  0x47   : > { %300 = vst [vmem:[%s2018_s10 + $0x60] sm:$0xf] %v299_v30  ;;  %302 = vst [vmem:[%s2018_s10 + $0x64] sm:$0xf] %v301_v31  ;;  %v305_v33 = vld [vmem:[%s2013_s28 + $0xd8] sm:$0xf] }
  0x48   : > { %304 = vst [vmem:[%s2018_s10 + $0x68] sm:$0xf] %v303_v32  ;;  %v307_v34 = vld [vmem:[%s2013_s28 + $0xe0] sm:$0xf]  ;;  %v309_v35 = vld [vmem:[%s2013_s28 + $0xe8] sm:$0xf] }
  0x49   : > { %306 = vst [vmem:[%s2018_s10 + $0x6c] sm:$0xf] %v305_v33  ;;  %308 = vst [vmem:[%s2018_s10 + $0x70] sm:$0xf] %v307_v34  ;;  %v311_v36 = vld [vmem:[%s2013_s28 + $0xf0] sm:$0xf] }
  0x4a   : > { %310 = vst [vmem:[%s2018_s10 + $0x74] sm:$0xf] %v309_v35  ;;  %v313_v37 = vld [vmem:[%s2013_s28 + $0xf8] sm:$0xf]  ;;  %v315_v38 = vld [vmem:[%s2013_s28 + $0x100] sm:$0xf] }
  0x4b   : > { %312 = vst [vmem:[%s2018_s10 + $0x78] sm:$0xf] %v311_v36  ;;  %314 = vst [vmem:[%s2018_s10 + $0x7c] sm:$0xf] %v313_v37  ;;  %v317_v39 = vld [vmem:[%s2013_s28 + $0x108] sm:$0xf] }
  0x4c   : > { %316 = vst [vmem:[%s2018_s10 + $0x80] sm:$0xf] %v315_v38  ;;  %v319_v40 = vld [vmem:[%s2013_s28 + $0x110] sm:$0xf]  ;;  %v321_v41 = vld [vmem:[%s2013_s28 + $0x118] sm:$0xf] }
  0x4d   : > { %318 = vst [vmem:[%s2018_s10 + $0x84] sm:$0xf] %v317_v39  ;;  %320 = vst [vmem:[%s2018_s10 + $0x88] sm:$0xf] %v319_v40  ;;  %v323_v42 = vld [vmem:[%s2013_s28 + $0x120] sm:$0xf] }
  0x4e   : > { %322 = vst [vmem:[%s2018_s10 + $0x8c] sm:$0xf] %v321_v41  ;;  %v325_v43 = vld [vmem:[%s2013_s28 + $0x128] sm:$0xf]  ;;  %v327_v44 = vld [vmem:[%s2013_s28 + $0x130] sm:$0xf] }
  0x4f   : > { %324 = vst [vmem:[%s2018_s10 + $0x90] sm:$0xf] %v323_v42  ;;  %326 = vst [vmem:[%s2018_s10 + $0x94] sm:$0xf] %v325_v43  ;;  %v329_v45 = vld [vmem:[%s2013_s28 + $0x138] sm:$0xf] }
  0x50   : > { %328 = vst [vmem:[%s2018_s10 + $0x98] sm:$0xf] %v327_v44  ;;  %v331_v46 = vld [vmem:[%s2013_s28 + $0x140] sm:$0xf]  ;;  %v333_v47 = vld [vmem:[%s2013_s28 + $0x148] sm:$0xf] }
  0x51   : > { %330 = vst [vmem:[%s2018_s10 + $0x9c] sm:$0xf] %v329_v45  ;;  %332 = vst [vmem:[%s2018_s10 + $0xa0] sm:$0xf] %v331_v46  ;;  %v335_v48 = vld [vmem:[%s2013_s28 + $0x150] sm:$0xf] }
  0x52   : > { %334 = vst [vmem:[%s2018_s10 + $0xa4] sm:$0xf] %v333_v47  ;;  %v337_v49 = vld [vmem:[%s2013_s28 + $0x158] sm:$0xf]  ;;  %v339_v50 = vld [vmem:[%s2013_s28 + $0x160] sm:$0xf] }
  0x53   : > { %336 = vst [vmem:[%s2018_s10 + $0xa8] sm:$0xf] %v335_v48  ;;  %338 = vst [vmem:[%s2018_s10 + $0xac] sm:$0xf] %v337_v49  ;;  %v341_v51 = vld [vmem:[%s2013_s28 + $0x168] sm:$0xf] }
  0x54   : > { %340 = vst [vmem:[%s2018_s10 + $0xb0] sm:$0xf] %v339_v50  ;;  %v343_v52 = vld [vmem:[%s2013_s28 + $0x170] sm:$0xf]  ;;  %v345_v53 = vld [vmem:[%s2013_s28 + $0x178] sm:$0xf] }
  0x55   : > { %342 = vst [vmem:[%s2018_s10 + $0xb4] sm:$0xf] %v341_v51  ;;  %344 = vst [vmem:[%s2018_s10 + $0xb8] sm:$0xf] %v343_v52  ;;  %v347_v54 = vld [vmem:[%s2013_s28 + $0x180] sm:$0xf] }
  0x56   : > { %346 = vst [vmem:[%s2018_s10 + $0xbc] sm:$0xf] %v345_v53  ;;  %v349_v55 = vld [vmem:[%s2013_s28 + $0x188] sm:$0xf]  ;;  %v351_v56 = vld [vmem:[%s2013_s28 + $0x190] sm:$0xf] }
  0x57   : > { %348 = vst [vmem:[%s2018_s10 + $0xc0] sm:$0xf] %v347_v54  ;;  %350 = vst [vmem:[%s2018_s10 + $0xc4] sm:$0xf] %v349_v55  ;;  %v353_v57 = vld [vmem:[%s2013_s28 + $0x198] sm:$0xf] }
  0x58   : > { %352 = vst [vmem:[%s2018_s10 + $0xc8] sm:$0xf] %v351_v56  ;;  %v355_v58 = vld [vmem:[%s2013_s28 + $0x1a0] sm:$0xf]  ;;  %v357_v59 = vld [vmem:[%s2013_s28 + $0x1a8] sm:$0xf] }
  0x59   : > { %354 = vst [vmem:[%s2018_s10 + $0xcc] sm:$0xf] %v353_v57  ;;  %356 = vst [vmem:[%s2018_s10 + $0xd0] sm:$0xf] %v355_v58  ;;  %v359_v60 = vld [vmem:[%s2013_s28 + $0x1b0] sm:$0xf] }
  0x5a   : > { %358 = vst [vmem:[%s2018_s10 + $0xd4] sm:$0xf] %v357_v59  ;;  %v361_v61 = vld [vmem:[%s2013_s28 + $0x1b8] sm:$0xf]  ;;  %v363_v62 = vld [vmem:[%s2013_s28 + $0x1c0] sm:$0xf] }
  0x5b   : > { %360 = vst [vmem:[%s2018_s10 + $0xd8] sm:$0xf] %v359_v60  ;;  %362 = vst [vmem:[%s2018_s10 + $0xdc] sm:$0xf] %v361_v61  ;;  %v365_v63 = vld [vmem:[%s2013_s28 + $0x1c8] sm:$0xf] }
  0x5c   : > { %364 = vst [vmem:[%s2018_s10 + $0xe0] sm:$0xf] %v363_v62  ;;  %v367_v0 = vld [vmem:[%s2013_s28 + $0x1d0] sm:$0xf]  ;;  %v369_v1 = vld [vmem:[%s2013_s28 + $0x1d8] sm:$0xf] }
  0x5d   : > { %366 = vst [vmem:[%s2018_s10 + $0xe4] sm:$0xf] %v365_v63  ;;  %368 = vst [vmem:[%s2018_s10 + $0xe8] sm:$0xf] %v367_v0  ;;  %v371_v2 = vld [vmem:[%s2013_s28 + $0x1e0] sm:$0xf] }
  0x5e   : > { %370 = vst [vmem:[%s2018_s10 + $0xec] sm:$0xf] %v369_v1  ;;  %v373_v3 = vld [vmem:[%s2013_s28 + $0x1e8] sm:$0xf]  ;;  %v375_v4 = vld [vmem:[%s2013_s28 + $0x1f0] sm:$0xf] }
  0x5f   : > { %372 = vst [vmem:[%s2018_s10 + $0xf0] sm:$0xf] %v371_v2  ;;  %374 = vst [vmem:[%s2018_s10 + $0xf4] sm:$0xf] %v373_v3  ;;  %v377_v5 = vld [vmem:[%s2013_s28 + $0x1f8] sm:$0xf] }
  0x60   : > { %376 = vst [vmem:[%s2018_s10 + $0xf8] sm:$0xf] %v375_v4  ;;  %v379_v6 = vld [vmem:[%s2013_s28 + $0x200] sm:$0xf]  ;;  %v381_v7 = vld [vmem:[%s2013_s28 + $0x208] sm:$0xf] }
  0x61   : > { %378 = vst [vmem:[%s2018_s10 + $0xfc] sm:$0xf] %v377_v5  ;;  %380 = vst [vmem:[%s2018_s10 + $0x100] sm:$0xf] %v379_v6  ;;  %v383_v8 = vld [vmem:[%s2013_s28 + $0x210] sm:$0xf] }
  0x62   : > { %382 = vst [vmem:[%s2018_s10 + $0x104] sm:$0xf] %v381_v7  ;;  %v385_v9 = vld [vmem:[%s2013_s28 + $0x218] sm:$0xf]  ;;  %v387_v10 = vld [vmem:[%s2013_s28 + $0x220] sm:$0xf] }
  0x63   : > { %384 = vst [vmem:[%s2018_s10 + $0x108] sm:$0xf] %v383_v8  ;;  %386 = vst [vmem:[%s2018_s10 + $0x10c] sm:$0xf] %v385_v9  ;;  %v389_v11 = vld [vmem:[%s2013_s28 + $0x228] sm:$0xf] }
  0x64   : > { %388 = vst [vmem:[%s2018_s10 + $0x110] sm:$0xf] %v387_v10  ;;  %v391_v12 = vld [vmem:[%s2013_s28 + $0x230] sm:$0xf]  ;;  %v393_v13 = vld [vmem:[%s2013_s28 + $0x238] sm:$0xf] }
  0x65   : > { %390 = vst [vmem:[%s2018_s10 + $0x114] sm:$0xf] %v389_v11  ;;  %392 = vst [vmem:[%s2018_s10 + $0x118] sm:$0xf] %v391_v12  ;;  %v395_v14 = vld [vmem:[%s2013_s28 + $0x240] sm:$0xf] }
  0x66   : > { %394 = vst [vmem:[%s2018_s10 + $0x11c] sm:$0xf] %v393_v13  ;;  %v397_v15 = vld [vmem:[%s2013_s28 + $0x248] sm:$0xf]  ;;  %v399_v16 = vld [vmem:[%s2013_s28 + $0x250] sm:$0xf] }
  0x67   : > { %396 = vst [vmem:[%s2018_s10 + $0x120] sm:$0xf] %v395_v14  ;;  %398 = vst [vmem:[%s2018_s10 + $0x124] sm:$0xf] %v397_v15  ;;  %v401_v17 = vld [vmem:[%s2013_s28 + $0x258] sm:$0xf] }
  0x68   : > { %400 = vst [vmem:[%s2018_s10 + $0x128] sm:$0xf] %v399_v16  ;;  %v403_v18 = vld [vmem:[%s2013_s28 + $0x260] sm:$0xf]  ;;  %v405_v19 = vld [vmem:[%s2013_s28 + $0x268] sm:$0xf] }
  0x69   : > { %402 = vst [vmem:[%s2018_s10 + $0x12c] sm:$0xf] %v401_v17  ;;  %404 = vst [vmem:[%s2018_s10 + $0x130] sm:$0xf] %v403_v18  ;;  %v407_v20 = vld [vmem:[%s2013_s28 + $0x270] sm:$0xf] }
  0x6a   : > { %406 = vst [vmem:[%s2018_s10 + $0x134] sm:$0xf] %v405_v19  ;;  %v409_v21 = vld [vmem:[%s2013_s28 + $0x278] sm:$0xf]  ;;  %v411_v22 = vld [vmem:[%s2013_s28 + $0x280] sm:$0xf] }
  0x6b   : > { %408 = vst [vmem:[%s2018_s10 + $0x138] sm:$0xf] %v407_v20  ;;  %410 = vst [vmem:[%s2018_s10 + $0x13c] sm:$0xf] %v409_v21  ;;  %v413_v23 = vld [vmem:[%s2013_s28 + $0x288] sm:$0xf] }
  0x6c   : > { %412 = vst [vmem:[%s2018_s10 + $0x140] sm:$0xf] %v411_v22  ;;  %v415_v24 = vld [vmem:[%s2013_s28 + $0x290] sm:$0xf]  ;;  %v417_v25 = vld [vmem:[%s2013_s28 + $0x298] sm:$0xf] }
  0x6d   : > { %414 = vst [vmem:[%s2018_s10 + $0x144] sm:$0xf] %v413_v23  ;;  %416 = vst [vmem:[%s2018_s10 + $0x148] sm:$0xf] %v415_v24  ;;  %v419_v26 = vld [vmem:[%s2013_s28 + $0x2a0] sm:$0xf] }
  0x6e   : > { %418 = vst [vmem:[%s2018_s10 + $0x14c] sm:$0xf] %v417_v25  ;;  %v421_v27 = vld [vmem:[%s2013_s28 + $0x2a8] sm:$0xf]  ;;  %v423_v28 = vld [vmem:[%s2013_s28 + $0x2b0] sm:$0xf] }
  0x6f   : > { %420 = vst [vmem:[%s2018_s10 + $0x150] sm:$0xf] %v419_v26  ;;  %422 = vst [vmem:[%s2018_s10 + $0x154] sm:$0xf] %v421_v27  ;;  %v425_v29 = vld [vmem:[%s2013_s28 + $0x2b8] sm:$0xf] }
  0x70   : > { %424 = vst [vmem:[%s2018_s10 + $0x158] sm:$0xf] %v423_v28  ;;  %v427_v30 = vld [vmem:[%s2013_s28 + $0x2c0] sm:$0xf]  ;;  %v429_v31 = vld [vmem:[%s2013_s28 + $0x2c8] sm:$0xf] }
  0x71   : > { %426 = vst [vmem:[%s2018_s10 + $0x15c] sm:$0xf] %v425_v29  ;;  %428 = vst [vmem:[%s2018_s10 + $0x160] sm:$0xf] %v427_v30  ;;  %v431_v32 = vld [vmem:[%s2013_s28 + $0x2d0] sm:$0xf] }
  0x72   : > { %430 = vst [vmem:[%s2018_s10 + $0x164] sm:$0xf] %v429_v31  ;;  %v433_v33 = vld [vmem:[%s2013_s28 + $0x2d8] sm:$0xf]  ;;  %v435_v34 = vld [vmem:[%s2013_s28 + $0x2e0] sm:$0xf] }
  0x73   : > { %432 = vst [vmem:[%s2018_s10 + $0x168] sm:$0xf] %v431_v32  ;;  %434 = vst [vmem:[%s2018_s10 + $0x16c] sm:$0xf] %v433_v33  ;;  %v437_v35 = vld [vmem:[%s2013_s28 + $0x2e8] sm:$0xf] }
  0x74   : > { %436 = vst [vmem:[%s2018_s10 + $0x170] sm:$0xf] %v435_v34  ;;  %v439_v36 = vld [vmem:[%s2013_s28 + $0x2f0] sm:$0xf]  ;;  %v441_v37 = vld [vmem:[%s2013_s28 + $0x2f8] sm:$0xf] }
  0x75   : > { %438 = vst [vmem:[%s2018_s10 + $0x174] sm:$0xf] %v437_v35  ;;  %440 = vst [vmem:[%s2018_s10 + $0x178] sm:$0xf] %v439_v36 }
  0x76   : > { %442 = vst [vmem:[%s2018_s10 + $0x17c] sm:$0xf] %v441_v37 }
  0x77 PF: > { %p1494_p0 = scmp.ge.s32.totalorder %s1871_s25, 1  ;;  %p668_p1 = scmp.lt.s32.totalorder %s1871_s25, 7 }
  0x79   : > { %p669_p2 = pnand %p1494_p0, %p668_p1 }
  0x7a   : > { %s675_s0 = sand.u32 (!%p669_p2), 1, %s1847_s19   ;;  %s682_s11 = sand.u32 (!%p669_p2), 1, %s1839_s17  }
  0x7b   : > { %672 = sbr.rel (%p669_p2) target bundleno = 450 (0x1c2), region = 92  ;;  %s713_s28 = sand.u32 (!%p669_p2), 1, %s1831_s15  }
  0x7c   : > { %s1637_s26 = smul.u32 (!%p669_p2), 48, %s675_s0  ;;  %s1495_s29 = sshll.u32 (!%p669_p2), %s713_s28, 3 }
  0x7d   : > { %s1638_s5 = smul.u32 (!%p669_p2), 384, %s682_s11  ;;  %p719_p3 = scmp.lt.s32.totalorder (!%p669_p2), %s1859_s22, 1 }
  0x7e   : > { %s2226_s24 = scalar_lea.vmem (!%p669_p2), [#allocation3], %s1637_s26  ;;  %s2230_s15 = scalar_lea.vmem (!%p669_p2), [#allocation5], %s1495_s29 }
  0x7f   : > { %s2228_s17 = scalar_lea.vmem (!%p669_p2), [#allocation4], %s1638_s5  ;;  %p1496_p4 = scmp.ne.s32.totalorder (!%p669_p2), %s1855_s21, 0 }
  0x82   : > { %s2216_s30 = scalar_select %p719_p3, %s1859_s22, 1 }
  0x83   : > { %730 = sbr.rel (%p1496_p4) target bundleno = 138 (0x8a), region = 104  ;;  %v1873_v38 = vmov (!%p1496_p4), 0.0  }
  0x84   : > { %s721_s9 = scalar_lea.vmem %s2342_s2, %s2216_s30  ;;  %s724_s27 = scalar_lea.vmem %s2343_s3, %s2216_s30  ;;  %731 = vst [vmem:[#allocation2] sm:$0xff] (!%p1496_p4), %v1873_v38  ;;  %732 = vst [vmem:[#allocation2 + $0x8] sm:$0xff] (!%p1496_p4), %v1873_v38 }
  0x8a PF: > { %v1728_v39 = vld [vmem:[%s2228_s17 + $0x40] sm:$0xff]   ;;  %v1732_v43 = vld [vmem:[%s2228_s17 + $0x48] sm:$0xff]   ;;  %v1736_v47 = vld [vmem:[%s2228_s17 + $0x50] sm:$0xff]   ;;  %p1551_p5 = scmp.ne.s32.totalorder %s1855_s21, 2 }
  0x8b   : > { %v1729_v40 = vld [vmem:[%s2228_s17 + $0xc0] sm:$0xff]   ;;  %1569 = vmatprep.subr.bf16.mxu0 %v1728_v39  ;;  %v1733_v44 = vld [vmem:[%s2228_s17 + $0xc8] sm:$0xff]   ;;  %v1737_v48 = vld [vmem:[%s2228_s17 + $0xd0] sm:$0xff]  }
  0x8c   : > { %v1730_v41 = vld [vmem:[%s2228_s17] sm:$0xff]   ;;  %1591 = vmatprep.subr.bf16.mxu1 %v1729_v40  ;;  %v1734_v45 = vld [vmem:[%s2228_s17 + $0x8] sm:$0xff]   ;;  %v1738_v49 = vld [vmem:[%s2228_s17 + $0x10] sm:$0xff]  }
  0x8d   : > { %v1731_v42 = vld [vmem:[%s2228_s17 + $0x80] sm:$0xff]   ;;  %1570 = vmatpush3.bf16.msra.mxu0 %v1730_v41  ;;  %v1735_v46 = vld [vmem:[%s2228_s17 + $0x88] sm:$0xff]   ;;  %v1739_v50 = vld [vmem:[%s2228_s17 + $0x90] sm:$0xff]  }
  0x8e   : > { %1592 = vmatpush3.bf16.msra.mxu1 %v1731_v42  ;;  %1571 = vmatprep.subr.bf16.mxu0 %v1732_v43  ;;  %v1740_v51 = vld [vmem:[%s2228_s17 + $0x58] sm:$0xff]   ;;  %v1744_v55 = vld [vmem:[%s2228_s17 + $0x60] sm:$0xff]   ;;  %v1748_v59 = vld [vmem:[%s2228_s17 + $0x68] sm:$0xff]  }
  0x8f   : > { %1593 = vmatprep.subr.bf16.mxu1 %v1733_v44  ;;  %v1741_v52 = vld [vmem:[%s2228_s17 + $0xd8] sm:$0xff]   ;;  %v1745_v56 = vld [vmem:[%s2228_s17 + $0xe0] sm:$0xff]   ;;  %v1749_v60 = vld [vmem:[%s2228_s17 + $0xe8] sm:$0xff]  }
  0x90   : > { %v1742_v53 = vld [vmem:[%s2228_s17 + $0x18] sm:$0xff]   ;;  %v1746_v57 = vld [vmem:[%s2228_s17 + $0x20] sm:$0xff]   ;;  %v1750_v61 = vld [vmem:[%s2228_s17 + $0x28] sm:$0xff]  }
  0x91   : > { %1572 = vmatpush3.bf16.msra.mxu0 %v1734_v45  ;;  %v1743_v54 = vld [vmem:[%s2228_s17 + $0x98] sm:$0xff]   ;;  %v1747_v58 = vld [vmem:[%s2228_s17 + $0xa0] sm:$0xff]   ;;  %v1751_v62 = vld [vmem:[%s2228_s17 + $0xa8] sm:$0xff]  }
  0x92   : > { %1594 = vmatpush3.bf16.msra.mxu1 %v1735_v46  ;;  %1573 = vmatprep.subr.bf16.mxu0 %v1736_v47  ;;  %v1752_v63 = vld [vmem:[%s2228_s17 + $0x70] sm:$0xff]   ;;  %v1756_v3 = vld [vmem:[%s2228_s17 + $0x78] sm:$0xff]   ;;  %v1766_v11 = vld [vmem:[%s2228_s17 + $0x140] sm:$0xff]  }
  0x93   : > { %1595 = vmatprep.subr.bf16.mxu1 %v1737_v48  ;;  %v1753_v0 = vld [vmem:[%s2228_s17 + $0xf0] sm:$0xff]   ;;  %v1757_v4 = vld [vmem:[%s2228_s17 + $0xf8] sm:$0xff]   ;;  %v1767_v12 = vld [vmem:[%s2228_s17 + $0x100] sm:$0xff]  }
  0x94   : > { %v1754_v1 = vld [vmem:[%s2228_s17 + $0x30] sm:$0xff]   ;;  %v1758_v5 = vld [vmem:[%s2228_s17 + $0x38] sm:$0xff]   ;;  %v1768_v13 = vld [vmem:[%s2228_s17 + $0x148] sm:$0xff]  }
  0x95   : > { %1574 = vmatpush3.bf16.msra.mxu0 %v1738_v49  ;;  %v1755_v2 = vld [vmem:[%s2228_s17 + $0xb0] sm:$0xff]   ;;  %v1759_v6 = vld [vmem:[%s2228_s17 + $0xb8] sm:$0xff]   ;;  %v1769_v14 = vld [vmem:[%s2228_s17 + $0x108] sm:$0xff]  }
  0x96   : > { %1596 = vmatpush3.bf16.msra.mxu1 %v1739_v50  ;;  %1575 = vmatprep.subr.bf16.mxu0 %v1740_v51  ;;  %v1760_v7 = vld [vmem:[%s2226_s24] ss:$24 sps:$4 sm:$0xff]   ;;  %v1762_v8 = vld [vmem:[%s2226_s24 + $0x4] ss:$24 sps:$4 sm:$0xff]   ;;  %v1784_v22 = vld [vmem:[%s2226_s24 + $0x14] ss:$24 sps:$4 sm:$0xff]  }
  0x97   : > { %1597 = vmatprep.subr.bf16.mxu1 %v1741_v52  ;;  %v1763_v9 = vld [vmem:[%s2226_s24 + $0x8] ss:$24 sps:$4 sm:$0xff]   ;;  %v1765_v10 = vld [vmem:[%s2226_s24 + $0xc] ss:$24 sps:$4 sm:$0xff]   ;;  %1187 = vmatprep.mubr.bf16.mxu0 %v1762_v8 }
  0x98   : > { %1228 = vmatprep.mubr.bf16.mxu1 %v1765_v10  ;;  %v1770_v15 = vld [vmem:[%s2228_s17 + $0x150] sm:$0xff]   ;;  %v1772_v17 = vld [vmem:[%s2228_s17 + $0x158] sm:$0xff]   ;;  %v1774_v19 = vld [vmem:[%s2228_s17 + $0x160] sm:$0xff]  }
  0x99   : > { %1576 = vmatpush3.bf16.msra.mxu0 %v1742_v53  ;;  %v1771_v16 = vld [vmem:[%s2228_s17 + $0x110] sm:$0xff]   ;;  %v1773_v18 = vld [vmem:[%s2228_s17 + $0x118] sm:$0xff]   ;;  %v1775_v20 = vld [vmem:[%s2228_s17 + $0x120] sm:$0xff]  }
  0x9a   : > { %1598 = vmatpush3.bf16.msra.mxu1 %v1743_v54  ;;  %1577 = vmatprep.subr.bf16.mxu0 %v1744_v55  ;;  %v1776_v21 = vld [vmem:[%s2228_s17 + $0x168] sm:$0xff]   ;;  %v1778_v24 = vld [vmem:[%s2228_s17 + $0x170] sm:$0xff]   ;;  %v1780_v26 = vld [vmem:[%s2228_s17 + $0x178] sm:$0xff]  }
  0x9b   : > { %1599 = vmatprep.subr.bf16.mxu1 %v1745_v56  ;;  %v1777_v23 = vld [vmem:[%s2228_s17 + $0x128] sm:$0xff]   ;;  %v1779_v25 = vld [vmem:[%s2228_s17 + $0x130] sm:$0xff]   ;;  %v1781_v27 = vld [vmem:[%s2228_s17 + $0x138] sm:$0xff]  }
  0x9c   : > { %v1782_v28 = vld [vmem:[%s2226_s24 + $0x10] ss:$24 sps:$4 sm:$0xff]  }
  0x9d   : > { %1578 = vmatpush3.bf16.msra.mxu0 %v1746_v57  ;;  %v733_v47 = vld [vmem:[#allocation2] sm:$0xff]  ;;  %v734_v51 = vld [vmem:[#allocation2 + $0x8] sm:$0xff] }
  0x9e   : > { %1600 = vmatpush3.bf16.msra.mxu1 %v1747_v58  ;;  %1579 = vmatprep.subr.bf16.mxu0 %v1748_v59  ;;  %v1552_v57 = vld [vmem:[%s721_s9] ss:$0 sm:$0xff] (!%p1551_p5) }
  0x9f   : > { %1601 = vmatprep.subr.bf16.mxu1 %v1749_v60  ;;  %v1553_v60 = vld [vmem:[%s724_s27] ss:$0 sm:$0xff] (!%p1551_p5) }
  0xa1   : > { %1580 = vmatpush3.bf16.msra.mxu0 %v1750_v61 }
  0xa2   : > { %1602 = vmatpush3.bf16.msra.mxu1 %v1751_v62  ;;  %1581 = vmatprep.subr.bf16.mxu0 %v1752_v63 }
  0xa3   : > { %1603 = vmatprep.subr.bf16.mxu1 %v1753_v0 }
  0xa5   : > { %1582 = vmatpush3.bf16.msra.mxu0 %v1754_v1 }
  0xa6   : > { %1604 = vmatpush3.bf16.msra.mxu1 %v1755_v2  ;;  %1583 = vmatprep.subr.bf16.mxu0 %v1756_v3 }
  0xa7   : > { %1605 = vmatprep.subr.bf16.mxu1 %v1757_v4 }
  0xa9   : > { %1584 = vmatpush3.bf16.msra.mxu0 %v1758_v5 }
  0xaa   : > { %1606 = vmatpush3.bf16.msra.mxu1 %v1759_v6  ;;  %1613 = vmatprep.subr.bf16.mxu0 %v1766_v11 }
  0xac   : > { %1188 = vmatmul.mubr.bf16.vlgmr.msra.gmra.mrb[0].mxu0 %v1760_v7 }
  0xad   : > { %1229 = vmatmul.mubr.bf16.vlgmr.msra.gmra.mrb[0].mxu1 %v1763_v9  ;;  %1614 = vmatpush3.bf16.msra.mxu0 %v1767_v12 }
  0xae   : > { %1615 = vmatprep.subr.bf16.mxu0 %v1768_v13  ;;  %1269 = vmatprep.mubr.bf16.mxu0 %v1784_v22 }
  0xb1   : > { %1616 = vmatpush3.bf16.msra.mxu0 %v1769_v14 }
  0xb2   : > { %1617 = vmatprep.subr.bf16.mxu0 %v1770_v15 }
  0xb5   : > { %1618 = vmatpush3.bf16.msra.mxu0 %v1771_v16 }
  0xb6   : > { %1619 = vmatprep.subr.bf16.mxu0 %v1772_v17 }
  0xb9   : > { %1620 = vmatpush3.bf16.msra.mxu0 %v1773_v18 }
  0xba   : > { %1621 = vmatprep.subr.bf16.mxu0 %v1774_v19 }
  0xbd   : > { %1622 = vmatpush3.bf16.msra.mxu0 %v1775_v20 }
  0xbe   : > { %1623 = vmatprep.subr.bf16.mxu0 %v1776_v21 }
  0xc1   : > { %1624 = vmatpush3.bf16.msra.mxu0 %v1777_v23 }
  0xc2   : > { %1625 = vmatprep.subr.bf16.mxu0 %v1778_v24 }
  0xc5   : > { %1626 = vmatpush3.bf16.msra.mxu0 %v1779_v25 }
  0xc6   : > { %1627 = vmatprep.subr.bf16.mxu0 %v1780_v26 }
  0xc9   : > { %1628 = vmatpush3.bf16.msra.mxu0 %v1781_v27 }
  0xcc   : > { %1270 = vmatmul.mubr.bf16.vlgmr.msra.gmra.mrb[4].mxu0 %v1782_v28 }
 0x17f   : > { %v1585_v29 = vpop.f32.mrb[0].mxu0 }
 0x180   : > { %v1607_v30 = vpop.f32.mrb[0].mxu1  ;;  %v1586_v31 = vpop.f32.mrb[1].mxu0 }
 0x181   : > { %v1587_v32 = vadd.f32 %v1586_v31, %v1585_v29  ;;  %v1608_v33 = vpop.f32.mrb[1].mxu1  ;;  %v1588_v34 = vpop.f32.mrb[2].mxu0 }
 0x182   : > { %v1609_v35 = vadd.f32 %v1608_v33, %v1607_v30  ;;  %v1610_v36 = vpop.f32.mrb[2].mxu1  ;;  %v1589_v37 = vpop.f32.mrb[3].mxu0 }
 0x183   : > { %v1590_v38 = vadd.f32 %v1589_v37, %v1588_v34  ;;  %v1611_v39 = vpop.f32.mrb[3].mxu1 }
 0x184   : > { %v1231_v40 = vadd.f32 %v1609_v35, %v1587_v32  ;;  %v1612_v41 = vadd.f32 %v1611_v39, %v1610_v36 }
 0x186   : > { %v1234_v42 = vadd.f32 %v1612_v41, %v1590_v38 }
 0x19f   : > { %v1629_v43 = vpop.f32.mrb[4].mxu0 }
 0x1a0   : > { %v1630_v44 = vpop.f32.mrb[5].mxu0 }
 0x1a1   : > { %v1631_v45 = vadd.f32 %v1630_v44, %v1629_v43  ;;  %v1632_v46 = vpop.f32.mrb[6].mxu0 }
 0x1a2   : > { %v1633_v48 = vpop.f32.mrb[7].mxu0 }
 0x1a3   : > { %v1272_v49 = vadd.f32 %v1631_v45, %v1231_v40  ;;  %v1634_v50 = vadd.f32 %v1633_v48, %v1632_v46  ;;  %1285 = sbr.rel (%p1551_p5) target bundleno = 442 (0x1ba), region = 108 }
 0x1a5   : > { %v1278_v52 = vadd.f32 %v1272_v49, %v733_v47  ;;  %v1275_v53 = vadd.f32 %v1634_v50, %v1234_v42 }
 0x1a7   : > { %1280 = vst [vmem:[#allocation2] sm:$0xff] %v1278_v52  ;;  %v1279_v54 = vadd.f32 %v1275_v53, %v734_v51 }
 0x1a9   : > { %1281 = vst [vmem:[#allocation2 + $0x8] sm:$0xff] %v1279_v54 }
 0x1ae   : > { %v1286_v55 = vld [vmem:[#allocation2] sm:$0xff] }
 0x1af   : > { %v1295_v58 = vmul.f32 %v1552_v57, %v1286_v55 }
 0x1b0   : > { %v1287_v56 = vld [vmem:[#allocation2 + $0x8] sm:$0xff] }
 0x1b1   : > { %v1296_v59 = vmul.f32 %v1552_v57, %v1287_v56  ;;  %v1304_v61 = vadd.f32 %v1553_v60, %v1295_v58 }
 0x1b3   : > { %v1305_v62 = vadd.f32 %v1553_v60, %v1296_v59  ;;  %v1306_v63 = vmax.f32 %v1304_v61, 0.0 }
 0x1b5   : > { %v1307_v0 = vmax.f32 %v1305_v62, 0.0 }
 0x1b7   : > { %v1567_v1 = vpack.c.bf16 %v1307_v0, %v1306_v63 }
 0x1b9   : > { %1568 = vst [vmem:[%s2230_s15] sm:$0xff] %v1567_v1  }
 0x1ba PF: > { %1324 = sbr.rel (!%p1993_p12) target bundleno = 450 (0x1c2), region = 112  ;;  %s1557_s21 = sshll.u32 (%p1993_p12), %s1859_s22, 2 }
 0x1bb   : > { %s1329_s27 = scalar_lea.vmem (%p1993_p12), %s2344_s4, %s1557_s21 }
 0x1c0   : > { %v1345_v2 = vld [vmem:[%s2230_s15] sm:$0xf] (%p1993_p12)  ;;  %v1347_v3 = vld [vmem:[%s2230_s15 + $0x4] sm:$0xf] (%p1993_p12) }
 0x1c1   : > { %1346 = vst [vmem:[%s1329_s27] sm:$0xf] %v1345_v2  ;;  %1348 = vst [vmem:[%s1329_s27 + $0x8] sm:$0xf] %v1347_v3 }
 0x1c2 PF: > { %s14_s25 = sadd.s32 1, %s1871_s25   ;;  %s2358_s22 = sld [smem:[#allocation6_spill]] }
 0x1c3   : > { %p11_p6 = scmp.ge.s32.totalorder %s14_s25, 8   ;;  %s2359_s14 = sld [smem:[#allocation7_spill]] }
 0x1c4   : > { %s2360_s24 = sld [smem:[#allocation8_spill]]  ;;  %s2361_s15 = smov %s1835_s16 }
 0x1c5   : > { %s2362_s16 = smov %s1991_s13  ;;  %s2363_s17 = smov %s1843_s18 }
 0x1c6   : > { %s2364_s18 = smov %s1988_s12  ;;  %s2365_s19 = smov %s1851_s20 }
 0x1c7   : > { %s2366_s20 = smov %s1974_s7  ;;  %s2367_s21 = smov %s1863_s23 }
 0x1c8   :  { %13 = sbr.rel (!%p11_p6) target bundleno = 9 (0x9), region = 198 }
 0x1c9   : > { %s2368_s23 = smov %s2359_s14 }

// kernel: resnet34_features.68
= control target key start
LH: loop header
LB: loop body
LE: loop exit
PB: predicated region body
PF: predicated region fallthrough
CT: control target
= control target key end

     0   :  { %s2701_s0 = inlined_call_operand.vmem [shape: bf16[16,2304], index: 0, kind: input, shape index: {}]   ;;  %s2702_s1 = inlined_call_operand.vmem [shape: bf16[2304,512], index: 1, kind: input, shape index: {}]   ;;  %s2703_s2 = inlined_call_operand.vmem [shape: f32[1,512], index: 2, kind: input, shape index: {}]   ;;  %s2704_s3 = inlined_call_operand.vmem [shape: f32[1,512], index: 3, kind: input, shape index: {}]   ;;  %s2705_s4 = inlined_call_operand.vmem [shape: bf16[16,512], index: 4, kind: output, shape index: {}]  }
   0x1   :  { %2708 = sst [smem:[#allocation8_spill]] %s2701_s0 }
   0x2   :  { %2709 = sst [smem:[#allocation9_spill]] %s2702_s1 }
   0x3   :  { %s2212_s15 = smov 0   ;;  %s2214_s16 = smov 0  }
   0x4   :  { %s2216_s17 = smov 0   ;;  %s2218_s18 = smov 0  }
   0x5   :  { %s2220_s19 = smov 0   ;;  %s2222_s20 = smov 0  }
   0x6   :  { %s2224_s21 = smov 0   ;;  %s2226_s22 = smov 0  }
   0x7   :  { %s2228_s23 = smov 0   ;;  %s2230_s24 = smov 0  }
   0x8   :  { %s2232_s25 = smov 0  }
   0x9 LB: > { %s1716_s26 = sadd.s32 4294967295, %s2184_s25   ;;  %s26_s27 = sadd.s32 1, %s2176_s23  ;;  %s2184_s25 = sphi %s2232_s25, %s14_s25   ;;  %s2180_s24 = sphi %s2230_s24, %s2728_s24   ;;  %s2176_s23 = sphi %s2228_s23, %s2727_s23   ;;  %s2172_s22 = sphi %s2226_s22, %s2726_s22   ;;  %s2168_s21 = sphi %s2224_s21, %s2725_s21   ;;  %s2164_s20 = sphi %s2222_s20, %s2724_s20   ;;  %s2160_s19 = sphi %s2220_s19, %s2723_s19   ;;  %s2156_s18 = sphi %s2218_s18, %s2722_s18   ;;  %s2152_s17 = sphi %s2216_s17, %s2721_s17   ;;  %s2148_s16 = sphi %s2214_s16, %s2720_s16   ;;  %s2144_s15 = sphi %s2212_s15, %s2719_s15  }
   0xa   : > { %p27_p0 = scmp.ge.s32.totalorder %s26_s27, 3  ;;  %s29_s28 = sadd.s32 1, %s2180_s24 }
   0xb   : > { %s42_s29 = sadd.s32 1, %s2164_s20  ;;  %p49_p1 = scmp.ne.s32.totalorder %s2164_s20, %s2160_s19 }
   0xc   : > { %s2730_s27 = smov (%p27_p0, %s26_s27), 0  ;;  %s2732_s28 = smov (!%p27_p0, %s29_s28), %s2180_s24 }
   0xd   : > { %2710 = sst [smem:[#allocation6_spill]] %s2730_s27  ;;  %s38_s30 = ssub.s32 %s2176_s23, %s2730_s27 }
   0xe   : > { %p50_p2 = scmp.eq.s32.totalorder %s2184_s25, 0  ;;  %p31_p3 = scmp.ge.s32.totalorder %s2732_s28, 2 }
   0xf   : > { %p40_p4 = scmp.eq.s32.totalorder %s38_s30, 0  ;;  %s70_s6 = sadd.s32 1, %s2156_s18 }
  0x10   : > { %p2279_p5 = por %p50_p2, %p49_p1  ;;  %s2734_s28 = smov (%p31_p3, %s2732_s28), 0 }
  0x11   : > { %2712 = sst [smem:[#allocation7_spill]] %s2734_s28  ;;  %s66_s8 = ssub.s32 %s2180_s24, %s2734_s28 }
  0x12   : > { %s2287_s7 = scalar_select %p40_p4, %s2164_s20, %s42_s29  }
  0x13   : > { %p77_p6 = scmp.ne.s32.totalorder %s2156_s18, %s2152_s17  ;;  %s67_s9 = sor.u32 %s66_s8, %s38_s30 }
  0x14   : > { %p148_p7 = scmp.eq.s32.totalorder %s66_s8, 0  ;;  %p68_p8 = scmp.eq.s32.totalorder %s67_s9, 0 }
  0x15   : > { %p2293_p9 = por %p77_p6, %p50_p2  ;;  %s150_s11 = sadd.s32 1, %s2148_s16 }
  0x16   : > { %p160_p10 = scmp.ne.s32.totalorder %s2148_s16, %s2144_s15  ;;  %p161_p11 = scmp.eq.s32.totalorder %s1716_s26, 5 }
  0x17   : > { %s2301_s12 = scalar_select %p68_p8, %s2156_s18, %s70_s6  }
  0x18   : > { %s2304_s13 = scalar_select %p148_p7, %s2148_s16, %s150_s11  }
  0x19   : > { %p2306_p12 = por %p161_p11, %p160_p10  ;;  %p1719_p13 = scmp.ge.s32.totalorder %s2184_s25, 6 }
  0x1b   : > { %183 = sbr.rel (%p1719_p13) target bundleno = 104 (0x68), region = 16 }
  0x22   : > { %186 = sbr.rel (!%p2279_p5) target bundleno = 46 (0x2e), region = 20  ;;  %s188_s29 = sand.u32 (%p2279_p5), 1, %s2164_s20  }
  0x23   : > { %s1839_s30 = smul.u32 (%p2279_p5), 24, %s2176_s23  ;;  %s2715_s0 = sld [smem:[#allocation8_spill]] (%p2279_p5) }
  0x24   : > { %s1852_s8 = smul.u32 (%p2279_p5), 48, %s188_s29 }
  0x26   : > { %s190_s26 = scalar_lea.vmem (%p2279_p5), [#allocation3], %s1852_s8 }
  0x29   : > { %s196_s11 = scalar_lea.vmem %s2715_s0, %s1839_s30 }
  0x2a   : > { %v209_v0 = vld [vmem:[%s196_s11] sm:$0xff]  ;;  %v211_v1 = vld [vmem:[%s196_s11 + $0x8] sm:$0xff]  ;;  %v213_v2 = vld [vmem:[%s196_s11 + $0x10] sm:$0xff] }
  0x2b   : > { %210 = vst [vmem:[%s190_s26] sm:$0xff] %v209_v0  ;;  %212 = vst [vmem:[%s190_s26 + $0x8] sm:$0xff] %v211_v1  ;;  %v215_v3 = vld [vmem:[%s196_s11 + $0x48] sm:$0xff]  ;;  %v217_v4 = vld [vmem:[%s196_s11 + $0x50] sm:$0xff] }
  0x2c   : > { %214 = vst [vmem:[%s190_s26 + $0x10] sm:$0xff] %v213_v2  ;;  %v219_v5 = vld [vmem:[%s196_s11 + $0x58] sm:$0xff]  ;;  %216 = vst [vmem:[%s190_s26 + $0x18] sm:$0xff] %v215_v3 }
  0x2d   : > { %218 = vst [vmem:[%s190_s26 + $0x20] sm:$0xff] %v217_v4  ;;  %220 = vst [vmem:[%s190_s26 + $0x28] sm:$0xff] %v219_v5 }
  0x2e PF: > { %226 = sbr.rel (!%p2293_p9) target bundleno = 104 (0x68), region = 43  ;;  %s228_s5 = sand.u32 (%p2293_p9), 1, %s2156_s18  }
  0x2f   : > { %s1853_s29 = smul.u32 (%p2293_p9), 768, %s228_s5  ;;  %s1721_s30 = sshll.u32 (%p2293_p9), %s2180_s24, 1 }
  0x30   : > { %s1840_s8 = smul.u32 (%p2293_p9), 384, %s2176_s23  ;;  %s2716_s1 = sld [smem:[#allocation9_spill]] (%p2293_p9) }
  0x31   : > { %s2331_s10 = scalar_lea.vmem (%p2293_p9), [#allocation4], %s1853_s29 }
  0x32   : > { %s234_s6 = sadd.s32 (%p2293_p9), %s1840_s8, %s1721_s30 }
  0x33   : > { %s1723_s9 = sshll.u32 (%p2293_p9), %s234_s6, 2 }
  0x36   : > { %s2326_s11 = scalar_lea.vmem %s2716_s1, %s1723_s9 }
  0x37   : > { %v454_v6 = vld [vmem:[%s2326_s11] sm:$0xff]  ;;  %v456_v7 = vld [vmem:[%s2326_s11 + $0x10] sm:$0xff] }
  0x38   : > { %v458_v8 = vld [vmem:[%s2326_s11 + $0x20] sm:$0xff]  ;;  %455 = vst [vmem:[%s2331_s10] sm:$0xff] %v454_v6  ;;  %457 = vst [vmem:[%s2331_s10 + $0x8] sm:$0xff] %v456_v7  ;;  %v460_v9 = vld [vmem:[%s2326_s11 + $0x30] sm:$0xff] }
  0x39   : > { %459 = vst [vmem:[%s2331_s10 + $0x10] sm:$0xff] %v458_v8  ;;  %v462_v10 = vld [vmem:[%s2326_s11 + $0x40] sm:$0xff]  ;;  %v464_v11 = vld [vmem:[%s2326_s11 + $0x50] sm:$0xff]  ;;  %461 = vst [vmem:[%s2331_s10 + $0x18] sm:$0xff] %v460_v9 }
  0x3a   : > { %463 = vst [vmem:[%s2331_s10 + $0x20] sm:$0xff] %v462_v10  ;;  %465 = vst [vmem:[%s2331_s10 + $0x28] sm:$0xff] %v464_v11  ;;  %v466_v12 = vld [vmem:[%s2326_s11 + $0x60] sm:$0xff]  ;;  %v468_v13 = vld [vmem:[%s2326_s11 + $0x70] sm:$0xff] }
  0x3b   : > { %v470_v14 = vld [vmem:[%s2326_s11 + $0x80] sm:$0xff]  ;;  %467 = vst [vmem:[%s2331_s10 + $0x30] sm:$0xff] %v466_v12  ;;  %469 = vst [vmem:[%s2331_s10 + $0x38] sm:$0xff] %v468_v13  ;;  %v472_v15 = vld [vmem:[%s2326_s11 + $0x90] sm:$0xff] }
  0x3c   : > { %471 = vst [vmem:[%s2331_s10 + $0x40] sm:$0xff] %v470_v14  ;;  %v474_v16 = vld [vmem:[%s2326_s11 + $0xa0] sm:$0xff]  ;;  %v476_v17 = vld [vmem:[%s2326_s11 + $0xb0] sm:$0xff]  ;;  %473 = vst [vmem:[%s2331_s10 + $0x48] sm:$0xff] %v472_v15 }
  0x3d   : > { %475 = vst [vmem:[%s2331_s10 + $0x50] sm:$0xff] %v474_v16  ;;  %477 = vst [vmem:[%s2331_s10 + $0x58] sm:$0xff] %v476_v17  ;;  %v478_v18 = vld [vmem:[%s2326_s11 + $0xc0] sm:$0xff]  ;;  %v480_v19 = vld [vmem:[%s2326_s11 + $0xd0] sm:$0xff] }
  0x3e   : > { %v482_v20 = vld [vmem:[%s2326_s11 + $0xe0] sm:$0xff]  ;;  %479 = vst [vmem:[%s2331_s10 + $0x60] sm:$0xff] %v478_v18  ;;  %481 = vst [vmem:[%s2331_s10 + $0x68] sm:$0xff] %v480_v19  ;;  %v484_v21 = vld [vmem:[%s2326_s11 + $0xf0] sm:$0xff] }
  0x3f   : > { %483 = vst [vmem:[%s2331_s10 + $0x70] sm:$0xff] %v482_v20  ;;  %v486_v22 = vld [vmem:[%s2326_s11 + $0x100] sm:$0xff]  ;;  %v488_v23 = vld [vmem:[%s2326_s11 + $0x110] sm:$0xff]  ;;  %485 = vst [vmem:[%s2331_s10 + $0x78] sm:$0xff] %v484_v21 }
  0x40   : > { %487 = vst [vmem:[%s2331_s10 + $0x80] sm:$0xff] %v486_v22  ;;  %489 = vst [vmem:[%s2331_s10 + $0x88] sm:$0xff] %v488_v23  ;;  %v490_v24 = vld [vmem:[%s2326_s11 + $0x120] sm:$0xff]  ;;  %v492_v25 = vld [vmem:[%s2326_s11 + $0x130] sm:$0xff] }
  0x41   : > { %v494_v26 = vld [vmem:[%s2326_s11 + $0x140] sm:$0xff]  ;;  %491 = vst [vmem:[%s2331_s10 + $0x90] sm:$0xff] %v490_v24  ;;  %493 = vst [vmem:[%s2331_s10 + $0x98] sm:$0xff] %v492_v25  ;;  %v496_v27 = vld [vmem:[%s2326_s11 + $0x150] sm:$0xff] }
  0x42   : > { %495 = vst [vmem:[%s2331_s10 + $0xa0] sm:$0xff] %v494_v26  ;;  %v498_v28 = vld [vmem:[%s2326_s11 + $0x160] sm:$0xff]  ;;  %v500_v29 = vld [vmem:[%s2326_s11 + $0x170] sm:$0xff]  ;;  %497 = vst [vmem:[%s2331_s10 + $0xa8] sm:$0xff] %v496_v27 }
  0x43   : > { %499 = vst [vmem:[%s2331_s10 + $0xb0] sm:$0xff] %v498_v28  ;;  %501 = vst [vmem:[%s2331_s10 + $0xb8] sm:$0xff] %v500_v29  ;;  %v502_v30 = vld [vmem:[%s2326_s11 + $0x180] sm:$0xff]  ;;  %v504_v31 = vld [vmem:[%s2326_s11 + $0x190] sm:$0xff] }
  0x44   : > { %v506_v32 = vld [vmem:[%s2326_s11 + $0x1a0] sm:$0xff]  ;;  %503 = vst [vmem:[%s2331_s10 + $0xc0] sm:$0xff] %v502_v30  ;;  %505 = vst [vmem:[%s2331_s10 + $0xc8] sm:$0xff] %v504_v31  ;;  %v508_v33 = vld [vmem:[%s2326_s11 + $0x1b0] sm:$0xff] }
  0x45   : > { %507 = vst [vmem:[%s2331_s10 + $0xd0] sm:$0xff] %v506_v32  ;;  %v510_v34 = vld [vmem:[%s2326_s11 + $0x1c0] sm:$0xff]  ;;  %v512_v35 = vld [vmem:[%s2326_s11 + $0x1d0] sm:$0xff]  ;;  %509 = vst [vmem:[%s2331_s10 + $0xd8] sm:$0xff] %v508_v33 }
  0x46   : > { %511 = vst [vmem:[%s2331_s10 + $0xe0] sm:$0xff] %v510_v34  ;;  %513 = vst [vmem:[%s2331_s10 + $0xe8] sm:$0xff] %v512_v35  ;;  %v514_v36 = vld [vmem:[%s2326_s11 + $0x1e0] sm:$0xff]  ;;  %v516_v37 = vld [vmem:[%s2326_s11 + $0x1f0] sm:$0xff] }
  0x47   : > { %v518_v38 = vld [vmem:[%s2326_s11 + $0x200] sm:$0xff]  ;;  %515 = vst [vmem:[%s2331_s10 + $0xf0] sm:$0xff] %v514_v36  ;;  %517 = vst [vmem:[%s2331_s10 + $0xf8] sm:$0xff] %v516_v37  ;;  %v520_v39 = vld [vmem:[%s2326_s11 + $0x210] sm:$0xff] }
  0x48   : > { %519 = vst [vmem:[%s2331_s10 + $0x100] sm:$0xff] %v518_v38  ;;  %v522_v40 = vld [vmem:[%s2326_s11 + $0x220] sm:$0xff]  ;;  %v524_v41 = vld [vmem:[%s2326_s11 + $0x230] sm:$0xff]  ;;  %521 = vst [vmem:[%s2331_s10 + $0x108] sm:$0xff] %v520_v39 }
  0x49   : > { %523 = vst [vmem:[%s2331_s10 + $0x110] sm:$0xff] %v522_v40  ;;  %525 = vst [vmem:[%s2331_s10 + $0x118] sm:$0xff] %v524_v41  ;;  %v526_v42 = vld [vmem:[%s2326_s11 + $0x240] sm:$0xff]  ;;  %v528_v43 = vld [vmem:[%s2326_s11 + $0x250] sm:$0xff] }
  0x4a   : > { %v530_v44 = vld [vmem:[%s2326_s11 + $0x260] sm:$0xff]  ;;  %527 = vst [vmem:[%s2331_s10 + $0x120] sm:$0xff] %v526_v42  ;;  %529 = vst [vmem:[%s2331_s10 + $0x128] sm:$0xff] %v528_v43  ;;  %v532_v45 = vld [vmem:[%s2326_s11 + $0x270] sm:$0xff] }
  0x4b   : > { %531 = vst [vmem:[%s2331_s10 + $0x130] sm:$0xff] %v530_v44  ;;  %v534_v46 = vld [vmem:[%s2326_s11 + $0x280] sm:$0xff]  ;;  %v536_v47 = vld [vmem:[%s2326_s11 + $0x290] sm:$0xff]  ;;  %533 = vst [vmem:[%s2331_s10 + $0x138] sm:$0xff] %v532_v45 }
  0x4c   : > { %535 = vst [vmem:[%s2331_s10 + $0x140] sm:$0xff] %v534_v46  ;;  %537 = vst [vmem:[%s2331_s10 + $0x148] sm:$0xff] %v536_v47  ;;  %v538_v48 = vld [vmem:[%s2326_s11 + $0x2a0] sm:$0xff]  ;;  %v540_v49 = vld [vmem:[%s2326_s11 + $0x2b0] sm:$0xff] }
  0x4d   : > { %v542_v50 = vld [vmem:[%s2326_s11 + $0x2c0] sm:$0xff]  ;;  %539 = vst [vmem:[%s2331_s10 + $0x150] sm:$0xff] %v538_v48  ;;  %541 = vst [vmem:[%s2331_s10 + $0x158] sm:$0xff] %v540_v49  ;;  %v544_v51 = vld [vmem:[%s2326_s11 + $0x2d0] sm:$0xff] }
  0x4e   : > { %543 = vst [vmem:[%s2331_s10 + $0x160] sm:$0xff] %v542_v50  ;;  %v546_v52 = vld [vmem:[%s2326_s11 + $0x2e0] sm:$0xff]  ;;  %v548_v53 = vld [vmem:[%s2326_s11 + $0x2f0] sm:$0xff]  ;;  %545 = vst [vmem:[%s2331_s10 + $0x168] sm:$0xff] %v544_v51 }
  0x4f   : > { %547 = vst [vmem:[%s2331_s10 + $0x170] sm:$0xff] %v546_v52  ;;  %549 = vst [vmem:[%s2331_s10 + $0x178] sm:$0xff] %v548_v53  ;;  %v550_v54 = vld [vmem:[%s2326_s11 + $0x300] sm:$0xff]  ;;  %v552_v55 = vld [vmem:[%s2326_s11 + $0x310] sm:$0xff] }
  0x50   : > { %v554_v56 = vld [vmem:[%s2326_s11 + $0x320] sm:$0xff]  ;;  %551 = vst [vmem:[%s2331_s10 + $0x180] sm:$0xff] %v550_v54  ;;  %553 = vst [vmem:[%s2331_s10 + $0x188] sm:$0xff] %v552_v55  ;;  %v556_v57 = vld [vmem:[%s2326_s11 + $0x330] sm:$0xff] }
  0x51   : > { %555 = vst [vmem:[%s2331_s10 + $0x190] sm:$0xff] %v554_v56  ;;  %v558_v58 = vld [vmem:[%s2326_s11 + $0x340] sm:$0xff]  ;;  %v560_v59 = vld [vmem:[%s2326_s11 + $0x350] sm:$0xff]  ;;  %557 = vst [vmem:[%s2331_s10 + $0x198] sm:$0xff] %v556_v57 }
  0x52   : > { %559 = vst [vmem:[%s2331_s10 + $0x1a0] sm:$0xff] %v558_v58  ;;  %561 = vst [vmem:[%s2331_s10 + $0x1a8] sm:$0xff] %v560_v59  ;;  %v562_v60 = vld [vmem:[%s2326_s11 + $0x360] sm:$0xff]  ;;  %v564_v61 = vld [vmem:[%s2326_s11 + $0x370] sm:$0xff] }
  0x53   : > { %v566_v62 = vld [vmem:[%s2326_s11 + $0x380] sm:$0xff]  ;;  %563 = vst [vmem:[%s2331_s10 + $0x1b0] sm:$0xff] %v562_v60  ;;  %565 = vst [vmem:[%s2331_s10 + $0x1b8] sm:$0xff] %v564_v61  ;;  %v568_v63 = vld [vmem:[%s2326_s11 + $0x390] sm:$0xff] }
  0x54   : > { %567 = vst [vmem:[%s2331_s10 + $0x1c0] sm:$0xff] %v566_v62  ;;  %v570_v0 = vld [vmem:[%s2326_s11 + $0x3a0] sm:$0xff]  ;;  %v572_v1 = vld [vmem:[%s2326_s11 + $0x3b0] sm:$0xff]  ;;  %569 = vst [vmem:[%s2331_s10 + $0x1c8] sm:$0xff] %v568_v63 }
  0x55   : > { %571 = vst [vmem:[%s2331_s10 + $0x1d0] sm:$0xff] %v570_v0  ;;  %573 = vst [vmem:[%s2331_s10 + $0x1d8] sm:$0xff] %v572_v1  ;;  %v574_v2 = vld [vmem:[%s2326_s11 + $0x3c0] sm:$0xff]  ;;  %v576_v3 = vld [vmem:[%s2326_s11 + $0x3d0] sm:$0xff] }
  0x56   : > { %v578_v4 = vld [vmem:[%s2326_s11 + $0x3e0] sm:$0xff]  ;;  %575 = vst [vmem:[%s2331_s10 + $0x1e0] sm:$0xff] %v574_v2  ;;  %577 = vst [vmem:[%s2331_s10 + $0x1e8] sm:$0xff] %v576_v3  ;;  %v580_v5 = vld [vmem:[%s2326_s11 + $0x3f0] sm:$0xff] }
  0x57   : > { %579 = vst [vmem:[%s2331_s10 + $0x1f0] sm:$0xff] %v578_v4  ;;  %v582_v6 = vld [vmem:[%s2326_s11 + $0x400] sm:$0xff]  ;;  %v584_v7 = vld [vmem:[%s2326_s11 + $0x410] sm:$0xff]  ;;  %581 = vst [vmem:[%s2331_s10 + $0x1f8] sm:$0xff] %v580_v5 }
  0x58   : > { %583 = vst [vmem:[%s2331_s10 + $0x200] sm:$0xff] %v582_v6  ;;  %585 = vst [vmem:[%s2331_s10 + $0x208] sm:$0xff] %v584_v7  ;;  %v586_v8 = vld [vmem:[%s2326_s11 + $0x420] sm:$0xff]  ;;  %v588_v9 = vld [vmem:[%s2326_s11 + $0x430] sm:$0xff] }
  0x59   : > { %v590_v10 = vld [vmem:[%s2326_s11 + $0x440] sm:$0xff]  ;;  %587 = vst [vmem:[%s2331_s10 + $0x210] sm:$0xff] %v586_v8  ;;  %589 = vst [vmem:[%s2331_s10 + $0x218] sm:$0xff] %v588_v9  ;;  %v592_v11 = vld [vmem:[%s2326_s11 + $0x450] sm:$0xff] }
  0x5a   : > { %591 = vst [vmem:[%s2331_s10 + $0x220] sm:$0xff] %v590_v10  ;;  %v594_v12 = vld [vmem:[%s2326_s11 + $0x460] sm:$0xff]  ;;  %v596_v13 = vld [vmem:[%s2326_s11 + $0x470] sm:$0xff]  ;;  %593 = vst [vmem:[%s2331_s10 + $0x228] sm:$0xff] %v592_v11 }
  0x5b   : > { %595 = vst [vmem:[%s2331_s10 + $0x230] sm:$0xff] %v594_v12  ;;  %597 = vst [vmem:[%s2331_s10 + $0x238] sm:$0xff] %v596_v13  ;;  %v598_v14 = vld [vmem:[%s2326_s11 + $0x480] sm:$0xff]  ;;  %v600_v15 = vld [vmem:[%s2326_s11 + $0x490] sm:$0xff] }
  0x5c   : > { %v602_v16 = vld [vmem:[%s2326_s11 + $0x4a0] sm:$0xff]  ;;  %599 = vst [vmem:[%s2331_s10 + $0x240] sm:$0xff] %v598_v14  ;;  %601 = vst [vmem:[%s2331_s10 + $0x248] sm:$0xff] %v600_v15  ;;  %v604_v17 = vld [vmem:[%s2326_s11 + $0x4b0] sm:$0xff] }
  0x5d   : > { %603 = vst [vmem:[%s2331_s10 + $0x250] sm:$0xff] %v602_v16  ;;  %v606_v18 = vld [vmem:[%s2326_s11 + $0x4c0] sm:$0xff]  ;;  %v608_v19 = vld [vmem:[%s2326_s11 + $0x4d0] sm:$0xff]  ;;  %605 = vst [vmem:[%s2331_s10 + $0x258] sm:$0xff] %v604_v17 }
  0x5e   : > { %607 = vst [vmem:[%s2331_s10 + $0x260] sm:$0xff] %v606_v18  ;;  %609 = vst [vmem:[%s2331_s10 + $0x268] sm:$0xff] %v608_v19  ;;  %v610_v20 = vld [vmem:[%s2326_s11 + $0x4e0] sm:$0xff]  ;;  %v612_v21 = vld [vmem:[%s2326_s11 + $0x4f0] sm:$0xff] }
  0x5f   : > { %v614_v22 = vld [vmem:[%s2326_s11 + $0x500] sm:$0xff]  ;;  %611 = vst [vmem:[%s2331_s10 + $0x270] sm:$0xff] %v610_v20  ;;  %613 = vst [vmem:[%s2331_s10 + $0x278] sm:$0xff] %v612_v21  ;;  %v616_v23 = vld [vmem:[%s2326_s11 + $0x510] sm:$0xff] }
  0x60   : > { %615 = vst [vmem:[%s2331_s10 + $0x280] sm:$0xff] %v614_v22  ;;  %v618_v24 = vld [vmem:[%s2326_s11 + $0x520] sm:$0xff]  ;;  %v620_v25 = vld [vmem:[%s2326_s11 + $0x530] sm:$0xff]  ;;  %617 = vst [vmem:[%s2331_s10 + $0x288] sm:$0xff] %v616_v23 }
  0x61   : > { %619 = vst [vmem:[%s2331_s10 + $0x290] sm:$0xff] %v618_v24  ;;  %621 = vst [vmem:[%s2331_s10 + $0x298] sm:$0xff] %v620_v25  ;;  %v622_v26 = vld [vmem:[%s2326_s11 + $0x540] sm:$0xff]  ;;  %v624_v27 = vld [vmem:[%s2326_s11 + $0x550] sm:$0xff] }
  0x62   : > { %v626_v28 = vld [vmem:[%s2326_s11 + $0x560] sm:$0xff]  ;;  %623 = vst [vmem:[%s2331_s10 + $0x2a0] sm:$0xff] %v622_v26  ;;  %625 = vst [vmem:[%s2331_s10 + $0x2a8] sm:$0xff] %v624_v27  ;;  %v628_v29 = vld [vmem:[%s2326_s11 + $0x570] sm:$0xff] }
  0x63   : > { %627 = vst [vmem:[%s2331_s10 + $0x2b0] sm:$0xff] %v626_v28  ;;  %v630_v30 = vld [vmem:[%s2326_s11 + $0x580] sm:$0xff]  ;;  %v632_v31 = vld [vmem:[%s2326_s11 + $0x590] sm:$0xff]  ;;  %629 = vst [vmem:[%s2331_s10 + $0x2b8] sm:$0xff] %v628_v29 }
  0x64   : > { %631 = vst [vmem:[%s2331_s10 + $0x2c0] sm:$0xff] %v630_v30  ;;  %633 = vst [vmem:[%s2331_s10 + $0x2c8] sm:$0xff] %v632_v31  ;;  %v634_v32 = vld [vmem:[%s2326_s11 + $0x5a0] sm:$0xff]  ;;  %v636_v33 = vld [vmem:[%s2326_s11 + $0x5b0] sm:$0xff] }
  0x65   : > { %v638_v34 = vld [vmem:[%s2326_s11 + $0x5c0] sm:$0xff]  ;;  %635 = vst [vmem:[%s2331_s10 + $0x2d0] sm:$0xff] %v634_v32  ;;  %637 = vst [vmem:[%s2331_s10 + $0x2d8] sm:$0xff] %v636_v33  ;;  %v640_v35 = vld [vmem:[%s2326_s11 + $0x5d0] sm:$0xff] }
  0x66   : > { %639 = vst [vmem:[%s2331_s10 + $0x2e0] sm:$0xff] %v638_v34  ;;  %v642_v36 = vld [vmem:[%s2326_s11 + $0x5e0] sm:$0xff]  ;;  %v644_v37 = vld [vmem:[%s2326_s11 + $0x5f0] sm:$0xff]  ;;  %641 = vst [vmem:[%s2331_s10 + $0x2e8] sm:$0xff] %v640_v35 }
  0x67   : > { %643 = vst [vmem:[%s2331_s10 + $0x2f0] sm:$0xff] %v642_v36  ;;  %645 = vst [vmem:[%s2331_s10 + $0x2f8] sm:$0xff] %v644_v37 }
  0x68 PF: > { %p1724_p0 = scmp.ge.s32.totalorder %s2184_s25, 1  ;;  %p666_p1 = scmp.lt.s32.totalorder %s2184_s25, 7 }
  0x6a   : > { %p667_p2 = pnand %p1724_p0, %p666_p1 }
  0x6b   : > { %s673_s0 = sand.u32 (!%p667_p2), 1, %s2160_s19   ;;  %s680_s28 = sand.u32 (!%p667_p2), 1, %s2152_s17  }
  0x6c   : > { %670 = sbr.rel (%p667_p2) target bundleno = 495 (0x1ef), region = 89  ;;  %s713_s5 = sand.u32 (!%p667_p2), 1, %s2144_s15  }
  0x6d   : > { %s1854_s26 = smul.u32 (!%p667_p2), 48, %s673_s0  ;;  %s1725_s30 = sshll.u32 (!%p667_p2), %s713_s5, 4 }
  0x6e   : > { %s1855_s29 = smul.u32 (!%p667_p2), 768, %s680_s28  ;;  %s1726_s8 = sshll.u32 (!%p667_p2), %s2172_s22, 1 }
  0x6f   : > { %p721_p3 = scmp.lt.s32.totalorder (!%p667_p2), %s1726_s8, 3  ;;  %s2538_s19 = scalar_lea.vmem (!%p667_p2), [#allocation3], %s1854_s26 }
  0x70   : > { %s2540_s17 = scalar_lea.vmem (!%p667_p2), [#allocation4], %s1855_s29  ;;  %s2542_s15 = scalar_lea.vmem (!%p667_p2), [#allocation5], %s1725_s30 }
  0x71   : > { %p1728_p4 = scmp.ne.s32.totalorder (!%p667_p2), %s2168_s21, 0 }
  0x73   : > { %s2736_s8 = smov (!%p721_p3, %s1726_s8), 3  ;;  %735 = sbr.rel (%p1728_p4) target bundleno = 122 (0x7a), region = 101 }
  0x74   : > { %s723_s11 = scalar_lea.vmem %s2703_s2, %s2736_s8  ;;  %s728_s27 = scalar_lea.vmem %s2704_s3, %s2736_s8  ;;  %v2186_v38 = vmov (!%p1728_p4), 0.0  }
  0x75   : > { %736 = vst [vmem:[#allocation2] sm:$0xff] (!%p1728_p4), %v2186_v38  ;;  %737 = vst [vmem:[#allocation2 + $0x8] sm:$0xff] (!%p1728_p4), %v2186_v38 }
  0x76   : > { %738 = vst [vmem:[#allocation2 + $0x10] sm:$0xff] (!%p1728_p4), %v2186_v38  ;;  %739 = vst [vmem:[#allocation2 + $0x18] sm:$0xff] (!%p1728_p4), %v2186_v38 }
  0x7a PF: > { %v1945_v39 = vld [vmem:[%s2540_s17 + $0x104] ss:$8 sps:$4 sm:$0xff]   ;;  %v1947_v40 = vld [vmem:[%s2540_s17 + $0x100] ss:$8 sps:$4 sm:$0xff]   ;;  %v1948_v41 = vld [vmem:[%s2540_s17 + $0x114] ss:$8 sps:$4 sm:$0xff]  }
  0x7b   : > { %1399 = vmatprep.subr.bf16.mxu0 %v1945_v39  ;;  %v1950_v42 = vld [vmem:[%s2540_s17 + $0x110] ss:$8 sps:$4 sm:$0xff]   ;;  %v1951_v43 = vld [vmem:[%s2540_s17 + $0x124] ss:$8 sps:$4 sm:$0xff]   ;;  %v1953_v44 = vld [vmem:[%s2540_s17 + $0x120] ss:$8 sps:$4 sm:$0xff]  }
  0x7c   : > { %1400 = vmatpush1.bf16.msra.mxu0 %v1947_v40  ;;  %v1954_v45 = vld [vmem:[%s2540_s17 + $0x134] ss:$8 sps:$4 sm:$0xff]   ;;  %v1956_v46 = vld [vmem:[%s2540_s17 + $0x130] ss:$8 sps:$4 sm:$0xff]   ;;  %v1957_v47 = vld [vmem:[%s2540_s17 + $0x144] ss:$8 sps:$4 sm:$0xff]  }
  0x7d   : > { %1401 = vmatprep.subr.bf16.mxu0 %v1948_v41  ;;  %v1959_v48 = vld [vmem:[%s2540_s17 + $0x140] ss:$8 sps:$4 sm:$0xff]   ;;  %v1960_v49 = vld [vmem:[%s2540_s17 + $0x154] ss:$8 sps:$4 sm:$0xff]   ;;  %v1962_v50 = vld [vmem:[%s2540_s17 + $0x150] ss:$8 sps:$4 sm:$0xff]  }
  0x7e   : > { %v1963_v51 = vld [vmem:[%s2540_s17 + $0x164] ss:$8 sps:$4 sm:$0xff]   ;;  %v1995_v53 = vld [vmem:[%s2540_s17] ss:$8 sps:$4 sm:$0xff]   ;;  %v1966_v56 = vld [vmem:[%s2540_s17 + $0x174] ss:$8 sps:$4 sm:$0xff]  }
  0x7f   : > { %v1992_v52 = vld [vmem:[%s2540_s17 + $0x4] ss:$8 sps:$4 sm:$0xff]   ;;  %v1965_v54 = vld [vmem:[%s2540_s17 + $0x160] ss:$8 sps:$4 sm:$0xff]   ;;  %v2002_v57 = vld [vmem:[%s2540_s17 + $0x14] ss:$8 sps:$4 sm:$0xff]  }
  0x80   : > { %1402 = vmatpush1.bf16.msra.mxu0 %v1950_v42  ;;  %1356 = vmatprep.subr.bf16.mxu1 %v1992_v52  ;;  %v1998_v55 = vld [vmem:[%s2538_s19 + $0xc] ss:$24 sps:$4 sm:$0xff]   ;;  %v2004_v58 = vld [vmem:[%s2540_s17 + $0x10] ss:$8 sps:$4 sm:$0xff]   ;;  %v2010_v62 = vld [vmem:[%s2540_s17 + $0x20] ss:$8 sps:$4 sm:$0xff]  }
  0x81   : > { %1403 = vmatprep.subr.bf16.mxu0 %v1951_v43  ;;  %1357 = vmatpush1.bf16.msra.mxu1 %v1995_v53  ;;  %v1968_v59 = vld [vmem:[%s2540_s17 + $0x170] ss:$8 sps:$4 sm:$0xff]   ;;  %v1969_v60 = vld [vmem:[%s2540_s17 + $0x184] ss:$8 sps:$4 sm:$0xff]   ;;  %v1971_v63 = vld [vmem:[%s2540_s17 + $0x180] ss:$8 sps:$4 sm:$0xff]  }
  0x82   : > { %1431 = vmatprep.mubr.bf16.mxu0 %v1998_v55  ;;  %1358 = vmatprep.subr.bf16.mxu1 %v2002_v57  ;;  %v2008_v61 = vld [vmem:[%s2540_s17 + $0x24] ss:$8 sps:$4 sm:$0xff]   ;;  %v2014_v0 = vld [vmem:[%s2540_s17 + $0x34] ss:$8 sps:$4 sm:$0xff]   ;;  %v2016_v2 = vld [vmem:[%s2540_s17 + $0x30] ss:$8 sps:$4 sm:$0xff]  }
  0x83   : > { %v1972_v1 = vld [vmem:[%s2540_s17 + $0x194] ss:$8 sps:$4 sm:$0xff]   ;;  %v2020_v3 = vld [vmem:[%s2540_s17 + $0x44] ss:$8 sps:$4 sm:$0xff]   ;;  %v1974_v4 = vld [vmem:[%s2540_s17 + $0x190] ss:$8 sps:$4 sm:$0xff]  }
  0x84   : > { %1404 = vmatpush1.bf16.msra.mxu0 %v1953_v44  ;;  %v1975_v5 = vld [vmem:[%s2540_s17 + $0x1a4] ss:$8 sps:$4 sm:$0xff]   ;;  %v2022_v6 = vld [vmem:[%s2540_s17 + $0x40] ss:$8 sps:$4 sm:$0xff]   ;;  %v2026_v7 = vld [vmem:[%s2540_s17 + $0x54] ss:$8 sps:$4 sm:$0xff]  }
  0x85   : > { %1405 = vmatprep.subr.bf16.mxu0 %v1954_v45  ;;  %1359 = vmatpush1.bf16.msra.mxu1 %v2004_v58  ;;  %v1977_v8 = vld [vmem:[%s2540_s17 + $0x1a0] ss:$8 sps:$4 sm:$0xff]   ;;  %v1978_v9 = vld [vmem:[%s2540_s17 + $0x1b4] ss:$8 sps:$4 sm:$0xff]   ;;  %v2028_v10 = vld [vmem:[%s2540_s17 + $0x50] ss:$8 sps:$4 sm:$0xff]  }
  0x86   : > { %1360 = vmatprep.subr.bf16.mxu1 %v2008_v61  ;;  %v2032_v11 = vld [vmem:[%s2540_s17 + $0x64] ss:$8 sps:$4 sm:$0xff]   ;;  %v1980_v12 = vld [vmem:[%s2540_s17 + $0x1b0] ss:$8 sps:$4 sm:$0xff]   ;;  %v2034_v14 = vld [vmem:[%s2540_s17 + $0x60] ss:$8 sps:$4 sm:$0xff]  }
  0x87   : > { %v1981_v13 = vld [vmem:[%s2540_s17 + $0x1c4] ss:$8 sps:$4 sm:$0xff]   ;;  %v2038_v15 = vld [vmem:[%s2540_s17 + $0x74] ss:$8 sps:$4 sm:$0xff]   ;;  %v1983_v16 = vld [vmem:[%s2540_s17 + $0x1c0] ss:$8 sps:$4 sm:$0xff]  }
  0x88   : > { %1406 = vmatpush1.bf16.msra.mxu0 %v1956_v46  ;;  %v1984_v17 = vld [vmem:[%s2540_s17 + $0x1d4] ss:$8 sps:$4 sm:$0xff]   ;;  %v2040_v18 = vld [vmem:[%s2540_s17 + $0x70] ss:$8 sps:$4 sm:$0xff]   ;;  %v2044_v19 = vld [vmem:[%s2540_s17 + $0x84] ss:$8 sps:$4 sm:$0xff]  }
  0x89   : > { %1407 = vmatprep.subr.bf16.mxu0 %v1957_v47  ;;  %1361 = vmatpush1.bf16.msra.mxu1 %v2010_v62  ;;  %v1986_v20 = vld [vmem:[%s2540_s17 + $0x1d0] ss:$8 sps:$4 sm:$0xff]   ;;  %v1987_v21 = vld [vmem:[%s2540_s17 + $0x1e4] ss:$8 sps:$4 sm:$0xff]   ;;  %v2046_v22 = vld [vmem:[%s2540_s17 + $0x80] ss:$8 sps:$4 sm:$0xff]  }
  0x8a   : > { %1362 = vmatprep.subr.bf16.mxu1 %v2014_v0  ;;  %v2050_v23 = vld [vmem:[%s2540_s17 + $0x94] ss:$8 sps:$4 sm:$0xff]   ;;  %v1989_v24 = vld [vmem:[%s2540_s17 + $0x1e0] ss:$8 sps:$4 sm:$0xff]   ;;  %v2052_v26 = vld [vmem:[%s2540_s17 + $0x90] ss:$8 sps:$4 sm:$0xff]  }
  0x8b   : > { %v1990_v25 = vld [vmem:[%s2540_s17 + $0x1f4] ss:$8 sps:$4 sm:$0xff]   ;;  %v2056_v27 = vld [vmem:[%s2540_s17 + $0xa4] ss:$8 sps:$4 sm:$0xff]   ;;  %v1994_v28 = vld [vmem:[%s2540_s17 + $0x1f0] ss:$8 sps:$4 sm:$0xff]  }
  0x8c   : > { %1408 = vmatpush1.bf16.msra.mxu0 %v1959_v48  ;;  %v2001_v29 = vld [vmem:[%s2540_s17 + $0x204] ss:$8 sps:$4 sm:$0xff]   ;;  %v2058_v30 = vld [vmem:[%s2540_s17 + $0xa0] ss:$8 sps:$4 sm:$0xff]   ;;  %v2062_v32 = vld [vmem:[%s2540_s17 + $0xb4] ss:$8 sps:$4 sm:$0xff]  }
  0x8d   : > { %1409 = vmatprep.subr.bf16.mxu0 %v1960_v49  ;;  %1363 = vmatpush1.bf16.msra.mxu1 %v2016_v2  ;;  %v1996_v31 = vld [vmem:[%s2538_s19 + $0x8] ss:$24 sps:$4 sm:$0xff]   ;;  %v2007_v34 = vld [vmem:[%s2540_s17 + $0x214] ss:$8 sps:$4 sm:$0xff]   ;;  %v2068_v37 = vld [vmem:[%s2540_s17 + $0xc4] ss:$8 sps:$4 sm:$0xff]  }
  0x8e   : > { %1364 = vmatprep.subr.bf16.mxu1 %v2020_v3  ;;  %v1999_v33 = vld [vmem:[%s2540_s17 + $0x200] ss:$8 sps:$4 sm:$0xff]   ;;  %v2064_v35 = vld [vmem:[%s2540_s17 + $0xb0] ss:$8 sps:$4 sm:$0xff]   ;;  %v2091_v36 = vld [vmem:[%s2538_s19 + $0x4] ss:$24 sps:$4 sm:$0xff]  }
  0x8f   : > { %v2005_v38 = vld [vmem:[%s2540_s17 + $0x210] ss:$8 sps:$4 sm:$0xff]   ;;  %1388 = vmatprep.mubr.bf16.mxu1 %v2091_v36  ;;  %v2097_v39 = vld [vmem:[%s2538_s19 + $0x14] ss:$24 sps:$4 sm:$0xff]   ;;  %v2070_v41 = vld [vmem:[%s2540_s17 + $0xc0] ss:$8 sps:$4 sm:$0xff]  }
  0x90   : > { %1410 = vmatpush1.bf16.msra.mxu0 %v1962_v50  ;;  %v2013_v40 = vld [vmem:[%s2540_s17 + $0x224] ss:$8 sps:$4 sm:$0xff]   ;;  %v2074_v42 = vld [vmem:[%s2540_s17 + $0xd4] ss:$8 sps:$4 sm:$0xff]   ;;  %v2011_v43 = vld [vmem:[%s2540_s17 + $0x220] ss:$8 sps:$4 sm:$0xff]  }
  0x91   : > { %1411 = vmatprep.subr.bf16.mxu0 %v1963_v51  ;;  %1365 = vmatpush1.bf16.msra.mxu1 %v2022_v6  ;;  %v2019_v44 = vld [vmem:[%s2540_s17 + $0x234] ss:$8 sps:$4 sm:$0xff]   ;;  %v2076_v45 = vld [vmem:[%s2540_s17 + $0xd0] ss:$8 sps:$4 sm:$0xff]   ;;  %v2080_v46 = vld [vmem:[%s2540_s17 + $0xe4] ss:$8 sps:$4 sm:$0xff]  }
  0x92   : > { %1366 = vmatprep.subr.bf16.mxu1 %v2026_v7  ;;  %v2017_v47 = vld [vmem:[%s2540_s17 + $0x230] ss:$8 sps:$4 sm:$0xff]   ;;  %v2025_v48 = vld [vmem:[%s2540_s17 + $0x244] ss:$8 sps:$4 sm:$0xff]   ;;  %v2082_v49 = vld [vmem:[%s2540_s17 + $0xe0] ss:$8 sps:$4 sm:$0xff]  }
  0x93   : > { %v2086_v50 = vld [vmem:[%s2540_s17 + $0xf4] ss:$8 sps:$4 sm:$0xff]   ;;  %v2023_v51 = vld [vmem:[%s2540_s17 + $0x240] ss:$8 sps:$4 sm:$0xff]   ;;  %v2088_v53 = vld [vmem:[%s2540_s17 + $0xf0] ss:$8 sps:$4 sm:$0xff]  }
  0x94   : > { %1412 = vmatpush1.bf16.msra.mxu0 %v1965_v54  ;;  %v2031_v52 = vld [vmem:[%s2540_s17 + $0x254] ss:$8 sps:$4 sm:$0xff]   ;;  %v2029_v54 = vld [vmem:[%s2540_s17 + $0x250] ss:$8 sps:$4 sm:$0xff]   ;;  %v2037_v55 = vld [vmem:[%s2540_s17 + $0x264] ss:$8 sps:$4 sm:$0xff]  }
  0x95   : > { %1413 = vmatprep.subr.bf16.mxu0 %v1966_v56  ;;  %1367 = vmatpush1.bf16.msra.mxu1 %v2028_v10  ;;  %v2089_v56 = vld [vmem:[%s2538_s19] ss:$24 sps:$4 sm:$0xff]   ;;  %v2043_v58 = vld [vmem:[%s2540_s17 + $0x274] ss:$8 sps:$4 sm:$0xff]   ;;  %v2061_v0 = vld [vmem:[%s2540_s17 + $0x2a4] ss:$8 sps:$4 sm:$0xff]  }
  0x96   : > { %1368 = vmatprep.subr.bf16.mxu1 %v2032_v11  ;;  %v2035_v57 = vld [vmem:[%s2540_s17 + $0x260] ss:$8 sps:$4 sm:$0xff]   ;;  %v2055_v62 = vld [vmem:[%s2540_s17 + $0x294] ss:$8 sps:$4 sm:$0xff]   ;;  %v2065_v3 = vld [vmem:[%s2540_s17 + $0x2b0] ss:$8 sps:$4 sm:$0xff]  }
  0x97   : > { %v2047_v61 = vld [vmem:[%s2540_s17 + $0x280] ss:$8 sps:$4 sm:$0xff]   ;;  %v2067_v2 = vld [vmem:[%s2540_s17 + $0x2b4] ss:$8 sps:$4 sm:$0xff]   ;;  %v2077_v7 = vld [vmem:[%s2540_s17 + $0x2d0] ss:$8 sps:$4 sm:$0xff]  }
  0x98   : > { %1414 = vmatpush1.bf16.msra.mxu0 %v1968_v59  ;;  %v2041_v59 = vld [vmem:[%s2540_s17 + $0x270] ss:$8 sps:$4 sm:$0xff]   ;;  %v2079_v6 = vld [vmem:[%s2540_s17 + $0x2d4] ss:$8 sps:$4 sm:$0xff]   ;;  %p1831_p5 = scmp.ne.s32.totalorder %s2168_s21, 2 }
  0x99   : > { %1415 = vmatprep.subr.bf16.mxu0 %v1969_v60  ;;  %1369 = vmatpush1.bf16.msra.mxu1 %v2034_v14  ;;  %v2049_v60 = vld [vmem:[%s2540_s17 + $0x284] ss:$8 sps:$4 sm:$0xff]   ;;  %v2094_v10 = vld [vmem:[%s2540_s17 + $0x2f4] ss:$8 sps:$4 sm:$0xff]   ;;  %v2092_v11 = vld [vmem:[%s2540_s17 + $0x2f0] ss:$8 sps:$4 sm:$0xff]  }
  0x9a   : > { %1370 = vmatprep.subr.bf16.mxu1 %v2038_v15  ;;  %v1517_v36 = vld [vmem:[%s728_s27] sm:$0x3] (!%p1831_p5) }
  0x9c   : > { %1416 = vmatpush1.bf16.msra.mxu0 %v1971_v63  ;;  %v2053_v63 = vld [vmem:[%s2540_s17 + $0x290] ss:$8 sps:$4 sm:$0xff]  }
  0x9d   : > { %1417 = vmatprep.subr.bf16.mxu0 %v1972_v1  ;;  %1371 = vmatpush1.bf16.msra.mxu1 %v2040_v18  ;;  %v2059_v1 = vld [vmem:[%s2540_s17 + $0x2a0] ss:$8 sps:$4 sm:$0xff]  }
  0x9e   : > { %1372 = vmatprep.subr.bf16.mxu1 %v2044_v19 }
  0xa0   : > { %1418 = vmatpush1.bf16.msra.mxu0 %v1974_v4  ;;  %v2073_v4 = vld [vmem:[%s2540_s17 + $0x2c4] ss:$8 sps:$4 sm:$0xff]  }
  0xa1   : > { %1419 = vmatprep.subr.bf16.mxu0 %v1975_v5  ;;  %1373 = vmatpush1.bf16.msra.mxu1 %v2046_v22  ;;  %v2071_v5 = vld [vmem:[%s2540_s17 + $0x2c0] ss:$8 sps:$4 sm:$0xff]  }
  0xa2   : > { %1374 = vmatprep.subr.bf16.mxu1 %v2050_v23  ;;  %v742_v23 = vld [vmem:[#allocation2 + $0x10] sm:$0xff] }
  0xa4   : > { %1420 = vmatpush1.bf16.msra.mxu0 %v1977_v8  ;;  %v2085_v8 = vld [vmem:[%s2540_s17 + $0x2e4] ss:$8 sps:$4 sm:$0xff]  }
  0xa5   : > { %1421 = vmatprep.subr.bf16.mxu0 %v1978_v9  ;;  %1375 = vmatpush1.bf16.msra.mxu1 %v2052_v26  ;;  %v2083_v9 = vld [vmem:[%s2540_s17 + $0x2e0] ss:$8 sps:$4 sm:$0xff]  }
  0xa6   : > { %1376 = vmatprep.subr.bf16.mxu1 %v2056_v27  ;;  %v743_v27 = vld [vmem:[#allocation2 + $0x18] sm:$0xff] }
  0xa8   : > { %1422 = vmatpush1.bf16.msra.mxu0 %v1980_v12  ;;  %v2095_v12 = vld [vmem:[%s2538_s19 + $0x10] ss:$24 sps:$4 sm:$0xff]  }
  0xa9   : > { %1423 = vmatprep.subr.bf16.mxu0 %v1981_v13  ;;  %1377 = vmatpush1.bf16.msra.mxu1 %v2058_v30 }
  0xaa   : > { %1378 = vmatprep.subr.bf16.mxu1 %v2062_v32 }
  0xac   : > { %1424 = vmatpush1.bf16.msra.mxu0 %v1983_v16 }
  0xad   : > { %1425 = vmatprep.subr.bf16.mxu0 %v1984_v17  ;;  %1379 = vmatpush1.bf16.msra.mxu1 %v2064_v35  ;;  %v740_v17 = vld [vmem:[#allocation2] sm:$0xff] }
  0xae   : > { %1380 = vmatprep.subr.bf16.mxu1 %v2068_v37  ;;  %v1501_v35 = vld [vmem:[%s723_s11] sm:$0x3] (!%p1831_p5) }
  0xb0   : > { %1426 = vmatpush1.bf16.msra.mxu0 %v1986_v20  ;;  %v741_v20 = vld [vmem:[#allocation2 + $0x8] sm:$0xff] }
  0xb1   : > { %1427 = vmatprep.subr.bf16.mxu0 %v1987_v21  ;;  %1381 = vmatpush1.bf16.msra.mxu1 %v2070_v41 }
  0xb2   : > { %1382 = vmatprep.subr.bf16.mxu1 %v2074_v42 }
  0xb4   : > { %1428 = vmatpush1.bf16.msra.mxu0 %v1989_v24 }
  0xb5   : > { %1429 = vmatprep.subr.bf16.mxu0 %v1990_v25  ;;  %1383 = vmatpush1.bf16.msra.mxu1 %v2076_v45 }
  0xb6   : > { %1384 = vmatprep.subr.bf16.mxu1 %v2080_v46 }
  0xb8   : > { %1430 = vmatpush1.bf16.msra.mxu0 %v1994_v28 }
  0xb9   : > { %1442 = vmatprep.subr.bf16.mxu0 %v2001_v29  ;;  %1385 = vmatpush1.bf16.msra.mxu1 %v2082_v49 }
  0xba   : > { %1386 = vmatprep.subr.bf16.mxu1 %v2086_v50 }
  0xbb   : > { %1432 = vmatmul.mubr.bf16.vlgmr.msra.gmra.mrb[0].mxu0 %v1996_v31 }
  0xbc   : > { %1443 = vmatpush1.bf16.msra.mxu0 %v1999_v33  ;;  %1474 = vmatprep.mubr.bf16.mxu0 %v2097_v39  ;;  %v1503_v33 = vlaneseq (!%p1831_p5) }
  0xbd   : > { %1444 = vmatprep.subr.bf16.mxu0 %v2007_v34  ;;  %1387 = vmatpush1.bf16.msra.mxu1 %v2088_v53 }
  0xbe   : > { %v1504_v34 = vshrl.u32 (!%p1831_p5), %v1503_v33, 7 }
  0xc0   : > { %1445 = vmatpush1.bf16.msra.mxu0 %v2005_v38  ;;  %1389 = vmatmul.mubr.bf16.vlgmr.msra.gmra.mrb[0].mxu1 %v2089_v56  ;;  %v1505_v38 = vsub.s32 (!%p1831_p5), 0, %v1504_v34  ;;  %v1509_v39 = vsub.s32 (!%p1831_p5), 1, %v1504_v34 }
  0xc1   : > { %1446 = vmatprep.subr.bf16.mxu0 %v2013_v40 }
  0xc2   : > { %v1522_v45 = vrot.slane (!%p1831_p5), %v1517_v36, %v1505_v38  ;;  %v1526_v46 = vrot.slane (!%p1831_p5), %v1517_v36, %v1509_v39 }
  0xc4   : > { %1447 = vmatpush1.bf16.msra.mxu0 %v2011_v43  ;;  %v1506_v43 = vrot.slane (!%p1831_p5), %v1501_v35, %v1505_v38 }
  0xc5   : > { %1448 = vmatprep.subr.bf16.mxu0 %v2019_v44  ;;  %v1510_v44 = vrot.slane (!%p1831_p5), %v1501_v35, %v1509_v39 }
  0xc8   : > { %1449 = vmatpush1.bf16.msra.mxu0 %v2017_v47 }
  0xc9   : > { %1450 = vmatprep.subr.bf16.mxu0 %v2025_v48 }
  0xcc   : > { %1451 = vmatpush1.bf16.msra.mxu0 %v2023_v51 }
  0xcd   : > { %1452 = vmatprep.subr.bf16.mxu0 %v2031_v52 }
  0xd0   : > { %1453 = vmatpush1.bf16.msra.mxu0 %v2029_v54 }
  0xd1   : > { %1454 = vmatprep.subr.bf16.mxu0 %v2037_v55 }
  0xd4   : > { %1455 = vmatpush1.bf16.msra.mxu0 %v2035_v57 }
  0xd5   : > { %1456 = vmatprep.subr.bf16.mxu0 %v2043_v58 }
  0xd8   : > { %1457 = vmatpush1.bf16.msra.mxu0 %v2041_v59 }
  0xd9   : > { %1458 = vmatprep.subr.bf16.mxu0 %v2049_v60 }
  0xdc   : > { %1459 = vmatpush1.bf16.msra.mxu0 %v2047_v61 }
  0xdd   : > { %1460 = vmatprep.subr.bf16.mxu0 %v2055_v62 }
  0xe0   : > { %1461 = vmatpush1.bf16.msra.mxu0 %v2053_v63 }
  0xe1   : > { %1462 = vmatprep.subr.bf16.mxu0 %v2061_v0 }
  0xe4   : > { %1463 = vmatpush1.bf16.msra.mxu0 %v2059_v1 }
  0xe5   : > { %1464 = vmatprep.subr.bf16.mxu0 %v2067_v2 }
  0xe8   : > { %1465 = vmatpush1.bf16.msra.mxu0 %v2065_v3 }
  0xe9   : > { %1466 = vmatprep.subr.bf16.mxu0 %v2073_v4 }
  0xec   : > { %1467 = vmatpush1.bf16.msra.mxu0 %v2071_v5 }
  0xed   : > { %1468 = vmatprep.subr.bf16.mxu0 %v2079_v6 }
  0xf0   : > { %1469 = vmatpush1.bf16.msra.mxu0 %v2077_v7 }
  0xf1   : > { %1470 = vmatprep.subr.bf16.mxu0 %v2085_v8 }
  0xf4   : > { %1471 = vmatpush1.bf16.msra.mxu0 %v2083_v9 }
  0xf5   : > { %1472 = vmatprep.subr.bf16.mxu0 %v2094_v10 }
  0xf8   : > { %1473 = vmatpush1.bf16.msra.mxu0 %v2092_v11 }
  0xfb   : > { %1475 = vmatmul.mubr.bf16.vlgmr.msra.gmra.mrb[0].mxu0 %v2095_v12 }
 0x193   : > { %v1390_v13 = vpop.f32.mrb[0].mxu1 }
 0x194   : > { %v1392_v14 = vpop.f32.mrb[1].mxu1 }
 0x195   : > { %v1394_v15 = vpop.f32.mrb[2].mxu1 }
 0x196   : > { %v1396_v16 = vpop.f32.mrb[3].mxu1 }
 0x1ce   : > { %v1476_v18 = vpop.f32.mrb[0].mxu0 }
 0x1cf   : > { %v1844_v19 = vadd.f32 %v1476_v18, %v1390_v13  ;;  %v1478_v21 = vpop.f32.mrb[1].mxu0 }
 0x1d0   : > { %v1845_v22 = vadd.f32 %v1478_v21, %v1392_v14  ;;  %v1480_v24 = vpop.f32.mrb[2].mxu0  ;;  %1496 = sbr.rel (%p1831_p5) target bundleno = 487 (0x1e7), region = 105 }
 0x1d1   : > { %v1485_v25 = vadd.f32 %v1844_v19, %v740_v17  ;;  %v1846_v26 = vadd.f32 %v1480_v24, %v1394_v15  ;;  %v1482_v28 = vpop.f32.mrb[3].mxu0 }
 0x1d2   : > { %v1486_v29 = vadd.f32 %v1845_v22, %v741_v20  ;;  %v1847_v30 = vadd.f32 %v1482_v28, %v1396_v16 }
 0x1d3   : > { %1489 = vst [vmem:[#allocation2] sm:$0xff] %v1485_v25  ;;  %v1487_v31 = vadd.f32 %v1846_v26, %v742_v23 }
 0x1d4   : > { %1490 = vst [vmem:[#allocation2 + $0x8] sm:$0xff] %v1486_v29  ;;  %v1488_v32 = vadd.f32 %v1847_v30, %v743_v27 }
 0x1d5   : > { %1491 = vst [vmem:[#allocation2 + $0x10] sm:$0xff] %v1487_v31 }
 0x1d6   : > { %1492 = vst [vmem:[#allocation2 + $0x18] sm:$0xff] %v1488_v32 }
 0x1da   : > { %v1497_v37 = vld [vmem:[#allocation2] sm:$0xff] }
 0x1db   : > { %v1498_v40 = vld [vmem:[#allocation2 + $0x8] sm:$0xff]  ;;  %v1513_v47 = vmul.f32 %v1506_v43, %v1497_v37 }
 0x1dc   : > { %v1499_v41 = vld [vmem:[#allocation2 + $0x10] sm:$0xff]  ;;  %v1514_v48 = vmul.f32 %v1510_v44, %v1498_v40 }
 0x1dd   : > { %v1500_v42 = vld [vmem:[#allocation2 + $0x18] sm:$0xff]  ;;  %v1515_v49 = vmul.f32 %v1506_v43, %v1499_v41  ;;  %v1529_v51 = vadd.f32 %v1522_v45, %v1513_v47 }
 0x1de   : > { %v1516_v50 = vmul.f32 %v1510_v44, %v1500_v42  ;;  %v1530_v52 = vadd.f32 %v1526_v46, %v1514_v48 }
 0x1df   : > { %v1531_v53 = vadd.f32 %v1522_v45, %v1515_v49  ;;  %v1533_v55 = vmax.f32 %v1529_v51, 0.0 }
 0x1e0   : > { %v1532_v54 = vadd.f32 %v1526_v46, %v1516_v50  ;;  %v1534_v56 = vmax.f32 %v1530_v52, 0.0 }
 0x1e1   : > { %v1535_v57 = vmax.f32 %v1531_v53, 0.0 }
 0x1e2   : > { %v1536_v58 = vmax.f32 %v1532_v54, 0.0  ;;  %v1841_v59 = vpack.c.bf16 %v1534_v56, %v1533_v55 }
 0x1e4   : > { %v1842_v60 = vpack.c.bf16 %v1536_v58, %v1535_v57  ;;  %1549 = vst [vmem:[%s2542_s15] sm:$0xff] %v1841_v59 }
 0x1e6   : > { %1550 = vst [vmem:[%s2542_s15 + $0x8] sm:$0xff] %v1842_v60 }
 0x1e7 PF: > { %1557 = sbr.rel (!%p2306_p12) target bundleno = 495 (0x1ef), region = 109  ;;  %s1843_s21 = sshll.u32 (%p2306_p12), %s2172_s22, 3 }
 0x1e8   : > { %s1563_s29 = scalar_lea.vmem (%p2306_p12), %s2705_s4, %s1843_s21 }
 0x1eb   : > { %v1593_v61 = vld [vmem:[%s2542_s15] sm:$0xff] (%p2306_p12) }
 0x1ec   : > { %1594 = vst [vmem:[%s1563_s29] sm:$0xff] (%p2306_p12), %v1593_v61 }
 0x1ed   : > { %v1595_v62 = vld [vmem:[%s2542_s15 + $0x8] sm:$0xff] (%p2306_p12) }
 0x1ee   : > { %1596 = vst [vmem:[%s1563_s29 + $0x10] sm:$0xff] %v1595_v62 }
 0x1ef PF: > { %s14_s25 = sadd.s32 1, %s2184_s25   ;;  %s2717_s14 = sld [smem:[#allocation6_spill]] }
 0x1f0   : > { %p11_p6 = scmp.ge.s32.totalorder %s14_s25, 8   ;;  %s2718_s30 = sld [smem:[#allocation7_spill]] }
 0x1f1   : > { %s2719_s15 = smov %s2148_s16  ;;  %s2720_s16 = smov %s2304_s13 }
 0x1f2   : > { %s2721_s17 = smov %s2156_s18  ;;  %s2722_s18 = smov %s2301_s12 }
 0x1f3   : > { %s2723_s19 = smov %s2164_s20  ;;  %s2724_s20 = smov %s2287_s7 }
 0x1f4   : > { %s2725_s21 = smov %s2176_s23  ;;  %s2726_s22 = smov %s2180_s24 }
 0x1f5   : > { %s2727_s23 = smov %s2717_s14  ;;  %13 = sbr.rel (!%p11_p6) target bundleno = 9 (0x9), region = 192 }
 0x1f6   : > { %s2728_s24 = smov %s2718_s30 }

// kernel: resnet34_features.69
= control target key start
LH: loop header
LB: loop body
LE: loop exit
PB: predicated region body
PF: predicated region fallthrough
CT: control target
= control target key end

     0   :  { %s1156_s15 = smov 0   ;;  %s1158_s16 = smov 0   ;;  %s1347_s0 = inlined_call_operand.vmem [shape: bf16[16,256], index: 0, kind: input, shape index: {}]   ;;  %s1348_s1 = inlined_call_operand.vmem [shape: bf16[256,512], index: 1, kind: input, shape index: {}]   ;;  %s1349_s2 = inlined_call_operand.vmem [shape: f32[1,512], index: 2, kind: input, shape index: {}]   ;;  %s1350_s3 = inlined_call_operand.vmem [shape: f32[1,512], index: 3, kind: input, shape index: {}]   ;;  %s1351_s4 = inlined_call_operand.vmem [shape: bf16[16,512], index: 4, kind: output, shape index: {}]  }
   0x1   :  { %s1160_s17 = smov 0   ;;  %s1162_s18 = smov 0  }
   0x2   :  { %s1164_s19 = smov 0  }
   0x3 LB: > { %s29_s20 = sadd.s32 1, %s1125_s18  ;;  %s942_s21 = sadd.s32 4294967295, %s1129_s19   ;;  %s1129_s19 = sphi %s1164_s19, %s14_s19   ;;  %s1125_s18 = sphi %s1162_s18, %s1356_s18   ;;  %s1121_s17 = sphi %s1160_s17, %s1355_s17   ;;  %s1117_s16 = sphi %s1158_s16, %s1354_s16   ;;  %s1113_s15 = sphi %s1156_s15, %s1353_s15  }
   0x4   : > { %p31_p0 = scmp.ge.s32.totalorder %s29_s20, 2  ;;  %p77_p1 = scmp.ne.s32.totalorder %s1117_s16, %s1113_s15 }
   0x5   : > { %p78_p2 = scmp.eq.s32.totalorder %s1129_s19, 0  ;;  %p161_p4 = scmp.eq.s32.totalorder %s942_s21, 1 }
   0x6   : > { %s1358_s20 = smov (%p31_p0, %s29_s20), 0  ;;  %s70_s23 = sadd.s32 1, %s1117_s16 }
   0x7   : > { %p79_p3 = por %p78_p2, %p77_p1  ;;  %s66_s22 = ssub.s32 %s1125_s18, %s1358_s20 }
   0x8   : > { %p68_p5 = scmp.eq.s32.totalorder %s66_s22, 0  ;;  %p1191_p6 = por %p161_p4, %p77_p1 }
   0x9   : > { %p946_p7 = scmp.ge.s32.totalorder %s1129_s19, 2 }
   0xa   : > { %s1196_s25 = scalar_select %p68_p5, %s1117_s16, %s70_s23  }
   0xb   : > { %198 = sbr.rel (%p946_p7) target bundleno = 38 (0x26), region = 20 }
  0x12   : > { %201 = sbr.rel (!%p79_p3) target bundleno = 38 (0x26), region = 24  ;;  %s203_s26 = sand.u32 (%p79_p3), 1, %s1117_s16  }
  0x13   : > { %s996_s27 = sshll.u32 (%p79_p3), %s1125_s18, 3  ;;  %s947_s28 = sshll.u32 (%p79_p3), %s203_s26, 8 }
  0x14   : > { %s1204_s5 = scalar_lea.vmem (%p79_p3), %s1348_s1, %s996_s27  ;;  %s1209_s6 = scalar_lea.vmem (%p79_p3), [#allocation3], %s947_s28 }
  0x15   : > { %v301_v0 = vld [vmem:[%s1204_s5] sm:$0xff] (%p79_p3)  ;;  %v303_v1 = vld [vmem:[%s1204_s5 + $0x10] sm:$0xff] (%p79_p3) }
  0x16   : > { %v305_v2 = vld [vmem:[%s1204_s5 + $0x20] sm:$0xff] (%p79_p3)  ;;  %302 = vst [vmem:[%s1209_s6] sm:$0xff] (%p79_p3), %v301_v0  ;;  %304 = vst [vmem:[%s1209_s6 + $0x8] sm:$0xff] (%p79_p3), %v303_v1  ;;  %v307_v3 = vld [vmem:[%s1204_s5 + $0x30] sm:$0xff] (%p79_p3) }
  0x17   : > { %306 = vst [vmem:[%s1209_s6 + $0x10] sm:$0xff] (%p79_p3), %v305_v2  ;;  %v309_v4 = vld [vmem:[%s1204_s5 + $0x40] sm:$0xff] (%p79_p3)  ;;  %v311_v5 = vld [vmem:[%s1204_s5 + $0x50] sm:$0xff] (%p79_p3)  ;;  %308 = vst [vmem:[%s1209_s6 + $0x18] sm:$0xff] (%p79_p3), %v307_v3 }
  0x18   : > { %310 = vst [vmem:[%s1209_s6 + $0x20] sm:$0xff] (%p79_p3), %v309_v4  ;;  %312 = vst [vmem:[%s1209_s6 + $0x28] sm:$0xff] (%p79_p3), %v311_v5  ;;  %v313_v6 = vld [vmem:[%s1204_s5 + $0x60] sm:$0xff] (%p79_p3)  ;;  %v315_v7 = vld [vmem:[%s1204_s5 + $0x70] sm:$0xff] (%p79_p3) }
  0x19   : > { %v317_v8 = vld [vmem:[%s1204_s5 + $0x80] sm:$0xff]  ;;  %314 = vst [vmem:[%s1209_s6 + $0x30] sm:$0xff] %v313_v6  ;;  %316 = vst [vmem:[%s1209_s6 + $0x38] sm:$0xff] %v315_v7  ;;  %v319_v9 = vld [vmem:[%s1204_s5 + $0x90] sm:$0xff] }
  0x1a   : > { %318 = vst [vmem:[%s1209_s6 + $0x40] sm:$0xff] %v317_v8  ;;  %v321_v10 = vld [vmem:[%s1204_s5 + $0xa0] sm:$0xff]  ;;  %v323_v11 = vld [vmem:[%s1204_s5 + $0xb0] sm:$0xff]  ;;  %320 = vst [vmem:[%s1209_s6 + $0x48] sm:$0xff] %v319_v9 }
  0x1b   : > { %322 = vst [vmem:[%s1209_s6 + $0x50] sm:$0xff] %v321_v10  ;;  %324 = vst [vmem:[%s1209_s6 + $0x58] sm:$0xff] %v323_v11  ;;  %v325_v12 = vld [vmem:[%s1204_s5 + $0xc0] sm:$0xff]  ;;  %v327_v13 = vld [vmem:[%s1204_s5 + $0xd0] sm:$0xff] }
  0x1c   : > { %v329_v14 = vld [vmem:[%s1204_s5 + $0xe0] sm:$0xff]  ;;  %326 = vst [vmem:[%s1209_s6 + $0x60] sm:$0xff] %v325_v12  ;;  %328 = vst [vmem:[%s1209_s6 + $0x68] sm:$0xff] %v327_v13  ;;  %v331_v15 = vld [vmem:[%s1204_s5 + $0xf0] sm:$0xff] }
  0x1d   : > { %330 = vst [vmem:[%s1209_s6 + $0x70] sm:$0xff] %v329_v14  ;;  %v333_v16 = vld [vmem:[%s1204_s5 + $0x100] sm:$0xff]  ;;  %v335_v17 = vld [vmem:[%s1204_s5 + $0x110] sm:$0xff]  ;;  %332 = vst [vmem:[%s1209_s6 + $0x78] sm:$0xff] %v331_v15 }
  0x1e   : > { %334 = vst [vmem:[%s1209_s6 + $0x80] sm:$0xff] %v333_v16  ;;  %336 = vst [vmem:[%s1209_s6 + $0x88] sm:$0xff] %v335_v17  ;;  %v337_v18 = vld [vmem:[%s1204_s5 + $0x120] sm:$0xff]  ;;  %v339_v19 = vld [vmem:[%s1204_s5 + $0x130] sm:$0xff] }
  0x1f   : > { %v341_v20 = vld [vmem:[%s1204_s5 + $0x140] sm:$0xff]  ;;  %338 = vst [vmem:[%s1209_s6 + $0x90] sm:$0xff] %v337_v18  ;;  %340 = vst [vmem:[%s1209_s6 + $0x98] sm:$0xff] %v339_v19  ;;  %v343_v21 = vld [vmem:[%s1204_s5 + $0x150] sm:$0xff] }
  0x20   : > { %342 = vst [vmem:[%s1209_s6 + $0xa0] sm:$0xff] %v341_v20  ;;  %v345_v22 = vld [vmem:[%s1204_s5 + $0x160] sm:$0xff]  ;;  %v347_v23 = vld [vmem:[%s1204_s5 + $0x170] sm:$0xff]  ;;  %344 = vst [vmem:[%s1209_s6 + $0xa8] sm:$0xff] %v343_v21 }
  0x21   : > { %346 = vst [vmem:[%s1209_s6 + $0xb0] sm:$0xff] %v345_v22  ;;  %348 = vst [vmem:[%s1209_s6 + $0xb8] sm:$0xff] %v347_v23  ;;  %v349_v24 = vld [vmem:[%s1204_s5 + $0x180] sm:$0xff]  ;;  %v351_v25 = vld [vmem:[%s1204_s5 + $0x190] sm:$0xff] }
  0x22   : > { %v353_v26 = vld [vmem:[%s1204_s5 + $0x1a0] sm:$0xff]  ;;  %350 = vst [vmem:[%s1209_s6 + $0xc0] sm:$0xff] %v349_v24  ;;  %352 = vst [vmem:[%s1209_s6 + $0xc8] sm:$0xff] %v351_v25  ;;  %v355_v27 = vld [vmem:[%s1204_s5 + $0x1b0] sm:$0xff] }
  0x23   : > { %354 = vst [vmem:[%s1209_s6 + $0xd0] sm:$0xff] %v353_v26  ;;  %v357_v28 = vld [vmem:[%s1204_s5 + $0x1c0] sm:$0xff]  ;;  %v359_v29 = vld [vmem:[%s1204_s5 + $0x1d0] sm:$0xff]  ;;  %356 = vst [vmem:[%s1209_s6 + $0xd8] sm:$0xff] %v355_v27 }
  0x24   : > { %358 = vst [vmem:[%s1209_s6 + $0xe0] sm:$0xff] %v357_v28  ;;  %360 = vst [vmem:[%s1209_s6 + $0xe8] sm:$0xff] %v359_v29  ;;  %v361_v30 = vld [vmem:[%s1204_s5 + $0x1e0] sm:$0xff]  ;;  %v363_v31 = vld [vmem:[%s1204_s5 + $0x1f0] sm:$0xff] }
  0x25   : > { %362 = vst [vmem:[%s1209_s6 + $0xf0] sm:$0xff] %v361_v30  ;;  %364 = vst [vmem:[%s1209_s6 + $0xf8] sm:$0xff] %v363_v31 }
  0x26 PF: > { %p950_p8 = scmp.ge.s32.totalorder %s1129_s19, 1  ;;  %p385_p9 = scmp.lt.s32.totalorder %s1129_s19, 3 }
  0x28   : > { %p386_p10 = pnand %p950_p8, %p385_p9 }
  0x29   : > { %s392_s7 = sand.u32 (!%p386_p10), 1, %s1113_s15   ;;  %v1090_v32 = vld [vmem:[%s1347_s0 + $0x4] ss:$8 sps:$4 sm:$0xff] (!%p386_p10)   ;;  %v1088_v1 = vld [vmem:[%s1347_s0] ss:$8 sps:$4 sm:$0xff] (!%p386_p10)   ;;  %s953_s14 = sshll.u32 (!%p386_p10), %s1121_s17, 1  ;;  %v736_v2 = vlaneseq (!%p386_p10) }
  0x2a   : > { %389 = sbr.rel (%p386_p10) target bundleno = 339 (0x153), region = 70  ;;  %s951_s8 = sshll.u32 (!%p386_p10), %s392_s7, 8  ;;  %708 = vmatprep.mubr.bf16.mxu0 (!%p386_p10), %v1090_v32 }
  0x2b   : > { %s1280_s11 = scalar_lea.vmem (!%p386_p10), [#allocation3], %s951_s8  ;;  %p449_p11 = scmp.lt.s32.totalorder (!%p386_p10), %s953_s14, 3  ;;  %v737_v3 = vshrl.u32 (!%p386_p10), %v736_v2, 7 }
  0x2c   : > { %v1040_v33 = vld [vmem:[%s1280_s11 + $0x4] ss:$8 sps:$4 sm:$0xff] (!%p386_p10)   ;;  %v1042_v34 = vld [vmem:[%s1280_s11] ss:$8 sps:$4 sm:$0xff] (!%p386_p10)   ;;  %v1043_v35 = vld [vmem:[%s1280_s11 + $0x14] ss:$8 sps:$4 sm:$0xff] (!%p386_p10)  }
  0x2d   : > { %676 = vmatprep.subr.bf16.mxu0 (!%p386_p10), %v1040_v33  ;;  %v1045_v36 = vld [vmem:[%s1280_s11 + $0x10] ss:$8 sps:$4 sm:$0xff] (!%p386_p10)   ;;  %v1046_v37 = vld [vmem:[%s1280_s11 + $0x24] ss:$8 sps:$4 sm:$0xff] (!%p386_p10)   ;;  %v1048_v38 = vld [vmem:[%s1280_s11 + $0x20] ss:$8 sps:$4 sm:$0xff] (!%p386_p10)  }
  0x2e   : > { %677 = vmatpush1.bf16.msra.mxu0 (!%p386_p10), %v1042_v34  ;;  %v1049_v39 = vld [vmem:[%s1280_s11 + $0x34] ss:$8 sps:$4 sm:$0xff] (!%p386_p10)   ;;  %v1051_v40 = vld [vmem:[%s1280_s11 + $0x30] ss:$8 sps:$4 sm:$0xff] (!%p386_p10)   ;;  %v1052_v41 = vld [vmem:[%s1280_s11 + $0x44] ss:$8 sps:$4 sm:$0xff] (!%p386_p10)  }
  0x2f   : > { %678 = vmatprep.subr.bf16.mxu0 (!%p386_p10), %v1043_v35  ;;  %v1054_v42 = vld [vmem:[%s1280_s11 + $0x40] ss:$8 sps:$4 sm:$0xff] (!%p386_p10)   ;;  %v1055_v43 = vld [vmem:[%s1280_s11 + $0x54] ss:$8 sps:$4 sm:$0xff] (!%p386_p10)   ;;  %v1057_v44 = vld [vmem:[%s1280_s11 + $0x50] ss:$8 sps:$4 sm:$0xff] (!%p386_p10)  }
  0x30   : > { %v1058_v45 = vld [vmem:[%s1280_s11 + $0x64] ss:$8 sps:$4 sm:$0xff] (!%p386_p10)   ;;  %v1060_v46 = vld [vmem:[%s1280_s11 + $0x60] ss:$8 sps:$4 sm:$0xff] (!%p386_p10)   ;;  %v1061_v47 = vld [vmem:[%s1280_s11 + $0x74] ss:$8 sps:$4 sm:$0xff] (!%p386_p10)  }
  0x31   : > { %v1063_v48 = vld [vmem:[%s1280_s11 + $0x70] ss:$8 sps:$4 sm:$0xff]   ;;  %v1064_v49 = vld [vmem:[%s1280_s11 + $0x84] ss:$8 sps:$4 sm:$0xff]   ;;  %v1066_v50 = vld [vmem:[%s1280_s11 + $0x80] ss:$8 sps:$4 sm:$0xff]  }
  0x32   : > { %679 = vmatpush1.bf16.msra.mxu0 %v1045_v36  ;;  %v1067_v51 = vld [vmem:[%s1280_s11 + $0x94] ss:$8 sps:$4 sm:$0xff]   ;;  %v1069_v52 = vld [vmem:[%s1280_s11 + $0x90] ss:$8 sps:$4 sm:$0xff]   ;;  %v1070_v53 = vld [vmem:[%s1280_s11 + $0xa4] ss:$8 sps:$4 sm:$0xff]  }
  0x33   : > { %680 = vmatprep.subr.bf16.mxu0 %v1046_v37  ;;  %v1072_v54 = vld [vmem:[%s1280_s11 + $0xa0] ss:$8 sps:$4 sm:$0xff]   ;;  %v1073_v55 = vld [vmem:[%s1280_s11 + $0xb4] ss:$8 sps:$4 sm:$0xff]   ;;  %v1075_v56 = vld [vmem:[%s1280_s11 + $0xb0] ss:$8 sps:$4 sm:$0xff]  }
  0x34   : > { %v1076_v57 = vld [vmem:[%s1280_s11 + $0xc4] ss:$8 sps:$4 sm:$0xff]   ;;  %v1078_v58 = vld [vmem:[%s1280_s11 + $0xc0] ss:$8 sps:$4 sm:$0xff]   ;;  %v1079_v59 = vld [vmem:[%s1280_s11 + $0xd4] ss:$8 sps:$4 sm:$0xff]  }
  0x35   : > { %v1081_v60 = vld [vmem:[%s1280_s11 + $0xd0] ss:$8 sps:$4 sm:$0xff]   ;;  %v1082_v61 = vld [vmem:[%s1280_s11 + $0xe4] ss:$8 sps:$4 sm:$0xff]   ;;  %v1084_v62 = vld [vmem:[%s1280_s11 + $0xe0] ss:$8 sps:$4 sm:$0xff]  }
  0x36   : > { %681 = vmatpush1.bf16.msra.mxu0 %v1048_v38  ;;  %v1085_v63 = vld [vmem:[%s1280_s11 + $0xf4] ss:$8 sps:$4 sm:$0xff]   ;;  %v1087_v0 = vld [vmem:[%s1280_s11 + $0xf0] ss:$8 sps:$4 sm:$0xff]   ;;  %s1360_s14 = smov (!%p449_p11, %s953_s14), 3  ;;  %v738_v4 = vsub.s32 0, %v737_v3 }
  0x37   : > { %682 = vmatprep.subr.bf16.mxu0 %v1049_v39  ;;  %s451_s23 = scalar_lea.vmem %s1349_s2, %s1360_s14  ;;  %s456_s28 = scalar_lea.vmem %s1350_s3, %s1360_s14  ;;  %v742_v6 = vsub.s32 1, %v737_v3 }
  0x38   : > { %v734_v5 = vld [vmem:[%s451_s23] sm:$0x3]  ;;  %s952_s29 = sshll.u32 %s392_s7, 4  ;;  %s999_s15 = sshll.u32 (%p1191_p6), %s1121_s17, 3 }
  0x39   : > { %v750_v7 = vld [vmem:[%s456_s28] sm:$0x3]  ;;  %v739_v8 = vrot.slane %v734_v5, %v738_v4  ;;  %v743_v9 = vrot.slane %v734_v5, %v742_v6  ;;  %s433_s30 = scalar_lea.vmem [#allocation4], %s952_s29  ;;  %s792_s7 = scalar_lea.vmem (%p1191_p6), %s1351_s4, %s999_s15 }
  0x3a   : > { %683 = vmatpush1.bf16.msra.mxu0 %v1051_v40  ;;  %v755_v10 = vrot.slane %v750_v7, %v738_v4  ;;  %v759_v12 = vrot.slane %v750_v7, %v742_v6 }
  0x3b   : > { %684 = vmatprep.subr.bf16.mxu0 %v1052_v41 }
  0x3e   : > { %685 = vmatpush1.bf16.msra.mxu0 %v1054_v42 }
  0x3f   : > { %686 = vmatprep.subr.bf16.mxu0 %v1055_v43 }
  0x42   : > { %687 = vmatpush1.bf16.msra.mxu0 %v1057_v44 }
  0x43   : > { %688 = vmatprep.subr.bf16.mxu0 %v1058_v45 }
  0x46   : > { %689 = vmatpush1.bf16.msra.mxu0 %v1060_v46 }
  0x47   : > { %690 = vmatprep.subr.bf16.mxu0 %v1061_v47 }
  0x4a   : > { %691 = vmatpush1.bf16.msra.mxu0 %v1063_v48 }
  0x4b   : > { %692 = vmatprep.subr.bf16.mxu0 %v1064_v49 }
  0x4e   : > { %693 = vmatpush1.bf16.msra.mxu0 %v1066_v50 }
  0x4f   : > { %694 = vmatprep.subr.bf16.mxu0 %v1067_v51 }
  0x52   : > { %695 = vmatpush1.bf16.msra.mxu0 %v1069_v52 }
  0x53   : > { %696 = vmatprep.subr.bf16.mxu0 %v1070_v53 }
  0x56   : > { %697 = vmatpush1.bf16.msra.mxu0 %v1072_v54 }
  0x57   : > { %698 = vmatprep.subr.bf16.mxu0 %v1073_v55 }
  0x5a   : > { %699 = vmatpush1.bf16.msra.mxu0 %v1075_v56 }
  0x5b   : > { %700 = vmatprep.subr.bf16.mxu0 %v1076_v57 }
  0x5e   : > { %701 = vmatpush1.bf16.msra.mxu0 %v1078_v58 }
  0x5f   : > { %702 = vmatprep.subr.bf16.mxu0 %v1079_v59 }
  0x62   : > { %703 = vmatpush1.bf16.msra.mxu0 %v1081_v60 }
  0x63   : > { %704 = vmatprep.subr.bf16.mxu0 %v1082_v61 }
  0x66   : > { %705 = vmatpush1.bf16.msra.mxu0 %v1084_v62 }
  0x67   : > { %706 = vmatprep.subr.bf16.mxu0 %v1085_v63 }
  0x6a   : > { %707 = vmatpush1.bf16.msra.mxu0 %v1087_v0 }
  0x6d   : > { %709 = vmatmul.mubr.bf16.vlgmr.msra.gmra.mrb[0].mxu0 %v1088_v1 }
 0x140   : > { %v710_v11 = vpop.f32.mrb[0].mxu0 }
 0x141   : > { %v746_v13 = vmul.f32 %v739_v8, %v710_v11  ;;  %v712_v14 = vpop.f32.mrb[1].mxu0 }
 0x142   : > { %v747_v15 = vmul.f32 %v743_v9, %v712_v14  ;;  %v714_v16 = vpop.f32.mrb[2].mxu0 }
 0x143   : > { %v762_v17 = vadd.f32 %v755_v10, %v746_v13  ;;  %v748_v18 = vmul.f32 %v739_v8, %v714_v16  ;;  %v716_v19 = vpop.f32.mrb[3].mxu0 }
 0x144   : > { %v763_v20 = vadd.f32 %v759_v12, %v747_v15  ;;  %v749_v21 = vmul.f32 %v743_v9, %v716_v19  ;;  %786 = sbr.rel (!%p1191_p6) target bundleno = 339 (0x153), region = 86 }
 0x145   : > { %v764_v22 = vadd.f32 %v755_v10, %v748_v18 }
 0x146   : > { %v997_v23 = vpack.c.bf16 %v763_v20, %v762_v17  ;;  %v765_v24 = vadd.f32 %v759_v12, %v749_v21 }
 0x148   : > { %778 = vst [vmem:[%s433_s30] sm:$0xff] %v997_v23  ;;  %v998_v25 = vpack.c.bf16 %v765_v24, %v764_v22 }
 0x14a   : > { %779 = vst [vmem:[%s433_s30 + $0x8] sm:$0xff] %v998_v25 }
 0x14f   : > { %v822_v26 = vld [vmem:[%s433_s30] sm:$0xff] }
 0x150   : > { %823 = vst [vmem:[%s792_s7] sm:$0xff] %v822_v26 }
 0x151   : > { %v824_v27 = vld [vmem:[%s433_s30 + $0x8] sm:$0xff] }
 0x152   : > { %825 = vst [vmem:[%s792_s7 + $0x10] sm:$0xff] %v824_v27 }
 0x153 PF: > { %s14_s19 = sadd.s32 1, %s1129_s19   ;;  %s1353_s15 = smov %s1117_s16 }
 0x154   : > { %p11_p12 = scmp.ge.s32.totalorder %s14_s19, 4   ;;  %s1354_s16 = smov %s1196_s25 }
 0x155   : > { %s1355_s17 = smov %s1125_s18  ;;  %s1356_s18 = smov %s1358_s20 }
 0x156   :  { %13 = sbr.rel (!%p11_p12) target bundleno = 3 (0x3), region = 164 }

// kernel: resnet34_features.70
= control target key start
LH: loop header
LB: loop body
LE: loop exit
PB: predicated region body
PF: predicated region fallthrough
CT: control target
= control target key end

     0   :  { %s2860_s0 = inlined_call_operand.vmem [shape: bf16[16,4608], index: 0, kind: input, shape index: {}]   ;;  %s2861_s1 = inlined_call_operand.vmem [shape: bf16[4608,512], index: 1, kind: input, shape index: {}]   ;;  %s2862_s2 = inlined_call_operand.vmem [shape: f32[1,512], index: 2, kind: input, shape index: {}]   ;;  %s2863_s3 = inlined_call_operand.vmem [shape: f32[1,512], index: 3, kind: input, shape index: {}]   ;;  %s2864_s4 = inlined_call_operand.vmem [shape: bf16[16,512], index: 4, kind: input, shape index: {}]   ;;  %s2865_s5 = inlined_call_operand.vmem [shape: bf16[16,512], index: 5, kind: output, shape index: {}]  }
   0x1   :  { %2868 = sst [smem:[#allocation10_spill]] %s2860_s0 }
   0x2   :  { %s2346_s18 = smov 0   ;;  %s2348_s19 = smov 0  }
   0x3   :  { %s2350_s20 = smov 0   ;;  %s2352_s21 = smov 0  }
   0x4   :  { %s2354_s22 = smov 0   ;;  %s2356_s23 = smov 0  }
   0x5   :  { %s2358_s24 = smov 0   ;;  %s2360_s25 = smov 0  }
   0x6   :  { %s2362_s26 = smov 0   ;;  %s2364_s27 = smov 0  }
   0x7   :  { %s2366_s28 = smov 0  }
   0x8 LB: > { %s1840_s29 = sadd.s32 4294967295, %s2313_s28   ;;  %s27_s30 = sadd.s32 1, %s2305_s26  ;;  %s2313_s28 = sphi %s2366_s28, %s15_s28   ;;  %s2309_s27 = sphi %s2364_s27, %s2889_s27   ;;  %s2305_s26 = sphi %s2362_s26, %s2888_s26   ;;  %s2301_s25 = sphi %s2360_s25, %s2887_s25   ;;  %s2297_s24 = sphi %s2358_s24, %s2886_s24   ;;  %s2293_s23 = sphi %s2356_s23, %s2885_s23   ;;  %s2289_s22 = sphi %s2354_s22, %s2884_s22   ;;  %s2285_s21 = sphi %s2352_s21, %s2883_s21   ;;  %s2281_s20 = sphi %s2350_s20, %s2882_s20   ;;  %s2277_s19 = sphi %s2348_s19, %s2881_s19   ;;  %s2273_s18 = sphi %s2346_s18, %s2880_s18  }
   0x9   : > { %p28_p0 = scmp.ge.s32.totalorder %s27_s30, 6  ;;  %s30_s6 = sadd.s32 1, %s2309_s27 }
   0xa   : > { %s43_s7 = sadd.s32 1, %s2293_s23  ;;  %p50_p1 = scmp.ne.s32.totalorder %s2293_s23, %s2289_s22 }
   0xb   : > { %s2891_s30 = smov (%p28_p0, %s27_s30), 0  ;;  %s2893_s6 = smov (!%p28_p0, %s30_s6), %s2309_s27 }
   0xc   : > { %2869 = sst [smem:[#allocation7_spill]] %s2891_s30  ;;  %s39_s8 = ssub.s32 %s2305_s26, %s2891_s30 }
   0xd   : > { %p51_p2 = scmp.eq.s32.totalorder %s2313_s28, 0  ;;  %p32_p3 = scmp.ge.s32.totalorder %s2893_s6, 2 }
   0xe   : > { %p41_p4 = scmp.eq.s32.totalorder %s39_s8, 0  ;;  %s71_s10 = sadd.s32 1, %s2285_s21 }
   0xf   : > { %p2415_p5 = por %p51_p2, %p50_p1  ;;  %s2895_s6 = smov (%p32_p3, %s2893_s6), 0 }
  0x10   : > { %2871 = sst [smem:[#allocation8_spill]] %s2895_s6  ;;  %s67_s12 = ssub.s32 %s2309_s27, %s2895_s6 }
  0x11   : > { %s2423_s11 = scalar_select %p41_p4, %s2293_s23, %s43_s7  }
  0x12   : > { %p78_p6 = scmp.ne.s32.totalorder %s2285_s21, %s2281_s20  ;;  %s68_s13 = sor.u32 %s67_s12, %s39_s8 }
  0x13   : > { %2872 = sst [smem:[#allocation9_spill]] %s2423_s11  ;;  %p149_p7 = scmp.eq.s32.totalorder %s67_s12, 0 }
  0x14   : > { %p69_p8 = scmp.eq.s32.totalorder %s68_s13, 0  ;;  %p2431_p9 = por %p78_p6, %p51_p2 }
  0x15   : > { %s151_s15 = sadd.s32 1, %s2277_s19  ;;  %p158_p10 = scmp.ne.s32.totalorder %s2277_s19, %s2273_s18 }
  0x16   : > { %s2439_s16 = scalar_select %p69_p8, %s2285_s21, %s71_s10  }
  0x17   : > { %s2442_s17 = scalar_select %p149_p7, %s2277_s19, %s151_s15  }
  0x18   : > { %p2446_p11 = por %p158_p10, %p51_p2  ;;  %p190_p12 = scmp.eq.s32.totalorder %s1840_s29, 11 }
  0x19   : > { %p1843_p0 = scmp.ge.s32.totalorder %s2313_s28, 12 }
  0x1a   : > { %p2450_p13 = por %p190_p12, %p158_p10 }
  0x1b   : > { %212 = sbr.rel (%p1843_p0) target bundleno = 109 (0x6d), region = 16 }
  0x22   : > { %215 = sbr.rel (!%p2415_p5) target bundleno = 46 (0x2e), region = 20  ;;  %s217_s10 = sand.u32 (%p2415_p5), 1, %s2293_s23  }
  0x23   : > { %s1967_s12 = smul.u32 (%p2415_p5), 24, %s2305_s26  ;;  %s2876_s0 = sld [smem:[#allocation10_spill]] (%p2415_p5) }
  0x24   : > { %s1981_s13 = smul.u32 (%p2415_p5), 48, %s217_s10 }
  0x26   : > { %s219_s29 = scalar_lea.vmem (%p2415_p5), [#allocation3], %s1981_s13 }
  0x29   : > { %s225_s30 = scalar_lea.vmem %s2876_s0, %s1967_s12 }
  0x2a   : > { %v238_v0 = vld [vmem:[%s225_s30] sm:$0xff]  ;;  %v240_v1 = vld [vmem:[%s225_s30 + $0x8] sm:$0xff]  ;;  %v242_v2 = vld [vmem:[%s225_s30 + $0x10] sm:$0xff] }
  0x2b   : > { %239 = vst [vmem:[%s219_s29] sm:$0xff] %v238_v0  ;;  %241 = vst [vmem:[%s219_s29 + $0x8] sm:$0xff] %v240_v1  ;;  %v244_v3 = vld [vmem:[%s225_s30 + $0x90] sm:$0xff]  ;;  %v246_v4 = vld [vmem:[%s225_s30 + $0x98] sm:$0xff] }
  0x2c   : > { %243 = vst [vmem:[%s219_s29 + $0x10] sm:$0xff] %v242_v2  ;;  %v248_v5 = vld [vmem:[%s225_s30 + $0xa0] sm:$0xff]  ;;  %245 = vst [vmem:[%s219_s29 + $0x18] sm:$0xff] %v244_v3 }
  0x2d   : > { %247 = vst [vmem:[%s219_s29 + $0x20] sm:$0xff] %v246_v4  ;;  %249 = vst [vmem:[%s219_s29 + $0x28] sm:$0xff] %v248_v5 }
  0x2e PF: > { %255 = sbr.rel (!%p2431_p9) target bundleno = 102 (0x66), region = 43  ;;  %s257_s6 = sand.u32 (%p2431_p9), 1, %s2285_s21  }
  0x2f   : > { %s1982_s9 = smul.u32 (%p2431_p9), 768, %s257_s6  ;;  %s1845_s10 = sshll.u32 (%p2431_p9), %s2309_s27, 1 }
  0x30   : > { %s1968_s12 = smul.u32 (%p2431_p9), 384, %s2305_s26 }
  0x31   : > { %s2475_s14 = scalar_lea.vmem (%p2431_p9), [#allocation4], %s1982_s9 }
  0x32   : > { %s263_s13 = sadd.s32 (%p2431_p9), %s1968_s12, %s1845_s10 }
  0x33   : > { %s1847_s15 = sshll.u32 (%p2431_p9), %s263_s13, 2 }
  0x34   : > { %s2470_s30 = scalar_lea.vmem (%p2431_p9), %s2861_s1, %s1847_s15 }
  0x35   : > { %v483_v6 = vld [vmem:[%s2470_s30] sm:$0xff]  ;;  %v485_v7 = vld [vmem:[%s2470_s30 + $0x10] sm:$0xff] }
  0x36   : > { %v487_v8 = vld [vmem:[%s2470_s30 + $0x20] sm:$0xff]  ;;  %484 = vst [vmem:[%s2475_s14] sm:$0xff] %v483_v6  ;;  %486 = vst [vmem:[%s2475_s14 + $0x8] sm:$0xff] %v485_v7  ;;  %v489_v9 = vld [vmem:[%s2470_s30 + $0x30] sm:$0xff] }
  0x37   : > { %488 = vst [vmem:[%s2475_s14 + $0x10] sm:$0xff] %v487_v8  ;;  %v491_v10 = vld [vmem:[%s2470_s30 + $0x40] sm:$0xff]  ;;  %v493_v11 = vld [vmem:[%s2470_s30 + $0x50] sm:$0xff]  ;;  %490 = vst [vmem:[%s2475_s14 + $0x18] sm:$0xff] %v489_v9 }
  0x38   : > { %492 = vst [vmem:[%s2475_s14 + $0x20] sm:$0xff] %v491_v10  ;;  %494 = vst [vmem:[%s2475_s14 + $0x28] sm:$0xff] %v493_v11  ;;  %v495_v12 = vld [vmem:[%s2470_s30 + $0x60] sm:$0xff]  ;;  %v497_v13 = vld [vmem:[%s2470_s30 + $0x70] sm:$0xff] }
  0x39   : > { %v499_v14 = vld [vmem:[%s2470_s30 + $0x80] sm:$0xff]  ;;  %496 = vst [vmem:[%s2475_s14 + $0x30] sm:$0xff] %v495_v12  ;;  %498 = vst [vmem:[%s2475_s14 + $0x38] sm:$0xff] %v497_v13  ;;  %v501_v15 = vld [vmem:[%s2470_s30 + $0x90] sm:$0xff] }
  0x3a   : > { %500 = vst [vmem:[%s2475_s14 + $0x40] sm:$0xff] %v499_v14  ;;  %v503_v16 = vld [vmem:[%s2470_s30 + $0xa0] sm:$0xff]  ;;  %v505_v17 = vld [vmem:[%s2470_s30 + $0xb0] sm:$0xff]  ;;  %502 = vst [vmem:[%s2475_s14 + $0x48] sm:$0xff] %v501_v15 }
  0x3b   : > { %504 = vst [vmem:[%s2475_s14 + $0x50] sm:$0xff] %v503_v16  ;;  %506 = vst [vmem:[%s2475_s14 + $0x58] sm:$0xff] %v505_v17  ;;  %v507_v18 = vld [vmem:[%s2470_s30 + $0xc0] sm:$0xff]  ;;  %v509_v19 = vld [vmem:[%s2470_s30 + $0xd0] sm:$0xff] }
  0x3c   : > { %v511_v20 = vld [vmem:[%s2470_s30 + $0xe0] sm:$0xff]  ;;  %508 = vst [vmem:[%s2475_s14 + $0x60] sm:$0xff] %v507_v18  ;;  %510 = vst [vmem:[%s2475_s14 + $0x68] sm:$0xff] %v509_v19  ;;  %v513_v21 = vld [vmem:[%s2470_s30 + $0xf0] sm:$0xff] }
  0x3d   : > { %512 = vst [vmem:[%s2475_s14 + $0x70] sm:$0xff] %v511_v20  ;;  %v515_v22 = vld [vmem:[%s2470_s30 + $0x100] sm:$0xff]  ;;  %v517_v23 = vld [vmem:[%s2470_s30 + $0x110] sm:$0xff]  ;;  %514 = vst [vmem:[%s2475_s14 + $0x78] sm:$0xff] %v513_v21 }
  0x3e   : > { %516 = vst [vmem:[%s2475_s14 + $0x80] sm:$0xff] %v515_v22  ;;  %518 = vst [vmem:[%s2475_s14 + $0x88] sm:$0xff] %v517_v23  ;;  %v519_v24 = vld [vmem:[%s2470_s30 + $0x120] sm:$0xff]  ;;  %v521_v25 = vld [vmem:[%s2470_s30 + $0x130] sm:$0xff] }
  0x3f   : > { %v523_v26 = vld [vmem:[%s2470_s30 + $0x140] sm:$0xff]  ;;  %520 = vst [vmem:[%s2475_s14 + $0x90] sm:$0xff] %v519_v24  ;;  %522 = vst [vmem:[%s2475_s14 + $0x98] sm:$0xff] %v521_v25  ;;  %v525_v27 = vld [vmem:[%s2470_s30 + $0x150] sm:$0xff] }
  0x40   : > { %524 = vst [vmem:[%s2475_s14 + $0xa0] sm:$0xff] %v523_v26  ;;  %v527_v28 = vld [vmem:[%s2470_s30 + $0x160] sm:$0xff]  ;;  %v529_v29 = vld [vmem:[%s2470_s30 + $0x170] sm:$0xff]  ;;  %526 = vst [vmem:[%s2475_s14 + $0xa8] sm:$0xff] %v525_v27 }
  0x41   : > { %528 = vst [vmem:[%s2475_s14 + $0xb0] sm:$0xff] %v527_v28  ;;  %530 = vst [vmem:[%s2475_s14 + $0xb8] sm:$0xff] %v529_v29  ;;  %v531_v30 = vld [vmem:[%s2470_s30 + $0x180] sm:$0xff]  ;;  %v533_v31 = vld [vmem:[%s2470_s30 + $0x190] sm:$0xff] }
  0x42   : > { %v535_v32 = vld [vmem:[%s2470_s30 + $0x1a0] sm:$0xff]  ;;  %532 = vst [vmem:[%s2475_s14 + $0xc0] sm:$0xff] %v531_v30  ;;  %534 = vst [vmem:[%s2475_s14 + $0xc8] sm:$0xff] %v533_v31  ;;  %v537_v33 = vld [vmem:[%s2470_s30 + $0x1b0] sm:$0xff] }
  0x43   : > { %536 = vst [vmem:[%s2475_s14 + $0xd0] sm:$0xff] %v535_v32  ;;  %v539_v34 = vld [vmem:[%s2470_s30 + $0x1c0] sm:$0xff]  ;;  %v541_v35 = vld [vmem:[%s2470_s30 + $0x1d0] sm:$0xff]  ;;  %538 = vst [vmem:[%s2475_s14 + $0xd8] sm:$0xff] %v537_v33 }
  0x44   : > { %540 = vst [vmem:[%s2475_s14 + $0xe0] sm:$0xff] %v539_v34  ;;  %542 = vst [vmem:[%s2475_s14 + $0xe8] sm:$0xff] %v541_v35  ;;  %v543_v36 = vld [vmem:[%s2470_s30 + $0x1e0] sm:$0xff]  ;;  %v545_v37 = vld [vmem:[%s2470_s30 + $0x1f0] sm:$0xff] }
  0x45   : > { %v547_v38 = vld [vmem:[%s2470_s30 + $0x200] sm:$0xff]  ;;  %544 = vst [vmem:[%s2475_s14 + $0xf0] sm:$0xff] %v543_v36  ;;  %546 = vst [vmem:[%s2475_s14 + $0xf8] sm:$0xff] %v545_v37  ;;  %v549_v39 = vld [vmem:[%s2470_s30 + $0x210] sm:$0xff] }
  0x46   : > { %548 = vst [vmem:[%s2475_s14 + $0x100] sm:$0xff] %v547_v38  ;;  %v551_v40 = vld [vmem:[%s2470_s30 + $0x220] sm:$0xff]  ;;  %v553_v41 = vld [vmem:[%s2470_s30 + $0x230] sm:$0xff]  ;;  %550 = vst [vmem:[%s2475_s14 + $0x108] sm:$0xff] %v549_v39 }
  0x47   : > { %552 = vst [vmem:[%s2475_s14 + $0x110] sm:$0xff] %v551_v40  ;;  %554 = vst [vmem:[%s2475_s14 + $0x118] sm:$0xff] %v553_v41  ;;  %v555_v42 = vld [vmem:[%s2470_s30 + $0x240] sm:$0xff]  ;;  %v557_v43 = vld [vmem:[%s2470_s30 + $0x250] sm:$0xff] }
  0x48   : > { %v559_v44 = vld [vmem:[%s2470_s30 + $0x260] sm:$0xff]  ;;  %556 = vst [vmem:[%s2475_s14 + $0x120] sm:$0xff] %v555_v42  ;;  %558 = vst [vmem:[%s2475_s14 + $0x128] sm:$0xff] %v557_v43  ;;  %v561_v45 = vld [vmem:[%s2470_s30 + $0x270] sm:$0xff] }
  0x49   : > { %560 = vst [vmem:[%s2475_s14 + $0x130] sm:$0xff] %v559_v44  ;;  %v563_v46 = vld [vmem:[%s2470_s30 + $0x280] sm:$0xff]  ;;  %v565_v47 = vld [vmem:[%s2470_s30 + $0x290] sm:$0xff]  ;;  %562 = vst [vmem:[%s2475_s14 + $0x138] sm:$0xff] %v561_v45 }
  0x4a   : > { %564 = vst [vmem:[%s2475_s14 + $0x140] sm:$0xff] %v563_v46  ;;  %566 = vst [vmem:[%s2475_s14 + $0x148] sm:$0xff] %v565_v47  ;;  %v567_v48 = vld [vmem:[%s2470_s30 + $0x2a0] sm:$0xff]  ;;  %v569_v49 = vld [vmem:[%s2470_s30 + $0x2b0] sm:$0xff] }
  0x4b   : > { %v571_v50 = vld [vmem:[%s2470_s30 + $0x2c0] sm:$0xff]  ;;  %568 = vst [vmem:[%s2475_s14 + $0x150] sm:$0xff] %v567_v48  ;;  %570 = vst [vmem:[%s2475_s14 + $0x158] sm:$0xff] %v569_v49  ;;  %v573_v51 = vld [vmem:[%s2470_s30 + $0x2d0] sm:$0xff] }
  0x4c   : > { %572 = vst [vmem:[%s2475_s14 + $0x160] sm:$0xff] %v571_v50  ;;  %v575_v52 = vld [vmem:[%s2470_s30 + $0x2e0] sm:$0xff]  ;;  %v577_v53 = vld [vmem:[%s2470_s30 + $0x2f0] sm:$0xff]  ;;  %574 = vst [vmem:[%s2475_s14 + $0x168] sm:$0xff] %v573_v51 }
  0x4d   : > { %576 = vst [vmem:[%s2475_s14 + $0x170] sm:$0xff] %v575_v52  ;;  %578 = vst [vmem:[%s2475_s14 + $0x178] sm:$0xff] %v577_v53  ;;  %v579_v54 = vld [vmem:[%s2470_s30 + $0x300] sm:$0xff]  ;;  %v581_v55 = vld [vmem:[%s2470_s30 + $0x310] sm:$0xff] }
  0x4e   : > { %v583_v56 = vld [vmem:[%s2470_s30 + $0x320] sm:$0xff]  ;;  %580 = vst [vmem:[%s2475_s14 + $0x180] sm:$0xff] %v579_v54  ;;  %582 = vst [vmem:[%s2475_s14 + $0x188] sm:$0xff] %v581_v55  ;;  %v585_v57 = vld [vmem:[%s2470_s30 + $0x330] sm:$0xff] }
  0x4f   : > { %584 = vst [vmem:[%s2475_s14 + $0x190] sm:$0xff] %v583_v56  ;;  %v587_v58 = vld [vmem:[%s2470_s30 + $0x340] sm:$0xff]  ;;  %v589_v59 = vld [vmem:[%s2470_s30 + $0x350] sm:$0xff]  ;;  %586 = vst [vmem:[%s2475_s14 + $0x198] sm:$0xff] %v585_v57 }
  0x50   : > { %588 = vst [vmem:[%s2475_s14 + $0x1a0] sm:$0xff] %v587_v58  ;;  %590 = vst [vmem:[%s2475_s14 + $0x1a8] sm:$0xff] %v589_v59  ;;  %v591_v60 = vld [vmem:[%s2470_s30 + $0x360] sm:$0xff]  ;;  %v593_v61 = vld [vmem:[%s2470_s30 + $0x370] sm:$0xff] }
  0x51   : > { %v595_v62 = vld [vmem:[%s2470_s30 + $0x380] sm:$0xff]  ;;  %592 = vst [vmem:[%s2475_s14 + $0x1b0] sm:$0xff] %v591_v60  ;;  %594 = vst [vmem:[%s2475_s14 + $0x1b8] sm:$0xff] %v593_v61  ;;  %v597_v63 = vld [vmem:[%s2470_s30 + $0x390] sm:$0xff] }
  0x52   : > { %596 = vst [vmem:[%s2475_s14 + $0x1c0] sm:$0xff] %v595_v62  ;;  %v599_v0 = vld [vmem:[%s2470_s30 + $0x3a0] sm:$0xff]  ;;  %v601_v1 = vld [vmem:[%s2470_s30 + $0x3b0] sm:$0xff]  ;;  %598 = vst [vmem:[%s2475_s14 + $0x1c8] sm:$0xff] %v597_v63 }
  0x53   : > { %600 = vst [vmem:[%s2475_s14 + $0x1d0] sm:$0xff] %v599_v0  ;;  %602 = vst [vmem:[%s2475_s14 + $0x1d8] sm:$0xff] %v601_v1  ;;  %v603_v2 = vld [vmem:[%s2470_s30 + $0x3c0] sm:$0xff]  ;;  %v605_v3 = vld [vmem:[%s2470_s30 + $0x3d0] sm:$0xff] }
  0x54   : > { %v607_v4 = vld [vmem:[%s2470_s30 + $0x3e0] sm:$0xff]  ;;  %604 = vst [vmem:[%s2475_s14 + $0x1e0] sm:$0xff] %v603_v2  ;;  %606 = vst [vmem:[%s2475_s14 + $0x1e8] sm:$0xff] %v605_v3  ;;  %v609_v5 = vld [vmem:[%s2470_s30 + $0x3f0] sm:$0xff] }
  0x55   : > { %608 = vst [vmem:[%s2475_s14 + $0x1f0] sm:$0xff] %v607_v4  ;;  %v611_v6 = vld [vmem:[%s2470_s30 + $0x400] sm:$0xff]  ;;  %v613_v7 = vld [vmem:[%s2470_s30 + $0x410] sm:$0xff]  ;;  %610 = vst [vmem:[%s2475_s14 + $0x1f8] sm:$0xff] %v609_v5 }
  0x56   : > { %612 = vst [vmem:[%s2475_s14 + $0x200] sm:$0xff] %v611_v6  ;;  %614 = vst [vmem:[%s2475_s14 + $0x208] sm:$0xff] %v613_v7  ;;  %v615_v8 = vld [vmem:[%s2470_s30 + $0x420] sm:$0xff]  ;;  %v617_v9 = vld [vmem:[%s2470_s30 + $0x430] sm:$0xff] }
  0x57   : > { %v619_v10 = vld [vmem:[%s2470_s30 + $0x440] sm:$0xff]  ;;  %616 = vst [vmem:[%s2475_s14 + $0x210] sm:$0xff] %v615_v8  ;;  %618 = vst [vmem:[%s2475_s14 + $0x218] sm:$0xff] %v617_v9  ;;  %v621_v11 = vld [vmem:[%s2470_s30 + $0x450] sm:$0xff] }
  0x58   : > { %620 = vst [vmem:[%s2475_s14 + $0x220] sm:$0xff] %v619_v10  ;;  %v623_v12 = vld [vmem:[%s2470_s30 + $0x460] sm:$0xff]  ;;  %v625_v13 = vld [vmem:[%s2470_s30 + $0x470] sm:$0xff]  ;;  %622 = vst [vmem:[%s2475_s14 + $0x228] sm:$0xff] %v621_v11 }
  0x59   : > { %624 = vst [vmem:[%s2475_s14 + $0x230] sm:$0xff] %v623_v12  ;;  %626 = vst [vmem:[%s2475_s14 + $0x238] sm:$0xff] %v625_v13  ;;  %v627_v14 = vld [vmem:[%s2470_s30 + $0x480] sm:$0xff]  ;;  %v629_v15 = vld [vmem:[%s2470_s30 + $0x490] sm:$0xff] }
  0x5a   : > { %v631_v16 = vld [vmem:[%s2470_s30 + $0x4a0] sm:$0xff]  ;;  %628 = vst [vmem:[%s2475_s14 + $0x240] sm:$0xff] %v627_v14  ;;  %630 = vst [vmem:[%s2475_s14 + $0x248] sm:$0xff] %v629_v15  ;;  %v633_v17 = vld [vmem:[%s2470_s30 + $0x4b0] sm:$0xff] }
  0x5b   : > { %632 = vst [vmem:[%s2475_s14 + $0x250] sm:$0xff] %v631_v16  ;;  %v635_v18 = vld [vmem:[%s2470_s30 + $0x4c0] sm:$0xff]  ;;  %v637_v19 = vld [vmem:[%s2470_s30 + $0x4d0] sm:$0xff]  ;;  %634 = vst [vmem:[%s2475_s14 + $0x258] sm:$0xff] %v633_v17 }
  0x5c   : > { %636 = vst [vmem:[%s2475_s14 + $0x260] sm:$0xff] %v635_v18  ;;  %638 = vst [vmem:[%s2475_s14 + $0x268] sm:$0xff] %v637_v19  ;;  %v639_v20 = vld [vmem:[%s2470_s30 + $0x4e0] sm:$0xff]  ;;  %v641_v21 = vld [vmem:[%s2470_s30 + $0x4f0] sm:$0xff] }
  0x5d   : > { %v643_v22 = vld [vmem:[%s2470_s30 + $0x500] sm:$0xff]  ;;  %640 = vst [vmem:[%s2475_s14 + $0x270] sm:$0xff] %v639_v20  ;;  %642 = vst [vmem:[%s2475_s14 + $0x278] sm:$0xff] %v641_v21  ;;  %v645_v23 = vld [vmem:[%s2470_s30 + $0x510] sm:$0xff] }
  0x5e   : > { %644 = vst [vmem:[%s2475_s14 + $0x280] sm:$0xff] %v643_v22  ;;  %v647_v24 = vld [vmem:[%s2470_s30 + $0x520] sm:$0xff]  ;;  %v649_v25 = vld [vmem:[%s2470_s30 + $0x530] sm:$0xff]  ;;  %646 = vst [vmem:[%s2475_s14 + $0x288] sm:$0xff] %v645_v23 }
  0x5f   : > { %648 = vst [vmem:[%s2475_s14 + $0x290] sm:$0xff] %v647_v24  ;;  %650 = vst [vmem:[%s2475_s14 + $0x298] sm:$0xff] %v649_v25  ;;  %v651_v26 = vld [vmem:[%s2470_s30 + $0x540] sm:$0xff]  ;;  %v653_v27 = vld [vmem:[%s2470_s30 + $0x550] sm:$0xff] }
  0x60   : > { %v655_v28 = vld [vmem:[%s2470_s30 + $0x560] sm:$0xff]  ;;  %652 = vst [vmem:[%s2475_s14 + $0x2a0] sm:$0xff] %v651_v26  ;;  %654 = vst [vmem:[%s2475_s14 + $0x2a8] sm:$0xff] %v653_v27  ;;  %v657_v29 = vld [vmem:[%s2470_s30 + $0x570] sm:$0xff] }
  0x61   : > { %656 = vst [vmem:[%s2475_s14 + $0x2b0] sm:$0xff] %v655_v28  ;;  %v659_v30 = vld [vmem:[%s2470_s30 + $0x580] sm:$0xff]  ;;  %v661_v31 = vld [vmem:[%s2470_s30 + $0x590] sm:$0xff]  ;;  %658 = vst [vmem:[%s2475_s14 + $0x2b8] sm:$0xff] %v657_v29 }
  0x62   : > { %660 = vst [vmem:[%s2475_s14 + $0x2c0] sm:$0xff] %v659_v30  ;;  %662 = vst [vmem:[%s2475_s14 + $0x2c8] sm:$0xff] %v661_v31  ;;  %v663_v32 = vld [vmem:[%s2470_s30 + $0x5a0] sm:$0xff]  ;;  %v665_v33 = vld [vmem:[%s2470_s30 + $0x5b0] sm:$0xff] }
  0x63   : > { %v667_v34 = vld [vmem:[%s2470_s30 + $0x5c0] sm:$0xff]  ;;  %664 = vst [vmem:[%s2475_s14 + $0x2d0] sm:$0xff] %v663_v32  ;;  %666 = vst [vmem:[%s2475_s14 + $0x2d8] sm:$0xff] %v665_v33  ;;  %v669_v35 = vld [vmem:[%s2470_s30 + $0x5d0] sm:$0xff] }
  0x64   : > { %668 = vst [vmem:[%s2475_s14 + $0x2e0] sm:$0xff] %v667_v34  ;;  %v671_v36 = vld [vmem:[%s2470_s30 + $0x5e0] sm:$0xff]  ;;  %v673_v37 = vld [vmem:[%s2470_s30 + $0x5f0] sm:$0xff]  ;;  %670 = vst [vmem:[%s2475_s14 + $0x2e8] sm:$0xff] %v669_v35 }
  0x65   : > { %672 = vst [vmem:[%s2475_s14 + $0x2f0] sm:$0xff] %v671_v36  ;;  %674 = vst [vmem:[%s2475_s14 + $0x2f8] sm:$0xff] %v673_v37 }
  0x66 PF: > { %696 = sbr.rel (!%p2446_p11) target bundleno = 109 (0x6d), region = 89  ;;  %s698_s0 = sand.u32 (%p2446_p11), 1, %s2277_s19  }
  0x67   : > { %s1969_s11 = sshll.u32 (%p2446_p11), %s2309_s27, 3  ;;  %s1848_s29 = sshll.u32 (%p2446_p11), %s698_s0, 4 }
  0x68   : > { %s706_s10 = scalar_lea.vmem (%p2446_p11), %s2864_s4, %s1969_s11  ;;  %s700_s12 = scalar_lea.vmem (%p2446_p11), [#allocation5], %s1848_s29 }
  0x69   : > { %v736_v38 = vld [vmem:[%s706_s10] sm:$0xff] (%p2446_p11)  ;;  %v738_v39 = vld [vmem:[%s706_s10 + $0x10] sm:$0xff] (%p2446_p11) }
  0x6a   : > { %737 = vst [vmem:[%s700_s12] sm:$0xff] (%p2446_p11), %v736_v38  ;;  %739 = vst [vmem:[%s700_s12 + $0x8] sm:$0xff] (%p2446_p11), %v738_v39 }
  0x6d PF: > { %p1851_p1 = scmp.ge.s32.totalorder %s2313_s28, 1  ;;  %p744_p2 = scmp.lt.s32.totalorder %s2313_s28, 13 }
  0x6f   : > { %p745_p3 = pnand %p1851_p1, %p744_p2 }
  0x70   : > { %s751_s7 = sand.u32 (!%p745_p3), 1, %s2289_s22   ;;  %s758_s13 = sand.u32 (!%p745_p3), 1, %s2281_s20  }
  0x71   : > { %748 = sbr.rel (%p745_p3) target bundleno = 502 (0x1f6), region = 127  ;;  %s765_s30 = sand.u32 (!%p745_p3), 1, %s2273_s18  }
  0x72   : > { %s1983_s15 = smul.u32 (!%p745_p3), 48, %s751_s7  ;;  %s2678_s0 = sshll.u32 (!%p745_p3), %s765_s30, 4 }
  0x73   : > { %s1984_s14 = smul.u32 (!%p745_p3), 768, %s758_s13  ;;  %s1854_s11 = sshll.u32 (!%p745_p3), %s2301_s25, 1 }
  0x74   : > { %p812_p4 = scmp.lt.s32.totalorder (!%p745_p3), %s1854_s11, 3  ;;  %s2691_s18 = scalar_lea.vmem (!%p745_p3), [#allocation3], %s1983_s15 }
  0x75   : > { %s2693_s12 = scalar_lea.vmem (!%p745_p3), [#allocation4], %s1984_s14  ;;  %s767_s7 = scalar_lea.vmem (!%p745_p3), [#allocation5], %s2678_s0 }
  0x76   : > { %s2697_s13 = scalar_lea.vmem (!%p745_p3), [#allocation6], %s2678_s0  ;;  %p1856_p5 = scmp.ne.s32.totalorder (!%p745_p3), %s2297_s24, 0 }
  0x78   : > { %s2897_s11 = smov (!%p812_p4, %s1854_s11), 3  ;;  %828 = sbr.rel (%p1856_p5) target bundleno = 127 (0x7f), region = 143 }
  0x79   : > { %s814_s9 = scalar_lea.vmem %s2862_s2, %s2897_s11  ;;  %s819_s20 = scalar_lea.vmem %s2863_s3, %s2897_s11  ;;  %v2315_v40 = vmov (!%p1856_p5), 0.0  }
  0x7a   : > { %829 = vst [vmem:[#allocation2] sm:$0xff] (!%p1856_p5), %v2315_v40  ;;  %830 = vst [vmem:[#allocation2 + $0x8] sm:$0xff] (!%p1856_p5), %v2315_v40 }
  0x7b   : > { %831 = vst [vmem:[#allocation2 + $0x10] sm:$0xff] (!%p1856_p5), %v2315_v40  ;;  %832 = vst [vmem:[#allocation2 + $0x18] sm:$0xff] (!%p1856_p5), %v2315_v40 }
  0x7f PF: > { %v2074_v41 = vld [vmem:[%s2693_s12 + $0x104] ss:$8 sps:$4 sm:$0xff]   ;;  %v2076_v42 = vld [vmem:[%s2693_s12 + $0x100] ss:$8 sps:$4 sm:$0xff]   ;;  %v2077_v43 = vld [vmem:[%s2693_s12 + $0x114] ss:$8 sps:$4 sm:$0xff]  }
  0x80   : > { %1492 = vmatprep.subr.bf16.mxu0 %v2074_v41  ;;  %v2079_v44 = vld [vmem:[%s2693_s12 + $0x110] ss:$8 sps:$4 sm:$0xff]   ;;  %v2080_v45 = vld [vmem:[%s2693_s12 + $0x124] ss:$8 sps:$4 sm:$0xff]   ;;  %v2082_v46 = vld [vmem:[%s2693_s12 + $0x120] ss:$8 sps:$4 sm:$0xff]  }
  0x81   : > { %1493 = vmatpush1.bf16.msra.mxu0 %v2076_v42  ;;  %v2083_v47 = vld [vmem:[%s2693_s12 + $0x134] ss:$8 sps:$4 sm:$0xff]   ;;  %v2085_v48 = vld [vmem:[%s2693_s12 + $0x130] ss:$8 sps:$4 sm:$0xff]   ;;  %v2086_v49 = vld [vmem:[%s2693_s12 + $0x144] ss:$8 sps:$4 sm:$0xff]  }
  0x82   : > { %1494 = vmatprep.subr.bf16.mxu0 %v2077_v43  ;;  %v2088_v50 = vld [vmem:[%s2693_s12 + $0x140] ss:$8 sps:$4 sm:$0xff]   ;;  %v2089_v51 = vld [vmem:[%s2693_s12 + $0x154] ss:$8 sps:$4 sm:$0xff]   ;;  %v2091_v52 = vld [vmem:[%s2693_s12 + $0x150] ss:$8 sps:$4 sm:$0xff]  }
  0x83   : > { %v2092_v53 = vld [vmem:[%s2693_s12 + $0x164] ss:$8 sps:$4 sm:$0xff]   ;;  %v2124_v55 = vld [vmem:[%s2693_s12] ss:$8 sps:$4 sm:$0xff]   ;;  %v2095_v58 = vld [vmem:[%s2693_s12 + $0x174] ss:$8 sps:$4 sm:$0xff]  }
  0x84   : > { %v2121_v54 = vld [vmem:[%s2693_s12 + $0x4] ss:$8 sps:$4 sm:$0xff]   ;;  %v2094_v56 = vld [vmem:[%s2693_s12 + $0x160] ss:$8 sps:$4 sm:$0xff]   ;;  %v2131_v59 = vld [vmem:[%s2693_s12 + $0x14] ss:$8 sps:$4 sm:$0xff]  }
  0x85   : > { %1495 = vmatpush1.bf16.msra.mxu0 %v2079_v44  ;;  %1449 = vmatprep.subr.bf16.mxu1 %v2121_v54  ;;  %v2127_v57 = vld [vmem:[%s2691_s18 + $0xc] ss:$24 sps:$4 sm:$0xff]   ;;  %v2133_v60 = vld [vmem:[%s2693_s12 + $0x10] ss:$8 sps:$4 sm:$0xff]   ;;  %v2139_v0 = vld [vmem:[%s2693_s12 + $0x20] ss:$8 sps:$4 sm:$0xff]  }
  0x86   : > { %1496 = vmatprep.subr.bf16.mxu0 %v2080_v45  ;;  %1450 = vmatpush1.bf16.msra.mxu1 %v2124_v55  ;;  %v2097_v61 = vld [vmem:[%s2693_s12 + $0x170] ss:$8 sps:$4 sm:$0xff]   ;;  %v2098_v62 = vld [vmem:[%s2693_s12 + $0x184] ss:$8 sps:$4 sm:$0xff]   ;;  %v2100_v1 = vld [vmem:[%s2693_s12 + $0x180] ss:$8 sps:$4 sm:$0xff]  }
  0x87   : > { %1524 = vmatprep.mubr.bf16.mxu0 %v2127_v57  ;;  %1451 = vmatprep.subr.bf16.mxu1 %v2131_v59  ;;  %v2137_v63 = vld [vmem:[%s2693_s12 + $0x24] ss:$8 sps:$4 sm:$0xff]   ;;  %v2143_v2 = vld [vmem:[%s2693_s12 + $0x34] ss:$8 sps:$4 sm:$0xff]   ;;  %v2145_v4 = vld [vmem:[%s2693_s12 + $0x30] ss:$8 sps:$4 sm:$0xff]  }
  0x88   : > { %v2101_v3 = vld [vmem:[%s2693_s12 + $0x194] ss:$8 sps:$4 sm:$0xff]   ;;  %v2149_v5 = vld [vmem:[%s2693_s12 + $0x44] ss:$8 sps:$4 sm:$0xff]   ;;  %v2103_v6 = vld [vmem:[%s2693_s12 + $0x190] ss:$8 sps:$4 sm:$0xff]  }
  0x89   : > { %1497 = vmatpush1.bf16.msra.mxu0 %v2082_v46  ;;  %v2104_v7 = vld [vmem:[%s2693_s12 + $0x1a4] ss:$8 sps:$4 sm:$0xff]   ;;  %v2151_v8 = vld [vmem:[%s2693_s12 + $0x40] ss:$8 sps:$4 sm:$0xff]   ;;  %v2155_v9 = vld [vmem:[%s2693_s12 + $0x54] ss:$8 sps:$4 sm:$0xff]  }
  0x8a   : > { %1498 = vmatprep.subr.bf16.mxu0 %v2083_v47  ;;  %1452 = vmatpush1.bf16.msra.mxu1 %v2133_v60  ;;  %v2106_v10 = vld [vmem:[%s2693_s12 + $0x1a0] ss:$8 sps:$4 sm:$0xff]   ;;  %v2107_v11 = vld [vmem:[%s2693_s12 + $0x1b4] ss:$8 sps:$4 sm:$0xff]   ;;  %v2157_v12 = vld [vmem:[%s2693_s12 + $0x50] ss:$8 sps:$4 sm:$0xff]  }
  0x8b   : > { %1453 = vmatprep.subr.bf16.mxu1 %v2137_v63  ;;  %v2161_v13 = vld [vmem:[%s2693_s12 + $0x64] ss:$8 sps:$4 sm:$0xff]   ;;  %v2109_v14 = vld [vmem:[%s2693_s12 + $0x1b0] ss:$8 sps:$4 sm:$0xff]   ;;  %v2163_v16 = vld [vmem:[%s2693_s12 + $0x60] ss:$8 sps:$4 sm:$0xff]  }
  0x8c   : > { %v2110_v15 = vld [vmem:[%s2693_s12 + $0x1c4] ss:$8 sps:$4 sm:$0xff]   ;;  %v2167_v17 = vld [vmem:[%s2693_s12 + $0x74] ss:$8 sps:$4 sm:$0xff]   ;;  %v2112_v18 = vld [vmem:[%s2693_s12 + $0x1c0] ss:$8 sps:$4 sm:$0xff]  }
  0x8d   : > { %1499 = vmatpush1.bf16.msra.mxu0 %v2085_v48  ;;  %v2113_v19 = vld [vmem:[%s2693_s12 + $0x1d4] ss:$8 sps:$4 sm:$0xff]   ;;  %v2169_v20 = vld [vmem:[%s2693_s12 + $0x70] ss:$8 sps:$4 sm:$0xff]   ;;  %v2173_v21 = vld [vmem:[%s2693_s12 + $0x84] ss:$8 sps:$4 sm:$0xff]  }
  0x8e   : > { %1500 = vmatprep.subr.bf16.mxu0 %v2086_v49  ;;  %1454 = vmatpush1.bf16.msra.mxu1 %v2139_v0  ;;  %v2115_v22 = vld [vmem:[%s2693_s12 + $0x1d0] ss:$8 sps:$4 sm:$0xff]   ;;  %v2116_v23 = vld [vmem:[%s2693_s12 + $0x1e4] ss:$8 sps:$4 sm:$0xff]   ;;  %v2175_v24 = vld [vmem:[%s2693_s12 + $0x80] ss:$8 sps:$4 sm:$0xff]  }
  0x8f   : > { %1455 = vmatprep.subr.bf16.mxu1 %v2143_v2  ;;  %v2179_v25 = vld [vmem:[%s2693_s12 + $0x94] ss:$8 sps:$4 sm:$0xff]   ;;  %v2118_v26 = vld [vmem:[%s2693_s12 + $0x1e0] ss:$8 sps:$4 sm:$0xff]   ;;  %v2181_v28 = vld [vmem:[%s2693_s12 + $0x90] ss:$8 sps:$4 sm:$0xff]  }
  0x90   : > { %v2119_v27 = vld [vmem:[%s2693_s12 + $0x1f4] ss:$8 sps:$4 sm:$0xff]   ;;  %v2185_v29 = vld [vmem:[%s2693_s12 + $0xa4] ss:$8 sps:$4 sm:$0xff]   ;;  %v2123_v30 = vld [vmem:[%s2693_s12 + $0x1f0] ss:$8 sps:$4 sm:$0xff]  }
  0x91   : > { %1501 = vmatpush1.bf16.msra.mxu0 %v2088_v50  ;;  %v2130_v31 = vld [vmem:[%s2693_s12 + $0x204] ss:$8 sps:$4 sm:$0xff]   ;;  %v2187_v32 = vld [vmem:[%s2693_s12 + $0xa0] ss:$8 sps:$4 sm:$0xff]   ;;  %v2191_v34 = vld [vmem:[%s2693_s12 + $0xb4] ss:$8 sps:$4 sm:$0xff]  }
  0x92   : > { %1502 = vmatprep.subr.bf16.mxu0 %v2089_v51  ;;  %1456 = vmatpush1.bf16.msra.mxu1 %v2145_v4  ;;  %v2125_v33 = vld [vmem:[%s2691_s18 + $0x8] ss:$24 sps:$4 sm:$0xff]   ;;  %v2136_v36 = vld [vmem:[%s2693_s12 + $0x214] ss:$8 sps:$4 sm:$0xff]   ;;  %v2197_v39 = vld [vmem:[%s2693_s12 + $0xc4] ss:$8 sps:$4 sm:$0xff]  }
  0x93   : > { %1457 = vmatprep.subr.bf16.mxu1 %v2149_v5  ;;  %v2128_v35 = vld [vmem:[%s2693_s12 + $0x200] ss:$8 sps:$4 sm:$0xff]   ;;  %v2193_v37 = vld [vmem:[%s2693_s12 + $0xb0] ss:$8 sps:$4 sm:$0xff]   ;;  %v2220_v38 = vld [vmem:[%s2691_s18 + $0x4] ss:$24 sps:$4 sm:$0xff]  }
  0x94   : > { %v2134_v40 = vld [vmem:[%s2693_s12 + $0x210] ss:$8 sps:$4 sm:$0xff]   ;;  %1481 = vmatprep.mubr.bf16.mxu1 %v2220_v38  ;;  %v2226_v41 = vld [vmem:[%s2691_s18 + $0x14] ss:$24 sps:$4 sm:$0xff]   ;;  %v2199_v43 = vld [vmem:[%s2693_s12 + $0xc0] ss:$8 sps:$4 sm:$0xff]  }
  0x95   : > { %1503 = vmatpush1.bf16.msra.mxu0 %v2091_v52  ;;  %v2142_v42 = vld [vmem:[%s2693_s12 + $0x224] ss:$8 sps:$4 sm:$0xff]   ;;  %v2203_v44 = vld [vmem:[%s2693_s12 + $0xd4] ss:$8 sps:$4 sm:$0xff]   ;;  %v2140_v45 = vld [vmem:[%s2693_s12 + $0x220] ss:$8 sps:$4 sm:$0xff]  }
  0x96   : > { %1504 = vmatprep.subr.bf16.mxu0 %v2092_v53  ;;  %1458 = vmatpush1.bf16.msra.mxu1 %v2151_v8  ;;  %v2148_v46 = vld [vmem:[%s2693_s12 + $0x234] ss:$8 sps:$4 sm:$0xff]   ;;  %v2205_v47 = vld [vmem:[%s2693_s12 + $0xd0] ss:$8 sps:$4 sm:$0xff]   ;;  %v2209_v48 = vld [vmem:[%s2693_s12 + $0xe4] ss:$8 sps:$4 sm:$0xff]  }
  0x97   : > { %1459 = vmatprep.subr.bf16.mxu1 %v2155_v9  ;;  %v2146_v49 = vld [vmem:[%s2693_s12 + $0x230] ss:$8 sps:$4 sm:$0xff]   ;;  %v2154_v50 = vld [vmem:[%s2693_s12 + $0x244] ss:$8 sps:$4 sm:$0xff]   ;;  %v2211_v51 = vld [vmem:[%s2693_s12 + $0xe0] ss:$8 sps:$4 sm:$0xff]  }
  0x98   : > { %v2215_v52 = vld [vmem:[%s2693_s12 + $0xf4] ss:$8 sps:$4 sm:$0xff]   ;;  %v2152_v53 = vld [vmem:[%s2693_s12 + $0x240] ss:$8 sps:$4 sm:$0xff]   ;;  %v2217_v55 = vld [vmem:[%s2693_s12 + $0xf0] ss:$8 sps:$4 sm:$0xff]  }
  0x99   : > { %1505 = vmatpush1.bf16.msra.mxu0 %v2094_v56  ;;  %v2160_v54 = vld [vmem:[%s2693_s12 + $0x254] ss:$8 sps:$4 sm:$0xff]   ;;  %v2158_v56 = vld [vmem:[%s2693_s12 + $0x250] ss:$8 sps:$4 sm:$0xff]   ;;  %v2166_v57 = vld [vmem:[%s2693_s12 + $0x264] ss:$8 sps:$4 sm:$0xff]  }
  0x9a   : > { %1506 = vmatprep.subr.bf16.mxu0 %v2095_v58  ;;  %1460 = vmatpush1.bf16.msra.mxu1 %v2157_v12  ;;  %v2218_v58 = vld [vmem:[%s2691_s18] ss:$24 sps:$4 sm:$0xff]   ;;  %v2172_v60 = vld [vmem:[%s2693_s12 + $0x274] ss:$8 sps:$4 sm:$0xff]   ;;  %v2190_v2 = vld [vmem:[%s2693_s12 + $0x2a4] ss:$8 sps:$4 sm:$0xff]  }
  0x9b   : > { %1461 = vmatprep.subr.bf16.mxu1 %v2161_v13  ;;  %v2164_v59 = vld [vmem:[%s2693_s12 + $0x260] ss:$8 sps:$4 sm:$0xff]   ;;  %v2184_v0 = vld [vmem:[%s2693_s12 + $0x294] ss:$8 sps:$4 sm:$0xff]   ;;  %v2194_v5 = vld [vmem:[%s2693_s12 + $0x2b0] ss:$8 sps:$4 sm:$0xff]  }
  0x9c   : > { %v2176_v63 = vld [vmem:[%s2693_s12 + $0x280] ss:$8 sps:$4 sm:$0xff]   ;;  %v2196_v4 = vld [vmem:[%s2693_s12 + $0x2b4] ss:$8 sps:$4 sm:$0xff]   ;;  %v2206_v9 = vld [vmem:[%s2693_s12 + $0x2d0] ss:$8 sps:$4 sm:$0xff]  }
  0x9d   : > { %1507 = vmatpush1.bf16.msra.mxu0 %v2097_v61  ;;  %v2170_v61 = vld [vmem:[%s2693_s12 + $0x270] ss:$8 sps:$4 sm:$0xff]   ;;  %v2208_v8 = vld [vmem:[%s2693_s12 + $0x2d4] ss:$8 sps:$4 sm:$0xff]   ;;  %p1959_p6 = scmp.ne.s32.totalorder %s2297_s24, 5 }
  0x9e   : > { %1508 = vmatprep.subr.bf16.mxu0 %v2098_v62  ;;  %1462 = vmatpush1.bf16.msra.mxu1 %v2163_v16  ;;  %v2178_v62 = vld [vmem:[%s2693_s12 + $0x284] ss:$8 sps:$4 sm:$0xff]   ;;  %v2223_v12 = vld [vmem:[%s2693_s12 + $0x2f4] ss:$8 sps:$4 sm:$0xff]   ;;  %v2221_v13 = vld [vmem:[%s2693_s12 + $0x2f0] ss:$8 sps:$4 sm:$0xff]  }
  0x9f   : > { %1463 = vmatprep.subr.bf16.mxu1 %v2167_v17  ;;  %v1610_v38 = vld [vmem:[%s819_s20] sm:$0x3] (!%p1959_p6) }
  0xa1   : > { %1509 = vmatpush1.bf16.msra.mxu0 %v2100_v1  ;;  %v2182_v1 = vld [vmem:[%s2693_s12 + $0x290] ss:$8 sps:$4 sm:$0xff]  }
  0xa2   : > { %1510 = vmatprep.subr.bf16.mxu0 %v2101_v3  ;;  %1464 = vmatpush1.bf16.msra.mxu1 %v2169_v20  ;;  %v2188_v3 = vld [vmem:[%s2693_s12 + $0x2a0] ss:$8 sps:$4 sm:$0xff]  }
  0xa3   : > { %1465 = vmatprep.subr.bf16.mxu1 %v2173_v21 }
  0xa5   : > { %1511 = vmatpush1.bf16.msra.mxu0 %v2103_v6  ;;  %v2202_v6 = vld [vmem:[%s2693_s12 + $0x2c4] ss:$8 sps:$4 sm:$0xff]  }
  0xa6   : > { %1512 = vmatprep.subr.bf16.mxu0 %v2104_v7  ;;  %1466 = vmatpush1.bf16.msra.mxu1 %v2175_v24  ;;  %v2200_v7 = vld [vmem:[%s2693_s12 + $0x2c0] ss:$8 sps:$4 sm:$0xff]  }
  0xa7   : > { %1467 = vmatprep.subr.bf16.mxu1 %v2179_v25  ;;  %v835_v25 = vld [vmem:[#allocation2 + $0x10] sm:$0xff] }
  0xa9   : > { %1513 = vmatpush1.bf16.msra.mxu0 %v2106_v10  ;;  %v2214_v10 = vld [vmem:[%s2693_s12 + $0x2e4] ss:$8 sps:$4 sm:$0xff]  }
  0xaa   : > { %1514 = vmatprep.subr.bf16.mxu0 %v2107_v11  ;;  %1468 = vmatpush1.bf16.msra.mxu1 %v2181_v28  ;;  %v2212_v11 = vld [vmem:[%s2693_s12 + $0x2e0] ss:$8 sps:$4 sm:$0xff]  }
  0xab   : > { %1469 = vmatprep.subr.bf16.mxu1 %v2185_v29  ;;  %v836_v29 = vld [vmem:[#allocation2 + $0x18] sm:$0xff] }
  0xad   : > { %1515 = vmatpush1.bf16.msra.mxu0 %v2109_v14  ;;  %v2224_v14 = vld [vmem:[%s2691_s18 + $0x10] ss:$24 sps:$4 sm:$0xff]  }
  0xae   : > { %1516 = vmatprep.subr.bf16.mxu0 %v2110_v15  ;;  %1470 = vmatpush1.bf16.msra.mxu1 %v2187_v32 }
  0xaf   : > { %1471 = vmatprep.subr.bf16.mxu1 %v2191_v34 }
  0xb1   : > { %1517 = vmatpush1.bf16.msra.mxu0 %v2112_v18 }
  0xb2   : > { %1518 = vmatprep.subr.bf16.mxu0 %v2113_v19  ;;  %1472 = vmatpush1.bf16.msra.mxu1 %v2193_v37  ;;  %v833_v19 = vld [vmem:[#allocation2] sm:$0xff] }
  0xb3   : > { %1473 = vmatprep.subr.bf16.mxu1 %v2197_v39  ;;  %v1594_v37 = vld [vmem:[%s814_s9] sm:$0x3] (!%p1959_p6) }
  0xb5   : > { %1519 = vmatpush1.bf16.msra.mxu0 %v2115_v22  ;;  %v834_v22 = vld [vmem:[#allocation2 + $0x8] sm:$0xff] }
  0xb6   : > { %1520 = vmatprep.subr.bf16.mxu0 %v2116_v23  ;;  %1474 = vmatpush1.bf16.msra.mxu1 %v2199_v43  ;;  %v1627_v43 = vld [vmem:[%s767_s7 + $0x8] sm:$0xff] (!%p1959_p6) }
  0xb7   : > { %1475 = vmatprep.subr.bf16.mxu1 %v2203_v44 }
  0xb9   : > { %1521 = vmatpush1.bf16.msra.mxu0 %v2118_v26 }
  0xba   : > { %1522 = vmatprep.subr.bf16.mxu0 %v2119_v27  ;;  %1476 = vmatpush1.bf16.msra.mxu1 %v2205_v47 }
  0xbb   : > { %1477 = vmatprep.subr.bf16.mxu1 %v2209_v48 }
  0xbd   : > { %1523 = vmatpush1.bf16.msra.mxu0 %v2123_v30 }
  0xbe   : > { %1535 = vmatprep.subr.bf16.mxu0 %v2130_v31  ;;  %1478 = vmatpush1.bf16.msra.mxu1 %v2211_v51 }
  0xbf   : > { %1479 = vmatprep.subr.bf16.mxu1 %v2215_v52 }
  0xc0   : > { %1525 = vmatmul.mubr.bf16.vlgmr.msra.gmra.mrb[0].mxu0 %v2125_v33 }
  0xc1   : > { %1536 = vmatpush1.bf16.msra.mxu0 %v2128_v35  ;;  %1567 = vmatprep.mubr.bf16.mxu0 %v2226_v41  ;;  %v1596_v35 = vlaneseq (!%p1959_p6) }
  0xc2   : > { %1537 = vmatprep.subr.bf16.mxu0 %v2136_v36  ;;  %1480 = vmatpush1.bf16.msra.mxu1 %v2217_v55 }
  0xc3   : > { %v1597_v36 = vshrl.u32 (!%p1959_p6), %v1596_v35, 7 }
  0xc5   : > { %1538 = vmatpush1.bf16.msra.mxu0 %v2134_v40  ;;  %1482 = vmatmul.mubr.bf16.vlgmr.msra.gmra.mrb[0].mxu1 %v2218_v58  ;;  %v1598_v40 = vsub.s32 (!%p1959_p6), 0, %v1597_v36  ;;  %v1602_v41 = vsub.s32 (!%p1959_p6), 1, %v1597_v36 }
  0xc6   : > { %1539 = vmatprep.subr.bf16.mxu0 %v2142_v42  ;;  %v1626_v42 = vld [vmem:[%s767_s7] sm:$0xff] (!%p1959_p6) }
  0xc7   : > { %v1599_v47 = vrot.slane (!%p1959_p6), %v1594_v37, %v1598_v40  ;;  %v1603_v48 = vrot.slane (!%p1959_p6), %v1594_v37, %v1602_v41  ;;  %v1628_v51 = vunpack.c.l.bf16 (!%p1959_p6), %v1626_v42  ;;  %v1629_v52 = vunpack.c.h.bf16 (!%p1959_p6), %v1626_v42 }
  0xc9   : > { %1540 = vmatpush1.bf16.msra.mxu0 %v2140_v45 }
  0xca   : > { %1541 = vmatprep.subr.bf16.mxu0 %v2148_v46 }
  0xcd   : > { %1542 = vmatpush1.bf16.msra.mxu0 %v2146_v49  ;;  %v1615_v49 = vrot.slane (!%p1959_p6), %v1610_v38, %v1598_v40 }
  0xce   : > { %1543 = vmatprep.subr.bf16.mxu0 %v2154_v50  ;;  %v1619_v50 = vrot.slane (!%p1959_p6), %v1610_v38, %v1602_v41 }
  0xd1   : > { %1544 = vmatpush1.bf16.msra.mxu0 %v2152_v53  ;;  %v1630_v53 = vunpack.c.l.bf16 (!%p1959_p6), %v1627_v43 }
  0xd2   : > { %1545 = vmatprep.subr.bf16.mxu0 %v2160_v54  ;;  %v1631_v54 = vunpack.c.h.bf16 (!%p1959_p6), %v1627_v43 }
  0xd5   : > { %1546 = vmatpush1.bf16.msra.mxu0 %v2158_v56 }
  0xd6   : > { %1547 = vmatprep.subr.bf16.mxu0 %v2166_v57 }
  0xd9   : > { %1548 = vmatpush1.bf16.msra.mxu0 %v2164_v59 }
  0xda   : > { %1549 = vmatprep.subr.bf16.mxu0 %v2172_v60 }
  0xdd   : > { %1550 = vmatpush1.bf16.msra.mxu0 %v2170_v61 }
  0xde   : > { %1551 = vmatprep.subr.bf16.mxu0 %v2178_v62 }
  0xe1   : > { %1552 = vmatpush1.bf16.msra.mxu0 %v2176_v63 }
  0xe2   : > { %1553 = vmatprep.subr.bf16.mxu0 %v2184_v0 }
  0xe5   : > { %1554 = vmatpush1.bf16.msra.mxu0 %v2182_v1 }
  0xe6   : > { %1555 = vmatprep.subr.bf16.mxu0 %v2190_v2 }
  0xe9   : > { %1556 = vmatpush1.bf16.msra.mxu0 %v2188_v3 }
  0xea   : > { %1557 = vmatprep.subr.bf16.mxu0 %v2196_v4 }
  0xed   : > { %1558 = vmatpush1.bf16.msra.mxu0 %v2194_v5 }
  0xee   : > { %1559 = vmatprep.subr.bf16.mxu0 %v2202_v6 }
  0xf1   : > { %1560 = vmatpush1.bf16.msra.mxu0 %v2200_v7 }
  0xf2   : > { %1561 = vmatprep.subr.bf16.mxu0 %v2208_v8 }
  0xf5   : > { %1562 = vmatpush1.bf16.msra.mxu0 %v2206_v9 }
  0xf6   : > { %1563 = vmatprep.subr.bf16.mxu0 %v2214_v10 }
  0xf9   : > { %1564 = vmatpush1.bf16.msra.mxu0 %v2212_v11 }
  0xfa   : > { %1565 = vmatprep.subr.bf16.mxu0 %v2223_v12 }
  0xfd   : > { %1566 = vmatpush1.bf16.msra.mxu0 %v2221_v13 }
 0x100   : > { %1568 = vmatmul.mubr.bf16.vlgmr.msra.gmra.mrb[0].mxu0 %v2224_v14 }
 0x198   : > { %v1483_v15 = vpop.f32.mrb[0].mxu1 }
 0x199   : > { %v1485_v16 = vpop.f32.mrb[1].mxu1 }
 0x19a   : > { %v1487_v17 = vpop.f32.mrb[2].mxu1 }
 0x19b   : > { %v1489_v18 = vpop.f32.mrb[3].mxu1 }
 0x1d3   : > { %v1569_v20 = vpop.f32.mrb[0].mxu0 }
 0x1d4   : > { %v1973_v21 = vadd.f32 %v1569_v20, %v1483_v15  ;;  %v1571_v23 = vpop.f32.mrb[1].mxu0 }
 0x1d5   : > { %v1974_v24 = vadd.f32 %v1571_v23, %v1485_v16  ;;  %v1573_v26 = vpop.f32.mrb[2].mxu0  ;;  %1589 = sbr.rel (%p1959_p6) target bundleno = 494 (0x1ee), region = 147 }
 0x1d6   : > { %v1578_v27 = vadd.f32 %v1973_v21, %v833_v19  ;;  %v1975_v28 = vadd.f32 %v1573_v26, %v1487_v17  ;;  %v1575_v30 = vpop.f32.mrb[3].mxu0 }
 0x1d7   : > { %v1579_v31 = vadd.f32 %v1974_v24, %v834_v22  ;;  %v1976_v32 = vadd.f32 %v1575_v30, %v1489_v18 }
 0x1d8   : > { %1582 = vst [vmem:[#allocation2] sm:$0xff] %v1578_v27  ;;  %v1580_v33 = vadd.f32 %v1975_v28, %v835_v25 }
 0x1d9   : > { %1583 = vst [vmem:[#allocation2 + $0x8] sm:$0xff] %v1579_v31  ;;  %v1581_v34 = vadd.f32 %v1976_v32, %v836_v29 }
 0x1da   : > { %1584 = vst [vmem:[#allocation2 + $0x10] sm:$0xff] %v1580_v33 }
 0x1db   : > { %1585 = vst [vmem:[#allocation2 + $0x18] sm:$0xff] %v1581_v34 }
 0x1df   : > { %v1590_v39 = vld [vmem:[#allocation2] sm:$0xff] }
 0x1e0   : > { %v1591_v44 = vld [vmem:[#allocation2 + $0x8] sm:$0xff]  ;;  %v1606_v55 = vmul.f32 %v1599_v47, %v1590_v39 }
 0x1e1   : > { %v1592_v45 = vld [vmem:[#allocation2 + $0x10] sm:$0xff]  ;;  %v1607_v56 = vmul.f32 %v1603_v48, %v1591_v44 }
 0x1e2   : > { %v1593_v46 = vld [vmem:[#allocation2 + $0x18] sm:$0xff]  ;;  %v1608_v57 = vmul.f32 %v1599_v47, %v1592_v45  ;;  %v1622_v59 = vadd.f32 %v1615_v49, %v1606_v55 }
 0x1e3   : > { %v1609_v58 = vmul.f32 %v1603_v48, %v1593_v46  ;;  %v1623_v60 = vadd.f32 %v1619_v50, %v1607_v56 }
 0x1e4   : > { %v1624_v61 = vadd.f32 %v1615_v49, %v1608_v57  ;;  %v1632_v63 = vadd.f32 %v1628_v51, %v1622_v59 }
 0x1e5   : > { %v1625_v62 = vadd.f32 %v1619_v50, %v1609_v58  ;;  %v1633_v0 = vadd.f32 %v1629_v52, %v1623_v60 }
 0x1e6   : > { %v1634_v1 = vadd.f32 %v1630_v53, %v1624_v61  ;;  %v1636_v3 = vmax.f32 %v1632_v63, 0.0 }
 0x1e7   : > { %v1635_v2 = vadd.f32 %v1631_v54, %v1625_v62  ;;  %v1637_v4 = vmax.f32 %v1633_v0, 0.0 }
 0x1e8   : > { %v1638_v5 = vmax.f32 %v1634_v1, 0.0 }
 0x1e9   : > { %v1639_v6 = vmax.f32 %v1635_v2, 0.0  ;;  %v1970_v7 = vpack.c.bf16 %v1637_v4, %v1636_v3 }
 0x1eb   : > { %v1971_v8 = vpack.c.bf16 %v1639_v6, %v1638_v5  ;;  %1652 = vst [vmem:[%s2697_s13] sm:$0xff] %v1970_v7 }
 0x1ed   : > { %1653 = vst [vmem:[%s2697_s13 + $0x8] sm:$0xff] %v1971_v8 }
 0x1ee PF: > { %1660 = sbr.rel (!%p2450_p13) target bundleno = 502 (0x1f6), region = 151  ;;  %s1972_s24 = sshll.u32 (%p2450_p13), %s2301_s25, 3 }
 0x1ef   : > { %s1666_s6 = scalar_lea.vmem (%p2450_p13), %s2865_s5, %s1972_s24 }
 0x1f2   : > { %v1696_v9 = vld [vmem:[%s2697_s13] sm:$0xff] (%p2450_p13) }
 0x1f3   : > { %1697 = vst [vmem:[%s1666_s6] sm:$0xff] (%p2450_p13), %v1696_v9 }
 0x1f4   : > { %v1698_v10 = vld [vmem:[%s2697_s13 + $0x8] sm:$0xff] (%p2450_p13) }
 0x1f5   : > { %1699 = vst [vmem:[%s1666_s6 + $0x10] sm:$0xff] %v1698_v10 }
 0x1f6 PF: > { %s15_s28 = sadd.s32 1, %s2313_s28   ;;  %s2877_s8 = sld [smem:[#allocation9_spill]] }
 0x1f7   : > { %p12_p7 = scmp.ge.s32.totalorder %s15_s28, 14   ;;  %s2878_s9 = sld [smem:[#allocation7_spill]] }
 0x1f8   : > { %s2879_s10 = sld [smem:[#allocation8_spill]]  ;;  %s2880_s18 = smov %s2277_s19 }
 0x1f9   : > { %s2881_s19 = smov %s2442_s17  ;;  %s2882_s20 = smov %s2285_s21 }
 0x1fa   : > { %s2883_s21 = smov %s2439_s16  ;;  %s2884_s22 = smov %s2293_s23 }
 0x1fb   : > { %s2886_s24 = smov %s2305_s26  ;;  %s2887_s25 = smov %s2309_s27 }
 0x1fc   : > { %s2885_s23 = smov %s2877_s8  ;;  %14 = sbr.rel (!%p12_p7) target bundleno = 8 (0x8), region = 242 }
 0x1fd   : > { %s2888_s26 = smov %s2878_s9 }
 0x1fe   : > { %s2889_s27 = smov %s2879_s10 }

// kernel: resnet34_features.75
= control target key start
LH: loop header
LB: loop body
LE: loop exit
PB: predicated region body
PF: predicated region fallthrough
CT: control target
= control target key end

     0   :  { %6 = vsyncpa [#allocation3], 0  ;;  %s431_s0 = inlined_call_operand.vmem [shape: bf16[2,1,512], index: 0, kind: input, shape index: {}]   ;;  %s432_s1 = inlined_call_operand.hbm [shape: f32[2,1,512], index: 1, kind: output, shape index: {}]  }
   0x1   :  { %8 = vsyncpa [#allocation3 + $0x1], 0  ;;  %s331_s6 = smov 0   ;;  %s333_s7 = smov 0  }
   0x2   :  { %s335_s8 = smov 0   ;;  %s337_s9 = smov 0  }
   0x3 LB: > { %s352_s10 = sadd.s32 4294967295, %s317_s9   ;;  %s203_s11 = sadd.s32 4294967294, %s317_s9   ;;  %s317_s9 = sphi %s337_s9, %s438_s9   ;;  %s313_s8 = sphi %s335_s8, %s437_s8   ;;  %s309_s7 = sphi %s333_s7, %s436_s7   ;;  %s305_s6 = sphi %s331_s6, %s435_s6  }
   0x4   : > { %s356_s12 = sadd.s32 1, %s317_s9   ;;  %s47_s13 = sadd.s32 1, %s313_s8 }
   0x5   : > { %s44_s14 = ssub.s32 %s317_s9, %s356_s12  ;;  %p57_p0 = scmp.ne.s32.totalorder %s313_s8, %s309_s7 }
   0x6   : > { %p45_p1 = scmp.eq.s32.totalorder %s44_s14, 0  ;;  %p58_p2 = scmp.eq.s32.totalorder %s352_s10, 1 }
   0x7   : > { %p63_p3 = scmp.ne.s32.totalorder %s309_s7, %s305_s6  ;;  %p64_p4 = scmp.eq.s32.totalorder %s203_s11, 1 }
   0x8   : > { %s367_s15 = scalar_select %p45_p1, %s313_s8, %s47_s13  }
   0x9   : > { %p369_p5 = por %p58_p2, %p57_p0  ;;  %p373_p6 = por %p64_p4, %p63_p3 }
   0xa   : > { %p206_p7 = scmp.ge.s32.totalorder %s317_s9, 1  ;;  %p89_p8 = scmp.lt.s32.totalorder %s317_s9, 3 }
   0xc   : > { %p90_p9 = pnand %p206_p7, %p89_p8 }
   0xd   : > { %s105_s18 = sand.u32 (!%p90_p9), 1, %s309_s7   ;;  %p108_p10 = scmp.lt.s32.totalorder (!%p90_p9), %s352_s10, 1  ;;  %v119_v0 = vlaneseq (!%p90_p9)  ;;  %v319_v1 = vmov (!%p90_p9), 1966171168  }
   0xe   : > { %93 = sbr.rel (%p90_p9) target bundleno = 44 (0x2c), region = 24  ;;  %s207_s19 = sshll.u32 (!%p90_p9), %s105_s18, 2  ;;  %v117_v2 = vunpack.c.l.s4 (!%p90_p9), %v319_v1 }
   0xf   : > { %v120_v3 = vshrl.u32 (!%p90_p9), %v119_v0, 7  ;;  %s107_s25 = scalar_lea.vmem (!%p90_p9), [#allocation2], %s207_s19  ;;  %s214_s27 = sshll.u32 (!%p90_p9), %s352_s10, 6  ;;  %vm126_vm0 = vcmp.lt.s32.totalorder (!%p90_p9), %v119_v0, 512 }
  0x10   : > { %v118_v4 = vunpack.c.0.s8 (!%p90_p9), %v117_v2  ;;  %s144_s26 = sshll.u32 (!%p90_p9), %s107_s25, 4  ;;  %s391_s30 = scalar_lea.hbm (!%p90_p9), %s432_s1, %s214_s27  ;;  %s386_s26 = int_to_ptr.vmem [resolvable:$true] %s144_s26 }
  0x11   : > { %s130_s2 = scalar_lea.sflag (!%p90_p9), [#allocation3], %s105_s18  ;;  %s255_s3 = scalar_lea.vmem (!%p90_p9), %s386_s26, 64 }
  0x12   : > { %v121_v5 = vsub.s32 (!%p90_p9), %v118_v4, %v120_v3  ;;  %p256_p11 = scmp.ne.s32.totalorder (!%p90_p9), %s386_s26, %s255_s3  ;;  %s320_s4 = smov (!%p90_p9), [#allocation2]  }
  0x13   : > { %s259_s5 = sshll.u32 (!%p90_p9), %s320_s4, 4  ;;  %s260_s5 = int_to_ptr.vmem [resolvable:$false] %s259_s5 }
  0x14   : > { %p257_p12 = pnand (!%p90_p9), %p256_p11, %p369_p5  ;;  %p262_p0 = scmp.lt.s32.totalorder (!%p90_p9), %s386_s26, %s260_s5 }
  0x15   : > { %s109_s20 = scalar_select %p108_p10, %s352_s10, 1 }
  0x16   : > { %p258_p13 = pneg %p257_p12  ;;  %s261_s10 = scalar_lea.vmem %s260_s5, 128 }
  0x17   : > { %s208_s21 = sshll.u32 %s109_s20, 2  ;;  %p263_p1 = scmp.lt.s32.totalorder %s261_s10, %s255_s3 }
  0x18   : > { %s111_s24 = scalar_lea.vmem %s431_s0, %s208_s21 }
  0x19   : > { %v112_v6 = vld [vmem:[%s111_s24] sm:$0xf]  ;;  %p264_p2 = por %p263_p1, %p262_p0 }
  0x1a   : > { %v113_v7 = vunpack.c.l.bf16 %v112_v6 }
  0x1b   : > { %p265_p3 = pnand %p264_p2, %p258_p13 }
  0x1c   : > { %v122_v8 = vrot.slane %v113_v7, %v121_v5 }
  0x1e   : > { %128 = vst.msk [vmem:[%s107_s25] sm:$0xf] %vm126_vm0, %v122_v8 }
  0x1f   : > { %268 = shalt.err (!%p265_p3)
}
  0x20   : > { %s269_s11 = scalar_lea.hbm %s391_s30, 64  ;;  %s273_s18 = scalar_lea.hbm %s432_s1, 128 }
  0x21   : > { %p270_p4 = scmp.ne.s32.totalorder %s391_s30, %s269_s11  ;;  %p274_p9 = scmp.lt.u32.totalorder %s391_s30, %s432_s1 }
  0x22   : > { %p275_p10 = scmp.lt.u32.totalorder %s273_s18, %s269_s11  ;;  %p277_p12 = scmp.lt.u32.totalorder %s269_s11, %s391_s30 }
  0x23   : > { %p271_p7 = pnand %p270_p4, %p369_p5 }
  0x24   : > { %p276_p11 = por %p275_p10, %p274_p9 }
  0x25   : > { %p272_p8 = pneg %p271_p7 }
  0x26   : > { %p278_p13 = por %p277_p12, %p276_p11 }
  0x28   : > { %p279_p0 = pnand %p278_p13, %p272_p8 }
  0x2a   : > { %282 = shalt.err (!%p279_p0)
}
  0x2b   : > { %215 = dma.vmem_to_hbm [thread:$0]  (%p369_p5), %s386_s26, 64, %s391_s30, %s130_s2  }
  0x2c PF: > { %p221_p1 = scmp.ge.s32.totalorder %s317_s9, 2  ;;  %s156_s21 = sand.u32 1, %s305_s6  }
  0x2d   : > { %s157_s22 = scalar_lea.sflag [#allocation3], %s156_s21 }
  0x2e   : > { %p218_p2 = pnand %p221_p1, %p373_p6 }
  0x30   : > { %300 = dma.done.wait (!%p218_p2), %s157_s22, 64  }
  0x31   : > { %302 = vsyncadd (!%p218_p2), %s157_s22, 4294967232  ;;  %p11_p3 = scmp.ge.s32.totalorder %s356_s12, 4   ;;  %s435_s6 = smov %s309_s7 }
  0x32   : > { %s436_s7 = smov %s313_s8  ;;  %s437_s8 = smov %s367_s15 }
  0x33   : > { %s438_s9 = smov %s356_s12  ;;  %13 = sbr.rel (!%p11_p3) target bundleno = 3 (0x3), region = 59 }
  0x3a   :  { %162 = vsyncpa [#allocation3], 1 }
  0x3b   :  { %164 = vsyncpa [#allocation3 + $0x1], 1 }

// kernel: resnet34_features.71
= control target key start
LH: loop header
LB: loop body
LE: loop exit
PB: predicated region body
PF: predicated region fallthrough
CT: control target
= control target key end

     0   :  { %s2701_s0 = inlined_call_operand.vmem [shape: bf16[16,4608], index: 0, kind: input, shape index: {}]   ;;  %s2702_s1 = inlined_call_operand.vmem [shape: bf16[4608,512], index: 1, kind: input, shape index: {}]   ;;  %s2703_s2 = inlined_call_operand.vmem [shape: f32[1,512], index: 2, kind: input, shape index: {}]   ;;  %s2704_s3 = inlined_call_operand.vmem [shape: f32[1,512], index: 3, kind: input, shape index: {}]   ;;  %s2705_s4 = inlined_call_operand.vmem [shape: bf16[16,512], index: 4, kind: output, shape index: {}]  }
   0x1   :  { %2708 = sst [smem:[#allocation8_spill]] %s2701_s0 }
   0x2   :  { %2709 = sst [smem:[#allocation9_spill]] %s2702_s1 }
   0x3   :  { %s2212_s15 = smov 0   ;;  %s2214_s16 = smov 0  }
   0x4   :  { %s2216_s17 = smov 0   ;;  %s2218_s18 = smov 0  }
   0x5   :  { %s2220_s19 = smov 0   ;;  %s2222_s20 = smov 0  }
   0x6   :  { %s2224_s21 = smov 0   ;;  %s2226_s22 = smov 0  }
   0x7   :  { %s2228_s23 = smov 0   ;;  %s2230_s24 = smov 0  }
   0x8   :  { %s2232_s25 = smov 0  }
   0x9 LB: > { %s1716_s26 = sadd.s32 4294967295, %s2184_s25   ;;  %s26_s27 = sadd.s32 1, %s2176_s23  ;;  %s2184_s25 = sphi %s2232_s25, %s14_s25   ;;  %s2180_s24 = sphi %s2230_s24, %s2728_s24   ;;  %s2176_s23 = sphi %s2228_s23, %s2727_s23   ;;  %s2172_s22 = sphi %s2226_s22, %s2726_s22   ;;  %s2168_s21 = sphi %s2224_s21, %s2725_s21   ;;  %s2164_s20 = sphi %s2222_s20, %s2724_s20   ;;  %s2160_s19 = sphi %s2220_s19, %s2723_s19   ;;  %s2156_s18 = sphi %s2218_s18, %s2722_s18   ;;  %s2152_s17 = sphi %s2216_s17, %s2721_s17   ;;  %s2148_s16 = sphi %s2214_s16, %s2720_s16   ;;  %s2144_s15 = sphi %s2212_s15, %s2719_s15  }
   0xa   : > { %p27_p0 = scmp.ge.s32.totalorder %s26_s27, 6  ;;  %s29_s28 = sadd.s32 1, %s2180_s24 }
   0xb   : > { %s42_s29 = sadd.s32 1, %s2164_s20  ;;  %p49_p1 = scmp.ne.s32.totalorder %s2164_s20, %s2160_s19 }
   0xc   : > { %s2730_s27 = smov (%p27_p0, %s26_s27), 0  ;;  %s2732_s28 = smov (!%p27_p0, %s29_s28), %s2180_s24 }
   0xd   : > { %2710 = sst [smem:[#allocation6_spill]] %s2730_s27  ;;  %s38_s30 = ssub.s32 %s2176_s23, %s2730_s27 }
   0xe   : > { %p50_p2 = scmp.eq.s32.totalorder %s2184_s25, 0  ;;  %p31_p3 = scmp.ge.s32.totalorder %s2732_s28, 2 }
   0xf   : > { %p40_p4 = scmp.eq.s32.totalorder %s38_s30, 0  ;;  %s70_s6 = sadd.s32 1, %s2156_s18 }
  0x10   : > { %p2279_p5 = por %p50_p2, %p49_p1  ;;  %s2734_s28 = smov (%p31_p3, %s2732_s28), 0 }
  0x11   : > { %2712 = sst [smem:[#allocation7_spill]] %s2734_s28  ;;  %s66_s8 = ssub.s32 %s2180_s24, %s2734_s28 }
  0x12   : > { %s2287_s7 = scalar_select %p40_p4, %s2164_s20, %s42_s29  }
  0x13   : > { %p77_p6 = scmp.ne.s32.totalorder %s2156_s18, %s2152_s17  ;;  %s67_s9 = sor.u32 %s66_s8, %s38_s30 }
  0x14   : > { %p148_p7 = scmp.eq.s32.totalorder %s66_s8, 0  ;;  %p68_p8 = scmp.eq.s32.totalorder %s67_s9, 0 }
  0x15   : > { %p2293_p9 = por %p77_p6, %p50_p2  ;;  %s150_s11 = sadd.s32 1, %s2148_s16 }
  0x16   : > { %p160_p10 = scmp.ne.s32.totalorder %s2148_s16, %s2144_s15  ;;  %p161_p11 = scmp.eq.s32.totalorder %s1716_s26, 11 }
  0x17   : > { %s2301_s12 = scalar_select %p68_p8, %s2156_s18, %s70_s6  }
  0x18   : > { %s2304_s13 = scalar_select %p148_p7, %s2148_s16, %s150_s11  }
  0x19   : > { %p2306_p12 = por %p161_p11, %p160_p10  ;;  %p1719_p13 = scmp.ge.s32.totalorder %s2184_s25, 12 }
  0x1b   : > { %183 = sbr.rel (%p1719_p13) target bundleno = 104 (0x68), region = 16 }
  0x22   : > { %186 = sbr.rel (!%p2279_p5) target bundleno = 46 (0x2e), region = 20  ;;  %s188_s29 = sand.u32 (%p2279_p5), 1, %s2164_s20  }
  0x23   : > { %s1839_s30 = smul.u32 (%p2279_p5), 24, %s2176_s23  ;;  %s2715_s0 = sld [smem:[#allocation8_spill]] (%p2279_p5) }
  0x24   : > { %s1852_s8 = smul.u32 (%p2279_p5), 48, %s188_s29 }
  0x26   : > { %s190_s26 = scalar_lea.vmem (%p2279_p5), [#allocation3], %s1852_s8 }
  0x29   : > { %s196_s11 = scalar_lea.vmem %s2715_s0, %s1839_s30 }
  0x2a   : > { %v209_v0 = vld [vmem:[%s196_s11] sm:$0xff]  ;;  %v211_v1 = vld [vmem:[%s196_s11 + $0x8] sm:$0xff]  ;;  %v213_v2 = vld [vmem:[%s196_s11 + $0x10] sm:$0xff] }
  0x2b   : > { %210 = vst [vmem:[%s190_s26] sm:$0xff] %v209_v0  ;;  %212 = vst [vmem:[%s190_s26 + $0x8] sm:$0xff] %v211_v1  ;;  %v215_v3 = vld [vmem:[%s196_s11 + $0x90] sm:$0xff]  ;;  %v217_v4 = vld [vmem:[%s196_s11 + $0x98] sm:$0xff] }
  0x2c   : > { %214 = vst [vmem:[%s190_s26 + $0x10] sm:$0xff] %v213_v2  ;;  %v219_v5 = vld [vmem:[%s196_s11 + $0xa0] sm:$0xff]  ;;  %216 = vst [vmem:[%s190_s26 + $0x18] sm:$0xff] %v215_v3 }
  0x2d   : > { %218 = vst [vmem:[%s190_s26 + $0x20] sm:$0xff] %v217_v4  ;;  %220 = vst [vmem:[%s190_s26 + $0x28] sm:$0xff] %v219_v5 }
  0x2e PF: > { %226 = sbr.rel (!%p2293_p9) target bundleno = 104 (0x68), region = 43  ;;  %s228_s5 = sand.u32 (%p2293_p9), 1, %s2156_s18  }
  0x2f   : > { %s1853_s29 = smul.u32 (%p2293_p9), 768, %s228_s5  ;;  %s1721_s30 = sshll.u32 (%p2293_p9), %s2180_s24, 1 }
  0x30   : > { %s1840_s8 = smul.u32 (%p2293_p9), 384, %s2176_s23  ;;  %s2716_s1 = sld [smem:[#allocation9_spill]] (%p2293_p9) }
  0x31   : > { %s2331_s10 = scalar_lea.vmem (%p2293_p9), [#allocation4], %s1853_s29 }
  0x32   : > { %s234_s6 = sadd.s32 (%p2293_p9), %s1840_s8, %s1721_s30 }
  0x33   : > { %s1723_s9 = sshll.u32 (%p2293_p9), %s234_s6, 2 }
  0x36   : > { %s2326_s11 = scalar_lea.vmem %s2716_s1, %s1723_s9 }
  0x37   : > { %v454_v6 = vld [vmem:[%s2326_s11] sm:$0xff]  ;;  %v456_v7 = vld [vmem:[%s2326_s11 + $0x10] sm:$0xff] }
  0x38   : > { %v458_v8 = vld [vmem:[%s2326_s11 + $0x20] sm:$0xff]  ;;  %455 = vst [vmem:[%s2331_s10] sm:$0xff] %v454_v6  ;;  %457 = vst [vmem:[%s2331_s10 + $0x8] sm:$0xff] %v456_v7  ;;  %v460_v9 = vld [vmem:[%s2326_s11 + $0x30] sm:$0xff] }
  0x39   : > { %459 = vst [vmem:[%s2331_s10 + $0x10] sm:$0xff] %v458_v8  ;;  %v462_v10 = vld [vmem:[%s2326_s11 + $0x40] sm:$0xff]  ;;  %v464_v11 = vld [vmem:[%s2326_s11 + $0x50] sm:$0xff]  ;;  %461 = vst [vmem:[%s2331_s10 + $0x18] sm:$0xff] %v460_v9 }
  0x3a   : > { %463 = vst [vmem:[%s2331_s10 + $0x20] sm:$0xff] %v462_v10  ;;  %465 = vst [vmem:[%s2331_s10 + $0x28] sm:$0xff] %v464_v11  ;;  %v466_v12 = vld [vmem:[%s2326_s11 + $0x60] sm:$0xff]  ;;  %v468_v13 = vld [vmem:[%s2326_s11 + $0x70] sm:$0xff] }
  0x3b   : > { %v470_v14 = vld [vmem:[%s2326_s11 + $0x80] sm:$0xff]  ;;  %467 = vst [vmem:[%s2331_s10 + $0x30] sm:$0xff] %v466_v12  ;;  %469 = vst [vmem:[%s2331_s10 + $0x38] sm:$0xff] %v468_v13  ;;  %v472_v15 = vld [vmem:[%s2326_s11 + $0x90] sm:$0xff] }
  0x3c   : > { %471 = vst [vmem:[%s2331_s10 + $0x40] sm:$0xff] %v470_v14  ;;  %v474_v16 = vld [vmem:[%s2326_s11 + $0xa0] sm:$0xff]  ;;  %v476_v17 = vld [vmem:[%s2326_s11 + $0xb0] sm:$0xff]  ;;  %473 = vst [vmem:[%s2331_s10 + $0x48] sm:$0xff] %v472_v15 }
  0x3d   : > { %475 = vst [vmem:[%s2331_s10 + $0x50] sm:$0xff] %v474_v16  ;;  %477 = vst [vmem:[%s2331_s10 + $0x58] sm:$0xff] %v476_v17  ;;  %v478_v18 = vld [vmem:[%s2326_s11 + $0xc0] sm:$0xff]  ;;  %v480_v19 = vld [vmem:[%s2326_s11 + $0xd0] sm:$0xff] }
  0x3e   : > { %v482_v20 = vld [vmem:[%s2326_s11 + $0xe0] sm:$0xff]  ;;  %479 = vst [vmem:[%s2331_s10 + $0x60] sm:$0xff] %v478_v18  ;;  %481 = vst [vmem:[%s2331_s10 + $0x68] sm:$0xff] %v480_v19  ;;  %v484_v21 = vld [vmem:[%s2326_s11 + $0xf0] sm:$0xff] }
  0x3f   : > { %483 = vst [vmem:[%s2331_s10 + $0x70] sm:$0xff] %v482_v20  ;;  %v486_v22 = vld [vmem:[%s2326_s11 + $0x100] sm:$0xff]  ;;  %v488_v23 = vld [vmem:[%s2326_s11 + $0x110] sm:$0xff]  ;;  %485 = vst [vmem:[%s2331_s10 + $0x78] sm:$0xff] %v484_v21 }
  0x40   : > { %487 = vst [vmem:[%s2331_s10 + $0x80] sm:$0xff] %v486_v22  ;;  %489 = vst [vmem:[%s2331_s10 + $0x88] sm:$0xff] %v488_v23  ;;  %v490_v24 = vld [vmem:[%s2326_s11 + $0x120] sm:$0xff]  ;;  %v492_v25 = vld [vmem:[%s2326_s11 + $0x130] sm:$0xff] }
  0x41   : > { %v494_v26 = vld [vmem:[%s2326_s11 + $0x140] sm:$0xff]  ;;  %491 = vst [vmem:[%s2331_s10 + $0x90] sm:$0xff] %v490_v24  ;;  %493 = vst [vmem:[%s2331_s10 + $0x98] sm:$0xff] %v492_v25  ;;  %v496_v27 = vld [vmem:[%s2326_s11 + $0x150] sm:$0xff] }
  0x42   : > { %495 = vst [vmem:[%s2331_s10 + $0xa0] sm:$0xff] %v494_v26  ;;  %v498_v28 = vld [vmem:[%s2326_s11 + $0x160] sm:$0xff]  ;;  %v500_v29 = vld [vmem:[%s2326_s11 + $0x170] sm:$0xff]  ;;  %497 = vst [vmem:[%s2331_s10 + $0xa8] sm:$0xff] %v496_v27 }
  0x43   : > { %499 = vst [vmem:[%s2331_s10 + $0xb0] sm:$0xff] %v498_v28  ;;  %501 = vst [vmem:[%s2331_s10 + $0xb8] sm:$0xff] %v500_v29  ;;  %v502_v30 = vld [vmem:[%s2326_s11 + $0x180] sm:$0xff]  ;;  %v504_v31 = vld [vmem:[%s2326_s11 + $0x190] sm:$0xff] }
  0x44   : > { %v506_v32 = vld [vmem:[%s2326_s11 + $0x1a0] sm:$0xff]  ;;  %503 = vst [vmem:[%s2331_s10 + $0xc0] sm:$0xff] %v502_v30  ;;  %505 = vst [vmem:[%s2331_s10 + $0xc8] sm:$0xff] %v504_v31  ;;  %v508_v33 = vld [vmem:[%s2326_s11 + $0x1b0] sm:$0xff] }
  0x45   : > { %507 = vst [vmem:[%s2331_s10 + $0xd0] sm:$0xff] %v506_v32  ;;  %v510_v34 = vld [vmem:[%s2326_s11 + $0x1c0] sm:$0xff]  ;;  %v512_v35 = vld [vmem:[%s2326_s11 + $0x1d0] sm:$0xff]  ;;  %509 = vst [vmem:[%s2331_s10 + $0xd8] sm:$0xff] %v508_v33 }
  0x46   : > { %511 = vst [vmem:[%s2331_s10 + $0xe0] sm:$0xff] %v510_v34  ;;  %513 = vst [vmem:[%s2331_s10 + $0xe8] sm:$0xff] %v512_v35  ;;  %v514_v36 = vld [vmem:[%s2326_s11 + $0x1e0] sm:$0xff]  ;;  %v516_v37 = vld [vmem:[%s2326_s11 + $0x1f0] sm:$0xff] }
  0x47   : > { %v518_v38 = vld [vmem:[%s2326_s11 + $0x200] sm:$0xff]  ;;  %515 = vst [vmem:[%s2331_s10 + $0xf0] sm:$0xff] %v514_v36  ;;  %517 = vst [vmem:[%s2331_s10 + $0xf8] sm:$0xff] %v516_v37  ;;  %v520_v39 = vld [vmem:[%s2326_s11 + $0x210] sm:$0xff] }
  0x48   : > { %519 = vst [vmem:[%s2331_s10 + $0x100] sm:$0xff] %v518_v38  ;;  %v522_v40 = vld [vmem:[%s2326_s11 + $0x220] sm:$0xff]  ;;  %v524_v41 = vld [vmem:[%s2326_s11 + $0x230] sm:$0xff]  ;;  %521 = vst [vmem:[%s2331_s10 + $0x108] sm:$0xff] %v520_v39 }
  0x49   : > { %523 = vst [vmem:[%s2331_s10 + $0x110] sm:$0xff] %v522_v40  ;;  %525 = vst [vmem:[%s2331_s10 + $0x118] sm:$0xff] %v524_v41  ;;  %v526_v42 = vld [vmem:[%s2326_s11 + $0x240] sm:$0xff]  ;;  %v528_v43 = vld [vmem:[%s2326_s11 + $0x250] sm:$0xff] }
  0x4a   : > { %v530_v44 = vld [vmem:[%s2326_s11 + $0x260] sm:$0xff]  ;;  %527 = vst [vmem:[%s2331_s10 + $0x120] sm:$0xff] %v526_v42  ;;  %529 = vst [vmem:[%s2331_s10 + $0x128] sm:$0xff] %v528_v43  ;;  %v532_v45 = vld [vmem:[%s2326_s11 + $0x270] sm:$0xff] }
  0x4b   : > { %531 = vst [vmem:[%s2331_s10 + $0x130] sm:$0xff] %v530_v44  ;;  %v534_v46 = vld [vmem:[%s2326_s11 + $0x280] sm:$0xff]  ;;  %v536_v47 = vld [vmem:[%s2326_s11 + $0x290] sm:$0xff]  ;;  %533 = vst [vmem:[%s2331_s10 + $0x138] sm:$0xff] %v532_v45 }
  0x4c   : > { %535 = vst [vmem:[%s2331_s10 + $0x140] sm:$0xff] %v534_v46  ;;  %537 = vst [vmem:[%s2331_s10 + $0x148] sm:$0xff] %v536_v47  ;;  %v538_v48 = vld [vmem:[%s2326_s11 + $0x2a0] sm:$0xff]  ;;  %v540_v49 = vld [vmem:[%s2326_s11 + $0x2b0] sm:$0xff] }
  0x4d   : > { %v542_v50 = vld [vmem:[%s2326_s11 + $0x2c0] sm:$0xff]  ;;  %539 = vst [vmem:[%s2331_s10 + $0x150] sm:$0xff] %v538_v48  ;;  %541 = vst [vmem:[%s2331_s10 + $0x158] sm:$0xff] %v540_v49  ;;  %v544_v51 = vld [vmem:[%s2326_s11 + $0x2d0] sm:$0xff] }
  0x4e   : > { %543 = vst [vmem:[%s2331_s10 + $0x160] sm:$0xff] %v542_v50  ;;  %v546_v52 = vld [vmem:[%s2326_s11 + $0x2e0] sm:$0xff]  ;;  %v548_v53 = vld [vmem:[%s2326_s11 + $0x2f0] sm:$0xff]  ;;  %545 = vst [vmem:[%s2331_s10 + $0x168] sm:$0xff] %v544_v51 }
  0x4f   : > { %547 = vst [vmem:[%s2331_s10 + $0x170] sm:$0xff] %v546_v52  ;;  %549 = vst [vmem:[%s2331_s10 + $0x178] sm:$0xff] %v548_v53  ;;  %v550_v54 = vld [vmem:[%s2326_s11 + $0x300] sm:$0xff]  ;;  %v552_v55 = vld [vmem:[%s2326_s11 + $0x310] sm:$0xff] }
  0x50   : > { %v554_v56 = vld [vmem:[%s2326_s11 + $0x320] sm:$0xff]  ;;  %551 = vst [vmem:[%s2331_s10 + $0x180] sm:$0xff] %v550_v54  ;;  %553 = vst [vmem:[%s2331_s10 + $0x188] sm:$0xff] %v552_v55  ;;  %v556_v57 = vld [vmem:[%s2326_s11 + $0x330] sm:$0xff] }
  0x51   : > { %555 = vst [vmem:[%s2331_s10 + $0x190] sm:$0xff] %v554_v56  ;;  %v558_v58 = vld [vmem:[%s2326_s11 + $0x340] sm:$0xff]  ;;  %v560_v59 = vld [vmem:[%s2326_s11 + $0x350] sm:$0xff]  ;;  %557 = vst [vmem:[%s2331_s10 + $0x198] sm:$0xff] %v556_v57 }
  0x52   : > { %559 = vst [vmem:[%s2331_s10 + $0x1a0] sm:$0xff] %v558_v58  ;;  %561 = vst [vmem:[%s2331_s10 + $0x1a8] sm:$0xff] %v560_v59  ;;  %v562_v60 = vld [vmem:[%s2326_s11 + $0x360] sm:$0xff]  ;;  %v564_v61 = vld [vmem:[%s2326_s11 + $0x370] sm:$0xff] }
  0x53   : > { %v566_v62 = vld [vmem:[%s2326_s11 + $0x380] sm:$0xff]  ;;  %563 = vst [vmem:[%s2331_s10 + $0x1b0] sm:$0xff] %v562_v60  ;;  %565 = vst [vmem:[%s2331_s10 + $0x1b8] sm:$0xff] %v564_v61  ;;  %v568_v63 = vld [vmem:[%s2326_s11 + $0x390] sm:$0xff] }
  0x54   : > { %567 = vst [vmem:[%s2331_s10 + $0x1c0] sm:$0xff] %v566_v62  ;;  %v570_v0 = vld [vmem:[%s2326_s11 + $0x3a0] sm:$0xff]  ;;  %v572_v1 = vld [vmem:[%s2326_s11 + $0x3b0] sm:$0xff]  ;;  %569 = vst [vmem:[%s2331_s10 + $0x1c8] sm:$0xff] %v568_v63 }
  0x55   : > { %571 = vst [vmem:[%s2331_s10 + $0x1d0] sm:$0xff] %v570_v0  ;;  %573 = vst [vmem:[%s2331_s10 + $0x1d8] sm:$0xff] %v572_v1  ;;  %v574_v2 = vld [vmem:[%s2326_s11 + $0x3c0] sm:$0xff]  ;;  %v576_v3 = vld [vmem:[%s2326_s11 + $0x3d0] sm:$0xff] }
  0x56   : > { %v578_v4 = vld [vmem:[%s2326_s11 + $0x3e0] sm:$0xff]  ;;  %575 = vst [vmem:[%s2331_s10 + $0x1e0] sm:$0xff] %v574_v2  ;;  %577 = vst [vmem:[%s2331_s10 + $0x1e8] sm:$0xff] %v576_v3  ;;  %v580_v5 = vld [vmem:[%s2326_s11 + $0x3f0] sm:$0xff] }
  0x57   : > { %579 = vst [vmem:[%s2331_s10 + $0x1f0] sm:$0xff] %v578_v4  ;;  %v582_v6 = vld [vmem:[%s2326_s11 + $0x400] sm:$0xff]  ;;  %v584_v7 = vld [vmem:[%s2326_s11 + $0x410] sm:$0xff]  ;;  %581 = vst [vmem:[%s2331_s10 + $0x1f8] sm:$0xff] %v580_v5 }
  0x58   : > { %583 = vst [vmem:[%s2331_s10 + $0x200] sm:$0xff] %v582_v6  ;;  %585 = vst [vmem:[%s2331_s10 + $0x208] sm:$0xff] %v584_v7  ;;  %v586_v8 = vld [vmem:[%s2326_s11 + $0x420] sm:$0xff]  ;;  %v588_v9 = vld [vmem:[%s2326_s11 + $0x430] sm:$0xff] }
  0x59   : > { %v590_v10 = vld [vmem:[%s2326_s11 + $0x440] sm:$0xff]  ;;  %587 = vst [vmem:[%s2331_s10 + $0x210] sm:$0xff] %v586_v8  ;;  %589 = vst [vmem:[%s2331_s10 + $0x218] sm:$0xff] %v588_v9  ;;  %v592_v11 = vld [vmem:[%s2326_s11 + $0x450] sm:$0xff] }
  0x5a   : > { %591 = vst [vmem:[%s2331_s10 + $0x220] sm:$0xff] %v590_v10  ;;  %v594_v12 = vld [vmem:[%s2326_s11 + $0x460] sm:$0xff]  ;;  %v596_v13 = vld [vmem:[%s2326_s11 + $0x470] sm:$0xff]  ;;  %593 = vst [vmem:[%s2331_s10 + $0x228] sm:$0xff] %v592_v11 }
  0x5b   : > { %595 = vst [vmem:[%s2331_s10 + $0x230] sm:$0xff] %v594_v12  ;;  %597 = vst [vmem:[%s2331_s10 + $0x238] sm:$0xff] %v596_v13  ;;  %v598_v14 = vld [vmem:[%s2326_s11 + $0x480] sm:$0xff]  ;;  %v600_v15 = vld [vmem:[%s2326_s11 + $0x490] sm:$0xff] }
  0x5c   : > { %v602_v16 = vld [vmem:[%s2326_s11 + $0x4a0] sm:$0xff]  ;;  %599 = vst [vmem:[%s2331_s10 + $0x240] sm:$0xff] %v598_v14  ;;  %601 = vst [vmem:[%s2331_s10 + $0x248] sm:$0xff] %v600_v15  ;;  %v604_v17 = vld [vmem:[%s2326_s11 + $0x4b0] sm:$0xff] }
  0x5d   : > { %603 = vst [vmem:[%s2331_s10 + $0x250] sm:$0xff] %v602_v16  ;;  %v606_v18 = vld [vmem:[%s2326_s11 + $0x4c0] sm:$0xff]  ;;  %v608_v19 = vld [vmem:[%s2326_s11 + $0x4d0] sm:$0xff]  ;;  %605 = vst [vmem:[%s2331_s10 + $0x258] sm:$0xff] %v604_v17 }
  0x5e   : > { %607 = vst [vmem:[%s2331_s10 + $0x260] sm:$0xff] %v606_v18  ;;  %609 = vst [vmem:[%s2331_s10 + $0x268] sm:$0xff] %v608_v19  ;;  %v610_v20 = vld [vmem:[%s2326_s11 + $0x4e0] sm:$0xff]  ;;  %v612_v21 = vld [vmem:[%s2326_s11 + $0x4f0] sm:$0xff] }
  0x5f   : > { %v614_v22 = vld [vmem:[%s2326_s11 + $0x500] sm:$0xff]  ;;  %611 = vst [vmem:[%s2331_s10 + $0x270] sm:$0xff] %v610_v20  ;;  %613 = vst [vmem:[%s2331_s10 + $0x278] sm:$0xff] %v612_v21  ;;  %v616_v23 = vld [vmem:[%s2326_s11 + $0x510] sm:$0xff] }
  0x60   : > { %615 = vst [vmem:[%s2331_s10 + $0x280] sm:$0xff] %v614_v22  ;;  %v618_v24 = vld [vmem:[%s2326_s11 + $0x520] sm:$0xff]  ;;  %v620_v25 = vld [vmem:[%s2326_s11 + $0x530] sm:$0xff]  ;;  %617 = vst [vmem:[%s2331_s10 + $0x288] sm:$0xff] %v616_v23 }
  0x61   : > { %619 = vst [vmem:[%s2331_s10 + $0x290] sm:$0xff] %v618_v24  ;;  %621 = vst [vmem:[%s2331_s10 + $0x298] sm:$0xff] %v620_v25  ;;  %v622_v26 = vld [vmem:[%s2326_s11 + $0x540] sm:$0xff]  ;;  %v624_v27 = vld [vmem:[%s2326_s11 + $0x550] sm:$0xff] }
  0x62   : > { %v626_v28 = vld [vmem:[%s2326_s11 + $0x560] sm:$0xff]  ;;  %623 = vst [vmem:[%s2331_s10 + $0x2a0] sm:$0xff] %v622_v26  ;;  %625 = vst [vmem:[%s2331_s10 + $0x2a8] sm:$0xff] %v624_v27  ;;  %v628_v29 = vld [vmem:[%s2326_s11 + $0x570] sm:$0xff] }
  0x63   : > { %627 = vst [vmem:[%s2331_s10 + $0x2b0] sm:$0xff] %v626_v28  ;;  %v630_v30 = vld [vmem:[%s2326_s11 + $0x580] sm:$0xff]  ;;  %v632_v31 = vld [vmem:[%s2326_s11 + $0x590] sm:$0xff]  ;;  %629 = vst [vmem:[%s2331_s10 + $0x2b8] sm:$0xff] %v628_v29 }
  0x64   : > { %631 = vst [vmem:[%s2331_s10 + $0x2c0] sm:$0xff] %v630_v30  ;;  %633 = vst [vmem:[%s2331_s10 + $0x2c8] sm:$0xff] %v632_v31  ;;  %v634_v32 = vld [vmem:[%s2326_s11 + $0x5a0] sm:$0xff]  ;;  %v636_v33 = vld [vmem:[%s2326_s11 + $0x5b0] sm:$0xff] }
  0x65   : > { %v638_v34 = vld [vmem:[%s2326_s11 + $0x5c0] sm:$0xff]  ;;  %635 = vst [vmem:[%s2331_s10 + $0x2d0] sm:$0xff] %v634_v32  ;;  %637 = vst [vmem:[%s2331_s10 + $0x2d8] sm:$0xff] %v636_v33  ;;  %v640_v35 = vld [vmem:[%s2326_s11 + $0x5d0] sm:$0xff] }
  0x66   : > { %639 = vst [vmem:[%s2331_s10 + $0x2e0] sm:$0xff] %v638_v34  ;;  %v642_v36 = vld [vmem:[%s2326_s11 + $0x5e0] sm:$0xff]  ;;  %v644_v37 = vld [vmem:[%s2326_s11 + $0x5f0] sm:$0xff]  ;;  %641 = vst [vmem:[%s2331_s10 + $0x2e8] sm:$0xff] %v640_v35 }
  0x67   : > { %643 = vst [vmem:[%s2331_s10 + $0x2f0] sm:$0xff] %v642_v36  ;;  %645 = vst [vmem:[%s2331_s10 + $0x2f8] sm:$0xff] %v644_v37 }
  0x68 PF: > { %p1724_p0 = scmp.ge.s32.totalorder %s2184_s25, 1  ;;  %p666_p1 = scmp.lt.s32.totalorder %s2184_s25, 13 }
  0x6a   : > { %p667_p2 = pnand %p1724_p0, %p666_p1 }
  0x6b   : > { %s673_s0 = sand.u32 (!%p667_p2), 1, %s2160_s19   ;;  %s680_s28 = sand.u32 (!%p667_p2), 1, %s2152_s17  }
  0x6c   : > { %670 = sbr.rel (%p667_p2) target bundleno = 495 (0x1ef), region = 89  ;;  %s713_s5 = sand.u32 (!%p667_p2), 1, %s2144_s15  }
  0x6d   : > { %s1854_s26 = smul.u32 (!%p667_p2), 48, %s673_s0  ;;  %s1725_s30 = sshll.u32 (!%p667_p2), %s713_s5, 4 }
  0x6e   : > { %s1855_s29 = smul.u32 (!%p667_p2), 768, %s680_s28  ;;  %s1726_s8 = sshll.u32 (!%p667_p2), %s2172_s22, 1 }
  0x6f   : > { %p721_p3 = scmp.lt.s32.totalorder (!%p667_p2), %s1726_s8, 3  ;;  %s2538_s19 = scalar_lea.vmem (!%p667_p2), [#allocation3], %s1854_s26 }
  0x70   : > { %s2540_s17 = scalar_lea.vmem (!%p667_p2), [#allocation4], %s1855_s29  ;;  %s2542_s15 = scalar_lea.vmem (!%p667_p2), [#allocation5], %s1725_s30 }
  0x71   : > { %p1728_p4 = scmp.ne.s32.totalorder (!%p667_p2), %s2168_s21, 0 }
  0x73   : > { %s2736_s8 = smov (!%p721_p3, %s1726_s8), 3  ;;  %735 = sbr.rel (%p1728_p4) target bundleno = 122 (0x7a), region = 101 }
  0x74   : > { %s723_s11 = scalar_lea.vmem %s2703_s2, %s2736_s8  ;;  %s728_s27 = scalar_lea.vmem %s2704_s3, %s2736_s8  ;;  %v2186_v38 = vmov (!%p1728_p4), 0.0  }
  0x75   : > { %736 = vst [vmem:[#allocation2] sm:$0xff] (!%p1728_p4), %v2186_v38  ;;  %737 = vst [vmem:[#allocation2 + $0x8] sm:$0xff] (!%p1728_p4), %v2186_v38 }
  0x76   : > { %738 = vst [vmem:[#allocation2 + $0x10] sm:$0xff] (!%p1728_p4), %v2186_v38  ;;  %739 = vst [vmem:[#allocation2 + $0x18] sm:$0xff] (!%p1728_p4), %v2186_v38 }
  0x7a PF: > { %v1945_v39 = vld [vmem:[%s2540_s17 + $0x104] ss:$8 sps:$4 sm:$0xff]   ;;  %v1947_v40 = vld [vmem:[%s2540_s17 + $0x100] ss:$8 sps:$4 sm:$0xff]   ;;  %v1948_v41 = vld [vmem:[%s2540_s17 + $0x114] ss:$8 sps:$4 sm:$0xff]  }
  0x7b   : > { %1399 = vmatprep.subr.bf16.mxu0 %v1945_v39  ;;  %v1950_v42 = vld [vmem:[%s2540_s17 + $0x110] ss:$8 sps:$4 sm:$0xff]   ;;  %v1951_v43 = vld [vmem:[%s2540_s17 + $0x124] ss:$8 sps:$4 sm:$0xff]   ;;  %v1953_v44 = vld [vmem:[%s2540_s17 + $0x120] ss:$8 sps:$4 sm:$0xff]  }
  0x7c   : > { %1400 = vmatpush1.bf16.msra.mxu0 %v1947_v40  ;;  %v1954_v45 = vld [vmem:[%s2540_s17 + $0x134] ss:$8 sps:$4 sm:$0xff]   ;;  %v1956_v46 = vld [vmem:[%s2540_s17 + $0x130] ss:$8 sps:$4 sm:$0xff]   ;;  %v1957_v47 = vld [vmem:[%s2540_s17 + $0x144] ss:$8 sps:$4 sm:$0xff]  }
  0x7d   : > { %1401 = vmatprep.subr.bf16.mxu0 %v1948_v41  ;;  %v1959_v48 = vld [vmem:[%s2540_s17 + $0x140] ss:$8 sps:$4 sm:$0xff]   ;;  %v1960_v49 = vld [vmem:[%s2540_s17 + $0x154] ss:$8 sps:$4 sm:$0xff]   ;;  %v1962_v50 = vld [vmem:[%s2540_s17 + $0x150] ss:$8 sps:$4 sm:$0xff]  }
  0x7e   : > { %v1963_v51 = vld [vmem:[%s2540_s17 + $0x164] ss:$8 sps:$4 sm:$0xff]   ;;  %v1995_v53 = vld [vmem:[%s2540_s17] ss:$8 sps:$4 sm:$0xff]   ;;  %v1966_v56 = vld [vmem:[%s2540_s17 + $0x174] ss:$8 sps:$4 sm:$0xff]  }
  0x7f   : > { %v1992_v52 = vld [vmem:[%s2540_s17 + $0x4] ss:$8 sps:$4 sm:$0xff]   ;;  %v1965_v54 = vld [vmem:[%s2540_s17 + $0x160] ss:$8 sps:$4 sm:$0xff]   ;;  %v2002_v57 = vld [vmem:[%s2540_s17 + $0x14] ss:$8 sps:$4 sm:$0xff]  }
  0x80   : > { %1402 = vmatpush1.bf16.msra.mxu0 %v1950_v42  ;;  %1356 = vmatprep.subr.bf16.mxu1 %v1992_v52  ;;  %v1998_v55 = vld [vmem:[%s2538_s19 + $0xc] ss:$24 sps:$4 sm:$0xff]   ;;  %v2004_v58 = vld [vmem:[%s2540_s17 + $0x10] ss:$8 sps:$4 sm:$0xff]   ;;  %v2010_v62 = vld [vmem:[%s2540_s17 + $0x20] ss:$8 sps:$4 sm:$0xff]  }
  0x81   : > { %1403 = vmatprep.subr.bf16.mxu0 %v1951_v43  ;;  %1357 = vmatpush1.bf16.msra.mxu1 %v1995_v53  ;;  %v1968_v59 = vld [vmem:[%s2540_s17 + $0x170] ss:$8 sps:$4 sm:$0xff]   ;;  %v1969_v60 = vld [vmem:[%s2540_s17 + $0x184] ss:$8 sps:$4 sm:$0xff]   ;;  %v1971_v63 = vld [vmem:[%s2540_s17 + $0x180] ss:$8 sps:$4 sm:$0xff]  }
  0x82   : > { %1431 = vmatprep.mubr.bf16.mxu0 %v1998_v55  ;;  %1358 = vmatprep.subr.bf16.mxu1 %v2002_v57  ;;  %v2008_v61 = vld [vmem:[%s2540_s17 + $0x24] ss:$8 sps:$4 sm:$0xff]   ;;  %v2014_v0 = vld [vmem:[%s2540_s17 + $0x34] ss:$8 sps:$4 sm:$0xff]   ;;  %v2016_v2 = vld [vmem:[%s2540_s17 + $0x30] ss:$8 sps:$4 sm:$0xff]  }
  0x83   : > { %v1972_v1 = vld [vmem:[%s2540_s17 + $0x194] ss:$8 sps:$4 sm:$0xff]   ;;  %v2020_v3 = vld [vmem:[%s2540_s17 + $0x44] ss:$8 sps:$4 sm:$0xff]   ;;  %v1974_v4 = vld [vmem:[%s2540_s17 + $0x190] ss:$8 sps:$4 sm:$0xff]  }
  0x84   : > { %1404 = vmatpush1.bf16.msra.mxu0 %v1953_v44  ;;  %v1975_v5 = vld [vmem:[%s2540_s17 + $0x1a4] ss:$8 sps:$4 sm:$0xff]   ;;  %v2022_v6 = vld [vmem:[%s2540_s17 + $0x40] ss:$8 sps:$4 sm:$0xff]   ;;  %v2026_v7 = vld [vmem:[%s2540_s17 + $0x54] ss:$8 sps:$4 sm:$0xff]  }
  0x85   : > { %1405 = vmatprep.subr.bf16.mxu0 %v1954_v45  ;;  %1359 = vmatpush1.bf16.msra.mxu1 %v2004_v58  ;;  %v1977_v8 = vld [vmem:[%s2540_s17 + $0x1a0] ss:$8 sps:$4 sm:$0xff]   ;;  %v1978_v9 = vld [vmem:[%s2540_s17 + $0x1b4] ss:$8 sps:$4 sm:$0xff]   ;;  %v2028_v10 = vld [vmem:[%s2540_s17 + $0x50] ss:$8 sps:$4 sm:$0xff]  }
  0x86   : > { %1360 = vmatprep.subr.bf16.mxu1 %v2008_v61  ;;  %v2032_v11 = vld [vmem:[%s2540_s17 + $0x64] ss:$8 sps:$4 sm:$0xff]   ;;  %v1980_v12 = vld [vmem:[%s2540_s17 + $0x1b0] ss:$8 sps:$4 sm:$0xff]   ;;  %v2034_v14 = vld [vmem:[%s2540_s17 + $0x60] ss:$8 sps:$4 sm:$0xff]  }
  0x87   : > { %v1981_v13 = vld [vmem:[%s2540_s17 + $0x1c4] ss:$8 sps:$4 sm:$0xff]   ;;  %v2038_v15 = vld [vmem:[%s2540_s17 + $0x74] ss:$8 sps:$4 sm:$0xff]   ;;  %v1983_v16 = vld [vmem:[%s2540_s17 + $0x1c0] ss:$8 sps:$4 sm:$0xff]  }
  0x88   : > { %1406 = vmatpush1.bf16.msra.mxu0 %v1956_v46  ;;  %v1984_v17 = vld [vmem:[%s2540_s17 + $0x1d4] ss:$8 sps:$4 sm:$0xff]   ;;  %v2040_v18 = vld [vmem:[%s2540_s17 + $0x70] ss:$8 sps:$4 sm:$0xff]   ;;  %v2044_v19 = vld [vmem:[%s2540_s17 + $0x84] ss:$8 sps:$4 sm:$0xff]  }
  0x89   : > { %1407 = vmatprep.subr.bf16.mxu0 %v1957_v47  ;;  %1361 = vmatpush1.bf16.msra.mxu1 %v2010_v62  ;;  %v1986_v20 = vld [vmem:[%s2540_s17 + $0x1d0] ss:$8 sps:$4 sm:$0xff]   ;;  %v1987_v21 = vld [vmem:[%s2540_s17 + $0x1e4] ss:$8 sps:$4 sm:$0xff]   ;;  %v2046_v22 = vld [vmem:[%s2540_s17 + $0x80] ss:$8 sps:$4 sm:$0xff]  }
  0x8a   : > { %1362 = vmatprep.subr.bf16.mxu1 %v2014_v0  ;;  %v2050_v23 = vld [vmem:[%s2540_s17 + $0x94] ss:$8 sps:$4 sm:$0xff]   ;;  %v1989_v24 = vld [vmem:[%s2540_s17 + $0x1e0] ss:$8 sps:$4 sm:$0xff]   ;;  %v2052_v26 = vld [vmem:[%s2540_s17 + $0x90] ss:$8 sps:$4 sm:$0xff]  }
  0x8b   : > { %v1990_v25 = vld [vmem:[%s2540_s17 + $0x1f4] ss:$8 sps:$4 sm:$0xff]   ;;  %v2056_v27 = vld [vmem:[%s2540_s17 + $0xa4] ss:$8 sps:$4 sm:$0xff]   ;;  %v1994_v28 = vld [vmem:[%s2540_s17 + $0x1f0] ss:$8 sps:$4 sm:$0xff]  }
  0x8c   : > { %1408 = vmatpush1.bf16.msra.mxu0 %v1959_v48  ;;  %v2001_v29 = vld [vmem:[%s2540_s17 + $0x204] ss:$8 sps:$4 sm:$0xff]   ;;  %v2058_v30 = vld [vmem:[%s2540_s17 + $0xa0] ss:$8 sps:$4 sm:$0xff]   ;;  %v2062_v32 = vld [vmem:[%s2540_s17 + $0xb4] ss:$8 sps:$4 sm:$0xff]  }
  0x8d   : > { %1409 = vmatprep.subr.bf16.mxu0 %v1960_v49  ;;  %1363 = vmatpush1.bf16.msra.mxu1 %v2016_v2  ;;  %v1996_v31 = vld [vmem:[%s2538_s19 + $0x8] ss:$24 sps:$4 sm:$0xff]   ;;  %v2007_v34 = vld [vmem:[%s2540_s17 + $0x214] ss:$8 sps:$4 sm:$0xff]   ;;  %v2068_v37 = vld [vmem:[%s2540_s17 + $0xc4] ss:$8 sps:$4 sm:$0xff]  }
  0x8e   : > { %1364 = vmatprep.subr.bf16.mxu1 %v2020_v3  ;;  %v1999_v33 = vld [vmem:[%s2540_s17 + $0x200] ss:$8 sps:$4 sm:$0xff]   ;;  %v2064_v35 = vld [vmem:[%s2540_s17 + $0xb0] ss:$8 sps:$4 sm:$0xff]   ;;  %v2091_v36 = vld [vmem:[%s2538_s19 + $0x4] ss:$24 sps:$4 sm:$0xff]  }
  0x8f   : > { %v2005_v38 = vld [vmem:[%s2540_s17 + $0x210] ss:$8 sps:$4 sm:$0xff]   ;;  %1388 = vmatprep.mubr.bf16.mxu1 %v2091_v36  ;;  %v2097_v39 = vld [vmem:[%s2538_s19 + $0x14] ss:$24 sps:$4 sm:$0xff]   ;;  %v2070_v41 = vld [vmem:[%s2540_s17 + $0xc0] ss:$8 sps:$4 sm:$0xff]  }
  0x90   : > { %1410 = vmatpush1.bf16.msra.mxu0 %v1962_v50  ;;  %v2013_v40 = vld [vmem:[%s2540_s17 + $0x224] ss:$8 sps:$4 sm:$0xff]   ;;  %v2074_v42 = vld [vmem:[%s2540_s17 + $0xd4] ss:$8 sps:$4 sm:$0xff]   ;;  %v2011_v43 = vld [vmem:[%s2540_s17 + $0x220] ss:$8 sps:$4 sm:$0xff]  }
  0x91   : > { %1411 = vmatprep.subr.bf16.mxu0 %v1963_v51  ;;  %1365 = vmatpush1.bf16.msra.mxu1 %v2022_v6  ;;  %v2019_v44 = vld [vmem:[%s2540_s17 + $0x234] ss:$8 sps:$4 sm:$0xff]   ;;  %v2076_v45 = vld [vmem:[%s2540_s17 + $0xd0] ss:$8 sps:$4 sm:$0xff]   ;;  %v2080_v46 = vld [vmem:[%s2540_s17 + $0xe4] ss:$8 sps:$4 sm:$0xff]  }
  0x92   : > { %1366 = vmatprep.subr.bf16.mxu1 %v2026_v7  ;;  %v2017_v47 = vld [vmem:[%s2540_s17 + $0x230] ss:$8 sps:$4 sm:$0xff]   ;;  %v2025_v48 = vld [vmem:[%s2540_s17 + $0x244] ss:$8 sps:$4 sm:$0xff]   ;;  %v2082_v49 = vld [vmem:[%s2540_s17 + $0xe0] ss:$8 sps:$4 sm:$0xff]  }
  0x93   : > { %v2086_v50 = vld [vmem:[%s2540_s17 + $0xf4] ss:$8 sps:$4 sm:$0xff]   ;;  %v2023_v51 = vld [vmem:[%s2540_s17 + $0x240] ss:$8 sps:$4 sm:$0xff]   ;;  %v2088_v53 = vld [vmem:[%s2540_s17 + $0xf0] ss:$8 sps:$4 sm:$0xff]  }
  0x94   : > { %1412 = vmatpush1.bf16.msra.mxu0 %v1965_v54  ;;  %v2031_v52 = vld [vmem:[%s2540_s17 + $0x254] ss:$8 sps:$4 sm:$0xff]   ;;  %v2029_v54 = vld [vmem:[%s2540_s17 + $0x250] ss:$8 sps:$4 sm:$0xff]   ;;  %v2037_v55 = vld [vmem:[%s2540_s17 + $0x264] ss:$8 sps:$4 sm:$0xff]  }
  0x95   : > { %1413 = vmatprep.subr.bf16.mxu0 %v1966_v56  ;;  %1367 = vmatpush1.bf16.msra.mxu1 %v2028_v10  ;;  %v2089_v56 = vld [vmem:[%s2538_s19] ss:$24 sps:$4 sm:$0xff]   ;;  %v2043_v58 = vld [vmem:[%s2540_s17 + $0x274] ss:$8 sps:$4 sm:$0xff]   ;;  %v2061_v0 = vld [vmem:[%s2540_s17 + $0x2a4] ss:$8 sps:$4 sm:$0xff]  }
  0x96   : > { %1368 = vmatprep.subr.bf16.mxu1 %v2032_v11  ;;  %v2035_v57 = vld [vmem:[%s2540_s17 + $0x260] ss:$8 sps:$4 sm:$0xff]   ;;  %v2055_v62 = vld [vmem:[%s2540_s17 + $0x294] ss:$8 sps:$4 sm:$0xff]   ;;  %v2065_v3 = vld [vmem:[%s2540_s17 + $0x2b0] ss:$8 sps:$4 sm:$0xff]  }
  0x97   : > { %v2047_v61 = vld [vmem:[%s2540_s17 + $0x280] ss:$8 sps:$4 sm:$0xff]   ;;  %v2067_v2 = vld [vmem:[%s2540_s17 + $0x2b4] ss:$8 sps:$4 sm:$0xff]   ;;  %v2077_v7 = vld [vmem:[%s2540_s17 + $0x2d0] ss:$8 sps:$4 sm:$0xff]  }
  0x98   : > { %1414 = vmatpush1.bf16.msra.mxu0 %v1968_v59  ;;  %v2041_v59 = vld [vmem:[%s2540_s17 + $0x270] ss:$8 sps:$4 sm:$0xff]   ;;  %v2079_v6 = vld [vmem:[%s2540_s17 + $0x2d4] ss:$8 sps:$4 sm:$0xff]   ;;  %p1831_p5 = scmp.ne.s32.totalorder %s2168_s21, 5 }
  0x99   : > { %1415 = vmatprep.subr.bf16.mxu0 %v1969_v60  ;;  %1369 = vmatpush1.bf16.msra.mxu1 %v2034_v14  ;;  %v2049_v60 = vld [vmem:[%s2540_s17 + $0x284] ss:$8 sps:$4 sm:$0xff]   ;;  %v2094_v10 = vld [vmem:[%s2540_s17 + $0x2f4] ss:$8 sps:$4 sm:$0xff]   ;;  %v2092_v11 = vld [vmem:[%s2540_s17 + $0x2f0] ss:$8 sps:$4 sm:$0xff]  }
  0x9a   : > { %1370 = vmatprep.subr.bf16.mxu1 %v2038_v15  ;;  %v1517_v36 = vld [vmem:[%s728_s27] sm:$0x3] (!%p1831_p5) }
  0x9c   : > { %1416 = vmatpush1.bf16.msra.mxu0 %v1971_v63  ;;  %v2053_v63 = vld [vmem:[%s2540_s17 + $0x290] ss:$8 sps:$4 sm:$0xff]  }
  0x9d   : > { %1417 = vmatprep.subr.bf16.mxu0 %v1972_v1  ;;  %1371 = vmatpush1.bf16.msra.mxu1 %v2040_v18  ;;  %v2059_v1 = vld [vmem:[%s2540_s17 + $0x2a0] ss:$8 sps:$4 sm:$0xff]  }
  0x9e   : > { %1372 = vmatprep.subr.bf16.mxu1 %v2044_v19 }
  0xa0   : > { %1418 = vmatpush1.bf16.msra.mxu0 %v1974_v4  ;;  %v2073_v4 = vld [vmem:[%s2540_s17 + $0x2c4] ss:$8 sps:$4 sm:$0xff]  }
  0xa1   : > { %1419 = vmatprep.subr.bf16.mxu0 %v1975_v5  ;;  %1373 = vmatpush1.bf16.msra.mxu1 %v2046_v22  ;;  %v2071_v5 = vld [vmem:[%s2540_s17 + $0x2c0] ss:$8 sps:$4 sm:$0xff]  }
  0xa2   : > { %1374 = vmatprep.subr.bf16.mxu1 %v2050_v23  ;;  %v742_v23 = vld [vmem:[#allocation2 + $0x10] sm:$0xff] }
  0xa4   : > { %1420 = vmatpush1.bf16.msra.mxu0 %v1977_v8  ;;  %v2085_v8 = vld [vmem:[%s2540_s17 + $0x2e4] ss:$8 sps:$4 sm:$0xff]  }
  0xa5   : > { %1421 = vmatprep.subr.bf16.mxu0 %v1978_v9  ;;  %1375 = vmatpush1.bf16.msra.mxu1 %v2052_v26  ;;  %v2083_v9 = vld [vmem:[%s2540_s17 + $0x2e0] ss:$8 sps:$4 sm:$0xff]  }
  0xa6   : > { %1376 = vmatprep.subr.bf16.mxu1 %v2056_v27  ;;  %v743_v27 = vld [vmem:[#allocation2 + $0x18] sm:$0xff] }
  0xa8   : > { %1422 = vmatpush1.bf16.msra.mxu0 %v1980_v12  ;;  %v2095_v12 = vld [vmem:[%s2538_s19 + $0x10] ss:$24 sps:$4 sm:$0xff]  }
  0xa9   : > { %1423 = vmatprep.subr.bf16.mxu0 %v1981_v13  ;;  %1377 = vmatpush1.bf16.msra.mxu1 %v2058_v30 }
  0xaa   : > { %1378 = vmatprep.subr.bf16.mxu1 %v2062_v32 }
  0xac   : > { %1424 = vmatpush1.bf16.msra.mxu0 %v1983_v16 }
  0xad   : > { %1425 = vmatprep.subr.bf16.mxu0 %v1984_v17  ;;  %1379 = vmatpush1.bf16.msra.mxu1 %v2064_v35  ;;  %v740_v17 = vld [vmem:[#allocation2] sm:$0xff] }
  0xae   : > { %1380 = vmatprep.subr.bf16.mxu1 %v2068_v37  ;;  %v1501_v35 = vld [vmem:[%s723_s11] sm:$0x3] (!%p1831_p5) }
  0xb0   : > { %1426 = vmatpush1.bf16.msra.mxu0 %v1986_v20  ;;  %v741_v20 = vld [vmem:[#allocation2 + $0x8] sm:$0xff] }
  0xb1   : > { %1427 = vmatprep.subr.bf16.mxu0 %v1987_v21  ;;  %1381 = vmatpush1.bf16.msra.mxu1 %v2070_v41 }
  0xb2   : > { %1382 = vmatprep.subr.bf16.mxu1 %v2074_v42 }
  0xb4   : > { %1428 = vmatpush1.bf16.msra.mxu0 %v1989_v24 }
  0xb5   : > { %1429 = vmatprep.subr.bf16.mxu0 %v1990_v25  ;;  %1383 = vmatpush1.bf16.msra.mxu1 %v2076_v45 }
  0xb6   : > { %1384 = vmatprep.subr.bf16.mxu1 %v2080_v46 }
  0xb8   : > { %1430 = vmatpush1.bf16.msra.mxu0 %v1994_v28 }
  0xb9   : > { %1442 = vmatprep.subr.bf16.mxu0 %v2001_v29  ;;  %1385 = vmatpush1.bf16.msra.mxu1 %v2082_v49 }
  0xba   : > { %1386 = vmatprep.subr.bf16.mxu1 %v2086_v50 }
  0xbb   : > { %1432 = vmatmul.mubr.bf16.vlgmr.msra.gmra.mrb[0].mxu0 %v1996_v31 }
  0xbc   : > { %1443 = vmatpush1.bf16.msra.mxu0 %v1999_v33  ;;  %1474 = vmatprep.mubr.bf16.mxu0 %v2097_v39  ;;  %v1503_v33 = vlaneseq (!%p1831_p5) }
  0xbd   : > { %1444 = vmatprep.subr.bf16.mxu0 %v2007_v34  ;;  %1387 = vmatpush1.bf16.msra.mxu1 %v2088_v53 }
  0xbe   : > { %v1504_v34 = vshrl.u32 (!%p1831_p5), %v1503_v33, 7 }
  0xc0   : > { %1445 = vmatpush1.bf16.msra.mxu0 %v2005_v38  ;;  %1389 = vmatmul.mubr.bf16.vlgmr.msra.gmra.mrb[0].mxu1 %v2089_v56  ;;  %v1505_v38 = vsub.s32 (!%p1831_p5), 0, %v1504_v34  ;;  %v1509_v39 = vsub.s32 (!%p1831_p5), 1, %v1504_v34 }
  0xc1   : > { %1446 = vmatprep.subr.bf16.mxu0 %v2013_v40 }
  0xc2   : > { %v1522_v45 = vrot.slane (!%p1831_p5), %v1517_v36, %v1505_v38  ;;  %v1526_v46 = vrot.slane (!%p1831_p5), %v1517_v36, %v1509_v39 }
  0xc4   : > { %1447 = vmatpush1.bf16.msra.mxu0 %v2011_v43  ;;  %v1506_v43 = vrot.slane (!%p1831_p5), %v1501_v35, %v1505_v38 }
  0xc5   : > { %1448 = vmatprep.subr.bf16.mxu0 %v2019_v44  ;;  %v1510_v44 = vrot.slane (!%p1831_p5), %v1501_v35, %v1509_v39 }
  0xc8   : > { %1449 = vmatpush1.bf16.msra.mxu0 %v2017_v47 }
  0xc9   : > { %1450 = vmatprep.subr.bf16.mxu0 %v2025_v48 }
  0xcc   : > { %1451 = vmatpush1.bf16.msra.mxu0 %v2023_v51 }
  0xcd   : > { %1452 = vmatprep.subr.bf16.mxu0 %v2031_v52 }
  0xd0   : > { %1453 = vmatpush1.bf16.msra.mxu0 %v2029_v54 }
  0xd1   : > { %1454 = vmatprep.subr.bf16.mxu0 %v2037_v55 }
  0xd4   : > { %1455 = vmatpush1.bf16.msra.mxu0 %v2035_v57 }
  0xd5   : > { %1456 = vmatprep.subr.bf16.mxu0 %v2043_v58 }
  0xd8   : > { %1457 = vmatpush1.bf16.msra.mxu0 %v2041_v59 }
  0xd9   : > { %1458 = vmatprep.subr.bf16.mxu0 %v2049_v60 }
  0xdc   : > { %1459 = vmatpush1.bf16.msra.mxu0 %v2047_v61 }
  0xdd   : > { %1460 = vmatprep.subr.bf16.mxu0 %v2055_v62 }
  0xe0   : > { %1461 = vmatpush1.bf16.msra.mxu0 %v2053_v63 }
  0xe1   : > { %1462 = vmatprep.subr.bf16.mxu0 %v2061_v0 }
  0xe4   : > { %1463 = vmatpush1.bf16.msra.mxu0 %v2059_v1 }
  0xe5   : > { %1464 = vmatprep.subr.bf16.mxu0 %v2067_v2 }
  0xe8   : > { %1465 = vmatpush1.bf16.msra.mxu0 %v2065_v3 }
  0xe9   : > { %1466 = vmatprep.subr.bf16.mxu0 %v2073_v4 }
  0xec   : > { %1467 = vmatpush1.bf16.msra.mxu0 %v2071_v5 }
  0xed   : > { %1468 = vmatprep.subr.bf16.mxu0 %v2079_v6 }
  0xf0   : > { %1469 = vmatpush1.bf16.msra.mxu0 %v2077_v7 }
  0xf1   : > { %1470 = vmatprep.subr.bf16.mxu0 %v2085_v8 }
  0xf4   : > { %1471 = vmatpush1.bf16.msra.mxu0 %v2083_v9 }
  0xf5   : > { %1472 = vmatprep.subr.bf16.mxu0 %v2094_v10 }
  0xf8   : > { %1473 = vmatpush1.bf16.msra.mxu0 %v2092_v11 }
  0xfb   : > { %1475 = vmatmul.mubr.bf16.vlgmr.msra.gmra.mrb[0].mxu0 %v2095_v12 }
 0x193   : > { %v1390_v13 = vpop.f32.mrb[0].mxu1 }
 0x194   : > { %v1392_v14 = vpop.f32.mrb[1].mxu1 }
 0x195   : > { %v1394_v15 = vpop.f32.mrb[2].mxu1 }
 0x196   : > { %v1396_v16 = vpop.f32.mrb[3].mxu1 }
 0x1ce   : > { %v1476_v18 = vpop.f32.mrb[0].mxu0 }
 0x1cf   : > { %v1844_v19 = vadd.f32 %v1476_v18, %v1390_v13  ;;  %v1478_v21 = vpop.f32.mrb[1].mxu0 }
 0x1d0   : > { %v1845_v22 = vadd.f32 %v1478_v21, %v1392_v14  ;;  %v1480_v24 = vpop.f32.mrb[2].mxu0  ;;  %1496 = sbr.rel (%p1831_p5) target bundleno = 487 (0x1e7), region = 105 }
 0x1d1   : > { %v1485_v25 = vadd.f32 %v1844_v19, %v740_v17  ;;  %v1846_v26 = vadd.f32 %v1480_v24, %v1394_v15  ;;  %v1482_v28 = vpop.f32.mrb[3].mxu0 }
 0x1d2   : > { %v1486_v29 = vadd.f32 %v1845_v22, %v741_v20  ;;  %v1847_v30 = vadd.f32 %v1482_v28, %v1396_v16 }
 0x1d3   : > { %1489 = vst [vmem:[#allocation2] sm:$0xff] %v1485_v25  ;;  %v1487_v31 = vadd.f32 %v1846_v26, %v742_v23 }
 0x1d4   : > { %1490 = vst [vmem:[#allocation2 + $0x8] sm:$0xff] %v1486_v29  ;;  %v1488_v32 = vadd.f32 %v1847_v30, %v743_v27 }
 0x1d5   : > { %1491 = vst [vmem:[#allocation2 + $0x10] sm:$0xff] %v1487_v31 }
 0x1d6   : > { %1492 = vst [vmem:[#allocation2 + $0x18] sm:$0xff] %v1488_v32 }
 0x1da   : > { %v1497_v37 = vld [vmem:[#allocation2] sm:$0xff] }
 0x1db   : > { %v1498_v40 = vld [vmem:[#allocation2 + $0x8] sm:$0xff]  ;;  %v1513_v47 = vmul.f32 %v1506_v43, %v1497_v37 }
 0x1dc   : > { %v1499_v41 = vld [vmem:[#allocation2 + $0x10] sm:$0xff]  ;;  %v1514_v48 = vmul.f32 %v1510_v44, %v1498_v40 }
 0x1dd   : > { %v1500_v42 = vld [vmem:[#allocation2 + $0x18] sm:$0xff]  ;;  %v1515_v49 = vmul.f32 %v1506_v43, %v1499_v41  ;;  %v1529_v51 = vadd.f32 %v1522_v45, %v1513_v47 }
 0x1de   : > { %v1516_v50 = vmul.f32 %v1510_v44, %v1500_v42  ;;  %v1530_v52 = vadd.f32 %v1526_v46, %v1514_v48 }
 0x1df   : > { %v1531_v53 = vadd.f32 %v1522_v45, %v1515_v49  ;;  %v1533_v55 = vmax.f32 %v1529_v51, 0.0 }
 0x1e0   : > { %v1532_v54 = vadd.f32 %v1526_v46, %v1516_v50  ;;  %v1534_v56 = vmax.f32 %v1530_v52, 0.0 }
 0x1e1   : > { %v1535_v57 = vmax.f32 %v1531_v53, 0.0 }
 0x1e2   : > { %v1536_v58 = vmax.f32 %v1532_v54, 0.0  ;;  %v1841_v59 = vpack.c.bf16 %v1534_v56, %v1533_v55 }
 0x1e4   : > { %v1842_v60 = vpack.c.bf16 %v1536_v58, %v1535_v57  ;;  %1549 = vst [vmem:[%s2542_s15] sm:$0xff] %v1841_v59 }
 0x1e6   : > { %1550 = vst [vmem:[%s2542_s15 + $0x8] sm:$0xff] %v1842_v60 }
 0x1e7 PF: > { %1557 = sbr.rel (!%p2306_p12) target bundleno = 495 (0x1ef), region = 109  ;;  %s1843_s21 = sshll.u32 (%p2306_p12), %s2172_s22, 3 }
 0x1e8   : > { %s1563_s29 = scalar_lea.vmem (%p2306_p12), %s2705_s4, %s1843_s21 }
 0x1eb   : > { %v1593_v61 = vld [vmem:[%s2542_s15] sm:$0xff] (%p2306_p12) }
 0x1ec   : > { %1594 = vst [vmem:[%s1563_s29] sm:$0xff] (%p2306_p12), %v1593_v61 }
 0x1ed   : > { %v1595_v62 = vld [vmem:[%s2542_s15 + $0x8] sm:$0xff] (%p2306_p12) }
 0x1ee   : > { %1596 = vst [vmem:[%s1563_s29 + $0x10] sm:$0xff] %v1595_v62 }
 0x1ef PF: > { %s14_s25 = sadd.s32 1, %s2184_s25   ;;  %s2717_s14 = sld [smem:[#allocation6_spill]] }
 0x1f0   : > { %p11_p6 = scmp.ge.s32.totalorder %s14_s25, 14   ;;  %s2718_s30 = sld [smem:[#allocation7_spill]] }
 0x1f1   : > { %s2719_s15 = smov %s2148_s16  ;;  %s2720_s16 = smov %s2304_s13 }
 0x1f2   : > { %s2721_s17 = smov %s2156_s18  ;;  %s2722_s18 = smov %s2301_s12 }
 0x1f3   : > { %s2723_s19 = smov %s2164_s20  ;;  %s2724_s20 = smov %s2287_s7 }
 0x1f4   : > { %s2725_s21 = smov %s2176_s23  ;;  %s2726_s22 = smov %s2180_s24 }
 0x1f5   : > { %s2727_s23 = smov %s2717_s14  ;;  %13 = sbr.rel (!%p11_p6) target bundleno = 9 (0x9), region = 192 }
 0x1f6   : > { %s2728_s24 = smov %s2718_s30 }

</bundles_post_ra>
